<compile_context>
chip_gen: v5e
topology: v5e:2x2
jax: 0.10.0
libtpu: 0.0.40
codegen_flags: <defaults>
</compile_context>

<pallas_src>
import functools
import math

import jax
import jax.numpy as jnp
from jax.experimental import pallas as pl
from jax.experimental.pallas import tpu as pltpu


def _dwconv_gelu_bn_kernel(w_ref, b_ref, g_ref, beta_ref, x_ref, o_ref, pad_ref,
                           *, K, pad, eps):
    N, H, W, Cb = x_ref.shape
    Hp, Wp = H + 2 * pad, W + 2 * pad

    # ---- zero only the halo border (interior is fully overwritten below) ---
    # Re-zeroed every step so results stay correct when the channel grid axis
    # is sharded across TensorCores ("parallel") and each core owns its scratch.
    if pad > 0:
        pad_ref[:, 0:pad, :, :] = jnp.zeros((N, pad, Wp, Cb), jnp.float32)
        pad_ref[:, pad + H:Hp, :, :] = jnp.zeros((N, pad, Wp, Cb), jnp.float32)
        pad_ref[:, pad:pad + H, 0:pad, :] = jnp.zeros((N, H, pad, Cb), jnp.float32)
        pad_ref[:, pad:pad + H, pad + W:Wp, :] = jnp.zeros((N, H, pad, Cb), jnp.float32)
    pad_ref[:, pad:pad + H, pad:pad + W, :] = x_ref[...].astype(jnp.float32)

    wt = w_ref[...].astype(jnp.float32)                       # (K*K, Cb), one load
    bias = b_ref[...].astype(jnp.float32).reshape(1, 1, 1, Cb)
    gamma = g_ref[...].astype(jnp.float32).reshape(1, 1, 1, Cb)
    beta = beta_ref[...].astype(jnp.float32).reshape(1, 1, 1, Cb)

    # ---- depthwise conv: shift-and-accumulate over the K*K taps ------------
    # H shifts index a leading (non-tiled) axis; W shifts are static sublane
    # offsets; the lane (channel) axis is never rotated.
    acc = None
    for kh in range(K):
        for kw in range(K):
            tap = wt[kh * K + kw].reshape(1, 1, 1, Cb)
            term = tap * pad_ref[:, kh:kh + H, kw:kw + W, :]
            acc = term if acc is None else acc + term
    acc = acc + bias

    # ---- exact (erf) GELU, A&S 7.1.26 rational approx (~1.5e-7 abs err) ----
    z = acc * 0.7071067811865476
    az = jnp.abs(z)
    d = 1.0 + 0.3275911 * az
    t = pl.reciprocal(d, approx=True)      # EUP slot
    t = t * (2.0 - d * t)                  # one Newton step -> f32-accurate 1/d
    poly = ((((1.061405429 * t - 1.453152027) * t + 1.421413741) * t
             - 0.284496736) * t + 0.254829592) * t
    e = 1.0 - poly * jnp.exp(-az * az)     # exp rides the EUP slot too
    erf = jnp.where(z >= 0.0, e, -e)
    y = 0.5 * acc * (1.0 + erf)

    # ---- BatchNorm2d (training mode: biased batch stats over N*H*W) --------
    # Single traversal (sum + sum-of-squares); BN affine folded into one
    # per-channel scale/shift so the element loop does a single multiply-add.
    inv_cnt = 1.0 / float(N * H * W)
    s1 = jnp.sum(y, axis=(0, 1, 2), keepdims=True)            # (1,1,1,Cb)
    s2 = jnp.sum(y * y, axis=(0, 1, 2), keepdims=True)
    mean = s1 * inv_cnt
    var = jnp.maximum(s2 * inv_cnt - mean * mean, 0.0)
    inv = jax.lax.rsqrt(var + eps)
    scale = inv * gamma
    shift = beta - mean * scale
    # TODO(synk): BatchNorm running-mean/var buffer updates are stateful and do
    # not affect the forward output; not modeled here.

    # ---- residual straight from the resident input block (aligned read) ----
    res = x_ref[...].astype(jnp.float32)
    o_ref[...] = (y * scale + shift + res).astype(o_ref.dtype)


def _pick_channel_block(N, C, H, W, pad, itemsize):
    """Largest channel block that keeps lanes dense and per-step VMEM modest."""
    if C % 128 != 0:
        return C                       # full-C block (block dim == full array dim)

    def step_bytes(cb):
        io = N * H * W * cb * itemsize
        scratch = N * (H + 2 * pad) * (W + 2 * pad) * cb * 4
        return 2 * 2 * io + scratch    # double-buffered in + out, plus halo scratch

    cb = 128
    while cb * 2 <= C and C % (cb * 2) == 0 and step_bytes(cb * 2) <= 24 * 2**20:
        cb *= 2
    return cb


def depthwise_conv_forward(x, w, b, gamma, beta, *, eps=1e-5):
    """x: (N, C, H, W); w: (C, 1, K, K) depthwise weights; b, gamma, beta: (C,)."""
    N, C, H, W = x.shape
    K = w.shape[-1]
    # TODO(synk): only odd kernel_size handled; torch pads even 'same' asymmetrically.
    pad = K // 2

    # Layout plumbing: channels-last so C sits on the lane axis inside the kernel.
    x_nhwc = jnp.transpose(x, (0, 2, 3, 1))                    # (N, H, W, C)
    wtaps = jnp.transpose(w.reshape(C, K * K), (1, 0))         # (K*K, C)
    b2 = b.reshape(1, C)
    g2 = gamma.reshape(1, C)
    be2 = beta.reshape(1, C)

    itemsize = jnp.dtype(x.dtype).itemsize
    c_blk = _pick_channel_block(N, C, H, W, pad, itemsize)
    grid = (C // c_blk,)

    # Per-step VMEM budget (double-buffered I/O blocks + halo scratch + params).
    io_blk = N * H * W * c_blk * itemsize
    scratch_bytes = N * (H + 2 * pad) * (W + 2 * pad) * c_blk * 4
    est = 2 * 2 * io_blk + scratch_bytes + (K * K + 3) * c_blk * 4
    vmem_limit = int(min(64 * 2**20, max(4 * est, 32 * 2**20)))

    elems = N * C * H * W
    cost = pl.CostEstimate(
        flops=elems * (2 * K * K + 30),
        transcendentals=elems * 2,
        bytes_accessed=2 * elems * itemsize + (K * K + 3) * C * 4)

    kernel = functools.partial(_dwconv_gelu_bn_kernel, K=K, pad=pad, eps=eps)
    out_nhwc = pl.pallas_call(
        kernel,
        out_shape=jax.ShapeDtypeStruct((N, H, W, C), x.dtype),
        grid=grid,
        in_specs=[
            pl.BlockSpec((K * K, c_blk), lambda c: (0, c)),            # conv taps
            pl.BlockSpec((1, c_blk), lambda c: (0, c)),                # conv bias
            pl.BlockSpec((1, c_blk), lambda c: (0, c)),                # bn gamma
            pl.BlockSpec((1, c_blk), lambda c: (0, c)),                # bn beta
            pl.BlockSpec((N, H, W, c_blk), lambda c: (0, 0, 0, c)),    # x (NHWC)
        ],
        out_specs=pl.BlockSpec((N, H, W, c_blk), lambda c: (0, 0, 0, c)),
        scratch_shapes=[
            pltpu.VMEM((N, H + 2 * pad, W + 2 * pad, c_blk), jnp.float32),
        ],
        compiler_params=pltpu.CompilerParams(
            dimension_semantics=("parallel",),   # channel blocks independent; shards across TCs
            vmem_limit_bytes=vmem_limit),
        cost_estimate=cost,
    )(wtaps, b2, g2, be2, x_nhwc)
    # TODO(synk): for production N/H/W where a full channel slab exceeds VMEM,
    # tile H with a halo and use a two-pass (accumulate-then-finalize) BatchNorm.

    return jnp.transpose(out_nhwc, (0, 3, 1, 2))               # back to NCHW


if __name__ == "__main__":
    N, C, H, W, K = 2, 4, 16, 16, 3
    key = jax.random.PRNGKey(0)
    kx, kw_, kb = jax.random.split(key, 3)
    x = jax.random.normal(kx, (N, C, H, W), jnp.float32)

    # Deterministic params mimicking nn.Conv2d / nn.BatchNorm2d init shapes.
    fan_in = 1 * K * K                       # in_channels/groups * K*K
    bound = 1.0 / math.sqrt(fan_in)
    w = jax.random.uniform(kw_, (C, 1, K, K), jnp.float32, -bound, bound)
    b = jax.random.uniform(kb, (C,), jnp.float32, -bound, bound)
    gamma = jnp.ones((C,), jnp.float32)      # BatchNorm2d weight init = 1
    beta = jnp.zeros((C,), jnp.float32)      # BatchNorm2d bias init = 0

    out = jax.block_until_ready(depthwise_conv_forward(x, w, b, gamma, beta))

    # Pure-JAX reference (training-mode BatchNorm with batch statistics).
    conv = jax.lax.conv_general_dilated(
        x, w, window_strides=(1, 1), padding="SAME",
        dimension_numbers=("NCHW", "OIHW", "NCHW"), feature_group_count=C)
    y = conv + b[None, :, None, None]
    y = jax.nn.gelu(y, approximate=False)
    mean = y.mean(axis=(0, 2, 3), keepdims=True)
    var = ((y - mean) ** 2).mean(axis=(0, 2, 3), keepdims=True)
    ref = (y - mean) / jnp.sqrt(var + 1e-5) * gamma[None, :, None, None] \
          + beta[None, :, None, None] + x

    assert out.shape == ref.shape and out.dtype == ref.dtype
    err = float(jnp.max(jnp.abs(out - ref)))
    assert jnp.allclose(out, ref, atol=1e-4, rtol=1e-4), err
    print("KERNEL_OK")
</pallas_src>

<mosaic_0001>
module attributes {stable_mosaic.version = 11 : i64} {
  func.func @_dwconv_gelu_bn_kernel(%arg0: i32, %arg1: memref<9x4xf32, #tpu.memory_space<vmem>>, %arg2: memref<1x4xf32, #tpu.memory_space<vmem>>, %arg3: memref<1x4xf32, #tpu.memory_space<vmem>>, %arg4: memref<1x4xf32, #tpu.memory_space<vmem>>, %arg5: memref<2x16x16x4xf32, #tpu.memory_space<vmem>>, %arg6: memref<2x16x16x4xf32, #tpu.memory_space<vmem>>, %arg7: memref<2x18x18x4xf32, #tpu.memory_space<vmem>>) attributes {dimension_semantics = [#tpu.dimension_semantics<parallel>], iteration_bounds = array<i64: 1>, scalar_prefetch = 0 : i64, scratch_operands = 1 : i64, tpu.core_type = #tpu.core_type<tc>, window_params = [{transform_indices = @transform_0, window_bounds = array<i64: 9, 4>}, {transform_indices = @transform_1, window_bounds = array<i64: 1, 4>}, {transform_indices = @transform_2, window_bounds = array<i64: 1, 4>}, {transform_indices = @transform_3, window_bounds = array<i64: 1, 4>}, {transform_indices = @transform_4, window_bounds = array<i64: 2, 16, 16, 4>}, {transform_indices = @transform_5, window_bounds = array<i64: 2, 16, 16, 4>}]} {
    %cst = arith.constant 0.000000e+00 : f32
    %0 = vector.broadcast %cst : f32 to vector<2x1x18x4xf32>
    %c0 = arith.constant 0 : index
    %c0_0 = arith.constant 0 : index
    %c0_1 = arith.constant 0 : index
    %c0_2 = arith.constant 0 : index
    %1 = vector.load %arg7[%c0, %c0_0, %c0_1, %c0_2] : memref<2x18x18x4xf32, #tpu.memory_space<vmem>>, vector<2x1x18x4xf32>
    tpu.vector_store %arg7[%c0, %c0_0, %c0_1, %c0_2], %0 {strides = array<i32>} : memref<2x18x18x4xf32, #tpu.memory_space<vmem>>, vector<2x1x18x4xf32>,
    %cst_3 = arith.constant 0.000000e+00 : f32
    %2 = vector.broadcast %cst_3 : f32 to vector<2x1x18x4xf32>
    %c0_4 = arith.constant 0 : index
    %c17 = arith.constant 17 : index
    %c0_5 = arith.constant 0 : index
    %c0_6 = arith.constant 0 : index
    %3 = vector.load %arg7[%c0_4, %c17, %c0_5, %c0_6] : memref<2x18x18x4xf32, #tpu.memory_space<vmem>>, vector<2x1x18x4xf32>
    tpu.vector_store %arg7[%c0_4, %c17, %c0_5, %c0_6], %2 {strides = array<i32>} : memref<2x18x18x4xf32, #tpu.memory_space<vmem>>, vector<2x1x18x4xf32>,
    %cst_7 = arith.constant 0.000000e+00 : f32
    %4 = vector.broadcast %cst_7 : f32 to vector<2x16x1x4xf32>
    %c0_8 = arith.constant 0 : index
    %c1 = arith.constant 1 : index
    %c0_9 = arith.constant 0 : index
    %c0_10 = arith.constant 0 : index
    %5 = vector.load %arg7[%c0_8, %c1, %c0_9, %c0_10] : memref<2x18x18x4xf32, #tpu.memory_space<vmem>>, vector<2x16x1x4xf32>
    tpu.vector_store %arg7[%c0_8, %c1, %c0_9, %c0_10], %4 {strides = array<i32>} : memref<2x18x18x4xf32, #tpu.memory_space<vmem>>, vector<2x16x1x4xf32>,
    %cst_11 = arith.constant 0.000000e+00 : f32
    %6 = vector.broadcast %cst_11 : f32 to vector<2x16x1x4xf32>
    %c0_12 = arith.constant 0 : index
    %c1_13 = arith.constant 1 : index
    %c17_14 = arith.constant 17 : index
    %c0_15 = arith.constant 0 : index
    %7 = vector.load %arg7[%c0_12, %c1_13, %c17_14, %c0_15] : memref<2x18x18x4xf32, #tpu.memory_space<vmem>>, vector<2x16x1x4xf32>
    tpu.vector_store %arg7[%c0_12, %c1_13, %c17_14, %c0_15], %6 {strides = array<i32>} : memref<2x18x18x4xf32, #tpu.memory_space<vmem>>, vector<2x16x1x4xf32>,
    %c0_16 = arith.constant 0 : index
    %c0_17 = arith.constant 0 : index
    %c0_18 = arith.constant 0 : index
    %c0_19 = arith.constant 0 : index
    %8 = vector.load %arg5[%c0_16, %c0_17, %c0_18, %c0_19] : memref<2x16x16x4xf32, #tpu.memory_space<vmem>>, vector<2x16x16x4xf32>
    %c0_20 = arith.constant 0 : index
    %c1_21 = arith.constant 1 : index
    %c1_22 = arith.constant 1 : index
    %c0_23 = arith.constant 0 : index
    %9 = vector.load %arg7[%c0_20, %c1_21, %c1_22, %c0_23] : memref<2x18x18x4xf32, #tpu.memory_space<vmem>>, vector<2x16x16x4xf32>
    tpu.vector_store %arg7[%c0_20, %c1_21, %c1_22, %c0_23], %8 {strides = array<i32>} : memref<2x18x18x4xf32, #tpu.memory_space<vmem>>, vector<2x16x16x4xf32>,
    %c0_24 = arith.constant 0 : index
    %c0_25 = arith.constant 0 : index
    %10 = vector.load %arg1[%c0_24, %c0_25] : memref<9x4xf32, #tpu.memory_space<vmem>>, vector<9x4xf32>
    %c0_26 = arith.constant 0 : index
    %c0_27 = arith.constant 0 : index
    %11 = vector.load %arg2[%c0_26, %c0_27] : memref<1x4xf32, #tpu.memory_space<vmem>>, vector<1x4xf32>
    %12 = vector.shape_cast %11 : vector<1x4xf32> to vector<1x1x1x4xf32>
    %c0_28 = arith.constant 0 : index
    %c0_29 = arith.constant 0 : index
    %13 = vector.load %arg3[%c0_28, %c0_29] : memref<1x4xf32, #tpu.memory_space<vmem>>, vector<1x4xf32>
    %14 = vector.shape_cast %13 : vector<1x4xf32> to vector<1x1x1x4xf32>
    %c0_30 = arith.constant 0 : index
    %c0_31 = arith.constant 0 : index
    %15 = vector.load %arg4[%c0_30, %c0_31] : memref<1x4xf32, #tpu.memory_space<vmem>>, vector<1x4xf32>
    %16 = vector.shape_cast %15 : vector<1x4xf32> to vector<1x1x1x4xf32>
    %17 = vector.extract_strided_slice %10 {offsets = [0, 0], sizes = [1, 4], strides = [1, 1]} : vector<9x4xf32> to vector<1x4xf32>
    %18 = vector.shape_cast %17 : vector<1x4xf32> to vector<4xf32>
    %19 = vector.shape_cast %18 : vector<4xf32> to vector<1x1x1x4xf32>
    %c0_32 = arith.constant 0 : index
    %c0_33 = arith.constant 0 : index
    %c0_34 = arith.constant 0 : index
    %c0_35 = arith.constant 0 : index
    %20 = vector.load %arg7[%c0_32, %c0_33, %c0_34, %c0_35] : memref<2x18x18x4xf32, #tpu.memory_space<vmem>>, vector<2x16x16x4xf32>
    %21 = vector.broadcast %19 : vector<1x1x1x4xf32> to vector<2x16x16x4xf32>
    %22 = arith.mulf %21, %20 : vector<2x16x16x4xf32>
    %23 = vector.extract_strided_slice %10 {offsets = [1, 0], sizes = [1, 4], strides = [1, 1]} : vector<9x4xf32> to vector<1x4xf32>
    %24 = vector.shape_cast %23 : vector<1x4xf32> to vector<4xf32>
    %25 = vector.shape_cast %24 : vector<4xf32> to vector<1x1x1x4xf32>
    %c0_36 = arith.constant 0 : index
    %c0_37 = arith.constant 0 : index
    %c1_38 = arith.constant 1 : index
    %c0_39 = arith.constant 0 : index
    %26 = vector.load %arg7[%c0_36, %c0_37, %c1_38, %c0_39] : memref<2x18x18x4xf32, #tpu.memory_space<vmem>>, vector<2x16x16x4xf32>
    %27 = vector.broadcast %25 : vector<1x1x1x4xf32> to vector<2x16x16x4xf32>
    %28 = arith.mulf %27, %26 : vector<2x16x16x4xf32>
    %29 = arith.addf %22, %28 : vector<2x16x16x4xf32>
    %30 = vector.extract_strided_slice %10 {offsets = [2, 0], sizes = [1, 4], strides = [1, 1]} : vector<9x4xf32> to vector<1x4xf32>
    %31 = vector.shape_cast %30 : vector<1x4xf32> to vector<4xf32>
    %32 = vector.shape_cast %31 : vector<4xf32> to vector<1x1x1x4xf32>
    %c0_40 = arith.constant 0 : index
    %c0_41 = arith.constant 0 : index
    %c2 = arith.constant 2 : index
    %c0_42 = arith.constant 0 : index
    %33 = vector.load %arg7[%c0_40, %c0_41, %c2, %c0_42] : memref<2x18x18x4xf32, #tpu.memory_space<vmem>>, vector<2x16x16x4xf32>
    %34 = vector.broadcast %32 : vector<1x1x1x4xf32> to vector<2x16x16x4xf32>
    %35 = arith.mulf %34, %33 : vector<2x16x16x4xf32>
    %36 = arith.addf %29, %35 : vector<2x16x16x4xf32>
    %37 = vector.extract_strided_slice %10 {offsets = [3, 0], sizes = [1, 4], strides = [1, 1]} : vector<9x4xf32> to vector<1x4xf32>
    %38 = vector.shape_cast %37 : vector<1x4xf32> to vector<4xf32>
    %39 = vector.shape_cast %38 : vector<4xf32> to vector<1x1x1x4xf32>
    %c0_43 = arith.constant 0 : index
    %c1_44 = arith.constant 1 : index
    %c0_45 = arith.constant 0 : index
    %c0_46 = arith.constant 0 : index
    %40 = vector.load %arg7[%c0_43, %c1_44, %c0_45, %c0_46] : memref<2x18x18x4xf32, #tpu.memory_space<vmem>>, vector<2x16x16x4xf32>
    %41 = vector.broadcast %39 : vector<1x1x1x4xf32> to vector<2x16x16x4xf32>
    %42 = arith.mulf %41, %40 : vector<2x16x16x4xf32>
    %43 = arith.addf %36, %42 : vector<2x16x16x4xf32>
    %44 = vector.extract_strided_slice %10 {offsets = [4, 0], sizes = [1, 4], strides = [1, 1]} : vector<9x4xf32> to vector<1x4xf32>
    %45 = vector.shape_cast %44 : vector<1x4xf32> to vector<4xf32>
    %46 = vector.shape_cast %45 : vector<4xf32> to vector<1x1x1x4xf32>
    %c0_47 = arith.constant 0 : index
    %c1_48 = arith.constant 1 : index
    %c1_49 = arith.constant 1 : index
    %c0_50 = arith.constant 0 : index
    %47 = vector.load %arg7[%c0_47, %c1_48, %c1_49, %c0_50] : memref<2x18x18x4xf32, #tpu.memory_space<vmem>>, vector<2x16x16x4xf32>
    %48 = vector.broadcast %46 : vector<1x1x1x4xf32> to vector<2x16x16x4xf32>
    %49 = arith.mulf %48, %47 : vector<2x16x16x4xf32>
    %50 = arith.addf %43, %49 : vector<2x16x16x4xf32>
    %51 = vector.extract_strided_slice %10 {offsets = [5, 0], sizes = [1, 4], strides = [1, 1]} : vector<9x4xf32> to vector<1x4xf32>
    %52 = vector.shape_cast %51 : vector<1x4xf32> to vector<4xf32>
    %53 = vector.shape_cast %52 : vector<4xf32> to vector<1x1x1x4xf32>
    %c0_51 = arith.constant 0 : index
    %c1_52 = arith.constant 1 : index
    %c2_53 = arith.constant 2 : index
    %c0_54 = arith.constant 0 : index
    %54 = vector.load %arg7[%c0_51, %c1_52, %c2_53, %c0_54] : memref<2x18x18x4xf32, #tpu.memory_space<vmem>>, vector<2x16x16x4xf32>
    %55 = vector.broadcast %53 : vector<1x1x1x4xf32> to vector<2x16x16x4xf32>
    %56 = arith.mulf %55, %54 : vector<2x16x16x4xf32>
    %57 = arith.addf %50, %56 : vector<2x16x16x4xf32>
    %58 = vector.extract_strided_slice %10 {offsets = [6, 0], sizes = [1, 4], strides = [1, 1]} : vector<9x4xf32> to vector<1x4xf32>
    %59 = vector.shape_cast %58 : vector<1x4xf32> to vector<4xf32>
    %60 = vector.shape_cast %59 : vector<4xf32> to vector<1x1x1x4xf32>
    %c0_55 = arith.constant 0 : index
    %c2_56 = arith.constant 2 : index
    %c0_57 = arith.constant 0 : index
    %c0_58 = arith.constant 0 : index
    %61 = vector.load %arg7[%c0_55, %c2_56, %c0_57, %c0_58] : memref<2x18x18x4xf32, #tpu.memory_space<vmem>>, vector<2x16x16x4xf32>
    %62 = vector.broadcast %60 : vector<1x1x1x4xf32> to vector<2x16x16x4xf32>
    %63 = arith.mulf %62, %61 : vector<2x16x16x4xf32>
    %64 = arith.addf %57, %63 : vector<2x16x16x4xf32>
    %65 = vector.extract_strided_slice %10 {offsets = [7, 0], sizes = [1, 4], strides = [1, 1]} : vector<9x4xf32> to vector<1x4xf32>
    %66 = vector.shape_cast %65 : vector<1x4xf32> to vector<4xf32>
    %67 = vector.shape_cast %66 : vector<4xf32> to vector<1x1x1x4xf32>
    %c0_59 = arith.constant 0 : index
    %c2_60 = arith.constant 2 : index
    %c1_61 = arith.constant 1 : index
    %c0_62 = arith.constant 0 : index
    %68 = vector.load %arg7[%c0_59, %c2_60, %c1_61, %c0_62] : memref<2x18x18x4xf32, #tpu.memory_space<vmem>>, vector<2x16x16x4xf32>
    %69 = vector.broadcast %67 : vector<1x1x1x4xf32> to vector<2x16x16x4xf32>
    %70 = arith.mulf %69, %68 : vector<2x16x16x4xf32>
    %71 = arith.addf %64, %70 : vector<2x16x16x4xf32>
    %72 = vector.extract_strided_slice %10 {offsets = [8, 0], sizes = [1, 4], strides = [1, 1]} : vector<9x4xf32> to vector<1x4xf32>
    %73 = vector.shape_cast %72 : vector<1x4xf32> to vector<4xf32>
    %74 = vector.shape_cast %73 : vector<4xf32> to vector<1x1x1x4xf32>
    %c0_63 = arith.constant 0 : index
    %c2_64 = arith.constant 2 : index
    %c2_65 = arith.constant 2 : index
    %c0_66 = arith.constant 0 : index
    %75 = vector.load %arg7[%c0_63, %c2_64, %c2_65, %c0_66] : memref<2x18x18x4xf32, #tpu.memory_space<vmem>>, vector<2x16x16x4xf32>
    %76 = vector.broadcast %74 : vector<1x1x1x4xf32> to vector<2x16x16x4xf32>
    %77 = arith.mulf %76, %75 : vector<2x16x16x4xf32>
    %78 = arith.addf %71, %77 : vector<2x16x16x4xf32>
    %79 = vector.broadcast %12 : vector<1x1x1x4xf32> to vector<2x16x16x4xf32>
    %80 = arith.addf %78, %79 : vector<2x16x16x4xf32>
    %cst_67 = arith.constant 0.707106769 : f32
    %81 = vector.broadcast %cst_67 : f32 to vector<2x16x16x4xf32>
    %82 = arith.mulf %80, %81 : vector<2x16x16x4xf32>
    %83 = math.absf %82 : vector<2x16x16x4xf32>
    %cst_68 = arith.constant 0.327591091 : f32
    %84 = vector.broadcast %cst_68 : f32 to vector<2x16x16x4xf32>
    %85 = arith.mulf %84, %83 : vector<2x16x16x4xf32>
    %cst_69 = arith.constant 1.000000e+00 : f32
    %86 = vector.broadcast %cst_69 : f32 to vector<2x16x16x4xf32>
    %87 = arith.addf %86, %85 : vector<2x16x16x4xf32>
    %88 = tpu.reciprocal %87 {approx = true} : vector<2x16x16x4xf32> -> vector<2x16x16x4xf32>
    %89 = arith.mulf %87, %88 : vector<2x16x16x4xf32>
    %cst_70 = arith.constant 2.000000e+00 : f32
    %90 = vector.broadcast %cst_70 : f32 to vector<2x16x16x4xf32>
    %91 = arith.subf %90, %89 : vector<2x16x16x4xf32>
    %92 = arith.mulf %88, %91 : vector<2x16x16x4xf32>
    %cst_71 = arith.constant 1.06140542 : f32
    %93 = vector.broadcast %cst_71 : f32 to vector<2x16x16x4xf32>
    %94 = arith.mulf %93, %92 : vector<2x16x16x4xf32>
    %cst_72 = arith.constant 1.45315206 : f32
    %95 = vector.broadcast %cst_72 : f32 to vector<2x16x16x4xf32>
    %96 = arith.subf %94, %95 : vector<2x16x16x4xf32>
    %97 = arith.mulf %96, %92 : vector<2x16x16x4xf32>
    %cst_73 = arith.constant 1.42141378 : f32
    %98 = vector.broadcast %cst_73 : f32 to vector<2x16x16x4xf32>
    %99 = arith.addf %97, %98 : vector<2x16x16x4xf32>
    %100 = arith.mulf %99, %92 : vector<2x16x16x4xf32>
    %cst_74 = arith.constant 0.284496725 : f32
    %101 = vector.broadcast %cst_74 : f32 to vector<2x16x16x4xf32>
    %102 = arith.subf %100, %101 : vector<2x16x16x4xf32>
    %103 = arith.mulf %102, %92 : vector<2x16x16x4xf32>
    %cst_75 = arith.constant 0.254829586 : f32
    %104 = vector.broadcast %cst_75 : f32 to vector<2x16x16x4xf32>
    %105 = arith.addf %103, %104 : vector<2x16x16x4xf32>
    %106 = arith.mulf %105, %92 : vector<2x16x16x4xf32>
    %cst_76 = arith.constant 0.000000e+00 : f32
    %107 = vector.broadcast %cst_76 : f32 to vector<2x16x16x4xf32>
    %108 = arith.subf %107, %83 : vector<2x16x16x4xf32>
    %109 = arith.mulf %108, %83 : vector<2x16x16x4xf32>
    %110 = math.exp %109 : vector<2x16x16x4xf32>
    %111 = arith.mulf %106, %110 : vector<2x16x16x4xf32>
    %cst_77 = arith.constant 1.000000e+00 : f32
    %112 = vector.broadcast %cst_77 : f32 to vector<2x16x16x4xf32>
    %113 = arith.subf %112, %111 : vector<2x16x16x4xf32>
    %cst_78 = arith.constant 0.000000e+00 : f32
    %114 = vector.broadcast %cst_78 : f32 to vector<2x16x16x4xf32>
    %115 = arith.cmpf oge, %82, %114 : vector<2x16x16x4xf32>
    %cst_79 = arith.constant 0.000000e+00 : f32
    %116 = vector.broadcast %cst_79 : f32 to vector<2x16x16x4xf32>
    %117 = arith.subf %116, %113 : vector<2x16x16x4xf32>
    %118 = arith.select %115, %113, %117 : vector<2x16x16x4xi1>, vector<2x16x16x4xf32>
    %cst_80 = arith.constant 5.000000e-01 : f32
    %119 = vector.broadcast %cst_80 : f32 to vector<2x16x16x4xf32>
    %120 = arith.mulf %119, %80 : vector<2x16x16x4xf32>
    %cst_81 = arith.constant 1.000000e+00 : f32
    %121 = vector.broadcast %cst_81 : f32 to vector<2x16x16x4xf32>
    %122 = arith.addf %121, %118 : vector<2x16x16x4xf32>
    %123 = arith.mulf %120, %122 : vector<2x16x16x4xf32>
    %cst_82 = arith.constant dense<0.000000e+00> : vector<4xf32>
    %124 = vector.multi_reduction <add>, %123, %cst_82 [0, 1, 2] : vector<2x16x16x4xf32> to vector<4xf32>
    %125 = vector.shape_cast %124 : vector<4xf32> to vector<1x1x1x4xf32>
    %126 = arith.mulf %123, %123 : vector<2x16x16x4xf32>
    %cst_83 = arith.constant dense<0.000000e+00> : vector<4xf32>
    %127 = vector.multi_reduction <add>, %126, %cst_83 [0, 1, 2] : vector<2x16x16x4xf32> to vector<4xf32>
    %128 = vector.shape_cast %127 : vector<4xf32> to vector<1x1x1x4xf32>
    %cst_84 = arith.constant 0.001953125 : f32
    %129 = vector.broadcast %cst_84 : f32 to vector<1x1x1x4xf32>
    %130 = arith.mulf %125, %129 : vector<1x1x1x4xf32>
    %cst_85 = arith.constant 0.001953125 : f32
    %131 = vector.broadcast %cst_85 : f32 to vector<1x1x1x4xf32>
    %132 = arith.mulf %128, %131 : vector<1x1x1x4xf32>
    %133 = arith.mulf %130, %130 : vector<1x1x1x4xf32>
    %134 = arith.subf %132, %133 : vector<1x1x1x4xf32>
    %cst_86 = arith.constant 0.000000e+00 : f32
    %135 = vector.broadcast %cst_86 : f32 to vector<1x1x1x4xf32>
    %136 = arith.maximumf %134, %135 : vector<1x1x1x4xf32>
    %cst_87 = arith.constant 9.99999974E-6 : f32
    %137 = vector.broadcast %cst_87 : f32 to vector<1x1x1x4xf32>
    %138 = arith.addf %136, %137 : vector<1x1x1x4xf32>
    %139 = math.rsqrt %138 : vector<1x1x1x4xf32>
    %140 = arith.mulf %139, %14 : vector<1x1x1x4xf32>
    %141 = arith.mulf %130, %140 : vector<1x1x1x4xf32>
    %142 = arith.subf %16, %141 : vector<1x1x1x4xf32>
    %c0_88 = arith.constant 0 : index
    %c0_89 = arith.constant 0 : index
    %c0_90 = arith.constant 0 : index
    %c0_91 = arith.constant 0 : index
    %143 = vector.load %arg5[%c0_88, %c0_89, %c0_90, %c0_91] : memref<2x16x16x4xf32, #tpu.memory_space<vmem>>, vector<2x16x16x4xf32>
    %144 = vector.broadcast %140 : vector<1x1x1x4xf32> to vector<2x16x16x4xf32>
    %145 = arith.mulf %123, %144 : vector<2x16x16x4xf32>
    %146 = vector.broadcast %142 : vector<1x1x1x4xf32> to vector<2x16x16x4xf32>
    %147 = arith.addf %145, %146 : vector<2x16x16x4xf32>
    %148 = arith.addf %147, %143 : vector<2x16x16x4xf32>
    %c0_92 = arith.constant 0 : index
    %c0_93 = arith.constant 0 : index
    %c0_94 = arith.constant 0 : index
    %c0_95 = arith.constant 0 : index
    %149 = vector.load %arg6[%c0_92, %c0_93, %c0_94, %c0_95] : memref<2x16x16x4xf32, #tpu.memory_space<vmem>>, vector<2x16x16x4xf32>
    tpu.vector_store %arg6[%c0_92, %c0_93, %c0_94, %c0_95], %148 {strides = array<i32>} : memref<2x16x16x4xf32, #tpu.memory_space<vmem>>, vector<2x16x16x4xf32>,
    return
  }
  func.func @transform_0(%arg0: i32) -> (i32, i32) {
    %c0_i32 = arith.constant 0 : i32
    %c0_i32_0 = arith.constant 0 : i32
    return %c0_i32, %arg0 : i32, i32
  }
  func.func @transform_1(%arg0: i32) -> (i32, i32) {
    %c0_i32 = arith.constant 0 : i32
    %c0_i32_0 = arith.constant 0 : i32
    return %c0_i32, %arg0 : i32, i32
  }
  func.func @transform_2(%arg0: i32) -> (i32, i32) {
    %c0_i32 = arith.constant 0 : i32
    %c0_i32_0 = arith.constant 0 : i32
    return %c0_i32, %arg0 : i32, i32
  }
  func.func @transform_3(%arg0: i32) -> (i32, i32) {
    %c0_i32 = arith.constant 0 : i32
    %c0_i32_0 = arith.constant 0 : i32
    return %c0_i32, %arg0 : i32, i32
  }
  func.func @transform_4(%arg0: i32) -> (i32, i32, i32, i32) {
    %c0_i32 = arith.constant 0 : i32
    %c0_i32_0 = arith.constant 0 : i32
    %c0_i32_1 = arith.constant 0 : i32
    %c0_i32_2 = arith.constant 0 : i32
    return %c0_i32, %c0_i32_0, %c0_i32_1, %arg0 : i32, i32, i32, i32
  }
  func.func @transform_5(%arg0: i32) -> (i32, i32, i32, i32) {
    %c0_i32 = arith.constant 0 : i32
    %c0_i32_0 = arith.constant 0 : i32
    %c0_i32_1 = arith.constant 0 : i32
    %c0_i32_2 = arith.constant 0 : i32
    return %c0_i32, %c0_i32_0, %c0_i32_1, %arg0 : i32, i32, i32, i32
  }
}

</mosaic_0001>

<bundles_post_ra>
// kernel: tpu_custom_call.1
= control target key start
LH: loop header
LB: loop body
LE: loop exit
PB: predicated region body
PF: predicated region fallthrough
CT: control target
= control target key end

     0   :  { %vm20_vm0 = vcmask 31744   ;;  %v4908_v0 = vmov 0.0   ;;  %vm23_vm1 = vcmask 25600   ;;  %vm36_vm2 = vcmask 24576   ;;  %s9934_s0 = inlined_call_operand.vmem [shape: f32[9,4], index: 0, kind: input, shape index: {}]   ;;  %s9935_s1 = inlined_call_operand.vmem [shape: f32[1,4], index: 1, kind: input, shape index: {}]   ;;  %s9936_s4 = inlined_call_operand.vmem [shape: f32[2,16,16,4], index: 4, kind: input, shape index: {}]   ;;  %s9937_s2 = inlined_call_operand.vmem [shape: f32[1,4], index: 2, kind: input, shape index: {}]   ;;  %s9938_s3 = inlined_call_operand.vmem [shape: f32[1,4], index: 3, kind: input, shape index: {}]   ;;  %s9939_s5 = inlined_call_operand.vmem [shape: f32[2,16,16,4], index: 5, kind: output, shape index: {}]  }
   0x1   :  { %21 = vst.msk [vmem:[#allocation2] sm:$0xff] %vm20_vm0, %v4908_v0  ;;  %v101_v1 = vld [vmem:[%s9936_s4] sm:$0xff]  ;;  %v102_v2 = vld [vmem:[%s9936_s4 + $0x8] sm:$0xff]  ;;  %v103_v3 = vld [vmem:[%s9936_s4 + $0x10] sm:$0xff] }
   0x2   :  { %22 = vst.msk [vmem:[#allocation2 + $0x8] sm:$0xff] %vm20_vm0, %v4908_v0  ;;  %v104_v4 = vld [vmem:[%s9936_s4 + $0x18] sm:$0xff]  ;;  %v105_v5 = vld [vmem:[%s9936_s4 + $0x20] sm:$0xff]  ;;  %v106_v6 = vld [vmem:[%s9936_s4 + $0x28] sm:$0xff] }
   0x3   :  { %25 = vst.msk [vmem:[#allocation2 + $0x1b0] sm:$0xff] %vm20_vm0, %v4908_v0  ;;  %v107_v7 = vld [vmem:[%s9936_s4 + $0x30] sm:$0xff]  ;;  %v108_v8 = vld [vmem:[%s9936_s4 + $0x38] sm:$0xff]  ;;  %v109_v9 = vld [vmem:[%s9936_s4 + $0x40] sm:$0xff] }
   0x4   :  { %26 = vst.msk [vmem:[#allocation2 + $0x1b8] sm:$0xff] %vm20_vm0, %v4908_v0  ;;  %v110_v10 = vld [vmem:[%s9936_s4 + $0x48] sm:$0xff]  ;;  %v111_v11 = vld [vmem:[%s9936_s4 + $0x50] sm:$0xff]  ;;  %v112_v12 = vld [vmem:[%s9936_s4 + $0x58] sm:$0xff] }
   0x5   :  { %29 = vst.msk [vmem:[#allocation2 + $0x198] sm:$0xff] %vm20_vm0, %v4908_v0  ;;  %v113_v13 = vld [vmem:[%s9936_s4 + $0x60] sm:$0xff]  ;;  %v114_v14 = vld [vmem:[%s9936_s4 + $0x68] sm:$0xff]  ;;  %v115_v15 = vld [vmem:[%s9936_s4 + $0x70] sm:$0xff] }
   0x6   :  { %30 = vst.msk [vmem:[#allocation2 + $0x1a0] sm:$0xff] %vm20_vm0, %v4908_v0  ;;  %v116_v16 = vld [vmem:[%s9936_s4 + $0x78] sm:$0xff]  ;;  %v117_v17 = vld [vmem:[%s9936_s4 + $0x80] sm:$0xff]  ;;  %v118_v18 = vld [vmem:[%s9936_s4 + $0x88] sm:$0xff] }
   0x7   :  { %32 = vst.msk [vmem:[#allocation2 + $0x348] sm:$0xff] %vm20_vm0, %v4908_v0  ;;  %v119_v19 = vld [vmem:[%s9936_s4 + $0x90] sm:$0xff]  ;;  %v120_v20 = vld [vmem:[%s9936_s4 + $0x98] sm:$0xff]  ;;  %v121_v21 = vld [vmem:[%s9936_s4 + $0xa0] sm:$0xff] }
   0x8   :  { %33 = vst.msk [vmem:[#allocation2 + $0x350] sm:$0xff] %vm20_vm0, %v4908_v0  ;;  %v122_v22 = vld [vmem:[%s9936_s4 + $0xa8] sm:$0xff]  ;;  %v123_v23 = vld [vmem:[%s9936_s4 + $0xb0] sm:$0xff]  ;;  %v229_v24 = vld [vmem:[%s9934_s0] sm:$0xff] }
   0x9   :  { %24 = vst.msk [vmem:[#allocation2 + $0x10] sm:$0x3] %vm23_vm1, %v4908_v0  ;;  %v5182_v25 = vperm.slane %v229_v24, 0  ;;  %v235_v26 = vld [vmem:[#allocation2 + $0x8] sm:$0xff]  ;;  %v5184_v29 = vperm.slane %v229_v24, 1  ;;  %v5196_v42 = vperm.slane %v229_v24, 2 }
   0xa   :  { %27 = vst.msk [vmem:[#allocation2 + $0x1c0] sm:$0x3] %vm23_vm1, %v4908_v0  ;;  %v266_v27 = vld [vmem:[#allocation2 + $0x1b0] sm:$0xff]  ;;  %v124_v44 = vld [vmem:[%s9936_s4 + $0xb8] sm:$0xff]  ;;  %v234_v50 = vld [vmem:[#allocation2] sm:$0xff] }
   0xb   :  { %31 = vst.msk [vmem:[#allocation2 + $0x1a8] sm:$0x3] %vm23_vm1, %v4908_v0  ;;  %v267_v28 = vld [vmem:[#allocation2 + $0x1b8] sm:$0xff]  ;;  %v300_v33 = vmul.f32 %v5182_v25, %v235_v26  ;;  %v331_v34 = vmul.f32 %v5182_v25, %v266_v27  ;;  %v363_v51 = vld [vmem:[#allocation2 + $0x1] sm:$0xff]  ;;  %v5214_v62 = vmul.f32 %v5182_v25, %v234_v50 }
   0xc   :  { %34 = vst.msk [vmem:[#allocation2 + $0x358] sm:$0x3] %vm23_vm1, %v4908_v0  ;;  %v395_v30 = vld [vmem:[#allocation2 + $0x1b1] sm:$0xff]  ;;  %v332_v37 = vmul.f32 %v5182_v25, %v267_v28  ;;  %v5217_v63 = vmul.f32 %v5184_v29, %v363_v51 }
   0xd   :  { %37 = vst.msk [vmem:[#allocation2 + $0x18] sm:$0x1] %vm36_vm2, %v4908_v0  ;;  %v460_v38 = vmul.f32 %v5184_v29, %v395_v30  ;;  %v588_v39 = vld [vmem:[#allocation2 + $0x1b2] sm:$0xff]  ;;  %v1360_v57 = vld [vmem:[#allocation2 + $0x1a0] sm:$0xff] }
   0xe   :  { %38 = vst.msk [vmem:[#allocation2 + $0x30] sm:$0x1] %vm36_vm2, %v4908_v0  ;;  %v653_v48 = vmul.f32 %v5196_v42, %v588_v39  ;;  %v1359_v56 = vld [vmem:[#allocation2 + $0x198] sm:$0xff] }
   0xf   :  { %39 = vst.msk [vmem:[#allocation2 + $0x48] sm:$0x1] %vm36_vm2, %v4908_v0  ;;  %v524_v52 = vadd.f32 %v460_v38, %v331_v34  ;;  %v1552_v58 = vld [vmem:[#allocation2 + $0x199] sm:$0xff]  ;;  %v1777_v27 = vld [vmem:[#allocation2 + $0x34a] sm:$0xff] }
  0x10   :  { %40 = vst.msk [vmem:[#allocation2 + $0x60] sm:$0x1] %vm36_vm2, %v4908_v0  ;;  %v364_v31 = vld [vmem:[#allocation2 + $0x9] sm:$0xff] }
  0x11   :  { %41 = vst.msk [vmem:[#allocation2 + $0x78] sm:$0x1] %vm36_vm2, %v4908_v0  ;;  %v396_v32 = vld [vmem:[#allocation2 + $0x1b9] sm:$0xff]  ;;  %v429_v40 = vmul.f32 %v5184_v29, %v364_v31  ;;  %v557_v47 = vld [vmem:[#allocation2 + $0xa] sm:$0xff] }
  0x12   :  { %42 = vst.msk [vmem:[#allocation2 + $0x90] sm:$0x1] %vm36_vm2, %v4908_v0  ;;  %v461_v41 = vmul.f32 %v5184_v29, %v396_v32  ;;  %v589_v43 = vld [vmem:[#allocation2 + $0x1ba] sm:$0xff]  ;;  %v622_v59 = vmul.f32 %v5196_v42, %v557_v47  ;;  %v1746_v28 = vld [vmem:[#allocation2 + $0x1a2] sm:$0xff] }
  0x13   :  { %43 = vst.msk [vmem:[#allocation2 + $0xa8] sm:$0x1] %vm36_vm2, %v4908_v0  ;;  %v493_v53 = vadd.f32 %v429_v40, %v300_v33  ;;  %v654_v55 = vmul.f32 %v5196_v42, %v589_v43 }
  0x14   :  { %44 = vst.msk [vmem:[#allocation2 + $0xc0] sm:$0x1] %vm36_vm2, %v4908_v0  ;;  %v525_v54 = vadd.f32 %v461_v41, %v332_v37  ;;  %v5261_v37 = vld [vmem:[%s9934_s0 + $0x8] ss:$0 sm:$0xff] }
  0x15   :  { %45 = vst.msk [vmem:[#allocation2 + $0xd8] sm:$0x1] %vm36_vm2, %v4908_v0 }
  0x16   :  { %46 = vst.msk [vmem:[#allocation2 + $0xf0] sm:$0x1] %vm36_vm2, %v4908_v0 }
  0x17   :  { %47 = vst.msk [vmem:[#allocation2 + $0x108] sm:$0x1] %vm36_vm2, %v4908_v0 }
  0x18   :  { %48 = vst.msk [vmem:[#allocation2 + $0x120] sm:$0x1] %vm36_vm2, %v4908_v0 }
  0x19   :  { %49 = vst.msk [vmem:[#allocation2 + $0x138] sm:$0x1] %vm36_vm2, %v4908_v0 }
  0x1a   :  { %50 = vst.msk [vmem:[#allocation2 + $0x150] sm:$0x1] %vm36_vm2, %v4908_v0 }
  0x1b   :  { %51 = vst.msk [vmem:[#allocation2 + $0x168] sm:$0x1] %vm36_vm2, %v4908_v0 }
  0x1c   :  { %52 = vst.msk [vmem:[#allocation2 + $0x180] sm:$0x1] %vm36_vm2, %v4908_v0 }
  0x1d   :  { %53 = vst.msk [vmem:[#allocation2 + $0x1c8] sm:$0x1] %vm36_vm2, %v4908_v0 }
  0x1e   :  { %54 = vst.msk [vmem:[#allocation2 + $0x1e0] sm:$0x1] %vm36_vm2, %v4908_v0 }
  0x1f   :  { %55 = vst.msk [vmem:[#allocation2 + $0x1f8] sm:$0x1] %vm36_vm2, %v4908_v0 }
  0x20   :  { %56 = vst.msk [vmem:[#allocation2 + $0x210] sm:$0x1] %vm36_vm2, %v4908_v0 }
  0x21   :  { %57 = vst.msk [vmem:[#allocation2 + $0x228] sm:$0x1] %vm36_vm2, %v4908_v0 }
  0x22   :  { %58 = vst.msk [vmem:[#allocation2 + $0x240] sm:$0x1] %vm36_vm2, %v4908_v0 }
  0x23   :  { %59 = vst.msk [vmem:[#allocation2 + $0x258] sm:$0x1] %vm36_vm2, %v4908_v0 }
  0x24   :  { %60 = vst.msk [vmem:[#allocation2 + $0x270] sm:$0x1] %vm36_vm2, %v4908_v0 }
  0x25   :  { %61 = vst.msk [vmem:[#allocation2 + $0x288] sm:$0x1] %vm36_vm2, %v4908_v0 }
  0x26   :  { %62 = vst.msk [vmem:[#allocation2 + $0x2a0] sm:$0x1] %vm36_vm2, %v4908_v0 }
  0x27   :  { %63 = vst.msk [vmem:[#allocation2 + $0x2b8] sm:$0x1] %vm36_vm2, %v4908_v0 }
  0x28   :  { %64 = vst.msk [vmem:[#allocation2 + $0x2d0] sm:$0x1] %vm36_vm2, %v4908_v0 }
  0x29   :  { %65 = vst.msk [vmem:[#allocation2 + $0x2e8] sm:$0x1] %vm36_vm2, %v4908_v0 }
  0x2a   :  { %66 = vst.msk [vmem:[#allocation2 + $0x300] sm:$0x1] %vm36_vm2, %v4908_v0 }
  0x2b   :  { %67 = vst.msk [vmem:[#allocation2 + $0x318] sm:$0x1] %vm36_vm2, %v4908_v0 }
  0x2c   :  { %68 = vst.msk [vmem:[#allocation2 + $0x330] sm:$0x1] %vm36_vm2, %v4908_v0 }
  0x2d   :  { %69 = vst.msk [vmem:[#allocation2 + $0x29] sm:$0x1] %vm36_vm2, %v4908_v0 }
  0x2e   :  { %70 = vst.msk [vmem:[#allocation2 + $0x41] sm:$0x1] %vm36_vm2, %v4908_v0 }
  0x2f   :  { %71 = vst.msk [vmem:[#allocation2 + $0x59] sm:$0x1] %vm36_vm2, %v4908_v0 }
  0x30   :  { %72 = vst.msk [vmem:[#allocation2 + $0x71] sm:$0x1] %vm36_vm2, %v4908_v0 }
  0x31   :  { %73 = vst.msk [vmem:[#allocation2 + $0x89] sm:$0x1] %vm36_vm2, %v4908_v0 }
  0x32   :  { %74 = vst.msk [vmem:[#allocation2 + $0xa1] sm:$0x1] %vm36_vm2, %v4908_v0 }
  0x33   :  { %75 = vst.msk [vmem:[#allocation2 + $0xb9] sm:$0x1] %vm36_vm2, %v4908_v0 }
  0x34   :  { %76 = vst.msk [vmem:[#allocation2 + $0xd1] sm:$0x1] %vm36_vm2, %v4908_v0 }
  0x35   :  { %77 = vst.msk [vmem:[#allocation2 + $0xe9] sm:$0x1] %vm36_vm2, %v4908_v0 }
  0x36   :  { %78 = vst.msk [vmem:[#allocation2 + $0x101] sm:$0x1] %vm36_vm2, %v4908_v0 }
  0x37   :  { %79 = vst.msk [vmem:[#allocation2 + $0x119] sm:$0x1] %vm36_vm2, %v4908_v0 }
  0x38   :  { %80 = vst.msk [vmem:[#allocation2 + $0x131] sm:$0x1] %vm36_vm2, %v4908_v0 }
  0x39   :  { %81 = vst.msk [vmem:[#allocation2 + $0x149] sm:$0x1] %vm36_vm2, %v4908_v0 }
  0x3a   :  { %82 = vst.msk [vmem:[#allocation2 + $0x161] sm:$0x1] %vm36_vm2, %v4908_v0 }
  0x3b   :  { %83 = vst.msk [vmem:[#allocation2 + $0x179] sm:$0x1] %vm36_vm2, %v4908_v0 }
  0x3c   :  { %84 = vst.msk [vmem:[#allocation2 + $0x191] sm:$0x1] %vm36_vm2, %v4908_v0 }
  0x3d   :  { %85 = vst.msk [vmem:[#allocation2 + $0x1d9] sm:$0x1] %vm36_vm2, %v4908_v0 }
  0x3e   :  { %86 = vst.msk [vmem:[#allocation2 + $0x1f1] sm:$0x1] %vm36_vm2, %v4908_v0 }
  0x3f   :  { %87 = vst.msk [vmem:[#allocation2 + $0x209] sm:$0x1] %vm36_vm2, %v4908_v0 }
  0x40   :  { %88 = vst.msk [vmem:[#allocation2 + $0x221] sm:$0x1] %vm36_vm2, %v4908_v0 }
  0x41   :  { %89 = vst.msk [vmem:[#allocation2 + $0x239] sm:$0x1] %vm36_vm2, %v4908_v0 }
  0x42   :  { %90 = vst.msk [vmem:[#allocation2 + $0x251] sm:$0x1] %vm36_vm2, %v4908_v0 }
  0x43   :  { %91 = vst.msk [vmem:[#allocation2 + $0x269] sm:$0x1] %vm36_vm2, %v4908_v0 }
  0x44   :  { %92 = vst.msk [vmem:[#allocation2 + $0x281] sm:$0x1] %vm36_vm2, %v4908_v0 }
  0x45   :  { %93 = vst.msk [vmem:[#allocation2 + $0x299] sm:$0x1] %vm36_vm2, %v4908_v0 }
  0x46   :  { %94 = vst.msk [vmem:[#allocation2 + $0x2b1] sm:$0x1] %vm36_vm2, %v4908_v0 }
  0x47   :  { %95 = vst.msk [vmem:[#allocation2 + $0x2c9] sm:$0x1] %vm36_vm2, %v4908_v0 }
  0x48   :  { %96 = vst.msk [vmem:[#allocation2 + $0x2e1] sm:$0x1] %vm36_vm2, %v4908_v0 }
  0x49   :  { %97 = vst.msk [vmem:[#allocation2 + $0x2f9] sm:$0x1] %vm36_vm2, %v4908_v0 }
  0x4a   :  { %98 = vst.msk [vmem:[#allocation2 + $0x311] sm:$0x1] %vm36_vm2, %v4908_v0 }
  0x4b   :  { %99 = vst.msk [vmem:[#allocation2 + $0x329] sm:$0x1] %vm36_vm2, %v4908_v0 }
  0x4c   :  { %100 = vst.msk [vmem:[#allocation2 + $0x341] sm:$0x1] %vm36_vm2, %v4908_v0  ;;  %v1391_v0 = vld [vmem:[#allocation2 + $0x348] sm:$0xff] }
  0x4d   :  { %165 = vst.msk [vmem:[#allocation2 + $0x19] sm:$0xff] %vm20_vm0, %v101_v1  ;;  %v1392_v1 = vld [vmem:[#allocation2 + $0x350] sm:$0xff] }
  0x4e   :  { %166 = vst.msk [vmem:[#allocation2 + $0x21] sm:$0xff] %vm20_vm0, %v102_v2  ;;  %v1584_v2 = vld [vmem:[#allocation2 + $0x349] sm:$0xff] }
  0x4f   :  { %167 = vst.msk [vmem:[#allocation2 + $0x31] sm:$0xff] %vm20_vm0, %v103_v3  ;;  %v5219_v3 = vperm.slane %v229_v24, 6 }
  0x50   :  { %168 = vst.msk [vmem:[#allocation2 + $0x39] sm:$0xff] %vm20_vm0, %v104_v4  ;;  %v1745_v4 = vld [vmem:[#allocation2 + $0x19a] sm:$0xff] }
  0x51   :  { %169 = vst.msk [vmem:[#allocation2 + $0x49] sm:$0xff] %vm20_vm0, %v105_v5  ;;  %v686_v5 = vadd.f32 %v622_v59, %v493_v53  ;;  %v5253_v33 = vmul.f32 %v5219_v3, %v1392_v1 }
  0x52   :  { %170 = vst.msk [vmem:[#allocation2 + $0x51] sm:$0xff] %vm20_vm0, %v106_v6  ;;  %v5221_v6 = vadd.f32 %v653_v48, %v524_v52  ;;  %v5284_v52 = vmul.f32 %v5261_v37, %v1745_v4  ;;  %v5301_v4 = vmul.f32 %v5261_v37, %v1777_v27 }
  0x53   :  { %171 = vst.msk [vmem:[#allocation2 + $0x61] sm:$0xff] %vm20_vm0, %v107_v7  ;;  %v5223_v7 = vadd.f32 %v654_v55, %v525_v54  ;;  %v5291_v55 = vmul.f32 %v5261_v37, %v1746_v28 }
  0x54   :  { %172 = vst.msk [vmem:[#allocation2 + $0x69] sm:$0xff] %vm20_vm0, %v108_v8  ;;  %v1553_v8 = vld [vmem:[#allocation2 + $0x1a1] sm:$0xff] }
  0x55   :  { %173 = vst.msk [vmem:[#allocation2 + $0x79] sm:$0xff] %vm20_vm0, %v109_v9  ;;  %v236_v9 = vld [vmem:[#allocation2 + $0x18] sm:$0xff] }
  0x56   :  { %174 = vst.msk [vmem:[#allocation2 + $0x81] sm:$0xff] %vm20_vm0, %v110_v10  ;;  %v365_v10 = vld [vmem:[#allocation2 + $0x19] sm:$0xff]  ;;  %v301_v30 = vmul.f32 %v5182_v25, %v236_v9  ;;  %v238_v38 = vld [vmem:[#allocation2 + $0x30] sm:$0xff] }
  0x57   :  { %175 = vst.msk [vmem:[#allocation2 + $0x91] sm:$0xff] %vm20_vm0, %v111_v11  ;;  %v5225_v11 = vperm.slane %v229_v24, 3  ;;  %v430_v31 = vmul.f32 %v5184_v29, %v365_v10  ;;  %v558_v32 = vld [vmem:[#allocation2 + $0x1a] sm:$0xff]  ;;  %v367_v39 = vld [vmem:[#allocation2 + $0x31] sm:$0xff] }
  0x58   :  { %176 = vst.msk [vmem:[#allocation2 + $0x99] sm:$0xff] %vm20_vm0, %v112_v12  ;;  %v5227_v12 = vperm.slane %v229_v24, 4  ;;  %v623_v54 = vmul.f32 %v5196_v42, %v558_v32 }
  0x59   :  { %177 = vst.msk [vmem:[#allocation2 + $0xa9] sm:$0xff] %vm20_vm0, %v113_v13  ;;  %v5229_v13 = vperm.slane %v229_v24, 5  ;;  %v5281_v51 = vld [vmem:[#allocation2 + $0x4a] sm:$0xff] }
  0x5a   :  { %178 = vst.msk [vmem:[#allocation2 + $0xb1] sm:$0xff] %vm20_vm0, %v114_v14  ;;  %v5231_v14 = vperm.slane %v229_v24, 7  ;;  %v5312_v32 = vld [vmem:[#allocation2 + $0x61] sm:$0xff] }
  0x5b   :  { %179 = vst.msk [vmem:[#allocation2 + $0xc1] sm:$0xff] %vm20_vm0, %v115_v15  ;;  %v5234_v15 = vmul.f32 %v5219_v3, %v1359_v56 }
  0x5c   :  { %180 = vst.msk [vmem:[#allocation2 + $0xc9] sm:$0xff] %vm20_vm0, %v116_v16  ;;  %v5188_v35 = vld [vmem:[#allocation2 + $0x78] sm:$0xff]  ;;  %v5236_v16 = vld [vmem:[#allocation2 + $0x48] sm:$0xff]  ;;  %v5256_v34 = vmul.f32 %v5231_v14, %v1552_v58  ;;  %v5264_v40 = vmul.f32 %v5231_v14, %v1553_v8  ;;  %v5267_v41 = vmul.f32 %v5231_v14, %v1584_v2  ;;  %v494_v58 = vadd.f32 %v430_v31, %v301_v30  ;;  %v5310_v31 = vld [vmem:[#allocation2 + $0x60] sm:$0xff] }
  0x5d   :  { %181 = vst.msk [vmem:[#allocation2 + $0xd9] sm:$0xff] %vm20_vm0, %v117_v17  ;;  %v5190_v36 = vld [vmem:[#allocation2 + $0x79] sm:$0xff]  ;;  %v309_v45 = vmul.f32 %v5182_v25, %v5188_v35  ;;  %v5238_v17 = vld [vmem:[#allocation2 + $0x49] sm:$0xff]  ;;  %v305_v43 = vmul.f32 %v5182_v25, %v5236_v16  ;;  %v627_v2 = vmul.f32 %v5196_v42, %v5281_v51 }
  0x5e   :  { %182 = vst.msk [vmem:[#allocation2 + $0xe1] sm:$0xff] %vm20_vm0, %v118_v18  ;;  %v438_v46 = vmul.f32 %v5184_v29, %v5190_v36  ;;  %v5207_v49 = vld [vmem:[#allocation2 + $0x7a] sm:$0xff]  ;;  %v5240_v18 = vld [vmem:[#allocation2 + $0x90] sm:$0xff] }
  0x5f   :  { %183 = vst.msk [vmem:[#allocation2 + $0xf1] sm:$0xff] %vm20_vm0, %v119_v19  ;;  %v631_v61 = vmul.f32 %v5196_v42, %v5207_v49  ;;  %v1585_v19 = vld [vmem:[#allocation2 + $0x351] sm:$0xff]  ;;  %v824_v26 = vmul.f32 %v5225_v11, %v5240_v18  ;;  %v311_v27 = vmul.f32 %v5182_v25, %v5240_v18 }
  0x60   :  { %184 = vst.msk [vmem:[#allocation2 + $0xf9] sm:$0xff] %vm20_vm0, %v120_v20  ;;  %v502_v60 = vadd.f32 %v438_v46, %v309_v45  ;;  %v237_v20 = vld [vmem:[#allocation2 + $0x20] sm:$0xff]  ;;  %v1778_v46 = vld [vmem:[#allocation2 + $0x352] sm:$0xff]  ;;  %v5279_v50 = vmul.f32 %v5231_v14, %v1585_v19 }
  0x61   :  { %185 = vst.msk [vmem:[#allocation2 + $0x109] sm:$0xff] %vm20_vm0, %v121_v21  ;;  %v366_v21 = vld [vmem:[#allocation2 + $0x21] sm:$0xff]  ;;  %v302_v47 = vmul.f32 %v5182_v25, %v237_v20  ;;  %v5286_v53 = vld [vmem:[#allocation2 + $0x91] sm:$0xff]  ;;  %v815_v59 = vmul.f32 %v5225_v11, %v237_v20  ;;  %v5304_v8 = vmul.f32 %v5261_v37, %v1778_v46  ;;  %v816_v20 = vmul.f32 %v5225_v11, %v238_v38 }
  0x62   :  { %186 = vst.msk [vmem:[#allocation2 + $0x111] sm:$0xff] %vm20_vm0, %v122_v22  ;;  %v5243_v22 = vmul.f32 %v5219_v3, %v1360_v57  ;;  %v695_v24 = vadd.f32 %v631_v61, %v502_v60  ;;  %v125_v45 = vld [vmem:[%s9936_s4 + $0xc0] sm:$0xff]  ;;  %v431_v48 = vmul.f32 %v5184_v29, %v366_v21  ;;  %v1017_v57 = vmul.f32 %v5227_v12, %v5286_v53  ;;  %v5308_v28 = vld [vmem:[#allocation2 + $0x92] sm:$0xff] }
  0x63   :  { %187 = vst.msk [vmem:[#allocation2 + $0x121] sm:$0xff] %vm20_vm0, %v123_v23  ;;  %v5246_v23 = vmul.f32 %v5219_v3, %v1391_v0  ;;  %v303_v60 = vmul.f32 %v5182_v25, %v238_v38  ;;  %v432_v61 = vmul.f32 %v5184_v29, %v367_v39  ;;  %v559_v0 = vld [vmem:[#allocation2 + $0x22] sm:$0xff]  ;;  %v879_v10 = vadd.f32 %v815_v59, %v686_v5  ;;  %v560_v30 = vld [vmem:[#allocation2 + $0x32] sm:$0xff] }
  0x64   :  { %10171 = vst [vmem:[#allocation3_spill] sm:$0xff] %v5182_v25  ;;  %v888_v56 = vadd.f32 %v824_v26, %v695_v24  ;;  %v495_v9 = vadd.f32 %v431_v48, %v302_v47  ;;  %v1008_v19 = vmul.f32 %v5227_v12, %v366_v21  ;;  %v239_v24 = vld [vmem:[#allocation2 + $0x38] sm:$0xff]  ;;  %v1210_v21 = vmul.f32 %v5229_v13, %v5308_v28 }
  0x65   :  { %10172 = vst [vmem:[#allocation4_spill] sm:$0xff] %v5184_v29  ;;  %v368_v26 = vld [vmem:[#allocation2 + $0x39] sm:$0xff]  ;;  %v687_v38 = vadd.f32 %v623_v54, %v494_v58  ;;  %v624_v46 = vmul.f32 %v5196_v42, %v559_v0  ;;  %v304_v47 = vmul.f32 %v5182_v25, %v239_v24  ;;  %v436_v54 = vmul.f32 %v5184_v29, %v5312_v32  ;;  %v126_v58 = vld [vmem:[%s9936_s4 + $0xc8] sm:$0xff] }
  0x66   :  { %10173 = vst [vmem:[#allocation5_spill] sm:$0xff] %v5196_v42  ;;  %v1081_v5 = vadd.f32 %v1017_v57, %v888_v56  ;;  %v433_v48 = vmul.f32 %v5184_v29, %v368_v26  ;;  %v625_v56 = vmul.f32 %v5196_v42, %v560_v30  ;;  %v307_v57 = vmul.f32 %v5182_v25, %v5310_v31 }
  0x67   :  { %188 = vst.msk [vmem:[#allocation2 + $0x129] sm:$0xff] %vm20_vm0, %v124_v44  ;;  %v434_v44 = vmul.f32 %v5184_v29, %v5238_v17 }
  0x68   :  { %10174 = vst [vmem:[#allocation6_spill] sm:$0xff] %v5214_v62 }
  0x69   :  { %10175 = vst [vmem:[#allocation7_spill] sm:$0xff] %v5217_v63  ;;  %v498_v1 = vadd.f32 %v434_v44, %v305_v43  ;;  %v440_v43 = vmul.f32 %v5184_v29, %v5286_v53  ;;  %v496_v44 = vadd.f32 %v432_v61, %v303_v60  ;;  %v5334_v60 = vld [vmem:[#allocation2 + $0x62] sm:$0xff] }
  0x6a   :  { %10176 = vst [vmem:[#allocation8_spill] sm:$0xff] %v5219_v3  ;;  %v377_v63 = vld [vmem:[#allocation2 + $0xa9] sm:$0xff] }
  0x6b   :  { %10177 = vst [vmem:[#allocation9_spill] sm:$0xff] %v5221_v6  ;;  %v691_v59 = vadd.f32 %v627_v2, %v498_v1  ;;  %v504_v61 = vadd.f32 %v440_v43, %v311_v27  ;;  %v633_v1 = vmul.f32 %v5196_v42, %v5308_v28  ;;  %v1274_v2 = vadd.f32 %v1210_v21, %v1081_v5 }
  0x6c   :  { %10178 = vst [vmem:[#allocation10_spill] sm:$0xff] %v5223_v7  ;;  %v5348_v27 = vmul.f32 %v5219_v3, %v239_v24  ;;  %v1013_v5 = vmul.f32 %v5227_v12, %v5312_v32  ;;  %v689_v21 = vadd.f32 %v625_v56, %v496_v44  ;;  %v818_v44 = vmul.f32 %v5225_v11, %v5236_v16 }
  0x6d   :  { %10179 = vst [vmem:[#allocation11_spill] sm:$0xff] %v5231_v14  ;;  %v697_v62 = vadd.f32 %v633_v1, %v504_v61  ;;  %v442_v61 = vmul.f32 %v5184_v29, %v377_v63  ;;  %v1011_v1 = vmul.f32 %v5227_v12, %v5238_v17  ;;  %v1400_v7 = vmul.f32 %v5219_v3, %v5188_v35 }
  0x6e   :  { %10180 = vst [vmem:[#allocation12_spill] sm:$0xff] %v5234_v15 }
  0x6f   :  { %10181 = vst [vmem:[#allocation13_spill] sm:$0xff] %v5243_v22 }
  0x70   :  { %10182 = vst [vmem:[#allocation14_spill] sm:$0xff] %v5246_v23  ;;  %v5345_v23 = vadd.f32 %v433_v48, %v304_v47 }
  0x71   :  { %10183 = vst [vmem:[#allocation15_spill] sm:$0xff] %v5253_v33  ;;  %v1202_v33 = vmul.f32 %v5229_v13, %v560_v30 }
  0x72   :  { %10184 = vst [vmem:[#allocation16_spill] sm:$0xff] %v5256_v34 }
  0x73   :  { %10185 = vst [vmem:[#allocation17_spill] sm:$0xff] %v5264_v40 }
  0x74   :  { %10186 = vst [vmem:[#allocation18_spill] sm:$0xff] %v5267_v41  ;;  %v5342_v41 = vmul.f32 %v5227_v12, %v368_v26 }
  0x75   :  { %10187 = vst [vmem:[#allocation19_spill] sm:$0xff] %v5279_v50  ;;  %v817_v50 = vmul.f32 %v5225_v11, %v239_v24  ;;  %v1597_v24 = vmul.f32 %v5231_v14, %v377_v63 }
  0x76   :  { %10188 = vst [vmem:[#allocation20_spill] sm:$0xff] %v5284_v52 }
  0x77   :  { %189 = vst.msk [vmem:[#allocation2 + $0x139] sm:$0xff] %vm20_vm0, %v125_v45  ;;  %v1009_v45 = vmul.f32 %v5227_v12, %v367_v39  ;;  %v248_v39 = vld [vmem:[#allocation2 + $0xa8] sm:$0xff] }
  0x78   :  { %10189 = vst [vmem:[#allocation21_spill] sm:$0xff] %v5291_v55  ;;  %v826_v30 = vmul.f32 %v5225_v11, %v248_v39 }
  0x79   :  { %10190 = vst [vmem:[#allocation22_spill] sm:$0xff] %v5301_v4  ;;  %v1072_v4 = vadd.f32 %v1008_v19, %v879_v10  ;;  %v1404_v10 = vmul.f32 %v5219_v3, %v248_v39  ;;  %v880_v19 = vadd.f32 %v816_v20, %v687_v38  ;;  %v500_v20 = vadd.f32 %v436_v54, %v307_v57 }
  0x7a   :  { %10191 = vst [vmem:[#allocation23_spill] sm:$0xff] %v5304_v8  ;;  %v820_v8 = vmul.f32 %v5225_v11, %v5310_v31  ;;  %v629_v38 = vmul.f32 %v5196_v42, %v5334_v60  ;;  %v1206_v57 = vmul.f32 %v5229_v13, %v5334_v60  ;;  %v313_v54 = vmul.f32 %v5182_v25, %v248_v39 }
  0x7b   :  { %190 = vst.msk [vmem:[#allocation2 + $0x141] sm:$0xff] %vm20_vm0, %v126_v58  ;;  %v5353_v58 = vmul.f32 %v5231_v14, %v368_v26  ;;  %v1468_v47 = vadd.f32 %v1404_v10, %v1274_v2  ;;  %v1073_v48 = vadd.f32 %v1009_v45, %v880_v19  ;;  %v561_v26 = vld [vmem:[#allocation2 + $0x3a] sm:$0xff]  ;;  %v890_v2 = vadd.f32 %v826_v30, %v697_v62 }
  0x7c   :  { %10192 = vst [vmem:[#allocation24_spill] sm:$0xff] %v5348_v27  ;;  %v884_v43 = vadd.f32 %v820_v8, %v691_v59  ;;  %v688_v8 = vadd.f32 %v624_v46, %v495_v9  ;;  %v1201_v59 = vmul.f32 %v5229_v13, %v559_v0  ;;  %v1396_v9 = vmul.f32 %v5219_v3, %v5236_v16  ;;  %v570_v46 = vld [vmem:[#allocation2 + $0xaa] sm:$0xff] }
  0x7d   :  { %10193 = vst [vmem:[#allocation25_spill] sm:$0xff] %v5353_v58  ;;  %v693_v45 = vadd.f32 %v629_v38, %v500_v20  ;;  %v822_v0 = vmul.f32 %v5225_v11, %v5188_v35  ;;  %v1019_v10 = vmul.f32 %v5227_v12, %v377_v63  ;;  %v1661_v19 = vadd.f32 %v1597_v24, %v1468_v47  ;;  %v241_v16 = vld [vmem:[#allocation2 + $0x50] sm:$0xff] }
  0x7e   :  { %v1077_v56 = vadd.f32 %v1013_v5, %v884_v43  ;;  %v1790_v43 = vmul.f32 %v5261_v37, %v570_v46  ;;  %v1266_v39 = vadd.f32 %v1202_v33, %v1073_v48  ;;  %v5376_v5 = vmul.f32 %v5231_v14, %v5238_v17  ;;  %v370_v20 = vld [vmem:[#allocation2 + $0x51] sm:$0xff] }
  0x7f   :  { %v626_v58 = vmul.f32 %v5196_v42, %v561_v26  ;;  %v881_v27 = vadd.f32 %v817_v50, %v688_v8  ;;  %v506_v62 = vadd.f32 %v442_v61, %v313_v54  ;;  %v635_v63 = vmul.f32 %v5196_v42, %v570_v46  ;;  %v5392_v50 = vld [vmem:[%s9935_s1] ss:$0 sm:$0xff]  ;;  %v379_v61 = vld [vmem:[#allocation2 + $0xc1] sm:$0xff] }
  0x80   :  { %10194 = vst [vmem:[#allocation26_spill] sm:$0xff] %v5376_v5  ;;  %v1270_v38 = vadd.f32 %v1206_v57, %v1077_v56  ;;  %v882_v30 = vadd.f32 %v818_v44, %v689_v21  ;;  %v5383_v47 = vmul.f32 %v5229_v13, %v561_v26  ;;  %v886_v33 = vadd.f32 %v822_v0, %v693_v45  ;;  %v250_v57 = vld [vmem:[#allocation2 + $0xc0] sm:$0xff] }
  0x81   :  { %v1015_v17 = vmul.f32 %v5227_v12, %v5190_v36  ;;  %v5387_v24 = vadd.f32 %v1201_v59, %v1072_v4  ;;  %v1083_v48 = vadd.f32 %v1019_v10, %v890_v2  ;;  %v1212_v35 = vmul.f32 %v5229_v13, %v570_v46 }
  0x82   :  { %v1854_v8 = vadd.f32 %v1790_v43, %v1661_v19  ;;  %v5395_v56 = vadd.f32 %v1396_v9, %v1266_v39  ;;  %v306_v21 = vmul.f32 %v5182_v25, %v241_v16  ;;  %v435_v44 = vmul.f32 %v5184_v29, %v370_v20 }
  0x83   :  { %10195 = vst [vmem:[#allocation27_spill] sm:$0xff] %v5387_v24  ;;  %v819_v26 = vmul.f32 %v5225_v11, %v241_v16  ;;  %v1464_v4 = vadd.f32 %v1400_v7, %v1270_v38  ;;  %v1593_v59 = vmul.f32 %v5231_v14, %v5190_v36  ;;  %v699_v54 = vadd.f32 %v635_v63, %v506_v62 }
  0x84   :  { %10196 = vst [vmem:[#allocation28_spill] sm:$0xff] %v5395_v56  ;;  %v828_v45 = vmul.f32 %v5225_v11, %v250_v57  ;;  %v1075_v0 = vadd.f32 %v1011_v1, %v882_v30  ;;  %v1204_v9 = vmul.f32 %v5229_v13, %v5281_v51  ;;  %v1079_v46 = vadd.f32 %v1015_v17, %v886_v33  ;;  %v572_v17 = vld [vmem:[#allocation2 + $0xc2] sm:$0xff] }
  0x85   :  { %v1208_v2 = vmul.f32 %v5229_v13, %v5207_v49  ;;  %v5408_v10 = vmul.f32 %v5227_v12, %v370_v20  ;;  %v1276_v19 = vadd.f32 %v1212_v35, %v1083_v48  ;;  %v5411_v7 = vadd.f32 %v5392_v50, %v1854_v8 }
  0x86   :  { %v1406_v36 = vmul.f32 %v5219_v3, %v250_v57  ;;  %v5414_v43 = vadd.f32 %v435_v44, %v306_v21  ;;  %v5417_v1 = vmul.f32 %v5219_v3, %v241_v16  ;;  %v315_v39 = vmul.f32 %v5182_v25, %v250_v57  ;;  %v563_v21 = vld [vmem:[#allocation2 + $0x52] sm:$0xff] }
  0x87   :  { %v444_v38 = vmul.f32 %v5184_v29, %v379_v61  ;;  %v1657_v62 = vadd.f32 %v1593_v59, %v1464_v4  ;;  %v1786_v63 = vmul.f32 %v5261_v37, %v5207_v49  ;;  %v892_v30 = vadd.f32 %v828_v45, %v699_v54 }
  0x88   :  { %v1021_v33 = vmul.f32 %v5227_v12, %v379_v61  ;;  %v1268_v48 = vadd.f32 %v1204_v9, %v1075_v0  ;;  %v5425_v35 = vmul.f32 %v5231_v14, %v370_v20  ;;  %v1272_v8 = vadd.f32 %v1208_v2, %v1079_v46 }
  0x89   :  { %v1402_v16 = vmul.f32 %v5219_v3, %v5240_v18  ;;  %v1398_v44 = vmul.f32 %v5219_v3, %v5310_v31  ;;  %v5432_v57 = vmul.f32 0.70710677, %v5411_v7  ;;  %v1470_v49 = vadd.f32 %v1406_v36, %v1276_v19  ;;  %v127_v18 = vld [vmem:[%s9936_s4 + $0xd0] sm:$0xff]  ;;  %v243_v19 = vld [vmem:[#allocation2 + $0x68] sm:$0xff] }
  0x8a   :  { %10197 = vst [vmem:[#allocation29_spill] sm:$0xff] %v5425_v35  ;;  %v1599_v4 = vmul.f32 %v5231_v14, %v379_v61  ;;  %v5437_v59 = vmul.f32 %v5261_v37, %v5281_v51  ;;  %v690_v20 = vadd.f32 %v626_v58, %v5345_v23  ;;  %v508_v54 = vadd.f32 %v444_v38, %v315_v39  ;;  %v372_v36 = vld [vmem:[#allocation2 + $0x69] sm:$0xff]  ;;  %v252_v38 = vld [vmem:[#allocation2 + $0xd8] sm:$0xff] }
  0x8b   :  { %v637_v45 = vmul.f32 %v5196_v42, %v572_v17  ;;  %v1074_v31 = vadd.f32 %v5342_v41, %v881_v27  ;;  %v1850_v0 = vadd.f32 %v1786_v63, %v1657_v62  ;;  %v1085_v9 = vadd.f32 %v1021_v33, %v892_v30  ;;  %191 = vst.msk [vmem:[#allocation2 + $0x151] sm:$0xff] %vm20_vm0, %v127_v18 }
  0x8c   :  { %10198 = vst [vmem:[#allocation30_spill] sm:$0xff] %v5437_v59  ;;  %v1214_v46 = vmul.f32 %v5229_v13, %v572_v17  ;;  %v1591_v51 = vmul.f32 %v5231_v14, %v5312_v32  ;;  %v628_v23 = vmul.f32 %v5196_v42, %v563_v21  ;;  %v1466_v58 = vadd.f32 %v1402_v16, %v1272_v8  ;;  %v5529_v59 = vld [vmem:[#allocation2 + $0xf1] sm:$0xff] }
  0x8d   :  { %v1595_v61 = vmul.f32 %v5231_v14, %v5286_v53  ;;  %v1462_v2 = vadd.f32 %v1398_v44, %v1268_v48  ;;  %v5453_v41 = vand.u32 2147483647, %v5432_v57  ;;  %v1663_v27 = vadd.f32 %v1599_v4, %v1470_v49 }
  0x8e   :  { %v1792_v39 = vmul.f32 %v5261_v37, %v572_v17  ;;  %v883_v62 = vadd.f32 %v819_v26, %v690_v20  ;;  %v1205_v63 = vmul.f32 %v5229_v13, %v563_v21  ;;  %v701_v32 = vadd.f32 %v637_v45, %v508_v54  ;;  %v381_v54 = vld [vmem:[#allocation2 + $0xd9] sm:$0xff] }
  0x8f   :  { %v830_v30 = vmul.f32 %v5225_v11, %v252_v38  ;;  %v1267_v33 = vadd.f32 %v5383_v47, %v1074_v31  ;;  %v5460_v53 = vadd.f32 %v5392_v50, %v1850_v0  ;;  %v1278_v48 = vadd.f32 %v1214_v46, %v1085_v9 }
  0x90   :  { %v1408_v8 = vmul.f32 %v5219_v3, %v252_v38  ;;  %v308_v16 = vmul.f32 %v5182_v25, %v243_v19  ;;  %v437_v44 = vmul.f32 %v5184_v29, %v372_v36  ;;  %v1659_v17 = vadd.f32 %v1595_v61, %v1466_v58  ;;  %v565_v61 = vld [vmem:[#allocation2 + $0x6a] sm:$0xff] }
  0x91   :  { %10199 = vst [vmem:[#allocation31_spill] sm:$0xff] %v5460_v53  ;;  %v1788_v26 = vmul.f32 %v5261_v37, %v5308_v28  ;;  %v1655_v49 = vadd.f32 %v1591_v51, %v1462_v2  ;;  %v5468_v4 = vmul.f32 %v5261_v37, %v563_v21  ;;  %v2113_v47 = vmul.f32 0.3275911, %v5453_v41 }
  0x92   :  { %v1856_v20 = vadd.f32 %v1792_v39, %v1663_v27  ;;  %v821_v45 = vmul.f32 %v5225_v11, %v243_v19  ;;  %v1784_v18 = vmul.f32 %v5261_v37, %v5334_v60  ;;  %v894_v31 = vadd.f32 %v830_v30, %v701_v32  ;;  %v245_v32 = vld [vmem:[#allocation2 + $0x80] sm:$0xff] }
  0x93   :  { %10200 = vst [vmem:[#allocation32_spill] sm:$0xff] %v5468_v4  ;;  %v1023_v0 = vmul.f32 %v5227_v12, %v381_v54  ;;  %v1014_v9 = vmul.f32 %v5227_v12, %v372_v36  ;;  %v5477_v28 = vmul.f32 0.70710677, %v5460_v53  ;;  %v1472_v46 = vadd.f32 %v1408_v8, %v1278_v48  ;;  %v374_v30 = vld [vmem:[#allocation2 + $0x81] sm:$0xff] }
  0x94   :  { %v1601_v21 = vmul.f32 %v5231_v14, %v381_v54  ;;  %v501_v51 = vadd.f32 %v437_v44, %v308_v16  ;;  %v1399_v58 = vmul.f32 %v5219_v3, %v243_v19  ;;  %v692_v2 = vadd.f32 %v628_v23, %v5414_v43  ;;  %v574_v8 = vld [vmem:[#allocation2 + $0xda] sm:$0xff] }
  0x95   :  { %10201 = vst [vmem:[#allocation33_spill] sm:$0xff] %v5477_v28  ;;  %v1852_v27 = vadd.f32 %v1788_v26, %v1659_v17  ;;  %v5483_v60 = vmul.f32 %v5231_v14, %v372_v36  ;;  %v1076_v39 = vadd.f32 %v5408_v10, %v883_v62  ;;  %v5486_v4 = vadd.f32 1.0, %v2113_v47 }
  0x96   :  { %v5489_v48 = vadd.f32 %v5392_v50, %v1856_v20  ;;  %v5491_v16 = vadd.f32 %v1784_v18, %v1655_v49  ;;  %v5494_v19 = vadd.f32 %v5417_v1, %v1267_v33  ;;  %v1087_v43 = vadd.f32 %v1023_v0, %v894_v31  ;;  %v5510_v18 = vld [vmem:[#allocation2 + $0xf0] sm:$0xff] }
  0x97   :  { %v1216_v23 = vmul.f32 %v5229_v13, %v574_v8  ;;  %v630_v36 = vmul.f32 %v5196_v42, %v565_v61  ;;  %v2045_v10 = vand.u32 2147483647, %v5477_v28  ;;  %v1665_v62 = vadd.f32 %v1601_v21, %v1472_v46 }
  0x98   :  { %10202 = vst [vmem:[#allocation34_spill] sm:$0xff] %v5491_v16  ;;  %v1794_v44 = vmul.f32 %v5261_v37, %v574_v8  ;;  %v885_v17 = vadd.f32 %v821_v45, %v692_v2  ;;  %v310_v26 = vmul.f32 %v5182_v25, %v245_v32  ;;  %v439_v47 = vmul.f32 %v5184_v29, %v374_v30 }
  0x99   :  { %10203 = vst [vmem:[#allocation35_spill] sm:$0xff] %v5494_v19  ;;  %v5503_v49 = vadd.f32 %v5392_v50, %v1852_v27  ;;  %v1207_v1 = vmul.f32 %v5229_v13, %v565_v61  ;;  %v1269_v33 = vadd.f32 %v1205_v63, %v1076_v39  ;;  %4639 = vrcp.f32 %v5486_v4 }
  0x9a   :  { %v5508_v20 = vmul.f32 0.70710677, %v5489_v48  ;;  %v317_v31 = vmul.f32 %v5182_v25, %v252_v38  ;;  %v446_v45 = vmul.f32 %v5184_v29, %v381_v54  ;;  %v1280_v0 = vadd.f32 %v1216_v23, %v1087_v43  ;;  %v567_v43 = vld [vmem:[#allocation2 + $0x82] sm:$0xff] }
  0x9b   :  { %v1410_v46 = vmul.f32 %v5219_v3, %v5510_v18  ;;  %v1785_v21 = vmul.f32 %v5261_v37, %v565_v61  ;;  %v823_v2 = vmul.f32 %v5225_v11, %v245_v32  ;;  %v2109_v63 = vmul.f32 0.3275911, %v2045_v10 }
  0x9c   :  { %10204 = vst [vmem:[#allocation36_spill] sm:$0xff] %v5508_v20  ;;  %v1858_v27 = vadd.f32 %v1794_v44, %v1665_v62  ;;  %v503_v39 = vadd.f32 %v439_v47, %v310_v26  ;;  %v1016_v53 = vmul.f32 %v5227_v12, %v374_v30  ;;  %v694_v28 = vadd.f32 %v630_v36, %v501_v51  ;;  %v247_v62 = vld [vmem:[#allocation2 + $0x98] sm:$0xff] }
  0x9d   :  { %v5520_v16 = vmul.f32 0.70710677, %v5503_v49  ;;  %v1401_v38 = vmul.f32 %v5219_v3, %v245_v32  ;;  %v5524_v54 = vmul.f32 %v5231_v14, %v374_v30  ;;  %v1078_v23 = vadd.f32 %v1014_v9, %v885_v17  ;;  %v376_v44 = vld [vmem:[#allocation2 + $0x99] sm:$0xff] }
  0x9e   :  { %v5527_v61 = vand.u32 2147483647, %v5508_v20  ;;  %v510_v26 = vadd.f32 %v446_v45, %v317_v31  ;;  %v639_v51 = vmul.f32 %v5196_v42, %v574_v8  ;;  %v1474_v36 = vadd.f32 %v1410_v46, %v1280_v0 }
  0x9f   :  { %10205 = vst [vmem:[#allocation37_spill] sm:$0xff] %v5520_v16  ;;  %v1603_v47 = vmul.f32 %v5231_v14, %v5529_v59  ;;  %v4640_v32 = vpop.eup %4639  ;;  %v2173_v35 = vadd.f32 1.0, %v2109_v63  ;;  %v3069_v30 = vsub.f32 0.0, %v2045_v10  ;;  %v1463_v19 = vadd.f32 %v1399_v58, %v1269_v33  ;;  %v5543_v63 = vld [vmem:[#allocation2 + $0xf2] sm:$0xff] }
  0xa0   :  { %v5535_v9 = vadd.f32 %v5392_v50, %v1858_v27  ;;  %v632_v17 = vmul.f32 %v5196_v42, %v567_v43  ;;  %v887_v5 = vadd.f32 %v823_v2, %v694_v28  ;;  %v1209_v56 = vmul.f32 %v5229_v13, %v567_v43 }
  0xa1   :  { %v2047_v31 = vand.u32 2147483647, %v5520_v16  ;;  %v1271_v45 = vadd.f32 %v1207_v1, %v1078_v23  ;;  %v312_v8 = vmul.f32 %v5182_v25, %v247_v62  ;;  %v441_v0 = vmul.f32 %v5184_v29, %v376_v44 }
  0xa2   :  { %v2115_v46 = vmul.f32 0.3275911, %v5527_v61  ;;  %v703_v58 = vadd.f32 %v639_v51, %v510_v26  ;;  %v832_v33 = vmul.f32 %v5225_v11, %v5510_v18  ;;  %v1667_v27 = vadd.f32 %v1603_v47, %v1474_v36 }
  0xa3   :  { %v1796_v28 = vmul.f32 %v5261_v37, %v5543_v63  ;;  %4641 = vrcp.f32 %v2173_v35  ;;  %v3133_v2 = vmul.f32 %v3069_v30, %v2045_v10  ;;  %v2305_v1 = vmul.f32 %v4640_v32, %v5486_v4  ;;  %v569_v4 = vld [vmem:[#allocation2 + $0x9a] sm:$0xff] }
  0xa4   :  { %v5551_v23 = vmul.f32 0.70710677, %v5535_v9  ;;  %v1656_v16 = vadd.f32 %v5483_v60, %v1463_v19  ;;  %v5555_v24 = vmul.f32 %v5261_v37, %v567_v43  ;;  %v825_v26 = vmul.f32 %v5225_v11, %v247_v62 }
  0xa5   :  { %v2111_v51 = vmul.f32 0.3275911, %v2047_v31  ;;  %v505_v6 = vadd.f32 %v441_v0, %v312_v8  ;;  %v5559_v36 = vmul.f32 %v5227_v12, %v376_v44  ;;  %v5562_v47 = vmul.f32 %v5219_v3, %v247_v62 }
  0xa6   :  { %10206 = vst [vmem:[#allocation38_spill] sm:$0xff] %v5551_v23  ;;  %v696_v10 = vadd.f32 %v632_v17, %v503_v39  ;;  %v5564_v30 = vadd.f32 1.0, %v2115_v46  ;;  %v896_v55 = vadd.f32 %v832_v33, %v703_v58  ;;  %v1025_v60 = vmul.f32 %v5227_v12, %v5529_v59 }
  0xa7   :  { %v1860_v19 = vadd.f32 %v1796_v28, %v1667_v27  ;;  %v3203_v43 = vmul.f32 1.442695, %v3133_v2  ;;  %v5569_v52 = vmul.f32 %v5231_v14, %v376_v44  ;;  %v2369_v8 = vsub.f32 2.0, %v2305_v1  ;;  %v249_v28 = vld [vmem:[#allocation2 + $0xb0] sm:$0xff] }
  0xa8   :  { %v5572_v0 = vand.u32 2147483647, %v5551_v23  ;;  %v2175_v40 = vadd.f32 1.0, %v2111_v51  ;;  %v1080_v62 = vadd.f32 %v1016_v53, %v887_v5  ;;  %v1465_v34 = vadd.f32 %v1401_v38, %v1271_v45  ;;  %v378_v44 = vld [vmem:[#allocation2 + $0xb1] sm:$0xff] }
  0xa9   :  { %v5574_v39 = vadd.f32 %v1785_v21, %v1656_v16  ;;  %v4642_v17 = vpop.eup %4641  ;;  %v3071_v46 = vsub.f32 0.0, %v2047_v31  ;;  %v5577_v58 = vmul.f32 0.5, %v5503_v49  ;;  %v634_v33 = vmul.f32 %v5196_v42, %v569_v4  ;;  %v5641_v23 = vld [vmem:[#allocation2 + $0x10a] sm:$0xff] }
  0xaa   :  { %v889_v27 = vadd.f32 %v825_v26, %v696_v10  ;;  %4643 = vrcp.f32 %v5564_v30  ;;  %v1089_v2 = vadd.f32 %v1025_v60, %v896_v55  ;;  %v1218_v1 = vmul.f32 %v5229_v13, %v5543_v63  ;;  %v5598_v60 = vld [vmem:[#allocation2 + $0x108] sm:$0xff] }
  0xab   :  { %10207 = vst [vmem:[#allocation39_spill] sm:$0xff] %v5574_v39  ;;  %v5584_v5 = vadd.f32 %v5392_v50, %v1860_v19  ;;  %4645 = vpow2.f32 %v3203_v43  ;;  %v5587_v53 = vmul.f32 %v5229_v13, %v569_v4  ;;  %v5589_v16 = vmul.f32 %v4640_v32, %v2369_v8  ;;  %v5626_v39 = vld [vmem:[#allocation2 + $0x109] sm:$0xff] }
  0xac   :  { %10208 = vst [vmem:[#allocation40_spill] sm:$0xff] %v5577_v58  ;;  %v2117_v49 = vmul.f32 0.3275911, %v5572_v0  ;;  %v2301_v21 = vmul.f32 %v4642_v17, %v2173_v35  ;;  %4647 = vrcp.f32 %v2175_v40  ;;  %v314_v38 = vmul.f32 %v5182_v25, %v249_v28 }
  0xad   :  { %v443_v55 = vmul.f32 %v5184_v29, %v378_v44  ;;  %v3135_v45 = vmul.f32 %v3071_v46, %v2047_v31  ;;  %v1273_v26 = vadd.f32 %v1209_v56, %v1080_v62  ;;  %v319_v51 = vmul.f32 %v5182_v25, %v5510_v18 }
  0xae   :  { %v448_v10 = vmul.f32 %v5184_v29, %v5529_v59  ;;  %v1658_v32 = vadd.f32 %v5524_v54, %v1465_v34  ;;  %v1282_v19 = vadd.f32 %v1218_v1, %v1089_v2  ;;  %v5602_v35 = vmul.f32 0.70710677, %v5584_v5 }
  0xaf   :  { %v1412_v43 = vmul.f32 %v5219_v3, %v5598_v60  ;;  %v5607_v31 = vmul.f32 %v5261_v37, %v569_v4  ;;  %v827_v56 = vmul.f32 %v5225_v11, %v249_v28  ;;  %v2497_v18 = vmul.f32 1.0614054, %v5589_v16 }
  0xb0   :  { %10209 = vst [vmem:[#allocation41_spill] sm:$0xff] %v5602_v35  ;;  %v2181_v8 = vadd.f32 1.0, %v2117_v49  ;;  %v4644_v59 = vpop.eup %4643  ;;  %v2365_v62 = vsub.f32 2.0, %v2301_v21  ;;  %v5611_v46 = vadd.f32 %v443_v55, %v314_v38  ;;  %v5614_v34 = vmul.f32 %v5227_v12, %v378_v44  ;;  %v571_v38 = vld [vmem:[#allocation2 + $0xb2] sm:$0xff] }
  0xb1   :  { %v5617_v54 = vmul.f32 %v5219_v3, %v249_v28  ;;  %v5619_v2 = vpop.eup %4645  ;;  %v3207_v1 = vmul.f32 1.442695, %v3135_v45  ;;  %v5622_v4 = vmul.f32 %v5231_v14, %v378_v44  ;;  %v512_v58 = vadd.f32 %v448_v10, %v319_v51 }
  0xb2   :  { %10210 = vst [vmem:[#allocation42_spill] sm:$0xff] %v5619_v2  ;;  %v641_v49 = vmul.f32 %v5196_v42, %v5543_v63  ;;  %v4648_v21 = vpop.eup %4647  ;;  %v698_v55 = vadd.f32 %v634_v33, %v505_v6  ;;  %v5629_v22 = vand.u32 2147483647, %v5602_v35  ;;  %v1476_v28 = vadd.f32 %v1412_v43, %v1282_v19  ;;  %v251_v43 = vld [vmem:[#allocation2 + $0xc8] sm:$0xff] }
  0xb3   :  { %v1605_v2 = vmul.f32 %v5231_v14, %v5626_v39  ;;  %v4518_v45 = vadd.f32 -1.4531521, %v2497_v18  ;;  %v1082_v44 = vadd.f32 %v5559_v36, %v889_v27  ;;  %v2307_v51 = vmul.f32 %v4644_v59, %v5564_v30  ;;  %v380_v35 = vld [vmem:[#allocation2 + $0xc9] sm:$0xff] }
  0xb4   :  { %4649 = vrcp.f32 %v2181_v8  ;;  %v5635_v10 = vmul.f32 %v4642_v17, %v2365_v62  ;;  %v3073_v63 = vsub.f32 0.0, %v5453_v41  ;;  %v1467_v15 = vadd.f32 %v5562_v47, %v1273_v26 }
  0xb5   :  { %v1851_v6 = vadd.f32 %v5555_v24, %v1658_v32  ;;  %v2303_v33 = vmul.f32 %v4648_v21, %v2175_v40  ;;  %4651 = vpow2.f32 %v3207_v1  ;;  %v636_v19 = vmul.f32 %v5196_v42, %v571_v38 }
  0xb6   :  { %10211 = vst [vmem:[#allocation43_spill] sm:$0xff] %v5635_v10  ;;  %v705_v18 = vadd.f32 %v641_v49, %v512_v58  ;;  %v2119_v36 = vmul.f32 0.3275911, %v5629_v22  ;;  %v834_v30 = vmul.f32 %v5225_v11, %v5598_v60  ;;  %v1669_v17 = vadd.f32 %v1605_v2, %v1476_v28 }
  0xb7   :  { %v1798_v47 = vmul.f32 %v5261_v37, %v5641_v23  ;;  %v2625_v24 = vmul.f32 %v4518_v45, %v5589_v16  ;;  %v891_v40 = vadd.f32 %v827_v56, %v698_v55  ;;  %v1213_v27 = vmul.f32 %v5229_v13, %v571_v38 }
  0xb8   :  { %v2371_v26 = vsub.f32 2.0, %v2307_v51  ;;  %v3137_v32 = vmul.f32 %v3073_v63, %v5453_v41  ;;  %v5652_v58 = vmul.f32 0.5, %v5411_v7  ;;  %v316_v62 = vmul.f32 %v5182_v25, %v251_v43 }
  0xb9   :  { %v445_v1 = vmul.f32 %v5184_v29, %v380_v35  ;;  %v2367_v2 = vsub.f32 2.0, %v2303_v33  ;;  %v1275_v28 = vadd.f32 %v5587_v53, %v1082_v44  ;;  %v1660_v10 = vadd.f32 %v5569_v52, %v1467_v15 }
  0xba   :  { %v4650_v49 = vpop.eup %4649  ;;  %v5659_v56 = vmul.f32 %v5261_v37, %v571_v38  ;;  %v5661_v55 = vadd.f32 1.0, %v2119_v36  ;;  %v898_v45 = vadd.f32 %v834_v30, %v705_v18  ;;  %v1027_v7 = vmul.f32 %v5227_v12, %v5626_v39 }
  0xbb   :  { %v1862_v41 = vadd.f32 %v1798_v47, %v1669_v17  ;;  %v5665_v51 = vpop.eup %4651  ;;  %v2689_v63 = vadd.f32 1.4214138, %v2625_v24  ;;  %v5668_v20 = vadd.f32 %v5392_v50, %v1851_v6  ;;  %v829_v53 = vmul.f32 %v5225_v11, %v251_v43  ;;  %v573_v17 = vld [vmem:[#allocation2 + $0xca] sm:$0xff] }
  0xbc   :  { %10212 = vst [vmem:[#allocation44_spill] sm:$0xff] %v5665_v51  ;;  %v5671_v44 = vmul.f32 %v4644_v59, %v2371_v26  ;;  %v3211_v15 = vmul.f32 1.442695, %v3137_v32  ;;  %v5673_v52 = vadd.f32 %v445_v1, %v316_v62  ;;  %v5676_v38 = vmul.f32 %v5227_v12, %v380_v35 }
  0xbd   :  { %10213 = vst [vmem:[#allocation45_spill] sm:$0xff] %v5668_v20  ;;  %v2309_v33 = vmul.f32 %v4650_v49, %v2181_v8  ;;  %v5678_v18 = vmul.f32 %v4648_v21, %v2367_v2  ;;  %v5681_v36 = vmul.f32 %v5219_v3, %v251_v43  ;;  %v5684_v30 = vmul.f32 %v5231_v14, %v380_v35 }
  0xbe   :  { %v700_v6 = vadd.f32 %v636_v19, %v5611_v46  ;;  %4653 = vrcp.f32 %v5661_v55  ;;  %v1091_v59 = vadd.f32 %v1027_v7, %v898_v45  ;;  %v1220_v47 = vmul.f32 %v5229_v13, %v5641_v23  ;;  %v128_v46 = vld [vmem:[%s9936_s4 + $0xd8] sm:$0xff] }
  0xbf   :  { %10214 = vst [vmem:[#allocation46_spill] sm:$0xff] %v5678_v18  ;;  %v5691_v24 = vadd.f32 %v5392_v50, %v1862_v41  ;;  %v2753_v8 = vmul.f32 %v2689_v63, %v5589_v16  ;;  %v2499_v21 = vmul.f32 1.0614054, %v5671_v44  ;;  %v1084_v43 = vadd.f32 %v5614_v34, %v891_v40  ;;  %v5710_v40 = vld [vmem:[#allocation2 + $0x120] sm:$0xff] }
  0xc0   :  { %v1469_v35 = vadd.f32 %v5617_v54, %v1275_v28  ;;  %4655 = vpow2.f32 %v3211_v15  ;;  %v1853_v19 = vadd.f32 %v5607_v31, %v1660_v10  ;;  %v5702_v26 = vmul.f32 0.70710677, %v5668_v20  ;;  %192 = vst.msk [vmem:[#allocation2 + $0x159] sm:$0xff] %vm20_vm0, %v128_v46  ;;  %v253_v31 = vld [vmem:[#allocation2 + $0xe0] sm:$0xff] }
  0xc1   :  { %10215 = vst [vmem:[#allocation47_spill] sm:$0xff] %v5691_v24  ;;  %v2373_v32 = vsub.f32 2.0, %v2309_v33  ;;  %v638_v62 = vmul.f32 %v5196_v42, %v573_v17  ;;  %v893_v1 = vadd.f32 %v829_v53, %v700_v6  ;;  %v321_v34 = vmul.f32 %v5182_v25, %v5598_v60  ;;  %v382_v10 = vld [vmem:[#allocation2 + $0xe1] sm:$0xff] }
  0xc2   :  { %10216 = vst [vmem:[#allocation48_spill] sm:$0xff] %v5702_v26  ;;  %v450_v54 = vmul.f32 %v5184_v29, %v5626_v39  ;;  %v3075_v2 = vsub.f32 0.0, %v5527_v61  ;;  %v1284_v28 = vadd.f32 %v1220_v47, %v1091_v59  ;;  %v5714_v45 = vmul.f32 0.70710677, %v5691_v24  ;;  %v5734_v46 = vld [vmem:[#allocation2 + $0x121] sm:$0xff] }
  0xc3   :  { %10217 = vst [vmem:[#allocation49_spill] sm:$0xff] %v5710_v40  ;;  %v1414_v7 = vmul.f32 %v5219_v3, %v5710_v40  ;;  %v4582_v41 = vadd.f32 -0.28449672, %v2753_v8  ;;  %v4520_v63 = vadd.f32 -1.4531521, %v2499_v21  ;;  %v5719_v60 = vmul.f32 0.5, %v5489_v48 }
  0xc4   :  { %10218 = vst [vmem:[#allocation50_spill] sm:$0xff] %v5714_v45  ;;  %v5722_v39 = vmul.f32 %v5229_v13, %v573_v17  ;;  %v4654_v53 = vpop.eup %4653  ;;  %v1277_v15 = vadd.f32 %v1213_v27, %v1084_v43  ;;  %v1662_v33 = vadd.f32 %v5622_v4, %v1469_v35  ;;  %v5726_v6 = vmul.f32 %v5261_v37, %v573_v17 }
  0xc5   :  { %10219 = vst [vmem:[#allocation51_spill] sm:$0xff] %v5719_v60  ;;  %v5728_v59 = vmul.f32 %v4650_v49, %v2373_v32  ;;  %v318_v47 = vmul.f32 %v5182_v25, %v253_v31  ;;  %v447_v8 = vmul.f32 %v5184_v29, %v382_v10  ;;  %v514_v21 = vadd.f32 %v450_v54, %v321_v34 }
  0xc6   :  { %v643_v48 = vmul.f32 %v5196_v42, %v5641_v23  ;;  %10220 = vst [vmem:[#allocation52_spill] sm:$0xff] %v5734_v46  ;;  %v4656_v20 = vpop.eup %4655  ;;  %v3139_v27 = vmul.f32 %v3075_v2, %v5527_v61  ;;  %v5738_v4 = vand.u32 2147483647, %v5714_v45  ;;  %v1478_v17 = vadd.f32 %v1414_v7, %v1284_v28 }
  0xc7   :  { %v1607_v49 = vmul.f32 %v5231_v14, %v5734_v46  ;;  %v2881_v43 = vmul.f32 %v4582_v41, %v5589_v16  ;;  %v2627_v35 = vmul.f32 %v4520_v63, %v5671_v44  ;;  %v1920_v32 = vadd.f32 %v5392_v50, %v1853_v19 }
  0xc8   :  { %v2311_v23 = vmul.f32 %v4654_v53, %v5661_v55  ;;  %v5747_v34 = vand.u32 2147483647, %v5702_v26  ;;  %v831_v61 = vmul.f32 %v5225_v11, %v253_v31  ;;  %v5751_v54 = vmul.f32 %v5227_v12, %v382_v10  ;;  %v5761_v55 = vld [vmem:[#allocation2 + $0x122] sm:$0xff] }
  0xc9   :  { %v2501_v2 = vmul.f32 1.0614054, %v5728_v59  ;;  %v5754_v28 = vadd.f32 %v447_v8, %v318_v47  ;;  %v5757_v7 = vmul.f32 %v5219_v3, %v253_v31  ;;  %v707_v41 = vadd.f32 %v643_v48, %v514_v21  ;;  %10221 = vst [vmem:[#allocation53_spill] sm:$0xff] %v5761_v55 }
  0xca   :  { %v836_v19 = vmul.f32 %v5225_v11, %v5710_v40  ;;  %v3215_v63 = vmul.f32 1.442695, %v3139_v27  ;;  %v2121_v26 = vmul.f32 0.3275911, %v5738_v4  ;;  %v1671_v51 = vadd.f32 %v1607_v49, %v1478_v17 }
  0xcb   :  { %v1800_v18 = vmul.f32 %v5261_v37, %v5761_v55  ;;  %v2945_v45 = vadd.f32 0.2548296, %v2881_v43  ;;  %v2691_v24 = vadd.f32 1.4214138, %v2627_v35  ;;  %v5767_v47 = vmul.f32 %v5231_v14, %v382_v10  ;;  %v575_v35 = vld [vmem:[#allocation2 + $0xe2] sm:$0xff] }
  0xcc   :  { %v2375_v31 = vsub.f32 2.0, %v2311_v23  ;;  %v4522_v8 = vadd.f32 -1.4531521, %v2501_v2  ;;  %v3077_v21 = vsub.f32 0.0, %v5572_v0  ;;  %v702_v48 = vadd.f32 %v638_v62, %v5673_v52 }
  0xcd   :  { %v1086_v40 = vadd.f32 %v5676_v38, %v893_v1  ;;  %v1471_v27 = vadd.f32 %v5681_v36, %v1277_v15  ;;  %v1855_v17 = vadd.f32 %v5659_v56, %v1662_v33  ;;  %v900_v49 = vadd.f32 %v836_v19, %v707_v41  ;;  %v129_v56 = vld [vmem:[%s9936_s4 + $0xe0] sm:$0xff] }
  0xce   :  { %v1029_v43 = vmul.f32 %v5227_v12, %v5734_v46  ;;  %v5776_v60 = vmul.f32 0.70710677, %v1920_v32  ;;  %v2110_v10 = vmul.f32 0.3275911, %v5747_v34  ;;  %v5779_v23 = vadd.f32 1.0, %v2121_v26  ;;  %193 = vst.msk [vmem:[#allocation2 + $0x169] sm:$0xff] %vm20_vm0, %v129_v56 }
  0xcf   :  { %v1864_v2 = vadd.f32 %v1800_v18, %v1671_v51  ;;  %v3009_v52 = vmul.f32 %v2945_v45, %v5589_v16  ;;  %v2755_v38 = vmul.f32 %v2691_v24, %v5671_v44  ;;  %4657 = vpow2.f32 %v3215_v63  ;;  %v384_v33 = vld [vmem:[#allocation2 + $0xf9] sm:$0xff] }
  0xd0   :  { %10222 = vst [vmem:[#allocation54_spill] sm:$0xff] %v5776_v60  ;;  %v5783_v36 = vmul.f32 %v4654_v53, %v2375_v31  ;;  %v2629_v62 = vmul.f32 %v4522_v8, %v5728_v59  ;;  %v3141_v1 = vmul.f32 %v3077_v21, %v5572_v0  ;;  %v3070_v15 = vsub.f32 0.0, %v5747_v34  ;;  %v255_v0 = vld [vmem:[#allocation2 + $0xf8] sm:$0xff] }
  0xd1   :  { %v5791_v26 = vmul.f32 0.5, %v1920_v32  ;;  %v5794_v51 = vmul.f32 0.5, %v5535_v9  ;;  %v640_v16 = vmul.f32 %v5196_v42, %v575_v35  ;;  %v1093_v18 = vadd.f32 %v1029_v43, %v900_v49  ;;  %v130_v49 = vld [vmem:[%s9936_s4 + $0xe8] sm:$0xff] }
  0xd2   :  { %v1222_v24 = vmul.f32 %v5229_v13, %v5761_v55  ;;  %v895_v45 = vadd.f32 %v831_v61, %v702_v48  ;;  %v5801_v53 = vmul.f32 %v5229_v13, %v575_v35  ;;  %4659 = vrcp.f32 %v5779_v23  ;;  %v5815_v48 = vld [vmem:[#allocation2 + $0x138] sm:$0xff]  ;;  %194 = vst.msk [vmem:[#allocation2 + $0x171] sm:$0xff] %vm20_vm0, %v130_v49 }
  0xd3   :  { %10223 = vst [vmem:[#allocation55_spill] sm:$0xff] %v5791_v26  ;;  %v5805_v32 = vadd.f32 %v5392_v50, %v1864_v2  ;;  %v5807_v9 = vmul.f32 %v4656_v20, %v3009_v52  ;;  %v4584_v41 = vadd.f32 -0.28449672, %v2755_v38  ;;  %v1279_v19 = vadd.f32 %v5722_v39, %v1086_v40 }
  0xd4   :  { %10224 = vst [vmem:[#allocation56_spill] sm:$0xff] %v5794_v51  ;;  %v2503_v63 = vmul.f32 1.0614054, %v5783_v36  ;;  %v2693_v31 = vadd.f32 1.4214138, %v2629_v62  ;;  %v1664_v61 = vadd.f32 %v5684_v30, %v1471_v27  ;;  %v5813_v21 = vmul.f32 %v5261_v37, %v575_v35 }
  0xd5   :  { %10225 = vst [vmem:[#allocation57_spill] sm:$0xff] %v5805_v32  ;;  %v3219_v8 = vmul.f32 1.442695, %v3141_v1  ;;  %v5820_v20 = vpop.eup %4657  ;;  %v320_v43 = vmul.f32 %v5182_v25, %v255_v0  ;;  %v449_v40 = vmul.f32 %v5184_v29, %v384_v33  ;;  %v1286_v39 = vadd.f32 %v1222_v24, %v1093_v18 }
  0xd6   :  { %10226 = vst [vmem:[#allocation58_spill] sm:$0xff] %v5815_v48  ;;  %v1416_v2 = vmul.f32 %v5219_v3, %v5815_v48  ;;  %vm3457_vm3 = vcmp.ge.f32.partialorder %v5432_v57, 0.0  ;;  %v5829_v37 = vadd.f32 %v5392_v50, %v1855_v17  ;;  %v5832_v30 = vand.u32 2147483647, %v5776_v60 }
  0xd7   :  { %v5834_v27 = vadd.f32 1.0, %v2110_v10  ;;  %v5837_v35 = vmul.f32 0.70710677, %v5805_v32  ;;  %v3393_v52 = vsub.f32 1.0, %v5807_v9  ;;  %v2883_v38 = vmul.f32 %v4584_v41, %v5671_v44  ;;  %v5847_v10 = vld [vmem:[#allocation2 + $0x139] sm:$0xff]  ;;  %v5852_v9 = vld [vmem:[#allocation2 + $0x110] sm:$0xff] }
  0xd8   :  { %v3134_v56 = vmul.f32 %v3070_v15, %v5747_v34  ;;  %v4524_v62 = vadd.f32 -1.4531521, %v2503_v63  ;;  %v4660_v1 = vpop.eup %4659  ;;  %v2757_v18 = vmul.f32 %v2693_v31, %v5728_v59  ;;  %4661 = vpow2.f32 %v3219_v8  ;;  %10228 = vst [vmem:[#allocation60_spill] sm:$0xff] %v5847_v10  ;;  %v5854_v41 = vld [vmem:[#allocation2 + $0x111] sm:$0xff]  ;;  %v5861_v31 = vld [vmem:[#allocation2 + $0xfa] sm:$0xff] }
  0xd9   :  { %10227 = vst [vmem:[#allocation59_spill] sm:$0xff] %v5837_v35  ;;  %v833_v17 = vmul.f32 %v5225_v11, %v255_v0  ;;  %v5845_v24 = vmul.f32 %v5227_v12, %v384_v33  ;;  %v513_v49 = vadd.f32 %v449_v40, %v320_v43  ;;  %v5850_v26 = vmul.f32 %v5219_v3, %v255_v0 }
  0xda   :  { %v1480_v34 = vadd.f32 %v1416_v2, %v1286_v39  ;;  %v1609_v15 = vmul.f32 %v5231_v14, %v5847_v10  ;;  %v5859_v63 = vmul.f32 %v5231_v14, %v384_v33  ;;  %v704_v8 = vadd.f32 %v640_v16, %v5754_v28  ;;  %v5879_v28 = vld [vmem:[#allocation2 + $0x13a] sm:$0xff]  ;;  %v131_v16 = vld [vmem:[%s9936_s4 + $0xf0] sm:$0xff] }
  0xdb   :  { %v5865_v43 = vadd.f32 %v5751_v54, %v895_v45  ;;  %v5868_v0 = vand.u32 2147483647, %v5837_v35  ;;  %v3521_v40 = vsub.f32 0.0, %v3393_v52  ;;  %v2947_v60 = vadd.f32 0.2548296, %v2883_v38  ;;  %10230 = vst [vmem:[#allocation62_spill] sm:$0xff] %v5879_v28 }
  0xdc   :  { %v2631_v39 = vmul.f32 %v4524_v62, %v5783_v36  ;;  %v2313_v2 = vmul.f32 %v4660_v1, %v5779_v23  ;;  %v4586_v32 = vadd.f32 -0.28449672, %v2757_v18  ;;  %v5873_v33 = vadd.f32 %v5757_v7, %v1279_v19  ;;  %v5889_v7 = vld [vmem:[#allocation2 + $0x112] sm:$0xff]  ;;  %v5894_v38 = vld [vmem:[%s9934_s0 + $0x8] ss:$0 sm:$0xff]  ;;  %195 = vst.msk [vmem:[#allocation2 + $0x181] sm:$0xff] %vm20_vm0, %v131_v16 }
  0xdd   :  { %10229 = vst [vmem:[#allocation61_spill] sm:$0xff] %v5868_v0  ;;  %v322_v10 = vmul.f32 %v5182_v25, %v5852_v9  ;;  %v451_v54 = vmul.f32 %v5184_v29, %v5854_v41  ;;  %v5885_v45 = vadd.f32 %v5726_v6, %v1664_v61  ;;  %v642_v23 = vmul.f32 %v5196_v42, %v5861_v31 }
  0xde   :  { %v1673_v19 = vadd.f32 %v1609_v15, %v1480_v34  ;;  %v1802_v62 = vmul.f32 %v5894_v38, %v5879_v28  ;;  %v5899_v18 = vpop.eup %4661  ;;  %v5902_v6 = vmul.f32 0.70710677, %v5829_v37  ;;  %v5905_v61 = vmul.f32 0.3275911, %v5832_v30 }
  0xdf   :  { %4663 = vrcp.f32 %v5834_v27  ;;  %v2123_v34 = vmul.f32 0.3275911, %v5868_v0  ;;  %v3585_v15 = vsel %vm3457_vm3, %v3393_v52, %v3521_v40  ;;  %v3011_v35 = vmul.f32 %v2947_v60, %v5671_v44 }
  0xe0   :  { %v2695_v28 = vadd.f32 1.4214138, %v2631_v39  ;;  %v2377_v48 = vsub.f32 2.0, %v2313_v2  ;;  %v2885_v16 = vmul.f32 %v4586_v32, %v5728_v59  ;;  %v3079_v55 = vsub.f32 0.0, %v5629_v22  ;;  %v132_v32 = vld [vmem:[%s9936_s4 + $0xf8] sm:$0xff] }
  0xe1   :  { %v515_v51 = vadd.f32 %v451_v54, %v322_v10  ;;  %v644_v29 = vmul.f32 %v5196_v42, %v5889_v7  ;;  %v3072_v46 = vsub.f32 0.0, %v5832_v30  ;;  %v835_v0 = vmul.f32 %v5225_v11, %v5852_v9  ;;  %196 = vst.msk [vmem:[#allocation2 + $0x189] sm:$0xff] %vm20_vm0, %v132_v32 }
  0xe2   :  { %v706_v25 = vadd.f32 %v642_v23, %v513_v49  ;;  %v1866_v57 = vadd.f32 %v1802_v62, %v1673_v19  ;;  %v3713_v52 = vadd.f32 1.0, %v3585_v15  ;;  %v5919_v40 = vmul.f32 1.442695, %v3134_v56  ;;  %v5933_v49 = vld [vmem:[#allocation2 + $0x128] sm:$0xff] }
  0xe3   :  { %v897_v44 = vadd.f32 %v833_v17, %v704_v8  ;;  %v5921_v60 = vadd.f32 1.0, %v2123_v34  ;;  %v3331_v10 = vmul.f32 %v5820_v20, %v3011_v35  ;;  %v2759_v39 = vmul.f32 %v2695_v28, %v5783_v36  ;;  %v10233_v19 = vld [vmem:[#allocation36_spill] sm:$0xff] }
  0xe4   :  { %v5929_v2 = vmul.f32 0.5, %v5829_v37  ;;  %v5931_v54 = vmul.f32 %v4660_v1, %v2377_v48  ;;  %v2949_v17 = vadd.f32 0.2548296, %v2885_v16  ;;  %v3143_v8 = vmul.f32 %v3079_v55, %v5629_v22  ;;  %v5956_v55 = vld [vmem:[#allocation2 + $0x129] sm:$0xff] }
  0xe5   :  { %v5936_v56 = vpop.eup %4663  ;;  %v837_v23 = vmul.f32 %v5225_v11, %v5933_v49  ;;  %v708_v20 = vadd.f32 %v644_v29, %v515_v51  ;;  %v5942_v35 = vmul.f32 0.5, %v5584_v5  ;;  %v1028_v48 = vmul.f32 %v5227_v12, %v5854_v41 }
  0xe6   :  { %10231 = vst [vmem:[#allocation63_spill] sm:$0xff] %v5929_v2  ;;  %v899_v37 = vadd.f32 %v835_v0, %v706_v25  ;;  %v5947_v1 = vadd.f32 %v5392_v50, %v1866_v57  ;;  %v5950_v28 = vmul.f32 %v3713_v52, %v5652_v58  ;;  %vm3459_vm4 = vcmp.ge.f32.partialorder %v10233_v19, 0.0  ;;  %v133_v58 = vld [vmem:[%s9936_s4 + $0x100] sm:$0xff] }
  0xe7   :  { %v1219_v22 = vmul.f32 %v5229_v13, %v5861_v31  ;;  %v1090_v29 = vadd.f32 %v5845_v24, %v897_v44  ;;  %4665 = vrcp.f32 %v5921_v60  ;;  %v3395_v5 = vsub.f32 1.0, %v3331_v10  ;;  %197 = vst.msk [vmem:[#allocation2 + $0x1c9] sm:$0xff] %vm20_vm0, %v133_v58 }
  0xe8   :  { %10232 = vst [vmem:[#allocation64_spill] sm:$0xff] %v5950_v28  ;;  %v4588_v51 = vadd.f32 -0.28449672, %v2759_v39  ;;  %v1281_v25 = vadd.f32 %v5801_v53, %v5865_v43  ;;  %v2505_v0 = vmul.f32 1.0614054, %v5931_v54  ;;  %v3013_v62 = vmul.f32 %v2949_v17, %v5728_v59  ;;  %v5988_v17 = vld [vmem:[#allocation2 + $0x12a] sm:$0xff] }
  0xe9   :  { %v3223_v34 = vmul.f32 1.442695, %v3143_v8  ;;  %v1030_v24 = vmul.f32 %v5227_v12, %v5956_v55  ;;  %v901_v15 = vadd.f32 %v837_v23, %v708_v20  ;;  %v1666_v16 = vadd.f32 %v5767_v47, %v5873_v33 }
  0xea   :  { %v1221_v53 = vmul.f32 %v5229_v13, %v5889_v7  ;;  %v1092_v43 = vadd.f32 %v1028_v48, %v899_v37  ;;  %v5974_v57 = vmul.f32 0.70710677, %v5947_v1  ;;  %v1797_v59 = vmul.f32 %v5894_v38, %v5861_v31 }
  0xeb   :  { %v5980_v52 = vadd.f32 %v5392_v50, %v5885_v45  ;;  %v1413_v44 = vmul.f32 %v5219_v3, %v5852_v9  ;;  %v1283_v32 = vadd.f32 %v1219_v22, %v1090_v29  ;;  %v3523_v10 = vsub.f32 0.0, %v3395_v5 }
  0xec   :  { %v2887_v47 = vmul.f32 %v4588_v51, %v5783_v36  ;;  %v5986_v33 = vand.u32 2147483647, %v5902_v6  ;;  %v4526_v39 = vadd.f32 -1.4531521, %v2505_v0  ;;  %v3333_v31 = vmul.f32 %v5899_v18, %v3013_v62  ;;  %v10234_v51 = vld [vmem:[#allocation38_spill] sm:$0xff] }
  0xed   :  { %v4666_v8 = vpop.eup %4665  ;;  %4667 = vpow2.f32 %v3223_v34  ;;  %v1223_v50 = vmul.f32 %v5229_v13, %v5988_v17  ;;  %v1094_v45 = vadd.f32 %v1030_v24, %v901_v15  ;;  %v1475_v9 = vadd.f32 %v5850_v26, %v1281_v25 }
  0xee   :  { %v1415_v23 = vmul.f32 %v5219_v3, %v5933_v49  ;;  %v1285_v20 = vadd.f32 %v1221_v53, %v1092_v43  ;;  %v5997_v48 = vand.u32 2147483647, %v5974_v57  ;;  %v6000_v37 = vadd.f32 1.0, %v5905_v61  ;;  %v6013_v61 = vld [vmem:[#allocation2 + $0x140] sm:$0xff] }
  0xef   :  { %v6004_v18 = vmul.f32 %v5936_v56, %v5834_v27  ;;  %v1606_v22 = vmul.f32 %v5231_v14, %v5854_v41  ;;  %v1477_v29 = vadd.f32 %v1413_v44, %v1283_v32  ;;  %v3587_v26 = vsel %vm3459_vm4, %v3395_v5, %v3523_v10 }
  0xf0   :  { %vm3461_vm5 = vcmp.ge.f32.partialorder %v10234_v51, 0.0  ;;  %v2951_v25 = vadd.f32 0.2548296, %v2887_v47  ;;  %v2633_v0 = vmul.f32 %v4526_v39, %v5931_v54  ;;  %v2315_v58 = vmul.f32 %v4666_v8, %v5921_v60  ;;  %v6032_v47 = vld [vmem:[#allocation2 + $0x141] sm:$0xff] }
  0xf1   :  { %v3397_v62 = vsub.f32 1.0, %v3333_v31  ;;  %v3136_v27 = vmul.f32 %v3072_v46, %v5832_v30  ;;  %v1417_v41 = vmul.f32 %v5219_v3, %v6013_v61  ;;  %v1287_v34 = vadd.f32 %v1223_v50, %v1094_v45  ;;  %v134_v30 = vld [vmem:[%s9936_s4 + $0x108] sm:$0xff] }
  0xf2   :  { %v1668_v19 = vadd.f32 %v5859_v63, %v1475_v9  ;;  %v1608_v5 = vmul.f32 %v5231_v14, %v5956_v55  ;;  %v2125_v24 = vmul.f32 0.3275911, %v5997_v48  ;;  %v1479_v15 = vadd.f32 %v1415_v23, %v1285_v20  ;;  %198 = vst.msk [vmem:[#allocation2 + $0x1d1] sm:$0xff] %vm20_vm0, %v134_v30  ;;  %v10235_v23 = vld [vmem:[#allocation51_spill] sm:$0xff] }
  0xf3   :  { %v4668_v60 = vpop.eup %4667  ;;  %v3715_v53 = vadd.f32 1.0, %v3587_v26  ;;  %4669 = vpow2.f32 %v5919_v40  ;;  %v1799_v43 = vmul.f32 %v5894_v38, %v5889_v7  ;;  %v1670_v46 = vadd.f32 %v1606_v22, %v1477_v29 }
  0xf4   :  { %v3015_v63 = vmul.f32 %v2951_v25, %v5783_v36  ;;  %v2697_v44 = vadd.f32 1.4214138, %v2633_v0  ;;  %v1859_v32 = vadd.f32 %v5813_v21, %v1666_v16  ;;  %v2379_v10 = vsub.f32 2.0, %v2315_v58  ;;  %v6051_v25 = vld [vmem:[#allocation2 + $0x142] sm:$0xff] }
  0xf5   :  { %v3525_v39 = vsub.f32 0.0, %v3397_v62  ;;  %v3081_v40 = vsub.f32 0.0, %v5738_v4  ;;  %v1610_v7 = vmul.f32 %v5231_v14, %v6032_v47  ;;  %v1481_v31 = vadd.f32 %v1417_v41, %v1287_v34  ;;  %v6060_v41 = vld [vmem:[%s9935_s1] ss:$0 sm:$0xff] }
  0xf6   :  { %v1861_v50 = vadd.f32 %v1797_v59, %v1668_v19  ;;  %v1801_v45 = vmul.f32 %v5894_v38, %v5988_v17  ;;  %v2189_v36 = vadd.f32 1.0, %v2125_v24  ;;  %v1672_v9 = vadd.f32 %v1608_v5, %v1479_v15  ;;  %v10240_v15 = vld [vmem:[#allocation49_spill] sm:$0xff] }
  0xf7   :  { %v6041_v21 = vmul.f32 %v3715_v53, %v10235_v23  ;;  %v6044_v16 = vmul.f32 0.70710677, %v5980_v52  ;;  %v2114_v20 = vmul.f32 0.3275911, %v5986_v33  ;;  %v1863_v22 = vadd.f32 %v1799_v43, %v1670_v46  ;;  %v10242_v43 = vld [vmem:[#allocation52_spill] sm:$0xff] }
  0xf8   :  { %v3335_v29 = vmul.f32 %v4668_v60, %v3015_v63  ;;  %v2761_v26 = vmul.f32 %v2697_v44, %v5931_v54  ;;  %4671 = vrcp.f32 %v6000_v37  ;;  %v6049_v59 = vmul.f32 %v4666_v8, %v2379_v10  ;;  %v10241_v60 = vld [vmem:[#allocation3_spill] sm:$0xff]  ;;  %v10243_v46 = vld [vmem:[#allocation4_spill] sm:$0xff] }
  0xf9   :  { %10236 = vst [vmem:[#allocation36_spill] sm:$0xff] %v6041_v21  ;;  %v6053_v0 = vpop.eup %4669  ;;  %v3589_v58 = vsel %vm3461_vm5, %v3397_v62, %v3525_v39  ;;  %v6063_v34 = vadd.f32 %v6060_v41, %v1859_v32  ;;  %v1674_v19 = vadd.f32 %v1610_v7, %v1481_v31  ;;  %v1803_v8 = vmul.f32 %v5894_v38, %v6051_v25  ;;  %v10239_v62 = vld [vmem:[#allocation41_spill] sm:$0xff]  ;;  %v10251_v21 = vld [vmem:[#allocation56_spill] sm:$0xff] }
  0xfa   :  { %10237 = vst [vmem:[#allocation38_spill] sm:$0xff] %v6044_v16  ;;  %v3145_v5 = vmul.f32 %v3081_v40, %v5738_v4  ;;  %v6069_v24 = vadd.f32 %v6060_v41, %v1861_v50  ;;  %4673 = vrcp.f32 %v2189_v36  ;;  %v1865_v51 = vadd.f32 %v1801_v45, %v1672_v9 }
  0xfb   :  { %10238 = vst [vmem:[#allocation51_spill] sm:$0xff] %v6053_v0  ;;  %vm3463_vm6 = vcmp.ge.f32.partialorder %v10239_v62, 0.0  ;;  %v323_v53 = vmul.f32 %v10241_v60, %v10240_v15  ;;  %v452_v30 = vmul.f32 %v10243_v46, %v10242_v43  ;;  %v6077_v63 = vand.u32 2147483647, %v6044_v16 }
  0xfc   :  { %v6080_v44 = vadd.f32 %v6060_v41, %v1863_v22  ;;  %v3399_v4 = vsub.f32 1.0, %v3335_v29  ;;  %v4590_v32 = vadd.f32 -0.28449672, %v2761_v26  ;;  %v2366_v10 = vsub.f32 2.0, %v6004_v18 }
  0xfd   :  { %v2507_v39 = vmul.f32 1.0614054, %v6049_v59  ;;  %v3717_v40 = vadd.f32 1.0, %v3589_v58  ;;  %v3074_v7 = vsub.f32 0.0, %v5986_v33  ;;  %v6086_v31 = vmul.f32 0.70710677, %v6063_v34 }
  0xfe   :  { %10244 = vst [vmem:[#allocation41_spill] sm:$0xff] %v6080_v44  ;;  %v1867_v50 = vadd.f32 %v1803_v8, %v1674_v19  ;;  %v6088_v45 = vpop.eup %4671  ;;  %v3227_v9 = vmul.f32 1.442695, %v3145_v5  ;;  %v3209_v23 = vmul.f32 1.442695, %v3136_v27  ;;  %v6094_v29 = vadd.f32 %v6060_v41, %v1865_v51  ;;  %v10253_v51 = vld [vmem:[#allocation47_spill] sm:$0xff] }
  0xff   :  { %10245 = vst [vmem:[#allocation49_spill] sm:$0xff] %v6086_v31  ;;  %v6091_v22 = vmul.f32 0.70710677, %v6069_v24  ;;  %v6097_v18 = vmul.f32 0.5, %v5980_v52  ;;  %v516_v26 = vadd.f32 %v452_v30, %v323_v53  ;;  %v2116_v58 = vmul.f32 0.3275911, %v6077_v63 }
 0x100   :  { %10246 = vst [vmem:[#allocation3_spill] sm:$0xff] %v6088_v45  ;;  %v6101_v15 = vmul.f32 0.70710677, %v6080_v44  ;;  %v4674_v19 = vpop.eup %4673  ;;  %v3527_v8 = vsub.f32 0.0, %v3399_v4  ;;  %v2889_v5 = vmul.f32 %v4590_v32, %v5931_v54  ;;  %v2178_v27 = vadd.f32 1.0, %v2114_v20 }
 0x101   :  { %10247 = vst [vmem:[#allocation52_spill] sm:$0xff] %v6091_v22  ;;  %v4528_v43 = vadd.f32 -1.4531521, %v2507_v39  ;;  %v6105_v28 = vmul.f32 %v3717_v40, %v10251_v21  ;;  %v6108_v0 = vmul.f32 0.5, %v10253_v51  ;;  %v6111_v52 = vand.u32 2147483647, %v6086_v31 }
 0x102   :  { %10248 = vst [vmem:[#allocation65_spill] sm:$0xff] %v6094_v29  ;;  %v6114_v53 = vadd.f32 %v6060_v41, %v1867_v50  ;;  %4675 = vpow2.f32 %v3227_v9  ;;  %v6118_v30 = vmul.f32 %v6088_v45, %v6000_v37  ;;  %v6121_v20 = vmul.f32 0.70710677, %v6094_v29  ;;  %v135_v50 = vld [vmem:[%s9936_s4 + $0x110] sm:$0xff] }
 0x103   :  { %10249 = vst [vmem:[#allocation66_spill] sm:$0xff] %v6097_v18  ;;  %v6124_v21 = vand.u32 2147483647, %v6091_v22  ;;  %v324_v32 = vmul.f32 %v10241_v60, %v5933_v49  ;;  %v2180_v39 = vadd.f32 1.0, %v2116_v58  ;;  %v2317_v40 = vmul.f32 %v4674_v19, %v2189_v36  ;;  %v10257_v36 = vld [vmem:[#allocation53_spill] sm:$0xff] }
 0x104   :  { %10250 = vst [vmem:[#allocation67_spill] sm:$0xff] %v6101_v15  ;;  %v6129_v51 = vand.u32 2147483647, %v6101_v15  ;;  %v3591_v37 = vsel %vm3463_vm6, %v3399_v4, %v3527_v8  ;;  %v2953_v9 = vadd.f32 0.2548296, %v2889_v5  ;;  %v2635_v18 = vmul.f32 %v4528_v43, %v6049_v59 }
 0x105   :  { %10252 = vst [vmem:[#allocation56_spill] sm:$0xff] %v6105_v28  ;;  %4677 = vrcp.f32 %v2178_v27  ;;  %v453_v49 = vmul.f32 %v10243_v46, %v5956_v55  ;;  %v645_v58 = vmul.f32 %v5196_v42, %v10257_v36  ;;  %v2118_v2 = vmul.f32 0.3275911, %v6111_v52 }
 0x106   :  { %10254 = vst [vmem:[#allocation47_spill] sm:$0xff] %v6114_v53  ;;  %v6144_v45 = vmul.f32 0.70710677, %v6114_v53  ;;  %v6148_v62 = vmul.f32 %v6105_v28, %v6105_v28  ;;  %v6151_v4 = vmul.f32 %v5936_v56, %v2366_v10  ;;  %v6154_v8 = vand.u32 2147483647, %v6121_v20 }
 0x107   :  { %10255 = vst [vmem:[#allocation68_spill] sm:$0xff] %v6118_v30  ;;  %v2120_v55 = vmul.f32 0.3275911, %v6124_v21  ;;  %v3719_v5 = vadd.f32 1.0, %v3591_v37  ;;  %v2381_v43 = vsub.f32 2.0, %v2317_v40  ;;  %4679 = vrcp.f32 %v2180_v39  ;;  %v10261_v40 = vld [vmem:[#allocation58_spill] sm:$0xff] }
 0x108   :  { %10256 = vst [vmem:[#allocation69_spill] sm:$0xff] %v6121_v20  ;;  %v4676_v36 = vpop.eup %4675  ;;  %v3017_v15 = vmul.f32 %v2953_v9, %v5931_v54  ;;  %v3138_v16 = vmul.f32 %v3074_v7, %v5986_v33  ;;  %4681 = vpow2.f32 %v3209_v23  ;;  %v517_v28 = vadd.f32 %v453_v49, %v324_v32  ;;  %v10263_v33 = vld [vmem:[#allocation61_spill] sm:$0xff] }
 0x109   :  { %199 = vst.msk [vmem:[#allocation2 + $0x1e1] sm:$0xff] %vm20_vm0, %v135_v50  ;;  %v2122_v50 = vmul.f32 0.3275911, %v6129_v51  ;;  %v709_v56 = vadd.f32 %v645_v58, %v516_v26  ;;  %v6161_v10 = vand.u32 2147483647, %v6144_v45  ;;  %v838_v22 = vmul.f32 %v5225_v11, %v10261_v40  ;;  %v10264_v58 = vld [vmem:[#allocation60_spill] sm:$0xff] }
 0x10a   :  { %10258 = vst [vmem:[#allocation53_spill] sm:$0xff] %v6144_v45  ;;  %v2124_v31 = vmul.f32 0.3275911, %v6154_v8  ;;  %v2184_v53 = vadd.f32 1.0, %v2120_v55  ;;  %v6168_v54 = vmul.f32 %v3719_v5, %v5942_v35  ;;  %v3083_v7 = vsub.f32 0.0, %v10263_v33 }
 0x10b   :  { %10259 = vst [vmem:[#allocation70_spill] sm:$0xff] %v6148_v62  ;;  %v2699_v62 = vadd.f32 1.4214138, %v2635_v18  ;;  %v4678_v20 = vpop.eup %4677  ;;  %v6171_v23 = vmul.f32 %v4674_v19, %v2381_v43  ;;  %v2186_v18 = vadd.f32 1.0, %v2122_v50  ;;  %v3337_v26 = vmul.f32 %v4676_v36, %v3017_v15  ;;  %v10266_v50 = vld [vmem:[#allocation50_spill] sm:$0xff] }
 0x10c   :  { %10260 = vst [vmem:[#allocation71_spill] sm:$0xff] %v6151_v4  ;;  %v2182_v4 = vadd.f32 1.0, %v2118_v2  ;;  %v3076_v32 = vsub.f32 0.0, %v6077_v63  ;;  %v325_v9 = vmul.f32 %v10241_v60, %v10261_v40  ;;  %v454_v55 = vmul.f32 %v10243_v46, %v10264_v58 }
 0x10d   :  { %10262 = vst [vmem:[#allocation58_spill] sm:$0xff] %v6168_v54  ;;  %v2763_v2 = vmul.f32 %v2699_v62, %v6049_v59  ;;  %v4680_v49 = vpop.eup %4679  ;;  %v2306_v37 = vmul.f32 %v4678_v20, %v2178_v27  ;;  %v2126_v35 = vmul.f32 0.3275911, %v6161_v10  ;;  %v902_v19 = vadd.f32 %v838_v22, %v709_v56 }
 0x10e   :  { %4683 = vrcp.f32 %v2182_v4  ;;  %v6180_v5 = vpop.eup %4681  ;;  %v1031_v15 = vmul.f32 %v5227_v12, %v10264_v58  ;;  %v2188_v62 = vadd.f32 1.0, %v2124_v31  ;;  %v3980_v43 = vmul.f32 %v6168_v54, %v6168_v54 }
 0x10f   :  { %10265 = vst [vmem:[#allocation61_spill] sm:$0xff] %v6180_v5  ;;  %4685 = vrcp.f32 %v2184_v53  ;;  %vm3465_vm7 = vcmp.ge.f32.partialorder %v10266_v50, 0.0  ;;  %v3147_v36 = vmul.f32 %v3083_v7, %v10263_v33  ;;  %v2509_v27 = vmul.f32 1.0614054, %v6171_v23 }
 0x110   :  { %4687 = vrcp.f32 %v2186_v18  ;;  %v3401_v40 = vsub.f32 1.0, %v3337_v26  ;;  %v4592_v30 = vadd.f32 -0.28449672, %v2763_v2  ;;  %v3213_v45 = vmul.f32 1.442695, %v3138_v16 }
 0x111   :  { %v2308_v5 = vmul.f32 %v4680_v49, %v2180_v39  ;;  %v6190_v22 = vmul.f32 0.5, %v6063_v34  ;;  %v646_v31 = vmul.f32 %v5196_v42, %v5988_v17  ;;  %v2370_v56 = vsub.f32 2.0, %v2306_v37  ;;  %v10270_v39 = vld [vmem:[#allocation57_spill] sm:$0xff] }
 0x112   :  { %v2190_v58 = vadd.f32 1.0, %v2126_v35  ;;  %v6196_v29 = vsel %vm20_vm0, %v6168_v54, 0.0  ;;  %v518_v33 = vadd.f32 %v454_v55, %v325_v9  ;;  %v1095_v7 = vadd.f32 %v1031_v15, %v902_v19 }
 0x113   :  { %10267 = vst [vmem:[#allocation60_spill] sm:$0xff] %v6190_v22  ;;  %4689 = vrcp.f32 %v2188_v62  ;;  %v6199_v26 = vsel %vm20_vm0, %v3980_v43, 0.0  ;;  %v3231_v16 = vmul.f32 1.442695, %v3147_v36  ;;  %v6202_v34 = vmul.f32 0.5, %v10270_v39  ;;  %v10271_v36 = vld [vmem:[#allocation62_spill] sm:$0xff] }
 0x114   :  { %10268 = vst [vmem:[#allocation50_spill] sm:$0xff] %v6196_v29  ;;  %v4684_v44 = vpop.eup %4683  ;;  %v4530_v2 = vadd.f32 -1.4531521, %v2509_v27  ;;  %v3529_v17 = vsub.f32 0.0, %v3401_v40  ;;  %v2891_v37 = vmul.f32 %v4592_v30, %v6049_v59  ;;  %4691 = vpow2.f32 %v3213_v45 }
 0x115   :  { %10269 = vst [vmem:[#allocation72_spill] sm:$0xff] %v6199_v26  ;;  %v4686_v22 = vpop.eup %4685  ;;  %v2372_v35 = vsub.f32 2.0, %v2308_v5  ;;  %v839_v9 = vmul.f32 %v5225_v11, %v6013_v61  ;;  %v710_v55 = vadd.f32 %v646_v31, %v517_v28  ;;  %4693 = vrcp.f32 %v2190_v58 }
 0x116   :  { %v4688_v54 = vpop.eup %4687  ;;  %v6207_v19 = vmul.f32 %v4678_v20, %v2370_v56  ;;  %v326_v15 = vmul.f32 %v10241_v60, %v6013_v61  ;;  %v455_v43 = vmul.f32 %v10243_v46, %v6032_v47  ;;  %v647_v27 = vmul.f32 %v5196_v42, %v10271_v36 }
 0x117   :  { %v2310_v30 = vmul.f32 %v4684_v44, %v2182_v4  ;;  %4695 = vpow2.f32 %v3231_v16  ;;  %v3140_v45 = vmul.f32 %v3076_v32, %v6077_v63  ;;  %v2637_v5 = vmul.f32 %v4530_v2, %v6171_v23 }
 0x118   :  { %v2312_v39 = vmul.f32 %v4686_v22, %v2184_v53  ;;  %v3593_v20 = vsel %vm3465_vm7, %v3401_v40, %v3529_v17  ;;  %v2955_v31 = vadd.f32 0.2548296, %v2891_v37  ;;  %v2314_v56 = vmul.f32 %v4688_v54, %v2186_v18 }
 0x119   :  { %v4690_v28 = vpop.eup %4689  ;;  %v6219_v61 = vmul.f32 %v4680_v49, %v2372_v35  ;;  %v1032_v26 = vmul.f32 %v5227_v12, %v6032_v47  ;;  %v1224_v4 = vmul.f32 %v5229_v13, %v10271_v36  ;;  %v903_v16 = vadd.f32 %v839_v9, %v710_v55  ;;  %v136_v35 = vld [vmem:[%s9936_s4 + $0x118] sm:$0xff] }
 0x11a   :  { %v2498_v63 = vmul.f32 1.0614054, %v6207_v19  ;;  %v6226_v32 = vpop.eup %4691  ;;  %v519_v53 = vadd.f32 %v455_v43, %v326_v15  ;;  %v6228_v2 = vadd.f32 %v647_v27, %v518_v33  ;;  %v648_v50 = vmul.f32 %v5196_v42, %v6051_v25  ;;  %200 = vst.msk [vmem:[#allocation2 + $0x1e9] sm:$0xff] %vm20_vm0, %v136_v35 }
 0x11b   :  { %v2374_v18 = vsub.f32 2.0, %v2310_v30  ;;  %v4694_v49 = vpop.eup %4693  ;;  %v3721_v40 = vadd.f32 1.0, %v3593_v20  ;;  %v2701_v17 = vadd.f32 1.4214138, %v2637_v5  ;;  %v2316_v37 = vmul.f32 %v4690_v28, %v2188_v62  ;;  %v6241_v5 = vld [vmem:[#allocation2 + $0x150] sm:$0xff] }
 0x11c   :  { %v2376_v47 = vsub.f32 2.0, %v2312_v39  ;;  %v3019_v9 = vmul.f32 %v2955_v31, %v6049_v59  ;;  %v3085_v55 = vsub.f32 0.0, %v5997_v48  ;;  %v2378_v15 = vsub.f32 2.0, %v2314_v56 }
 0x11d   :  { %v2500_v33 = vmul.f32 1.0614054, %v6219_v61  ;;  %v4696_v43 = vpop.eup %4695  ;;  %v1288_v36 = vadd.f32 %v1224_v4, %v1095_v7  ;;  %v1096_v27 = vadd.f32 %v1032_v26, %v903_v16  ;;  %v1225_v62 = vmul.f32 %v5229_v13, %v6051_v25 }
 0x11e   :  { %v4519_v30 = vadd.f32 -1.4531521, %v2498_v63  ;;  %v6243_v39 = vadd.f32 %v648_v50, %v519_v53  ;;  %v2318_v20 = vmul.f32 %v4694_v49, %v2190_v58  ;;  %v6245_v59 = vmul.f32 %v4684_v44, %v2374_v18 }
 0x11f   :  { %v1418_v31 = vmul.f32 %v5219_v3, %v6241_v5  ;;  %v6250_v56 = vmul.f32 %v3721_v40, %v6108_v0  ;;  %v2765_v7 = vmul.f32 %v2701_v17, %v6171_v23  ;;  %v2380_v26 = vsub.f32 2.0, %v2316_v37  ;;  %v6262_v0 = vld [vmem:[#allocation2 + $0x151] sm:$0xff] }
 0x120   :  { %v6253_v4 = vmul.f32 %v4686_v22, %v2376_v47  ;;  %v3339_v25 = vmul.f32 %v4696_v43, %v3019_v9  ;;  %v3149_v16 = vmul.f32 %v3085_v55, %v5997_v48  ;;  %v6256_v63 = vmul.f32 %v4688_v54, %v2378_v15  ;;  %v10273_v54 = vld [vmem:[#allocation59_spill] sm:$0xff]  ;;  %v6275_v43 = vld [vmem:[#allocation2 + $0x158] sm:$0xff] }
 0x121   :  { %10272 = vst [vmem:[#allocation57_spill] sm:$0xff] %v6250_v56  ;;  %v4521_v53 = vadd.f32 -1.4531521, %v2500_v33  ;;  %v6259_v58 = vmul.f32 1.442695, %v3140_v45  ;;  %v1289_v50 = vadd.f32 %v1225_v62, %v1096_v27  ;;  %v2626_v18 = vmul.f32 %v4519_v30, %v6207_v19 }
 0x122   :  { %v2382_v40 = vsub.f32 2.0, %v2318_v20  ;;  %v2502_v17 = vmul.f32 1.0614054, %v6245_v59  ;;  %v1482_v22 = vadd.f32 %v1418_v31, %v1288_v36  ;;  %v1611_v37 = vmul.f32 %v5231_v14, %v6262_v0 }
 0x123   :  { %v3982_v48 = vmul.f32 %v6250_v56, %v6250_v56  ;;  %vm3467_vm8 = vcmp.ge.f32.partialorder %v10273_v54, 0.0  ;;  %v4594_v47 = vadd.f32 -0.28449672, %v2765_v7  ;;  %v6270_v45 = vmul.f32 %v4690_v28, %v2380_v26  ;;  %v6284_v28 = vld [vmem:[#allocation2 + $0x152] sm:$0xff] }
 0x124   :  { %v2504_v35 = vmul.f32 1.0614054, %v6253_v4  ;;  %v3403_v9 = vsub.f32 1.0, %v3339_v25  ;;  %v3235_v55 = vmul.f32 1.442695, %v3149_v16  ;;  %v2628_v33 = vmul.f32 %v4521_v53, %v6219_v61  ;;  %v137_v25 = vld [vmem:[%s9936_s4 + $0x120] sm:$0xff] }
 0x125   :  { %v2506_v15 = vmul.f32 1.0614054, %v6256_v63  ;;  %v6279_v36 = vsel %vm20_vm0, %v6250_v56, 0.0  ;;  %v6282_v27 = vmul.f32 0.5, %v6069_v24  ;;  %v2690_v62 = vadd.f32 1.4214138, %v2626_v18 }
 0x126   :  { %10274 = vst [vmem:[#allocation62_spill] sm:$0xff] %v6279_v36  ;;  %v1419_v30 = vmul.f32 %v5219_v3, %v6275_v43  ;;  %v6288_v20 = vmul.f32 %v4694_v49, %v2382_v40  ;;  %v4523_v31 = vadd.f32 -1.4531521, %v2502_v17  ;;  %v1675_v7 = vadd.f32 %v1611_v37, %v1482_v22  ;;  %v6301_v22 = vld [vmem:[#allocation2 + $0x159] sm:$0xff] }
 0x127   :  { %10275 = vst [vmem:[#allocation59_spill] sm:$0xff] %v6282_v27  ;;  %v1804_v26 = vmul.f32 %v5894_v38, %v6284_v28  ;;  %v6296_v24 = vsel %vm20_vm0, %v3982_v48, 0.0  ;;  %v2893_v16 = vmul.f32 %v4594_v47, %v6171_v23  ;;  %v2508_v53 = vmul.f32 1.0614054, %v6270_v45  ;;  %v6320_v27 = vld [vmem:[#allocation2 + $0x15a] sm:$0xff] }
 0x128   :  { %10276 = vst [vmem:[#allocation73_spill] sm:$0xff] %v6296_v24  ;;  %v4525_v18 = vadd.f32 -1.4531521, %v2504_v35  ;;  %v3531_v49 = vsub.f32 0.0, %v3403_v9  ;;  %4697 = vpow2.f32 %v3235_v55  ;;  %v4527_v40 = vadd.f32 -1.4531521, %v2506_v15 }
 0x129   :  { %201 = vst.msk [vmem:[#allocation2 + $0x1f9] sm:$0xff] %vm20_vm0, %v137_v25  ;;  %v2692_v17 = vadd.f32 1.4214138, %v2628_v33  ;;  %v6304_v37 = vmul.f32 0.5, %v5947_v1  ;;  %v840_v48 = vmul.f32 %v5225_v11, %v6241_v5  ;;  %v1483_v44 = vadd.f32 %v1419_v30, %v1289_v50 }
 0x12a   :  { %v1612_v47 = vmul.f32 %v5231_v14, %v6301_v22  ;;  %v2510_v35 = vmul.f32 1.0614054, %v6288_v20  ;;  %v2630_v25 = vmul.f32 %v4523_v31, %v6245_v59  ;;  %v3080_v55 = vsub.f32 0.0, %v6124_v21 }
 0x12b   :  { %10277 = vst [vmem:[#allocation74_spill] sm:$0xff] %v6304_v37  ;;  %v1868_v15 = vadd.f32 %v1804_v26, %v1675_v7  ;;  %v2957_v33 = vadd.f32 0.2548296, %v2893_v16  ;;  %v4529_v56 = vadd.f32 -1.4531521, %v2508_v53  ;;  %v2632_v24 = vmul.f32 %v4525_v18, %v6253_v4 }
 0x12c   :  { %v3082_v1 = vsub.f32 0.0, %v6129_v51  ;;  %v3595_v36 = vsel %vm3467_vm8, %v3403_v9, %v3531_v49  ;;  %v2634_v50 = vmul.f32 %v4527_v40, %v6256_v63  ;;  %v2754_v30 = vmul.f32 %v2690_v62, %v6207_v19  ;;  %v138_v49 = vld [vmem:[%s9936_s4 + $0x128] sm:$0xff] }
 0x12d   :  { %v2756_v29 = vmul.f32 %v2692_v17, %v6219_v61  ;;  %v904_v31 = vadd.f32 %v840_v48, %v6228_v2  ;;  %v1033_v7 = vmul.f32 %v5227_v12, %v6262_v0  ;;  %v1676_v26 = vadd.f32 %v1612_v47, %v1483_v44  ;;  %202 = vst.msk [vmem:[#allocation2 + $0x201] sm:$0xff] %vm20_vm0, %v138_v49 }
 0x12e   :  { %v1805_v16 = vmul.f32 %v5894_v38, %v6320_v27  ;;  %v4698_v53 = vpop.eup %4697  ;;  %v4531_v54 = vadd.f32 -1.4531521, %v2510_v35  ;;  %v2694_v9 = vadd.f32 1.4214138, %v2630_v25  ;;  %v3084_v18 = vsub.f32 0.0, %v6154_v8 }
 0x12f   :  { %v6329_v62 = vadd.f32 %v6060_v41, %v1868_v15  ;;  %v3723_v2 = vadd.f32 1.0, %v3595_v36  ;;  %v3021_v40 = vmul.f32 %v2957_v33, %v6171_v23  ;;  %v2636_v44 = vmul.f32 %v4529_v56, %v6270_v45 }
 0x130   :  { %v2696_v17 = vadd.f32 1.4214138, %v2632_v24  ;;  %v2698_v48 = vadd.f32 1.4214138, %v2634_v50  ;;  %v4583_v47 = vadd.f32 -0.28449672, %v2754_v30  ;;  %v1097_v42 = vadd.f32 %v1033_v7, %v904_v31 }
 0x131   :  { %v3086_v35 = vsub.f32 0.0, %v6161_v10  ;;  %v10278_v25 = vsub.f32 0.0, %v6111_v52  ;;  %v4585_v37 = vadd.f32 -0.28449672, %v2756_v29  ;;  %v1226_v36 = vmul.f32 %v5229_v13, %v6284_v28 }
 0x132   :  { %v1869_v23 = vadd.f32 %v1805_v16, %v1676_v26  ;;  %v2638_v56 = vmul.f32 %v4531_v54, %v6288_v20  ;;  %v2758_v24 = vmul.f32 %v2694_v9, %v6245_v59  ;;  %v3144_v33 = vmul.f32 %v3080_v55, %v6124_v21  ;;  %v6362_v55 = vld [vmem:[#allocation2 + $0x168] sm:$0xff] }
 0x133   :  { %v6341_v15 = vmul.f32 %v10278_v25, %v6111_v52  ;;  %v6349_v50 = vmul.f32 0.70710677, %v6329_v62  ;;  %v6352_v30 = vmul.f32 %v3723_v2, %v6202_v34  ;;  %v3341_v52 = vmul.f32 %v4698_v53, %v3021_v40 }
 0x134   :  { %v2700_v49 = vadd.f32 1.4214138, %v2636_v44  ;;  %v2760_v29 = vmul.f32 %v2696_v17, %v6253_v4  ;;  %v2762_v31 = vmul.f32 %v2698_v48, %v6256_v63  ;;  %v2882_v7 = vmul.f32 %v4583_v47, %v6207_v19 }
 0x135   :  { %10279 = vst [vmem:[#allocation75_spill] sm:$0xff] %v6349_v50  ;;  %v6358_v26 = vmul.f32 %v3082_v1, %v6129_v51  ;;  %v841_v21 = vmul.f32 %v5225_v11, %v6275_v43  ;;  %v2884_v16 = vmul.f32 %v4585_v37, %v6219_v61  ;;  %v1290_v34 = vadd.f32 %v1226_v36, %v1097_v42  ;;  %v6381_v36 = vld [vmem:[#allocation2 + $0x169] sm:$0xff] }
 0x136   :  { %10280 = vst [vmem:[#allocation76_spill] sm:$0xff] %v6352_v30  ;;  %v6366_v53 = vadd.f32 %v6060_v41, %v1869_v23  ;;  %v1420_v54 = vmul.f32 %v5219_v3, %v6362_v55  ;;  %vm3469_vm9 = vcmp.ge.f32.partialorder %v5974_v57, 0.0  ;;  %v2702_v9 = vadd.f32 1.4214138, %v2638_v56 }
 0x137   :  { %v4587_v2 = vadd.f32 -0.28449672, %v2758_v24  ;;  %v3148_v51 = vmul.f32 %v3084_v18, %v6154_v8  ;;  %v6373_v1 = vand.u32 2147483647, %v6349_v50  ;;  %v3984_v40 = vmul.f32 %v6352_v30, %v6352_v30 }
 0x138   :  { %v3405_v37 = vsub.f32 1.0, %v3341_v52  ;;  %v2764_v42 = vmul.f32 %v2700_v49, %v6270_v45  ;;  %v4589_v44 = vadd.f32 -0.28449672, %v2760_v29  ;;  %v4591_v17 = vadd.f32 -0.28449672, %v2762_v31 }
 0x139   :  { %v2946_v48 = vadd.f32 0.2548296, %v2882_v7  ;;  %v905_v47 = vadd.f32 %v841_v21, %v6243_v39  ;;  %v1034_v25 = vmul.f32 %v5227_v12, %v6301_v22  ;;  %v2948_v8 = vadd.f32 0.2548296, %v2884_v16 }
 0x13a   :  { %v6384_v18 = vmul.f32 0.70710677, %v6366_v53  ;;  %v1484_v23 = vadd.f32 %v1420_v54, %v1290_v34  ;;  %v1613_v56 = vmul.f32 %v5231_v14, %v6381_v36  ;;  %v6390_v24 = vsel %vm20_vm0, %v6352_v30, 0.0 }
 0x13b   :  { %10282 = vst [vmem:[#allocation78_spill] sm:$0xff] %v6390_v24  ;;  %v2766_v52 = vmul.f32 %v2702_v9, %v6288_v20  ;;  %v2886_v39 = vmul.f32 %v4587_v2, %v6245_v59  ;;  %v2127_v49 = vmul.f32 0.3275911, %v6373_v1  ;;  %v6396_v29 = vsel %vm20_vm0, %v3984_v40, 0.0  ;;  %v6403_v9 = vld [vmem:[#allocation2 + $0x16a] sm:$0xff] }
 0x13c   :  { %10281 = vst [vmem:[#allocation77_spill] sm:$0xff] %v6384_v18  ;;  %v3533_v31 = vsub.f32 0.0, %v3405_v37  ;;  %v4593_v7 = vadd.f32 -0.28449672, %v2764_v42  ;;  %v2888_v21 = vmul.f32 %v4589_v44, %v6253_v4  ;;  %v2890_v16 = vmul.f32 %v4591_v17, %v6256_v63 }
 0x13d   :  { %10283 = vst [vmem:[#allocation79_spill] sm:$0xff] %v6396_v29  ;;  %v3010_v34 = vmul.f32 %v2946_v48, %v6207_v19  ;;  %v1098_v54 = vadd.f32 %v1034_v25, %v905_v47  ;;  %v1227_v30 = vmul.f32 %v5229_v13, %v6320_v27  ;;  %v3012_v2 = vmul.f32 %v2948_v8, %v6219_v61  ;;  %v6418_v8 = vld [vmem:[#allocation2 + $0x170] sm:$0xff] }
 0x13e   :  { %v6407_v24 = vand.u32 2147483647, %v6384_v18  ;;  %v1677_v40 = vadd.f32 %v1613_v56, %v1484_v23  ;;  %v1806_v42 = vmul.f32 %v5894_v38, %v6403_v9  ;;  %v4595_v44 = vadd.f32 -0.28449672, %v2766_v52  ;;  %v1165_v18 = vld [vmem:[#allocation2 + $0x182] sm:$0xff] }
 0x13f   :  { %v2950_v29 = vadd.f32 0.2548296, %v2886_v39  ;;  %v3150_v17 = vmul.f32 %v3086_v35, %v6161_v10  ;;  %v6412_v19 = vadd.f32 1.0, %v2127_v49  ;;  %v3597_v48 = vsel %vm3469_vm9, %v3405_v37, %v3533_v31  ;;  %v139_v10 = vld [vmem:[%s9936_s4 + $0x130] sm:$0xff] }
 0x140   :  { %v2892_v47 = vmul.f32 %v4593_v7, %v6270_v45  ;;  %v2952_v25 = vadd.f32 0.2548296, %v2888_v21  ;;  %v3221_v61 = vmul.f32 1.442695, %v6341_v15  ;;  %4699 = vpow2.f32 %v6259_v58  ;;  %203 = vst.msk [vmem:[#allocation2 + $0x211] sm:$0xff] %vm20_vm0, %v139_v10  ;;  %v6436_v31 = vld [vmem:[#allocation2 + $0x171] sm:$0xff] }
 0x141   :  { %v3225_v23 = vmul.f32 1.442695, %v3144_v33  ;;  %v1291_v56 = vadd.f32 %v1227_v30, %v1098_v54  ;;  %v1421_v52 = vmul.f32 %v5219_v3, %v6418_v8  ;;  %v327_v57 = vmul.f32 %v10241_v60, %v6241_v5 }
 0x142   :  { %v456_v35 = vmul.f32 %v10243_v46, %v6262_v0  ;;  %v2128_v15 = vmul.f32 0.3275911, %v6407_v24  ;;  %v1870_v37 = vadd.f32 %v1806_v42, %v1677_v40  ;;  %v3725_v58 = vadd.f32 1.0, %v3597_v48  ;;  %v10285_v42 = vld [vmem:[#allocation74_spill] sm:$0xff] }
 0x143   :  { %v2954_v33 = vadd.f32 0.2548296, %v2890_v16  ;;  %v3330_v30 = vmul.f32 %v6226_v32, %v3010_v34  ;;  %4701 = vrcp.f32 %v6412_v19  ;;  %v2894_v39 = vmul.f32 %v4595_v44, %v6288_v20  ;;  %v10284_v32 = vld [vmem:[#allocation5_spill] sm:$0xff] }
 0x144   :  { %v2956_v49 = vadd.f32 0.2548296, %v2892_v47  ;;  %4703 = vpow2.f32 %v3221_v61  ;;  %v3229_v5 = vmul.f32 1.442695, %v6358_v26  ;;  %v3233_v0 = vmul.f32 1.442695, %v3148_v51 }
 0x145   :  { %4705 = vpow2.f32 %v3225_v23  ;;  %v1485_v7 = vadd.f32 %v1421_v52, %v1291_v56  ;;  %v1614_v21 = vmul.f32 %v5231_v14, %v6436_v31  ;;  %vm3458_vm10 = vcmp.ge.f32.partialorder %v5902_v6, 0.0  ;;  %v140_v26 = vld [vmem:[%s9936_s4 + $0x138] sm:$0xff] }
 0x146   :  { %v520_v16 = vadd.f32 %v456_v35, %v327_v57  ;;  %v649_v34 = vmul.f32 %v10284_v32, %v6284_v28  ;;  %v6443_v54 = vadd.f32 1.0, %v2128_v15  ;;  %v6446_v40 = vadd.f32 %v6060_v41, %v1870_v37  ;;  %v4700_v51 = vpop.eup %4699  ;;  %204 = vst.msk [vmem:[#allocation2 + $0x219] sm:$0xff] %vm20_vm0, %v140_v26  ;;  %v6459_v52 = vld [vmem:[#allocation2 + $0x172] sm:$0xff] }
 0x147   :  { %v6452_v44 = vmul.f32 %v3725_v58, %v10285_v42  ;;  %v3014_v48 = vmul.f32 %v2950_v29, %v6245_v59  ;;  %v3016_v47 = vmul.f32 %v2952_v25, %v6253_v4  ;;  %v3394_v61 = vsub.f32 1.0, %v3330_v30 }
 0x148   :  { %v2958_v28 = vadd.f32 0.2548296, %v2894_v39  ;;  %4707 = vpow2.f32 %v3229_v5  ;;  %v3237_v23 = vmul.f32 1.442695, %v3150_v17  ;;  %v6457_v56 = vmul.f32 %v4700_v51, %v3012_v2  ;;  %v10289_v5 = vld [vmem:[#allocation41_spill] sm:$0xff] }
 0x149   :  { %10286 = vst [vmem:[#allocation74_spill] sm:$0xff] %v6452_v44  ;;  %v4702_v10 = vpop.eup %4701  ;;  %v3018_v57 = vmul.f32 %v2954_v33, %v6256_v63  ;;  %4709 = vpow2.f32 %v3233_v0  ;;  %v1678_v35 = vadd.f32 %v1614_v21, %v1485_v7  ;;  %v1807_v59 = vmul.f32 %v5894_v38, %v6459_v52  ;;  %v10290_v7 = vld [vmem:[#allocation65_spill] sm:$0xff] }
 0x14a   :  { %v4704_v29 = vpop.eup %4703  ;;  %v713_v4 = vadd.f32 %v649_v34, %v520_v16  ;;  %4711 = vrcp.f32 %v6443_v54  ;;  %v842_v25 = vmul.f32 %v5225_v11, %v6362_v55  ;;  %v6468_v2 = vmul.f32 0.70710677, %v6446_v40  ;;  %v10291_v16 = vld [vmem:[#allocation47_spill] sm:$0xff] }
 0x14b   :  { %v4706_v17 = vpop.eup %4705  ;;  %v3986_v15 = vmul.f32 %v6452_v44, %v6452_v44  ;;  %v3020_v63 = vmul.f32 %v2956_v49, %v6270_v45  ;;  %v6473_v37 = vmul.f32 %v4704_v29, %v3014_v48  ;;  %v3522_v58 = vsub.f32 0.0, %v3394_v61 }
 0x14c   :  { %10287 = vst [vmem:[#allocation80_spill] sm:$0xff] %v6468_v2  ;;  %v3022_v38 = vmul.f32 %v2958_v28, %v6288_v20  ;;  %4713 = vpow2.f32 %v3237_v23  ;;  %v10004_v33 = vsub.f32 1.0, %v6457_v56  ;;  %v2319_v30 = vmul.f32 %v4702_v10, %v6412_v19 }
 0x14d   :  { %v6480_v39 = vsel %vm20_vm0, %v6452_v44, 0.0  ;;  %v6483_v0 = vmul.f32 0.5, %v10289_v5  ;;  %v6486_v21 = vmul.f32 0.5, %v10290_v7  ;;  %v1871_v45 = vadd.f32 %v1807_v59, %v1678_v35  ;;  %v10293_v59 = vld [vmem:[#allocation49_spill] sm:$0xff]  ;;  %v779_v7 = vld [vmem:[#allocation2 + $0x180] sm:$0xff]  ;;  %v10298_v44 = vld [vmem:[#allocation38_spill] sm:$0xff] }
 0x14e   :  { %10288 = vst [vmem:[#allocation81_spill] sm:$0xff] %v6480_v39  ;;  %v4708_v49 = vpop.eup %4707  ;;  %v6489_v34 = vmul.f32 0.5, %v10291_v16  ;;  %v906_v20 = vadd.f32 %v842_v25, %v713_v4  ;;  %v1035_v26 = vmul.f32 %v5227_v12, %v6381_v36  ;;  %v6494_v19 = vand.u32 2147483647, %v6468_v2  ;;  %v10296_v16 = vld [vmem:[#allocation52_spill] sm:$0xff] }
 0x14f   :  { %v4710_v51 = vpop.eup %4709  ;;  %v6497_v42 = vsel %vm20_vm0, %v3986_v15, 0.0  ;;  %v6499_v48 = vmul.f32 %v4706_v17, %v3016_v47  ;;  %v3398_v28 = vsub.f32 1.0, %v6473_v37  ;;  %v3586_v23 = vsel %vm3458_vm10, %v3394_v61, %v3522_v58 }
 0x150   :  { %10292 = vst [vmem:[#allocation41_spill] sm:$0xff] %v6497_v42  ;;  %v4712_v35 = vpop.eup %4711  ;;  %vm3462_vm11 = vcmp.ge.f32.partialorder %v10293_v59, 0.0  ;;  %v6507_v29 = vsub.f32 0.0, %v10004_v33  ;;  %v328_v4 = vmul.f32 %v10241_v60, %v6275_v43  ;;  %v457_v25 = vmul.f32 %v10243_v46, %v6301_v22  ;;  %v10299_v42 = vld [vmem:[#allocation67_spill] sm:$0xff]  ;;  %v10301_v59 = vld [vmem:[#allocation53_spill] sm:$0xff] }
 0x151   :  { %v2383_v47 = vsub.f32 2.0, %v2319_v30  ;;  %v6513_v17 = vmul.f32 %v4708_v49, %v3018_v57  ;;  %v329_v6 = vmul.f32 %v10241_v60, %v6362_v55  ;;  %v458_v61 = vmul.f32 %v10243_v46, %v6381_v36 }
 0x152   :  { %v6520_v15 = vadd.f32 %v6060_v41, %v1871_v45  ;;  %v4714_v37 = vpop.eup %4713  ;;  %v6522_v58 = vadd.f32 1.0, %v3586_v23  ;;  %v1099_v5 = vadd.f32 %v1035_v26, %v906_v20  ;;  %v1228_v43 = vmul.f32 %v5229_v13, %v6403_v9  ;;  %v141_v45 = vld [vmem:[%s9936_s4 + $0x140] sm:$0xff] }
 0x153   :  { %v2129_v22 = vmul.f32 0.3275911, %v6494_v19  ;;  %v6527_v57 = vmul.f32 %v4710_v51, %v3020_v63  ;;  %v2320_v30 = vmul.f32 %v4712_v35, %v6443_v54  ;;  %v330_v55 = vmul.f32 %v10241_v60, %v6418_v8  ;;  %205 = vst.msk [vmem:[#allocation2 + $0x229] sm:$0xff] %vm20_vm0, %v141_v45 }
 0x154   :  { %10294 = vst [vmem:[#allocation65_spill] sm:$0xff] %v6520_v15  ;;  %v459_v36 = vmul.f32 %v10243_v46, %v6436_v31  ;;  %v3400_v49 = vsub.f32 1.0, %v6499_v48  ;;  %vm3464_vm12 = vcmp.ge.f32.partialorder %v10296_v16, 0.0  ;;  %v521_v20 = vadd.f32 %v457_v25, %v328_v4 }
 0x155   :  { %10295 = vst [vmem:[#allocation47_spill] sm:$0xff] %v6522_v58  ;;  %v6539_v63 = vmul.f32 %v4702_v10, %v2383_v47  ;;  %v650_v54 = vmul.f32 %v10284_v32, %v6320_v27  ;;  %v3526_v26 = vsub.f32 0.0, %v3398_v28  ;;  %v522_v51 = vadd.f32 %v458_v61, %v329_v6  ;;  %v972_v61 = vld [vmem:[#allocation2 + $0x181] sm:$0xff] }
 0x156   :  { %v651_v23 = vmul.f32 %v10284_v32, %v6403_v9  ;;  %v6547_v33 = vmul.f32 0.70710677, %v6520_v15  ;;  %vm3460_vm13 = vcmp.ge.f32.partialorder %v10298_v44, 0.0  ;;  %v6550_v48 = vmul.f32 %v4714_v37, %v3022_v38  ;;  %v10303_v44 = vld [vmem:[#allocation60_spill] sm:$0xff] }
 0x157   :  { %v1292_v4 = vadd.f32 %v1228_v43, %v1099_v5  ;;  %v2193_v10 = vadd.f32 1.0, %v2129_v22  ;;  %v1422_v25 = vmul.f32 %v5219_v3, %v779_v7  ;;  %v3402_v27 = vsub.f32 1.0, %v6513_v17  ;;  %v780_v5 = vld [vmem:[#allocation2 + $0x188] sm:$0xff]  ;;  %v10300_v43 = vld [vmem:[#allocation69_spill] sm:$0xff] }
 0x158   :  { %10297 = vst [vmem:[#allocation49_spill] sm:$0xff] %v6547_v33  ;;  %v2384_v47 = vsub.f32 2.0, %v2320_v30  ;;  %v523_v45 = vadd.f32 %v459_v36, %v330_v55  ;;  %v652_v6 = vmul.f32 %v10284_v32, %v6459_v52  ;;  %v3404_v9 = vsub.f32 1.0, %v6527_v57 }
 0x159   :  { %vm3466_vm14 = vcmp.ge.f32.partialorder %v10299_v42, 0.0  ;;  %v2511_v39 = vmul.f32 1.0614054, %v6539_v63  ;;  %v714_v38 = vadd.f32 %v650_v54, %v521_v20  ;;  %v843_v37 = vmul.f32 %v5225_v11, %v6418_v8 }
 0x15a   :  { %vm3468_vm15 = vcmp.ge.f32.partialorder %v10300_v43, 0.0  ;;  %v3528_v17 = vsub.f32 0.0, %v3400_v49  ;;  %v3590_v22 = vsel %vm3462_vm11, %v3398_v28, %v3526_v26  ;;  %v715_v30 = vadd.f32 %v651_v23, %v522_v51 }
 0x15b   :  { %v6565_v55 = vand.u32 2147483647, %v6547_v33  ;;  %4715 = vrcp.f32 %v2193_v10  ;;  %v844_v57 = vmul.f32 %v5225_v11, %v779_v7  ;;  %v1486_v36 = vadd.f32 %v1422_v25, %v1292_v4  ;;  %v973_v7 = vld [vmem:[#allocation2 + $0x189] sm:$0xff] }
 0x15c   :  { %v1615_v20 = vmul.f32 %v5231_v14, %v972_v61  ;;  %v3406_v54 = vsub.f32 1.0, %v6550_v48  ;;  %v6570_v8 = vmul.f32 %v4712_v35, %v2384_v47  ;;  %v716_v58 = vadd.f32 %v652_v6, %v523_v45 }
 0x15d   :  { %v845_v2 = vmul.f32 %v5225_v11, %v780_v5  ;;  %vm3470_vm1 = vcmp.ge.f32.partialorder %v10301_v59, 0.0  ;;  %v3530_v28 = vsub.f32 0.0, %v3402_v27  ;;  %v4532_v26 = vadd.f32 -1.4531521, %v2511_v39  ;;  %v6583_v39 = vld [vmem:[%s9934_s0 + $0x8] ss:$0 sm:$0xff] }
 0x15e   :  { %v907_v51 = vadd.f32 %v843_v37, %v714_v38  ;;  %v1036_v23 = vmul.f32 %v5227_v12, %v6436_v31  ;;  %v3532_v4 = vsub.f32 0.0, %v3404_v9  ;;  %v3592_v25 = vsel %vm3464_vm12, %v3400_v49, %v3528_v17 }
 0x15f   :  { %v3718_v48 = vadd.f32 1.0, %v3590_v22  ;;  %v2130_v35 = vmul.f32 0.3275911, %v6565_v55  ;;  %v908_v47 = vadd.f32 %v844_v57, %v715_v30  ;;  %v1037_v45 = vmul.f32 %v5227_v12, %v972_v61 }
 0x160   :  { %v1679_v6 = vadd.f32 %v1615_v20, %v1486_v36  ;;  %v1808_v38 = vmul.f32 %v6583_v39, %v1165_v18  ;;  %v10302_v31 = vsub.f32 1.0, %v6457_v56  ;;  %v2512_v16 = vmul.f32 1.0614054, %v6570_v8  ;;  %v1166_v20 = vld [vmem:[#allocation2 + $0x18a] sm:$0xff] }
 0x161   :  { %v909_v37 = vadd.f32 %v845_v2, %v716_v58  ;;  %v1038_v17 = vmul.f32 %v5227_v12, %v973_v7  ;;  %v4716_v61 = vpop.eup %4715  ;;  %v3534_v22 = vsub.f32 0.0, %v3406_v54  ;;  %v2639_v30 = vmul.f32 %v4532_v26, %v6539_v63 }
 0x162   :  { %v3588_v49 = vsel %vm3460_vm13, %v10302_v31, %v6507_v29  ;;  %v1100_v57 = vadd.f32 %v1036_v23, %v907_v51  ;;  %v1229_v36 = vmul.f32 %v5229_v13, %v6459_v52  ;;  %v3594_v56 = vsel %vm3466_vm14, %v3402_v27, %v3530_v28 }
 0x163   :  { %v3720_v33 = vadd.f32 1.0, %v3592_v25  ;;  %v6599_v29 = vmul.f32 %v3718_v48, %v10303_v44  ;;  %v2194_v31 = vadd.f32 1.0, %v2130_v35  ;;  %v3596_v2 = vsel %vm3468_vm15, %v3404_v9, %v3532_v4  ;;  %v142_v25 = vld [vmem:[%s9936_s4 + $0x148] sm:$0xff] }
 0x164   :  { %v1101_v58 = vadd.f32 %v1037_v45, %v908_v47  ;;  %v1230_v32 = vmul.f32 %v5229_v13, %v1165_v18  ;;  %v1872_v26 = vadd.f32 %v1808_v38, %v1679_v6  ;;  %v4533_v51 = vadd.f32 -1.4531521, %v2512_v16  ;;  %v10305_v18 = vld [vmem:[#allocation59_spill] sm:$0xff]  ;;  %206 = vst.msk [vmem:[#allocation2 + $0x231] sm:$0xff] %vm20_vm0, %v142_v25 }
 0x165   :  { %10304 = vst [vmem:[#allocation52_spill] sm:$0xff] %v6599_v29  ;;  %v2321_v23 = vmul.f32 %v4716_v61, %v2193_v10  ;;  %v1102_v15 = vadd.f32 %v1038_v17, %v909_v37  ;;  %v1231_v52 = vmul.f32 %v5229_v13, %v1166_v20  ;;  %v3722_v50 = vadd.f32 1.0, %v3594_v56 }
 0x166   :  { %v2703_v42 = vadd.f32 1.4214138, %v2639_v30  ;;  %v1293_v27 = vadd.f32 %v1229_v36, %v1100_v57  ;;  %v1423_v28 = vmul.f32 %v5219_v3, %v780_v5  ;;  %v3598_v9 = vsel %vm3470_vm1, %v3406_v54, %v3534_v22  ;;  %v10313_v36 = vld [vmem:[#allocation13_spill] sm:$0xff] }
 0x167   :  { %v3724_v43 = vadd.f32 1.0, %v3596_v2  ;;  %v6612_v4 = vmul.f32 %v3720_v33, %v10305_v18  ;;  %4717 = vrcp.f32 %v2194_v31  ;;  %v6615_v10 = vadd.f32 1.0, %v3588_v49 }
 0x168   :  { %v3087_v48 = vsub.f32 0.0, %v6373_v1  ;;  %v1294_v35 = vadd.f32 %v1230_v32, %v1101_v58  ;;  %v6619_v5 = vadd.f32 %v6060_v41, %v1872_v26  ;;  %v6623_v47 = vsel %vm20_vm0, %v6599_v29, 0.0 }
 0x169   :  { %10306 = vst [vmem:[#allocation38_spill] sm:$0xff] %v6612_v4  ;;  %v2640_v54 = vmul.f32 %v4533_v51, %v6570_v8  ;;  %v2385_v59 = vsub.f32 2.0, %v2321_v23  ;;  %v1295_v33 = vadd.f32 %v1231_v52, %v1102_v15  ;;  %v3726_v45 = vadd.f32 1.0, %v3598_v9 }
 0x16a   :  { %10307 = vst [vmem:[#allocation67_spill] sm:$0xff] %v6615_v10  ;;  %v2767_v6 = vmul.f32 %v2703_v42, %v6539_v63  ;;  %v1487_v38 = vadd.f32 %v1423_v28, %v1293_v27  ;;  %v1616_v49 = vmul.f32 %v5231_v14, %v973_v7  ;;  %v6629_v16 = vmul.f32 %v3722_v50, %v6483_v0  ;;  %v10312_v50 = vld [vmem:[#allocation12_spill] sm:$0xff] }
 0x16b   :  { %10308 = vst [vmem:[#allocation69_spill] sm:$0xff] %v6623_v47  ;;  %v6632_v41 = vmul.f32 %v3724_v43, %v6486_v21  ;;  %v6636_v32 = vsel %vm20_vm0, %v6612_v4, 0.0  ;;  %v3979_v37 = vmul.f32 %v6599_v29, %v6599_v29  ;;  %v3981_v15 = vmul.f32 %v6612_v4, %v6612_v4  ;;  %v10317_v28 = vld [vmem:[#allocation16_spill] sm:$0xff]  ;;  %v10318_v43 = vld [vmem:[#allocation17_spill] sm:$0xff]  ;;  %v10333_v4 = vld [vmem:[#allocation10_spill] sm:$0xff] }
 0x16c   :  { %10309 = vst [vmem:[#allocation53_spill] sm:$0xff] %v6629_v16  ;;  %v3151_v17 = vmul.f32 %v3087_v48, %v6373_v1  ;;  %v6644_v7 = vmul.f32 0.70710677, %v6619_v5  ;;  %v1488_v0 = vadd.f32 %v10312_v50, %v1294_v35  ;;  %v2704_v21 = vadd.f32 1.4214138, %v2640_v54 }
 0x16d   :  { %10310 = vst [vmem:[#allocation60_spill] sm:$0xff] %v6632_v41  ;;  %v4718_v22 = vpop.eup %4717  ;;  %v3088_v30 = vsub.f32 0.0, %v6407_v24  ;;  %v6648_v57 = vmul.f32 %v4716_v61, %v2385_v59  ;;  %v1489_v56 = vadd.f32 %v10313_v36, %v1295_v33  ;;  %v4596_v44 = vadd.f32 -0.28449672, %v2767_v6  ;;  %v143_v6 = vld [vmem:[%s9936_s4 + $0x150] sm:$0xff] }
 0x16e   :  { %10311 = vst [vmem:[#allocation59_spill] sm:$0xff] %v6636_v32  ;;  %v3089_v2 = vsub.f32 0.0, %v6494_v19  ;;  %v1680_v58 = vadd.f32 %v1616_v49, %v1487_v38  ;;  %v1809_v26 = vmul.f32 %v6583_v39, %v1166_v20  ;;  %v6654_v1 = vmul.f32 %v3726_v45, %v6489_v34  ;;  %v268_v49 = vld [vmem:[#allocation2 + $0x1c8] sm:$0xff] }
 0x16f   :  { %v6658_v51 = vsel %vm20_vm0, %v6629_v16, 0.0  ;;  %v3983_v23 = vmul.f32 %v6629_v16, %v6629_v16  ;;  %v6663_v61 = vsel %vm20_vm0, %v3979_v37, 0.0  ;;  %v3239_v52 = vmul.f32 1.442695, %v3151_v17  ;;  %v10322_v37 = vld [vmem:[#allocation20_spill] sm:$0xff]  ;;  %207 = vst.msk [vmem:[#allocation2 + $0x241] sm:$0xff] %vm20_vm0, %v143_v6 }
 0x170   :  { %10314 = vst [vmem:[#allocation12_spill] sm:$0xff] %v6654_v1  ;;  %v2322_v42 = vmul.f32 %v4718_v22, %v2194_v31  ;;  %v6666_v27 = vand.u32 2147483647, %v6644_v7  ;;  %v1681_v20 = vadd.f32 %v10317_v28, %v1488_v0  ;;  %v2768_v34 = vmul.f32 %v2704_v21, %v6570_v8  ;;  %v10330_v6 = vld [vmem:[#allocation9_spill] sm:$0xff]  ;;  %v10332_v16 = vld [vmem:[#allocation75_spill] sm:$0xff] }
 0x171   :  { %10315 = vst [vmem:[#allocation13_spill] sm:$0xff] %v6658_v51  ;;  %v3152_v25 = vmul.f32 %v3088_v30, %v6407_v24  ;;  %v2513_v9 = vmul.f32 1.0614054, %v6648_v57  ;;  %v1682_v18 = vadd.f32 %v10318_v43, %v1489_v56  ;;  %v6675_v48 = vsel %vm20_vm0, %v6632_v41, 0.0  ;;  %v10323_v30 = vld [vmem:[#allocation21_spill] sm:$0xff]  ;;  %v399_v32 = vld [vmem:[#allocation2 + $0x1e1] sm:$0xff] }
 0x172   :  { %10316 = vst [vmem:[#allocation82_spill] sm:$0xff] %v6663_v61  ;;  %v2895_v35 = vmul.f32 %v4596_v44, %v6539_v63  ;;  %v3153_v31 = vmul.f32 %v3089_v2, %v6494_v19  ;;  %v1873_v54 = vadd.f32 %v1809_v26, %v1680_v58  ;;  %v6681_v59 = vsel %vm20_vm0, %v6654_v1, 0.0  ;;  %v6703_v2 = vld [vmem:[%s9935_s1] ss:$0 sm:$0xff]  ;;  %v591_v61 = vld [vmem:[#allocation2 + $0x1d2] sm:$0xff] }
 0x173   :  { %10319 = vst [vmem:[#allocation16_spill] sm:$0xff] %v6675_v48  ;;  %v3985_v24 = vmul.f32 %v6632_v41, %v6632_v41  ;;  %v3987_v33 = vmul.f32 %v6654_v1, %v6654_v1  ;;  %v6688_v45 = vsel %vm20_vm0, %v3981_v15, 0.0  ;;  %4719 = vpow2.f32 %v3239_v52 }
 0x174   :  { %10320 = vst [vmem:[#allocation17_spill] sm:$0xff] %v6681_v59  ;;  %v2386_v19 = vsub.f32 2.0, %v2322_v42  ;;  %v2131_v38 = vmul.f32 0.3275911, %v6666_v27  ;;  %v1874_v17 = vadd.f32 %v10322_v37, %v1681_v20  ;;  %v4597_v50 = vadd.f32 -0.28449672, %v2768_v34 }
 0x175   :  { %10321 = vst [vmem:[#allocation83_spill] sm:$0xff] %v6688_v45  ;;  %v3241_v0 = vmul.f32 1.442695, %v3152_v25  ;;  %v4534_v21 = vadd.f32 -1.4531521, %v2513_v9  ;;  %v1875_v36 = vadd.f32 %v10323_v30, %v1682_v18  ;;  %v6698_v15 = vsel %vm20_vm0, %v3983_v23, 0.0 }
 0x176   :  { %10324 = vst [vmem:[#allocation20_spill] sm:$0xff] %v6698_v15  ;;  %v2959_v56 = vadd.f32 0.2548296, %v2895_v35  ;;  %v3243_v44 = vmul.f32 1.442695, %v3153_v31  ;;  %v6706_v58 = vadd.f32 %v6703_v2, %v1873_v54  ;;  %v6709_v26 = vsel %vm20_vm0, %v3985_v24, 0.0 }
 0x177   :  { %10326 = vst [vmem:[#allocation84_spill] sm:$0xff] %v6709_v26  ;;  %v6712_v52 = vsel %vm20_vm0, %v3987_v33, 0.0  ;;  %v3090_v42 = vsub.f32 0.0, %v6565_v55  ;;  %v846_v23 = vmul.f32 %v5225_v11, %v268_v49  ;;  %v6717_v28 = vmul.f32 0.5, %v6329_v62  ;;  %v269_v37 = vld [vmem:[#allocation2 + $0x1d0] sm:$0xff]  ;;  %v270_v15 = vld [vmem:[#allocation2 + $0x1e0] sm:$0xff] }
 0x178   :  { %10325 = vst [vmem:[#allocation21_spill] sm:$0xff] %v6706_v58  ;;  %v6719_v20 = vmul.f32 %v4718_v22, %v2386_v19  ;;  %v6721_v34 = vadd.f32 1.0, %v2131_v38  ;;  %v6724_v25 = vadd.f32 %v6703_v2, %v1874_v17  ;;  %v2896_v9 = vmul.f32 %v4597_v50, %v6570_v8  ;;  %v397_v22 = vld [vmem:[#allocation2 + $0x1c9] sm:$0xff] }
 0x179   :  { %10327 = vst [vmem:[#allocation85_spill] sm:$0xff] %v6712_v52  ;;  %4721 = vpow2.f32 %v3241_v0  ;;  %v2641_v43 = vmul.f32 %v4534_v21, %v6648_v57  ;;  %v6729_v18 = vadd.f32 %v6703_v2, %v1875_v36  ;;  %v4720_v35 = vpop.eup %4719  ;;  %v3023_v31 = vmul.f32 %v2959_v56, %v6539_v63  ;;  %v398_v63 = vld [vmem:[#allocation2 + $0x1d1] sm:$0xff] }
 0x17a   :  { %10328 = vst [vmem:[#allocation86_spill] sm:$0xff] %v6724_v25  ;;  %v6733_v62 = vmul.f32 0.5, %v6366_v53  ;;  %4723 = vpow2.f32 %v3243_v44  ;;  %v6736_v54 = vmul.f32 0.70710677, %v6706_v58  ;;  %v3154_v24 = vmul.f32 %v3090_v42, %v6565_v55  ;;  %v590_v56 = vld [vmem:[#allocation2 + $0x1ca] sm:$0xff] }
 0x17b   :  { %10329 = vst [vmem:[#allocation87_spill] sm:$0xff] %v6729_v18  ;;  %v333_v33 = vmul.f32 %v10241_v60, %v268_v49  ;;  %v910_v19 = vadd.f32 %v846_v23, %v10330_v6  ;;  %v1039_v38 = vmul.f32 %v5227_v12, %v397_v22  ;;  %v2514_v17 = vmul.f32 1.0614054, %v6719_v20  ;;  %v10334_v59 = vld [vmem:[#allocation65_spill] sm:$0xff] }
 0x17c   :  { %4725 = vrcp.f32 %v6721_v34  ;;  %v3091_v53 = vsub.f32 0.0, %v6666_v27  ;;  %v6746_v50 = vmul.f32 0.70710677, %v6724_v25  ;;  %v2960_v0 = vadd.f32 0.2548296, %v2896_v9 }
 0x17d   :  { %v2705_v21 = vadd.f32 1.4214138, %v2641_v43  ;;  %v462_v55 = vmul.f32 %v10243_v46, %v397_v22  ;;  %v6750_v49 = vmul.f32 0.70710677, %v6729_v18  ;;  %v3343_v30 = vmul.f32 %v4720_v35, %v3023_v31 }
 0x17e   :  { %v6753_v36 = vmul.f32 0.5, %v6446_v40  ;;  %v847_v44 = vmul.f32 %v5225_v11, %v269_v37  ;;  %v6757_v42 = vand.u32 2147483647, %v6736_v54  ;;  %v6759_v6 = vmul.f32 1.442695, %v3154_v24  ;;  %v144_v24 = vld [vmem:[%s9936_s4 + $0x158] sm:$0xff] }
 0x17f   :  { %10331 = vst [vmem:[#allocation9_spill] sm:$0xff] %v6750_v49  ;;  %v4722_v23 = vpop.eup %4721  ;;  %v1103_v9 = vadd.f32 %v1039_v38, %v910_v19  ;;  %v334_v43 = vmul.f32 %v10241_v60, %v269_v37  ;;  %v1232_v22 = vmul.f32 %v5229_v13, %v590_v56  ;;  %v4535_v35 = vadd.f32 -1.4531521, %v2514_v17 }
 0x180   :  { %v6763_v1 = vpop.eup %4723  ;;  %v3155_v40 = vmul.f32 %v3091_v53, %v6666_v27  ;;  %v463_v31 = vmul.f32 %v10243_v46, %v398_v63  ;;  %v6768_v41 = vand.u32 2147483647, %v6746_v50  ;;  %vm3471_vm2 = vcmp.ge.f32.partialorder %v10332_v16, 0.0  ;;  %208 = vst.msk [vmem:[#allocation2 + $0x249] sm:$0xff] %vm20_vm0, %v144_v24 }
 0x181   :  { %v3024_v19 = vmul.f32 %v2960_v0, %v6570_v8  ;;  %v2769_v38 = vmul.f32 %v2705_v21, %v6648_v57  ;;  %v526_v37 = vadd.f32 %v462_v55, %v333_v33  ;;  %v6777_v17 = vand.u32 2147483647, %v6750_v49  ;;  %v10335_v8 = vld [vmem:[#allocation5_spill] sm:$0xff] }
 0x182   :  { %v4726_v27 = vpop.eup %4725  ;;  %v3407_v53 = vsub.f32 1.0, %v3343_v30  ;;  %v911_v29 = vadd.f32 %v847_v44, %v10333_v4  ;;  %v1040_v52 = vmul.f32 %v5227_v12, %v398_v63  ;;  %v2132_v26 = vmul.f32 0.3275911, %v6757_v42 }
 0x183   :  { %v6784_v45 = vmul.f32 0.5, %v10334_v59  ;;  %v655_v0 = vmul.f32 %v10335_v8, %v590_v56  ;;  %v1296_v33 = vadd.f32 %v1232_v22, %v1103_v9  ;;  %v1426_v21 = vmul.f32 %v5219_v3, %v270_v15 }
 0x184   :  { %v2642_v55 = vmul.f32 %v4535_v35, %v6719_v20  ;;  %v6789_v24 = vmul.f32 1.442695, %v3155_v40  ;;  %v527_v30 = vadd.f32 %v463_v31, %v334_v43  ;;  %v2133_v4 = vmul.f32 0.3275911, %v6768_v41  ;;  %v10336_v35 = vld [vmem:[#allocation77_spill] sm:$0xff] }
 0x185   :  { %v6792_v44 = vmul.f32 %v4722_v23, %v3024_v19  ;;  %v4598_v63 = vadd.f32 -0.28449672, %v2769_v38  ;;  %v2323_v48 = vmul.f32 %v4726_v27, %v6721_v34  ;;  %v2134_v59 = vmul.f32 0.3275911, %v6777_v17 }
 0x186   :  { %v3535_v51 = vsub.f32 0.0, %v3407_v53  ;;  %v1104_v56 = vadd.f32 %v1040_v52, %v911_v29  ;;  %v1233_v9 = vmul.f32 %v5229_v13, %v591_v61  ;;  %v2196_v22 = vadd.f32 1.0, %v2132_v26 }
 0x187   :  { %vm3472_vm3 = vcmp.ge.f32.partialorder %v10336_v35, 0.0  ;;  %v719_v40 = vadd.f32 %v655_v0, %v526_v37  ;;  %v848_v43 = vmul.f32 %v5225_v11, %v270_v15  ;;  %v1490_v31 = vadd.f32 %v1426_v21, %v1296_v33  ;;  %v271_v37 = vld [vmem:[#allocation2 + $0x1e8] sm:$0xff] }
 0x188   :  { %v1619_v23 = vmul.f32 %v5231_v14, %v399_v32  ;;  %v2706_v19 = vadd.f32 1.4214138, %v2642_v55  ;;  %v6801_v34 = vmul.f32 0.5, %v6619_v5  ;;  %v656_v38 = vmul.f32 %v10335_v8, %v591_v61  ;;  %v592_v21 = vld [vmem:[#allocation2 + $0x1e2] sm:$0xff] }
 0x189   :  { %v6804_v47 = vadd.f32 1.0, %v2133_v4  ;;  %v3408_v29 = vsub.f32 1.0, %v6792_v44  ;;  %v2897_v26 = vmul.f32 %v4598_v63, %v6648_v57  ;;  %v2387_v52 = vsub.f32 2.0, %v2323_v48 }
 0x18a   :  { %10337 = vst [vmem:[#allocation75_spill] sm:$0xff] %v6801_v34  ;;  %v2198_v10 = vadd.f32 1.0, %v2134_v59  ;;  %v3599_v0 = vsel %vm3471_vm2, %v3407_v53, %v3535_v51  ;;  %v1297_v33 = vadd.f32 %v1233_v9, %v1104_v56  ;;  %4727 = vrcp.f32 %v2196_v22  ;;  %v145_v51 = vld [vmem:[%s9936_s4 + $0x160] sm:$0xff]  ;;  %v400_v59 = vld [vmem:[#allocation2 + $0x1e9] sm:$0xff] }
 0x18b   :  { %v1427_v5 = vmul.f32 %v5219_v3, %v271_v37  ;;  %v912_v55 = vadd.f32 %v848_v43, %v719_v40  ;;  %v1041_v61 = vmul.f32 %v5227_v12, %v399_v32  ;;  %v1683_v4 = vadd.f32 %v1619_v23, %v1490_v31  ;;  %209 = vst.msk [vmem:[#allocation2 + $0x259] sm:$0xff] %vm20_vm0, %v145_v51 }
 0x18c   :  { %v1812_v18 = vmul.f32 %v6583_v39, %v592_v21  ;;  %v2770_v44 = vmul.f32 %v2706_v19, %v6719_v20  ;;  %4729 = vrcp.f32 %v6804_v47  ;;  %v335_v48 = vmul.f32 %v10241_v60, %v270_v15 }
 0x18d   :  { %v464_v16 = vmul.f32 %v10243_v46, %v399_v32  ;;  %v3727_v53 = vadd.f32 1.0, %v3599_v0  ;;  %v720_v63 = vadd.f32 %v656_v38, %v527_v30  ;;  %4731 = vrcp.f32 %v2198_v10 }
 0x18e   :  { %v849_v56 = vmul.f32 %v5225_v11, %v271_v37  ;;  %v3536_v9 = vsub.f32 0.0, %v3408_v29  ;;  %v2961_v40 = vadd.f32 0.2548296, %v2897_v26  ;;  %v1491_v43 = vadd.f32 %v1427_v5, %v1297_v33 }
 0x18f   :  { %v1620_v31 = vmul.f32 %v5231_v14, %v400_v59  ;;  %v6823_v15 = vmul.f32 %v4726_v27, %v2387_v52  ;;  %v1105_v32 = vadd.f32 %v1041_v61, %v912_v55  ;;  %v1234_v23 = vmul.f32 %v5229_v13, %v592_v21  ;;  %v593_v52 = vld [vmem:[#allocation2 + $0x1ea] sm:$0xff]  ;;  %v6833_v55 = vld [vmem:[#allocation2 + $0x1f8] sm:$0xff] }
 0x190   :  { %v1876_v19 = vadd.f32 %v1812_v18, %v1683_v4  ;;  %v4728_v34 = vpop.eup %4727  ;;  %v528_v0 = vadd.f32 %v464_v16, %v335_v48  ;;  %v336_v30 = vmul.f32 %v10241_v60, %v271_v37  ;;  %v465_v38 = vmul.f32 %v10243_v46, %v400_v59 }
 0x191   :  { %v657_v25 = vmul.f32 %v10335_v8, %v592_v21  ;;  %v6830_v26 = vmul.f32 %v3727_v53, %v6717_v28  ;;  %v4599_v33 = vadd.f32 -0.28449672, %v2770_v44  ;;  %v913_v5 = vadd.f32 %v849_v56, %v720_v63 }
 0x192   :  { %v1042_v27 = vmul.f32 %v5227_v12, %v400_v59  ;;  %v4730_v61 = vpop.eup %4729  ;;  %v3600_v18 = vsel %vm3472_vm3, %v3408_v29, %v3536_v9  ;;  %v3025_v37 = vmul.f32 %v2961_v40, %v6648_v57  ;;  %v1684_v4 = vadd.f32 %v1620_v31, %v1491_v43  ;;  %v6851_v9 = vld [vmem:[#allocation2 + $0x200] sm:$0xff] }
 0x193   :  { %10338 = vst [vmem:[#allocation10_spill] sm:$0xff] %v6830_v26  ;;  %v1813_v48 = vmul.f32 %v6583_v39, %v593_v52  ;;  %v4732_v21 = vpop.eup %4731  ;;  %v2324_v16 = vmul.f32 %v4728_v34, %v2196_v22  ;;  %v1298_v28 = vadd.f32 %v1234_v23, %v1105_v32  ;;  %v6840_v44 = vadd.f32 %v6703_v2, %v1876_v19  ;;  %v6855_v32 = vld [vmem:[#allocation2 + $0x1f9] sm:$0xff]  ;;  %v146_v23 = vld [vmem:[%s9936_s4 + $0x168] sm:$0xff] }
 0x194   :  { %v1428_v51 = vmul.f32 %v5219_v3, %v6833_v55  ;;  %v529_v53 = vadd.f32 %v465_v38, %v336_v30  ;;  %v721_v63 = vadd.f32 %v657_v25, %v528_v0  ;;  %v658_v59 = vmul.f32 %v10335_v8, %v593_v52  ;;  %210 = vst.msk [vmem:[#allocation2 + $0x261] sm:$0xff] %vm20_vm0, %v146_v23 }
 0x195   :  { %10339 = vst [vmem:[#allocation65_spill] sm:$0xff] %v6840_v44  ;;  %v850_v35 = vmul.f32 %v5225_v11, %v6833_v55  ;;  %v6847_v57 = vadd.f32 1.0, %v3600_v18  ;;  %v2515_v29 = vmul.f32 1.0614054, %v6823_v15  ;;  %v1106_v56 = vadd.f32 %v1042_v27, %v913_v5 }
 0x196   :  { %v1235_v22 = vmul.f32 %v5229_v13, %v593_v52  ;;  %v2898_v40 = vmul.f32 %v4599_v33, %v6719_v20  ;;  %v2325_v43 = vmul.f32 %v4730_v61, %v6804_v47  ;;  %v2326_v31 = vmul.f32 %v4732_v21, %v2198_v10 }
 0x197   :  { %v1877_v25 = vadd.f32 %v1813_v48, %v1684_v4  ;;  %v2388_v19 = vsub.f32 2.0, %v2324_v16  ;;  %v6861_v0 = vmul.f32 0.70710677, %v6840_v44  ;;  %v1492_v30 = vadd.f32 %v1428_v51, %v1298_v28 }
 0x198   :  { %v1621_v38 = vmul.f32 %v5231_v14, %v6855_v32  ;;  %v722_v33 = vadd.f32 %v658_v59, %v529_v53  ;;  %v914_v47 = vadd.f32 %v850_v35, %v721_v63  ;;  %v1043_v10 = vmul.f32 %v5227_v12, %v6855_v32  ;;  %v6882_v53 = vld [vmem:[#allocation2 + $0x1fa] sm:$0xff]  ;;  %v10343_v63 = vld [vmem:[#allocation80_spill] sm:$0xff] }
 0x199   :  { %10340 = vst [vmem:[#allocation5_spill] sm:$0xff] %v6861_v0  ;;  %v851_v5 = vmul.f32 %v5225_v11, %v6851_v9  ;;  %v6871_v27 = vmul.f32 %v6763_v1, %v3025_v37  ;;  %v4536_v52 = vadd.f32 -1.4531521, %v2515_v29  ;;  %v1299_v18 = vadd.f32 %v1235_v22, %v1106_v56  ;;  %v6890_v35 = vld [vmem:[#allocation2 + $0x201] sm:$0xff] }
 0x19a   :  { %v1429_v4 = vmul.f32 %v5219_v3, %v6851_v9  ;;  %v6877_v48 = vsel %vm20_vm0, %v6830_v26, 0.0  ;;  %v2389_v16 = vsub.f32 2.0, %v2325_v43  ;;  %v2390_v28 = vsub.f32 2.0, %v2326_v31 }
 0x19b   :  { %10341 = vst [vmem:[#allocation77_spill] sm:$0xff] %v6877_v48  ;;  %v6880_v51 = vadd.f32 %v6703_v2, %v1877_v25  ;;  %vm3473_vm4 = vcmp.ge.f32.partialorder %v10343_v63, 0.0  ;;  %v6885_v1 = vmul.f32 %v4728_v34, %v2388_v19  ;;  %v6888_v37 = vand.u32 2147483647, %v6861_v0 }
 0x19c   :  { %v1685_v59 = vadd.f32 %v1621_v38, %v1492_v30  ;;  %v1814_v29 = vmul.f32 %v6583_v39, %v6882_v53  ;;  %v1107_v56 = vadd.f32 %v1043_v10, %v914_v47  ;;  %v915_v22 = vadd.f32 %v851_v5, %v722_v33 }
 0x19d   :  { %10342 = vst [vmem:[#allocation88_spill] sm:$0xff] %v6880_v51  ;;  %v1044_v43 = vmul.f32 %v5227_v12, %v6890_v35  ;;  %v1236_v31 = vmul.f32 %v5229_v13, %v6882_v53  ;;  %v3409_v34 = vsub.f32 1.0, %v6871_v27  ;;  %v2643_v25 = vmul.f32 %v4536_v52, %v6823_v15  ;;  %v6912_v27 = vld [vmem:[#allocation2 + $0x202] sm:$0xff]  ;;  %v6914_v52 = vld [vmem:[#allocation2 + $0x210] sm:$0xff] }
 0x19e   :  { %10344 = vst [vmem:[#allocation80_spill] sm:$0xff] %v6888_v37  ;;  %v1493_v23 = vadd.f32 %v1429_v4, %v1299_v18  ;;  %v1622_v19 = vmul.f32 %v5231_v14, %v6890_v35  ;;  %v2962_v30 = vadd.f32 0.2548296, %v2898_v40  ;;  %v6902_v38 = vmul.f32 %v4730_v61, %v2389_v16 }
 0x19f   :  { %v6904_v48 = vmul.f32 %v4732_v21, %v2390_v28  ;;  %v6907_v33 = vmul.f32 0.70710677, %v6880_v51  ;;  %4733 = vpow2.f32 %v6759_v6  ;;  %v2516_v47 = vmul.f32 1.0614054, %v6885_v1  ;;  %v10346_v51 = vld [vmem:[#allocation68_spill] sm:$0xff] }
 0x1a0   :  { %v2135_v10 = vmul.f32 0.3275911, %v6888_v37  ;;  %v1878_v5 = vadd.f32 %v1814_v29, %v1685_v59  ;;  %v1108_v18 = vadd.f32 %v1044_v43, %v915_v22  ;;  %v1300_v40 = vadd.f32 %v1236_v31, %v1107_v56  ;;  %v10348_v29 = vld [vmem:[#allocation3_spill] sm:$0xff] }
 0x1a1   :  { %10345 = vst [vmem:[#allocation89_spill] sm:$0xff] %v6907_v33  ;;  %v1237_v61 = vmul.f32 %v5229_v13, %v6912_v27  ;;  %v1430_v21 = vmul.f32 %v5219_v3, %v6914_v52  ;;  %v3537_v4 = vsub.f32 0.0, %v3409_v34  ;;  %v2707_v16 = vadd.f32 1.4214138, %v2643_v25 }
 0x1a2   :  { %v1686_v6 = vadd.f32 %v1622_v19, %v1493_v23  ;;  %v1815_v28 = vmul.f32 %v6583_v39, %v6912_v27  ;;  %v10347_v59 = vsub.f32 2.0, %v10346_v51  ;;  %v2517_v22 = vmul.f32 1.0614054, %v6902_v38  ;;  %v6938_v19 = vld [vmem:[#allocation2 + $0x211] sm:$0xff] }
 0x1a3   :  { %v2518_v56 = vmul.f32 1.0614054, %v6904_v48  ;;  %v6930_v43 = vand.u32 2147483647, %v6907_v33  ;;  %4735 = vpow2.f32 %v6789_v24  ;;  %v4537_v31 = vadd.f32 -1.4531521, %v2516_v47 }
 0x1a4   :  { %v6925_v0 = vmul.f32 %v10348_v29, %v10347_v59  ;;  %v6933_v25 = vadd.f32 1.0, %v2135_v10  ;;  %v6936_v23 = vadd.f32 %v6703_v2, %v1878_v5  ;;  %v6940_v51 = vld [vmem:[#allocation2 + $0x218] sm:$0xff]  ;;  %v147_v59 = vld [vmem:[%s9936_s4 + $0x170] sm:$0xff]  ;;  %v1301_v29 = vadd.f32 %v1237_v61, %v1108_v18 }
 0x1a5   :  { %10350 = vst [vmem:[#allocation3_spill] sm:$0xff] %v6930_v43  ;;  %v1623_v33 = vmul.f32 %v5231_v14, %v6938_v19  ;;  %v1431_v24 = vmul.f32 %v5219_v3, %v6940_v51  ;;  %v4734_v47 = vpop.eup %4733  ;;  %v3988_v10 = vmul.f32 %v6830_v26, %v6830_v26  ;;  %v6954_v5 = vmul.f32 %v6847_v57, %v6733_v62  ;;  %v6966_v62 = vld [vmem:[#allocation2 + $0x219] sm:$0xff] }
 0x1a6   :  { %10349 = vst [vmem:[#allocation68_spill] sm:$0xff] %v6925_v0  ;;  %v1494_v0 = vadd.f32 %v1430_v21, %v1300_v40  ;;  %v3026_v44 = vmul.f32 %v2962_v30, %v6719_v20  ;;  %v1879_v18 = vadd.f32 %v1815_v28, %v1686_v6  ;;  %v3601_v40 = vsel %vm3473_vm4, %v3409_v34, %v3537_v4  ;;  %v6968_v20 = vld [vmem:[#allocation2 + $0x212] sm:$0xff] }
 0x1a7   :  { %10351 = vst [vmem:[#allocation90_spill] sm:$0xff] %v6936_v23  ;;  %v2771_v61 = vmul.f32 %v2707_v16, %v6823_v15  ;;  %v4538_v21 = vadd.f32 -1.4531521, %v2517_v22  ;;  %v2136_v58 = vmul.f32 0.3275911, %v6930_v43  ;;  %v2644_v37 = vmul.f32 %v4537_v31, %v6885_v1 }
 0x1a8   :  { %211 = vst.msk [vmem:[#allocation2 + $0x271] sm:$0xff] %vm20_vm0, %v147_v59  ;;  %v4539_v59 = vadd.f32 -1.4531521, %v2518_v56  ;;  %4737 = vrcp.f32 %v6933_v25  ;;  %v6964_v26 = vmul.f32 0.70710677, %v6936_v23  ;;  %v1687_v57 = vadd.f32 %v1623_v33, %v1494_v0  ;;  %v6994_v23 = vld [vmem:[#allocation2 + $0x21a] sm:$0xff] }
 0x1a9   :  { %10352 = vst [vmem:[#allocation91_spill] sm:$0xff] %v6954_v5  ;;  %v1495_v63 = vadd.f32 %v1431_v24, %v1301_v29  ;;  %v1624_v34 = vmul.f32 %v5231_v14, %v6966_v62  ;;  %v1816_v30 = vmul.f32 %v6583_v39, %v6968_v20  ;;  %v6974_v4 = vpop.eup %4735  ;;  %v6977_v16 = vsel %vm20_vm0, %v3988_v10, 0.0 }
 0x1aa   :  { %10353 = vst [vmem:[#allocation92_spill] sm:$0xff] %v6964_v26  ;;  %v6981_v6 = vmul.f32 %v6954_v5, %v6954_v5  ;;  %v6983_v28 = vmul.f32 %v4734_v47, %v3026_v44  ;;  %v6986_v0 = vadd.f32 %v6703_v2, %v1879_v18  ;;  %v3729_v33 = vadd.f32 1.0, %v3601_v40 }
 0x1ab   :  { %10354 = vst [vmem:[#allocation93_spill] sm:$0xff] %v6977_v16  ;;  %v2200_v22 = vadd.f32 1.0, %v2136_v58  ;;  %v337_v56 = vmul.f32 %v10241_v60, %v6833_v55  ;;  %v466_v31 = vmul.f32 %v10243_v46, %v6855_v32  ;;  %v4600_v29 = vadd.f32 -0.28449672, %v2771_v61 }
 0x1ac   :  { %10355 = vst [vmem:[#allocation94_spill] sm:$0xff] %v6986_v0  ;;  %v2645_v24 = vmul.f32 %v4538_v21, %v6902_v38  ;;  %v2646_v10 = vmul.f32 %v4539_v59, %v6904_v48  ;;  %v2708_v16 = vadd.f32 1.4214138, %v2644_v37  ;;  %v6997_v44 = vand.u32 2147483647, %v6964_v26 }
 0x1ad   :  { %v1688_v47 = vadd.f32 %v1624_v34, %v1495_v63  ;;  %v1880_v18 = vadd.f32 %v1816_v30, %v1687_v57  ;;  %v1817_v58 = vmul.f32 %v6583_v39, %v6994_v23  ;;  %v3092_v32 = vsub.f32 0.0, %v6757_v42 }
 0x1ae   :  { %v4738_v55 = vpop.eup %4737  ;;  %v3093_v61 = vsub.f32 0.0, %v6768_v41  ;;  %v7005_v21 = vmul.f32 0.70710677, %v6986_v0  ;;  %v3094_v37 = vsub.f32 0.0, %v6777_v17  ;;  %4739 = vrcp.f32 %v2200_v22 }
 0x1af   :  { %v530_v59 = vadd.f32 %v466_v31, %v337_v56  ;;  %v659_v57 = vmul.f32 %v10335_v8, %v6882_v53  ;;  %v7011_v63 = vmul.f32 %v3729_v33, %v6753_v36  ;;  %v2899_v34 = vmul.f32 %v4600_v29, %v6823_v15 }
 0x1b0   :  { %10356 = vst [vmem:[#allocation95_spill] sm:$0xff] %v7005_v21  ;;  %v2709_v30 = vadd.f32 1.4214138, %v2645_v24  ;;  %v2710_v40 = vadd.f32 1.4214138, %v2646_v10  ;;  %v2772_v26 = vmul.f32 %v2708_v16, %v6885_v1  ;;  %v7017_v0 = vadd.f32 %v6703_v2, %v1880_v18 }
 0x1b1   :  { %10357 = vst [vmem:[#allocation96_spill] sm:$0xff] %v7011_v63  ;;  %v2137_v43 = vmul.f32 0.3275911, %v6997_v44  ;;  %v1881_v49 = vadd.f32 %v1817_v58, %v1688_v47  ;;  %v2327_v56 = vmul.f32 %v4738_v55, %v6933_v25  ;;  %v338_v53 = vmul.f32 %v10241_v60, %v6851_v9  ;;  %v148_v25 = vld [vmem:[%s9936_s4 + $0x178] sm:$0xff]  ;;  %v10360_v9 = vld [vmem:[#allocation49_spill] sm:$0xff] }
 0x1b2   :  { %10358 = vst [vmem:[#allocation97_spill] sm:$0xff] %v7017_v0  ;;  %v467_v36 = vmul.f32 %v10243_v46, %v6890_v35  ;;  %v7025_v33 = vand.u32 2147483647, %v7005_v21  ;;  %v10359_v31 = vsub.f32 1.0, %v6983_v28  ;;  %v3156_v29 = vmul.f32 %v3092_v32, %v6757_v42 }
 0x1b3   :  { %v723_v24 = vadd.f32 %v659_v57, %v530_v59  ;;  %v852_v10 = vmul.f32 %v5225_v11, %v6914_v52  ;;  %vm3474_vm5 = vcmp.ge.f32.partialorder %v10360_v9, 0.0  ;;  %v2963_v47 = vadd.f32 0.2548296, %v2899_v34  ;;  %212 = vst.msk [vmem:[#allocation2 + $0x279] sm:$0xff] %vm20_vm0, %v148_v25 }
 0x1b4   :  { %v3538_v16 = vsub.f32 0.0, %v10359_v31  ;;  %v2773_v35 = vmul.f32 %v2709_v30, %v6902_v38  ;;  %v2774_v18 = vmul.f32 %v2710_v40, %v6904_v48  ;;  %v3157_v58 = vmul.f32 %v3093_v61, %v6768_v41  ;;  %v4740_v42 = vpop.eup %4739 }
 0x1b5   :  { %v4601_v32 = vadd.f32 -0.28449672, %v2772_v26  ;;  %v2201_v59 = vadd.f32 1.0, %v2137_v43  ;;  %v7041_v57 = vmul.f32 0.70710677, %v7017_v0  ;;  %v7044_v31 = vadd.f32 %v6703_v2, %v1881_v49 }
 0x1b6   :  { %v2391_v21 = vsub.f32 2.0, %v2327_v56  ;;  %v531_v46 = vadd.f32 %v467_v36, %v338_v53  ;;  %v660_v34 = vmul.f32 %v10335_v8, %v6912_v27  ;;  %v2138_v40 = vmul.f32 0.3275911, %v7025_v33 }
 0x1b7   :  { %10361 = vst [vmem:[#allocation49_spill] sm:$0xff] %v7041_v57  ;;  %v3158_v41 = vmul.f32 %v3094_v37, %v6777_v17  ;;  %v3249_v61 = vmul.f32 1.442695, %v3156_v29  ;;  %v916_v30 = vadd.f32 %v852_v10, %v723_v24  ;;  %v1045_v26 = vmul.f32 %v5227_v12, %v6938_v19 }
 0x1b8   :  { %10362 = vst [vmem:[#allocation98_spill] sm:$0xff] %v7044_v31  ;;  %v3027_v43 = vmul.f32 %v2963_v47, %v6823_v15  ;;  %v4602_v25 = vadd.f32 -0.28449672, %v2773_v35  ;;  %v4603_v0 = vadd.f32 -0.28449672, %v2774_v18  ;;  %v2328_v49 = vmul.f32 %v4740_v42, %v2200_v22 }
 0x1b9   :  { %v2900_v56 = vmul.f32 %v4601_v32, %v6885_v1  ;;  %4741 = vrcp.f32 %v2201_v59  ;;  %v7055_v53 = vand.u32 2147483647, %v7041_v57  ;;  %v7058_v27 = vmul.f32 0.70710677, %v7044_v31 }
 0x1ba   :  { %v7060_v17 = vmul.f32 %v4738_v55, %v2391_v21  ;;  %v724_v37 = vadd.f32 %v660_v34, %v531_v46  ;;  %v2202_v36 = vadd.f32 1.0, %v2138_v40  ;;  %v853_v29 = vmul.f32 %v5225_v11, %v6940_v51  ;;  %v7078_v40 = vld [vmem:[#allocation2 + $0x228] sm:$0xff] }
 0x1bb   :  { %10363 = vst [vmem:[#allocation99_spill] sm:$0xff] %v7058_v27  ;;  %v3251_v15 = vmul.f32 1.442695, %v3157_v58  ;;  %v3253_v24 = vmul.f32 1.442695, %v3158_v41  ;;  %v1109_v10 = vadd.f32 %v1045_v26, %v916_v30  ;;  %v1238_v22 = vmul.f32 %v5229_v13, %v6968_v20  ;;  %v149_v41 = vld [vmem:[%s9936_s4 + $0x180] sm:$0xff] }
 0x1bc   :  { %v7067_v47 = vmul.f32 %v6974_v4, %v3027_v43  ;;  %v2901_v35 = vmul.f32 %v4602_v25, %v6902_v38  ;;  %4743 = vpow2.f32 %v3249_v61  ;;  %v2392_v18 = vsub.f32 2.0, %v2328_v49  ;;  %213 = vst.msk [vmem:[#allocation2 + $0x289] sm:$0xff] %vm20_vm0, %v149_v41 }
 0x1bd   :  { %v2902_v55 = vmul.f32 %v4603_v0, %v6904_v48  ;;  %v2964_v46 = vadd.f32 0.2548296, %v2900_v56  ;;  %v2139_v21 = vmul.f32 0.3275911, %v7055_v53  ;;  %v7073_v32 = vand.u32 2147483647, %v7058_v27 }
 0x1be   :  { %v2519_v58 = vmul.f32 1.0614054, %v7060_v17  ;;  %4745 = vrcp.f32 %v2202_v36  ;;  %v917_v34 = vadd.f32 %v853_v29, %v724_v37  ;;  %v1046_v4 = vmul.f32 %v5227_v12, %v6966_v62 }
 0x1bf   :  { %v4742_v0 = vpop.eup %4741  ;;  %v10364_v61 = vsub.f32 1.0, %v6983_v28  ;;  %vm3475_vm6 = vcmp.ge.f32.partialorder %v6644_v7, 0.0  ;;  %4747 = vpow2.f32 %v3251_v15  ;;  %v1302_v26 = vadd.f32 %v1238_v22, %v1109_v10 }
 0x1c0   :  { %v1432_v43 = vmul.f32 %v5219_v3, %v7078_v40  ;;  %v3411_v25 = vsub.f32 1.0, %v7067_v47  ;;  %v2965_v49 = vadd.f32 0.2548296, %v2901_v35  ;;  %4749 = vpow2.f32 %v3253_v24 }
 0x1c1   :  { %v3602_v30 = vsel %vm3474_vm5, %v10364_v61, %v3538_v16  ;;  %v7092_v56 = vmul.f32 %v4740_v42, %v2392_v18  ;;  %v2966_v37 = vadd.f32 0.2548296, %v2902_v55  ;;  %v3028_v28 = vmul.f32 %v2964_v46, %v6885_v1  ;;  %v7100_v61 = vld [vmem:[#allocation2 + $0x229] sm:$0xff] }
 0x1c2   :  { %v7095_v9 = vadd.f32 1.0, %v2139_v21  ;;  %v2140_v16 = vmul.f32 0.3275911, %v7073_v32  ;;  %v4744_v29 = vpop.eup %4743  ;;  %v4540_v15 = vadd.f32 -1.4531521, %v2519_v58  ;;  %v2329_v10 = vmul.f32 %v4742_v0, %v2201_v59 }
 0x1c3   :  { %v1110_v22 = vadd.f32 %v1046_v4, %v917_v34  ;;  %v1239_v41 = vmul.f32 %v5229_v13, %v6994_v23  ;;  %v7104_v42 = vsel %vm20_vm0, %v6954_v5, 0.0  ;;  %v7108_v1 = vsel %vm20_vm0, %v6981_v6, 0.0 }
 0x1c4   :  { %10365 = vst [vmem:[#allocation100_spill] sm:$0xff] %v7104_v42  ;;  %v1496_v24 = vadd.f32 %v1432_v43, %v1302_v26  ;;  %v1625_v47 = vmul.f32 %v5231_v14, %v7100_v61  ;;  %v4746_v35 = vpop.eup %4745  ;;  %v3990_v59 = vmul.f32 %v7011_v63, %v7011_v63  ;;  %v3730_v18 = vadd.f32 1.0, %v3602_v30  ;;  %v7121_v42 = vld [vmem:[#allocation2 + $0x230] sm:$0xff] }
 0x1c5   :  { %10366 = vst [vmem:[#allocation101_spill] sm:$0xff] %v7108_v1  ;;  %v3539_v55 = vsub.f32 0.0, %v3411_v25  ;;  %v2520_v46 = vmul.f32 1.0614054, %v7092_v56  ;;  %v4748_v21 = vpop.eup %4747  ;;  %v3029_v58 = vmul.f32 %v2965_v49, %v6902_v38  ;;  %v3030_v34 = vmul.f32 %v2966_v37, %v6904_v48  ;;  %v7123_v30 = vld [vmem:[#allocation2 + $0x22a] sm:$0xff] }
 0x1c6   :  { %4751 = vrcp.f32 %v7095_v9  ;;  %v7118_v6 = vadd.f32 1.0, %v2140_v16  ;;  %v4750_v4 = vpop.eup %4749  ;;  %v3348_v26 = vmul.f32 %v4744_v29, %v3028_v28  ;;  %v2647_v43 = vmul.f32 %v4540_v15, %v7060_v17 }
 0x1c7   :  { %v2393_v5 = vsub.f32 2.0, %v2329_v10  ;;  %v1303_v1 = vadd.f32 %v1239_v41, %v1110_v22  ;;  %v2330_v31 = vmul.f32 %v4746_v35, %v2202_v36  ;;  %v1689_v27 = vadd.f32 %v1625_v47, %v1496_v24  ;;  %v7146_v41 = vld [vmem:[#allocation2 + $0x231] sm:$0xff] }
 0x1c8   :  { %v1433_v38 = vmul.f32 %v5219_v3, %v7121_v42  ;;  %v1818_v48 = vmul.f32 %v6583_v39, %v7123_v30  ;;  %v7131_v49 = vsel %vm20_vm0, %v7011_v63, 0.0  ;;  %v7134_v37 = vsel %vm20_vm0, %v3990_v59, 0.0 }
 0x1c9   :  { %10367 = vst [vmem:[#allocation102_spill] sm:$0xff] %v7131_v49  ;;  %v7137_v28 = vmul.f32 %v3730_v18, %v6784_v45  ;;  %v4541_v16 = vadd.f32 -1.4531521, %v2520_v46  ;;  %v3349_v29 = vmul.f32 %v4748_v21, %v3029_v58  ;;  %v3350_v36 = vmul.f32 %v4750_v4, %v3030_v34  ;;  %v10372_v21 = vld [vmem:[#allocation80_spill] sm:$0xff] }
 0x1ca   :  { %10368 = vst [vmem:[#allocation103_spill] sm:$0xff] %v7134_v37  ;;  %vm3476_vm7 = vcmp.ge.f32.partialorder %v6736_v54, 0.0  ;;  %4753 = vrcp.f32 %v7118_v6  ;;  %v3603_v39 = vsel %vm3475_vm6, %v3411_v25, %v3539_v55  ;;  %v3412_v15 = vsub.f32 1.0, %v3348_v26  ;;  %v10371_v25 = vld [vmem:[#allocation9_spill] sm:$0xff]  ;;  %v10377_v37 = vld [vmem:[#allocation3_spill] sm:$0xff] }
 0x1cb   :  { %10369 = vst [vmem:[#allocation104_spill] sm:$0xff] %v7137_v28  ;;  %vm3477_vm8 = vcmp.ge.f32.partialorder %v6746_v50, 0.0  ;;  %v2711_v10 = vadd.f32 1.4214138, %v2647_v43  ;;  %v7144_v22 = vmul.f32 %v4742_v0, %v2393_v5  ;;  %v2394_v24 = vsub.f32 2.0, %v2330_v31  ;;  %v150_v31 = vld [vmem:[%s9936_s4 + $0x188] sm:$0xff] }
 0x1cc   :  { %v4752_v45 = vpop.eup %4751  ;;  %v1497_v47 = vadd.f32 %v1433_v38, %v1303_v1  ;;  %v1626_v59 = vmul.f32 %v5231_v14, %v7146_v41  ;;  %v1882_v18 = vadd.f32 %v1818_v48, %v1689_v27  ;;  %v7152_v46 = vsel %vm20_vm0, %v7137_v28, 0.0  ;;  %214 = vst.msk [vmem:[#allocation2 + $0x291] sm:$0xff] %vm20_vm0, %v150_v31  ;;  %v7166_v43 = vld [vmem:[#allocation2 + $0x232] sm:$0xff]  ;;  %v10382_v50 = vld [vmem:[#allocation63_spill] sm:$0xff] }
 0x1cd   :  { %10370 = vst [vmem:[#allocation105_spill] sm:$0xff] %v7152_v46  ;;  %v3991_v7 = vmul.f32 %v7137_v28, %v7137_v28  ;;  %vm3478_vm9 = vcmp.ge.f32.partialorder %v10371_v25, 0.0  ;;  %v2648_v5 = vmul.f32 %v4541_v16, %v7092_v56  ;;  %v3731_v0 = vadd.f32 1.0, %v3603_v39 }
 0x1ce   :  { %v3413_v1 = vsub.f32 1.0, %v3349_v29  ;;  %v3414_v55 = vsub.f32 1.0, %v3350_v36  ;;  %v3095_v27 = vsub.f32 0.0, %v10372_v21  ;;  %v3540_v58 = vsub.f32 0.0, %v3412_v15  ;;  %10373 = vst [vmem:[#allocation9_spill] sm:$0xff] %v7166_v43 }
 0x1cf   :  { %v2775_v34 = vmul.f32 %v2711_v10, %v7060_v17  ;;  %v2521_v4 = vmul.f32 1.0614054, %v7144_v22  ;;  %v2331_v26 = vmul.f32 %v4752_v45, %v7095_v9  ;;  %v7168_v48 = vmul.f32 %v4746_v35, %v2394_v24  ;;  %v7176_v36 = vld [vmem:[%s9934_s0 + $0x8] ss:$0 sm:$0xff]  ;;  %v10375_v10 = vld [vmem:[#allocation21_spill] sm:$0xff]  ;;  %v10376_v9 = vld [vmem:[#allocation86_spill] sm:$0xff] }
 0x1d0   :  { %v4754_v38 = vpop.eup %4753  ;;  %v1690_v16 = vadd.f32 %v1626_v59, %v1497_v47  ;;  %v7171_v29 = vadd.f32 %v6703_v2, %v1882_v18  ;;  %10374 = vst [vmem:[#allocation80_spill] sm:$0xff] %v7176_v36  ;;  %v1819_v39 = vmul.f32 %v7176_v36, %v7166_v43  ;;  %v3668_v31 = vmul.f32 0.5, %v10375_v10  ;;  %v10378_v24 = vld [vmem:[#allocation75_spill] sm:$0xff] }
 0x1d1   :  { %v3669_v28 = vmul.f32 0.5, %v10376_v9  ;;  %v2712_v63 = vadd.f32 1.4214138, %v2648_v5  ;;  %v3096_v35 = vsub.f32 0.0, %v10377_v37  ;;  %v7184_v47 = vmul.f32 %v3731_v0, %v10378_v24  ;;  %v10381_v24 = vld [vmem:[#allocation87_spill] sm:$0xff] }
 0x1d2   :  { %v3541_v59 = vsub.f32 0.0, %v3413_v1  ;;  %v3542_v18 = vsub.f32 0.0, %v3414_v55  ;;  %v3159_v46 = vmul.f32 %v3095_v27, %v10372_v21  ;;  %v3604_v49 = vsel %vm3476_vm7, %v3412_v15, %v3540_v58 }
 0x1d3   :  { %10379 = vst [vmem:[#allocation21_spill] sm:$0xff] %v7184_v47  ;;  %v4542_v57 = vadd.f32 -1.4531521, %v2521_v4  ;;  %v2395_v14 = vsub.f32 2.0, %v2331_v26  ;;  %v2332_v36 = vmul.f32 %v4754_v38, %v7118_v6  ;;  %v4604_v10 = vadd.f32 -0.28449672, %v2775_v34 }
 0x1d4   :  { %v2522_v9 = vmul.f32 1.0614054, %v7168_v48  ;;  %v7192_v5 = vmul.f32 0.70710677, %v7171_v29  ;;  %v1883_v43 = vadd.f32 %v1819_v39, %v1690_v16  ;;  %v7195_v0 = vsel %vm20_vm0, %v3991_v7, 0.0 }
 0x1d5   :  { %10380 = vst [vmem:[#allocation86_spill] sm:$0xff] %v7195_v0  ;;  %v3670_v3 = vmul.f32 0.5, %v10381_v24  ;;  %v2776_v21 = vmul.f32 %v2712_v63, %v7092_v56  ;;  %v3160_v54 = vmul.f32 %v3096_v35, %v10377_v37  ;;  %v3992_v15 = vmul.f32 %v7184_v47, %v7184_v47 }
 0x1d6   :  { %v3605_v6 = vsel %vm3477_vm8, %v3413_v1, %v3541_v59  ;;  %v3732_v27 = vadd.f32 1.0, %v3604_v49  ;;  %v3255_v58 = vmul.f32 1.442695, %v3159_v46  ;;  %v3606_v34 = vsel %vm3478_vm9, %v3414_v55, %v3542_v18  ;;  %v10383_v49 = vld [vmem:[#allocation47_spill] sm:$0xff] }
 0x1d7   :  { %v2649_v7 = vmul.f32 %v4542_v57, %v7144_v22  ;;  %v7207_v4 = vmul.f32 %v4752_v45, %v2395_v14  ;;  %v2396_v26 = vsub.f32 2.0, %v2332_v36  ;;  %v2903_v63 = vmul.f32 %v4604_v10, %v7060_v17  ;;  %v151_v14 = vld [vmem:[%s9936_s4 + $0x190] sm:$0xff] }
 0x1d8   :  { %v4543_v16 = vadd.f32 -1.4531521, %v2522_v9  ;;  %v7211_v37 = vand.u32 2147483647, %v7192_v5  ;;  %v7214_v39 = vadd.f32 %v6703_v2, %v1883_v43  ;;  %v7218_v46 = vmul.f32 %v10383_v49, %v10382_v50  ;;  %215 = vst.msk [vmem:[#allocation2 + $0x2a1] sm:$0xff] %vm20_vm0, %v151_v14 }
 0x1d9   :  { %v3733_v25 = vadd.f32 1.0, %v3605_v6  ;;  %v4605_v1 = vadd.f32 -0.28449672, %v2776_v21  ;;  %v3257_v55 = vmul.f32 1.442695, %v3160_v54  ;;  %v7225_v57 = vsel %vm20_vm0, %v7184_v47, 0.0 }
 0x1da   :  { %10384 = vst [vmem:[#allocation3_spill] sm:$0xff] %v7218_v46  ;;  %v7228_v45 = vsel %vm20_vm0, %v3992_v15, 0.0  ;;  %v3734_v2 = vadd.f32 1.0, %v3606_v34  ;;  %4755 = vpow2.f32 %v3255_v58  ;;  %v7231_v43 = vmul.f32 %v3732_v27, %v3668_v31  ;;  %v10389_v54 = vld [vmem:[#allocation65_spill] sm:$0xff]  ;;  %v10391_v58 = vld [vmem:[#allocation4_spill] sm:$0xff] }
 0x1db   :  { %10385 = vst [vmem:[#allocation75_spill] sm:$0xff] %v7225_v57  ;;  %v2713_v36 = vadd.f32 1.4214138, %v2649_v7  ;;  %v2523_v35 = vmul.f32 1.0614054, %v7207_v4  ;;  %v7234_v59 = vmul.f32 %v4754_v38, %v2396_v26  ;;  %v2650_v10 = vmul.f32 %v4543_v16, %v7168_v48 }
 0x1dc   :  { %10386 = vst [vmem:[#allocation87_spill] sm:$0xff] %v7228_v45  ;;  %v2967_v18 = vadd.f32 0.2548296, %v2903_v63  ;;  %v2141_v9 = vmul.f32 0.3275911, %v7211_v37  ;;  %v7241_v21 = vmul.f32 %v3733_v25, %v3669_v28  ;;  %v7244_v15 = vmul.f32 0.5, %v10389_v54 }
 0x1dd   :  { %10387 = vst [vmem:[#allocation63_spill] sm:$0xff] %v7231_v43  ;;  %v7239_v24 = vmul.f32 0.70710677, %v7214_v39  ;;  %v2904_v31 = vmul.f32 %v4605_v1, %v7092_v56  ;;  %4757 = vpow2.f32 %v3257_v55  ;;  %v7247_v6 = vmul.f32 %v3734_v2, %v3670_v3  ;;  %v10398_v45 = vld [vmem:[#allocation89_spill] sm:$0xff] }
 0x1de   :  { %10388 = vst [vmem:[#allocation47_spill] sm:$0xff] %v7241_v21  ;;  %v3097_v38 = vsub.f32 0.0, %v6997_v44  ;;  %v339_v27 = vmul.f32 %v10241_v60, %v6914_v52  ;;  %v468_v34 = vmul.f32 %v10391_v58, %v6938_v19  ;;  %v7256_v28 = vsel %vm20_vm0, %v7231_v43, 0.0 }
 0x1df   :  { %10390 = vst [vmem:[#allocation65_spill] sm:$0xff] %v7247_v6  ;;  %v2777_v7 = vmul.f32 %v2713_v36, %v7144_v22  ;;  %v4544_v26 = vadd.f32 -1.4531521, %v2523_v35  ;;  %v2524_v63 = vmul.f32 1.0614054, %v7234_v59  ;;  %v3031_v3 = vmul.f32 %v2967_v18, %v7060_v17 }
 0x1e0   :  { %10392 = vst [vmem:[#allocation4_spill] sm:$0xff] %v7256_v28  ;;  %v4756_v16 = vpop.eup %4755  ;;  %v2714_v50 = vadd.f32 1.4214138, %v2650_v10  ;;  %v2205_v49 = vadd.f32 1.0, %v2141_v9  ;;  %v7262_v25 = vand.u32 2147483647, %v7239_v24  ;;  %v3993_v19 = vmul.f32 %v7231_v43, %v7231_v43 }
 0x1e1   :  { %v7266_v52 = vsel %vm20_vm0, %v7241_v21, 0.0  ;;  %v2968_v1 = vadd.f32 0.2548296, %v2904_v31  ;;  %v3098_v55 = vsub.f32 0.0, %v7025_v33  ;;  %v3994_v14 = vmul.f32 %v7241_v21, %v7241_v21  ;;  %v413_v28 = vld [vmem:[#allocation2 + $0x289] sm:$0xff] }
 0x1e2   :  { %10393 = vst [vmem:[#allocation106_spill] sm:$0xff] %v7266_v52  ;;  %v3161_v17 = vmul.f32 %v3097_v38, %v6997_v44  ;;  %v532_v2 = vadd.f32 %v468_v34, %v339_v27  ;;  %v661_v36 = vmul.f32 %v10335_v8, %v6968_v20  ;;  %v7278_v18 = vsel %vm20_vm0, %v7247_v6, 0.0  ;;  %v152_v44 = vld [vmem:[%s9936_s4 + $0x198] sm:$0xff]  ;;  %v10395_v20 = vld [vmem:[#allocation5_spill] sm:$0xff] }
 0x1e3   :  { %v4758_v35 = vpop.eup %4757  ;;  %10394 = vst [vmem:[#allocation107_spill] sm:$0xff] %v7278_v18  ;;  %v4606_v10 = vadd.f32 -0.28449672, %v2777_v7  ;;  %v2651_v9 = vmul.f32 %v4544_v26, %v7207_v4  ;;  %v4545_v54 = vadd.f32 -1.4531521, %v2524_v63  ;;  %v3351_v31 = vmul.f32 %v4756_v16, %v3031_v3 }
 0x1e4   :  { %v2778_v43 = vmul.f32 %v2714_v50, %v7168_v48  ;;  %4759 = vrcp.f32 %v2205_v49  ;;  %v2142_v21 = vmul.f32 0.3275911, %v7262_v25  ;;  %vm3479_vm10 = vcmp.ge.f32.partialorder %v10395_v20, 0.0  ;;  %216 = vst.msk [vmem:[#allocation2 + $0x2a9] sm:$0xff] %vm20_vm0, %v152_v44 }
 0x1e5   :  { %v3032_v38 = vmul.f32 %v2968_v1, %v7092_v56  ;;  %v3162_v27 = vmul.f32 %v3098_v55, %v7025_v33  ;;  %v340_v34 = vmul.f32 %v10241_v60, %v6940_v51  ;;  %v469_v7 = vmul.f32 %v10391_v58, %v6966_v62 }
 0x1e6   :  { %v3995_v26 = vmul.f32 %v7247_v6, %v7247_v6  ;;  %v3259_v63 = vmul.f32 1.442695, %v3161_v17  ;;  %v725_v16 = vadd.f32 %v661_v36, %v532_v2  ;;  %v854_v3 = vmul.f32 %v5225_v11, %v7078_v40 }
 0x1e7   :  { %v7299_v56 = vsel %vm20_vm0, %v3993_v19, 0.0  ;;  %v2905_v33 = vmul.f32 %v4606_v10, %v7144_v22  ;;  %v2715_v50 = vadd.f32 1.4214138, %v2651_v9  ;;  %v2652_v51 = vmul.f32 %v4545_v54, %v7234_v59  ;;  %v10399_v9 = vld [vmem:[#allocation88_spill] sm:$0xff] }
 0x1e8   :  { %10396 = vst [vmem:[#allocation5_spill] sm:$0xff] %v7299_v56  ;;  %v7304_v62 = vsel %vm20_vm0, %v3994_v14, 0.0  ;;  %v3415_v1 = vsub.f32 1.0, %v3351_v31  ;;  %v4607_v55 = vadd.f32 -0.28449672, %v2778_v43  ;;  %v2206_v44 = vadd.f32 1.0, %v2142_v21 }
 0x1e9   :  { %10397 = vst [vmem:[#allocation108_spill] sm:$0xff] %v7304_v62  ;;  %v3352_v6 = vmul.f32 %v4758_v35, %v3032_v38  ;;  %v3261_v17 = vmul.f32 1.442695, %v3162_v27  ;;  %v533_v2 = vadd.f32 %v469_v7, %v340_v34  ;;  %v3099_v36 = vsub.f32 0.0, %v7055_v53 }
 0x1ea   :  { %v4760_v47 = vpop.eup %4759  ;;  %vm3480_vm11 = vcmp.ge.f32.partialorder %v10398_v45, 0.0  ;;  %4761 = vpow2.f32 %v3259_v63  ;;  %v662_v19 = vmul.f32 %v10335_v8, %v6994_v23  ;;  %v918_v10 = vadd.f32 %v854_v3, %v725_v16 }
 0x1eb   :  { %v1047_v14 = vmul.f32 %v5227_v12, %v7100_v61  ;;  %v7313_v54 = vmul.f32 0.5, %v10399_v9  ;;  %v2969_v43 = vadd.f32 0.2548296, %v2905_v33  ;;  %v2779_v21 = vmul.f32 %v2715_v50, %v7207_v4  ;;  %v7335_v9 = vld [vmem:[#allocation2 + $0x240] sm:$0xff] }
 0x1ec   :  { %v2716_v35 = vadd.f32 1.4214138, %v2652_v51  ;;  %v3543_v31 = vsub.f32 0.0, %v3415_v1  ;;  %v2906_v38 = vmul.f32 %v4607_v55, %v7168_v48  ;;  %v3100_v27 = vsub.f32 0.0, %v7073_v32 }
 0x1ed   :  { %4763 = vrcp.f32 %v2206_v44  ;;  %v3416_v34 = vsub.f32 1.0, %v3352_v6  ;;  %v3163_v23 = vmul.f32 %v3099_v36, %v7055_v53  ;;  %v2333_v7 = vmul.f32 %v4760_v47, %v2205_v49 }
 0x1ee   :  { %4765 = vpow2.f32 %v3261_v17  ;;  %v726_v63 = vadd.f32 %v662_v19, %v533_v2  ;;  %v1111_v16 = vadd.f32 %v1047_v14, %v918_v10  ;;  %v855_v3 = vmul.f32 %v5225_v11, %v7121_v42 }
 0x1ef   :  { %v1240_v33 = vmul.f32 %v5229_v13, %v7123_v30  ;;  %v3033_v50 = vmul.f32 %v2969_v43, %v7144_v22  ;;  %v4608_v51 = vadd.f32 -0.28449672, %v2779_v21  ;;  %v2780_v55 = vmul.f32 %v2716_v35, %v7234_v59  ;;  %v10401_v21 = vld [vmem:[#allocation8_spill] sm:$0xff] }
 0x1f0   :  { %v341_v6 = vmul.f32 %v10241_v60, %v7078_v40  ;;  %v4762_v17 = vpop.eup %4761  ;;  %v3607_v53 = vsel %vm3479_vm10, %v3415_v1, %v3543_v31  ;;  %v2970_v49 = vadd.f32 0.2548296, %v2906_v38  ;;  %v3164_v2 = vmul.f32 %v3100_v27, %v7073_v32 }
 0x1f1   :  { %v470_v36 = vmul.f32 %v10391_v58, %v7100_v61  ;;  %v7333_v19 = vsel %vm20_vm0, %v3995_v26, 0.0  ;;  %v3544_v22 = vsub.f32 0.0, %v3416_v34  ;;  %v3263_v10 = vmul.f32 1.442695, %v3163_v23  ;;  %v153_v61 = vld [vmem:[%s9936_s4 + $0x1a0] sm:$0xff]  ;;  %v10402_v23 = vld [vmem:[#allocation92_spill] sm:$0xff] }
 0x1f2   :  { %10400 = vst [vmem:[#allocation89_spill] sm:$0xff] %v7333_v19  ;;  %v2397_v14 = vsub.f32 2.0, %v2333_v7  ;;  %v919_v40 = vadd.f32 %v855_v3, %v726_v63  ;;  %v1048_v20 = vmul.f32 %v5227_v12, %v7146_v41  ;;  %v1304_v1 = vadd.f32 %v1240_v33, %v1111_v16  ;;  %v10403_v7 = vld [vmem:[#allocation90_spill] sm:$0xff] }
 0x1f3   :  { %v4764_v43 = vpop.eup %4763  ;;  %v1434_v32 = vmul.f32 %v10401_v21, %v7335_v9  ;;  %v3735_v35 = vadd.f32 1.0, %v3607_v53  ;;  %v3353_v31 = vmul.f32 %v4762_v17, %v3033_v50  ;;  %v2907_v38 = vmul.f32 %v4608_v51, %v7207_v4  ;;  %217 = vst.msk [vmem:[#allocation2 + $0x2b9] sm:$0xff] %vm20_vm0, %v153_v61  ;;  %v7355_v51 = vld [vmem:[#allocation2 + $0x241] sm:$0xff]  ;;  %v10404_v17 = vld [vmem:[#allocation9_spill] sm:$0xff] }
 0x1f4   :  { %v4766_v26 = vpop.eup %4765  ;;  %v4609_v27 = vadd.f32 -0.28449672, %v2780_v55  ;;  %vm3481_vm12 = vcmp.ge.f32.partialorder %v10402_v23, 0.0  ;;  %v7348_v63 = vmul.f32 0.5, %v10403_v7  ;;  %v3034_v16 = vmul.f32 %v2970_v49, %v7168_v48  ;;  %v10405_v7 = vld [vmem:[#allocation11_spill] sm:$0xff] }
 0x1f5   :  { %v3265_v3 = vmul.f32 1.442695, %v3164_v2  ;;  %v534_v33 = vadd.f32 %v470_v36, %v341_v6  ;;  %v3608_v19 = vsel %vm3480_vm11, %v3416_v34, %v3544_v22  ;;  %4767 = vpow2.f32 %v3263_v10  ;;  %v10407_v2 = vld [vmem:[#allocation95_spill] sm:$0xff] }
 0x1f6   :  { %v7353_v53 = vmul.f32 %v4760_v47, %v2397_v14  ;;  %v2334_v50 = vmul.f32 %v4764_v43, %v2206_v44  ;;  %v1112_v55 = vadd.f32 %v1048_v20, %v919_v40  ;;  %v1241_v61 = vmul.f32 %v5229_v13, %v10404_v17  ;;  %v7373_v14 = vld [vmem:[#allocation2 + $0x248] sm:$0xff] }
 0x1f7   :  { %v1498_v62 = vadd.f32 %v1434_v32, %v1304_v1  ;;  %v1627_v56 = vmul.f32 %v10405_v7, %v7355_v51  ;;  %v7362_v48 = vmul.f32 %v3735_v35, %v7244_v15  ;;  %v3417_v6 = vsub.f32 1.0, %v3353_v31  ;;  %v7375_v40 = vld [vmem:[#allocation2 + $0x242] sm:$0xff]  ;;  %v10409_v35 = vld [vmem:[#allocation94_spill] sm:$0xff] }
 0x1f8   :  { %v2971_v45 = vadd.f32 0.2548296, %v2907_v38  ;;  %v2908_v34 = vmul.f32 %v4609_v27, %v7234_v59  ;;  %v3736_v47 = vadd.f32 1.0, %v3608_v19  ;;  %v3354_v49 = vmul.f32 %v4766_v26, %v3034_v16  ;;  %v10408_v1 = vld [vmem:[#allocation80_spill] sm:$0xff] }
 0x1f9   :  { %10406 = vst [vmem:[#allocation88_spill] sm:$0xff] %v7362_v48  ;;  %4769 = vpow2.f32 %v3265_v3  ;;  %v663_v44 = vmul.f32 %v10335_v8, %v7123_v30  ;;  %vm3482_vm13 = vcmp.ge.f32.partialorder %v10407_v2, 0.0  ;;  %v342_v36 = vmul.f32 %v10241_v60, %v7121_v42 }
 0x1fa   :  { %v471_v22 = vmul.f32 %v10391_v58, %v7146_v41  ;;  %v2525_v15 = vmul.f32 1.0614054, %v7353_v53  ;;  %v2398_v10 = vsub.f32 2.0, %v2334_v50  ;;  %v1305_v19 = vadd.f32 %v1241_v61, %v1112_v55 }
 0x1fb   :  { %v1691_v20 = vadd.f32 %v1627_v56, %v1498_v62  ;;  %v1435_v30 = vmul.f32 %v10401_v21, %v7373_v14  ;;  %v1820_v32 = vmul.f32 %v10408_v1, %v7375_v40  ;;  %v4768_v26 = vpop.eup %4767  ;;  %v3545_v42 = vsub.f32 0.0, %v3417_v6  ;;  %v154_v62 = vld [vmem:[%s9936_s4 + $0x1a8] sm:$0xff] }
 0x1fc   :  { %v7382_v31 = vmul.f32 0.5, %v10409_v35  ;;  %v3035_v41 = vmul.f32 %v2971_v45, %v7207_v4  ;;  %v2972_v38 = vadd.f32 0.2548296, %v2908_v34  ;;  %v3996_v27 = vmul.f32 %v7362_v48, %v7362_v48  ;;  %v7401_v45 = vld [vmem:[#allocation2 + $0x249] sm:$0xff]  ;;  %218 = vst.msk [vmem:[#allocation2 + $0x2c1] sm:$0xff] %vm20_vm0, %v154_v62 }
 0x1fd   :  { %v3418_v16 = vsub.f32 1.0, %v3354_v49  ;;  %v727_v3 = vadd.f32 %v663_v44, %v534_v33  ;;  %v856_v56 = vmul.f32 %v5225_v11, %v7335_v9  ;;  %v7394_v50 = vsel %vm20_vm0, %v7362_v48, 0.0 }
 0x1fe   :  { %10410 = vst [vmem:[#allocation8_spill] sm:$0xff] %v7394_v50  ;;  %v7397_v55 = vmul.f32 %v3736_v47, %v7313_v54  ;;  %v4546_v4 = vadd.f32 -1.4531521, %v2525_v15  ;;  %v7399_v61 = vmul.f32 %v4764_v43, %v2398_v10  ;;  %v535_v34 = vadd.f32 %v471_v22, %v342_v36 }
 0x1ff   :  { %v4770_v33 = vpop.eup %4769  ;;  %v1499_v49 = vadd.f32 %v1435_v30, %v1305_v19  ;;  %v1628_v44 = vmul.f32 %v10405_v7, %v7401_v45  ;;  %v1884_v35 = vadd.f32 %v1820_v32, %v1691_v20  ;;  %v3609_v48 = vsel %vm3481_vm12, %v3417_v6, %v3545_v42  ;;  %v7429_v30 = vld [vmem:[%s9935_s1] ss:$0 sm:$0xff] }
 0x200   :  { %10411 = vst [vmem:[#allocation92_spill] sm:$0xff] %v7397_v55  ;;  %v3355_v0 = vmul.f32 %v4768_v26, %v3035_v41  ;;  %v3036_v54 = vmul.f32 %v2972_v38, %v7234_v59  ;;  %v664_v43 = vmul.f32 %v10335_v8, %v10404_v17  ;;  %v7412_v47 = vsel %vm20_vm0, %v3996_v27, 0.0  ;;  %v7424_v17 = vld [vmem:[#allocation2 + $0x24a] sm:$0xff] }
 0x201   :  { %10412 = vst [vmem:[#allocation90_spill] sm:$0xff] %v7412_v47  ;;  %v3546_v15 = vsub.f32 0.0, %v3418_v16  ;;  %v920_v10 = vadd.f32 %v856_v56, %v727_v3  ;;  %v1049_v36 = vmul.f32 %v5227_v12, %v7355_v51  ;;  %v7418_v22 = vsel %vm20_vm0, %v7397_v55, 0.0  ;;  %v10414_v41 = vld [vmem:[#allocation49_spill] sm:$0xff] }
 0x202   :  { %10413 = vst [vmem:[#allocation9_spill] sm:$0xff] %v7418_v22  ;;  %v3997_v23 = vmul.f32 %v7397_v55, %v7397_v55  ;;  %v2653_v59 = vmul.f32 %v4546_v4, %v7353_v53  ;;  %v2526_v6 = vmul.f32 1.0614054, %v7399_v61  ;;  %v3737_v19 = vadd.f32 1.0, %v3609_v48 }
 0x203   :  { %v1692_v20 = vadd.f32 %v1628_v44, %v1499_v49  ;;  %v7432_v32 = vadd.f32 %v7429_v30, %v1884_v35  ;;  %v1821_v26 = vmul.f32 %v10408_v1, %v7424_v17  ;;  %v3419_v42 = vsub.f32 1.0, %v3355_v0  ;;  %v10416_v49 = vld [vmem:[#allocation97_spill] sm:$0xff] }
 0x204   :  { %vm3483_vm14 = vcmp.ge.f32.partialorder %v10414_v41, 0.0  ;;  %v3356_v38 = vmul.f32 %v4770_v33, %v3036_v54  ;;  %v728_v27 = vadd.f32 %v664_v43, %v535_v34  ;;  %v3610_v48 = vsel %vm3482_vm13, %v3418_v16, %v3546_v15  ;;  %v10418_v34 = vld [vmem:[#allocation99_spill] sm:$0xff] }
 0x205   :  { %v1113_v3 = vadd.f32 %v1049_v36, %v920_v10  ;;  %v857_v56 = vmul.f32 %v5225_v11, %v7373_v14  ;;  %v1242_v62 = vmul.f32 %v5229_v13, %v7375_v40  ;;  %v7444_v4 = vsel %vm20_vm0, %v3997_v23, 0.0  ;;  %v7455_v36 = vld [vmem:[#allocation2 + $0x258] sm:$0xff] }
 0x206   :  { %10415 = vst [vmem:[#allocation95_spill] sm:$0xff] %v7444_v4  ;;  %v3675_v44 = vmul.f32 0.5, %v10416_v49  ;;  %v2717_v0 = vadd.f32 1.4214138, %v2653_v59  ;;  %v4547_v35 = vadd.f32 -1.4531521, %v2526_v6  ;;  %v7448_v33 = vmul.f32 %v3737_v19, %v7348_v63 }
 0x207   :  { %vm3484_vm15 = vcmp.ge.f32.partialorder %v10418_v34, 0.0  ;;  %v7452_v2 = vmul.f32 0.70710677, %v7432_v32  ;;  %v1885_v16 = vadd.f32 %v1821_v26, %v1692_v20  ;;  %v3738_v54 = vadd.f32 1.0, %v3610_v48  ;;  %v155_v19 = vld [vmem:[%s9936_s4 + $0x1b0] sm:$0xff] }
 0x208   :  { %10417 = vst [vmem:[#allocation80_spill] sm:$0xff] %v7448_v33  ;;  %v3547_v43 = vsub.f32 0.0, %v3419_v42  ;;  %v3420_v15 = vsub.f32 1.0, %v3356_v38  ;;  %v3101_v10 = vsub.f32 0.0, %v7211_v37  ;;  %v921_v23 = vadd.f32 %v857_v56, %v728_v27 }
 0x209   :  { %v1050_v59 = vmul.f32 %v5227_v12, %v7401_v45  ;;  %v1306_v6 = vadd.f32 %v1242_v62, %v1113_v3  ;;  %v1436_v63 = vmul.f32 %v10401_v21, %v7455_v36  ;;  %v2781_v20 = vmul.f32 %v2717_v0, %v7353_v53  ;;  %219 = vst.msk [vmem:[#allocation2 + $0x2d1] sm:$0xff] %vm20_vm0, %v155_v19  ;;  %v10419_v3 = vld [vmem:[#allocation98_spill] sm:$0xff] }
 0x20a   :  { %v2654_v26 = vmul.f32 %v4547_v35, %v7399_v61  ;;  %v343_v38 = vmul.f32 %v10241_v60, %v7335_v9  ;;  %v472_v27 = vmul.f32 %v10391_v58, %v7355_v51  ;;  %v3998_v48 = vmul.f32 %v7448_v33, %v7448_v33  ;;  %v7486_v19 = vld [vmem:[#allocation2 + $0x259] sm:$0xff] }
 0x20b   :  { %v3676_v56 = vmul.f32 0.5, %v10419_v3  ;;  %v7475_v62 = vand.u32 2147483647, %v7452_v2  ;;  %v7478_v49 = vadd.f32 %v7429_v30, %v1885_v16  ;;  %v7481_v0 = vmul.f32 %v3738_v54, %v7382_v31 }
 0x20c   :  { %v3611_v9 = vsel %vm3483_vm14, %v3419_v42, %v3547_v43  ;;  %v3548_v51 = vsub.f32 0.0, %v3420_v15  ;;  %v3165_v35 = vmul.f32 %v3101_v10, %v7211_v37  ;;  %v1114_v55 = vadd.f32 %v1050_v59, %v921_v23 }
 0x20d   :  { %10420 = vst [vmem:[#allocation94_spill] sm:$0xff] %v7481_v0  ;;  %v1243_v3 = vmul.f32 %v5229_v13, %v7424_v17  ;;  %v1500_v4 = vadd.f32 %v1436_v63, %v1306_v6  ;;  %v1629_v16 = vmul.f32 %v10405_v7, %v7486_v19  ;;  %v4610_v47 = vadd.f32 -0.28449672, %v2781_v20  ;;  %v7508_v63 = vld [vmem:[#allocation2 + $0x260] sm:$0xff] }
 0x20e   :  { %v2718_v22 = vadd.f32 1.4214138, %v2654_v26  ;;  %v3102_v31 = vsub.f32 0.0, %v7262_v25  ;;  %v536_v54 = vadd.f32 %v472_v27, %v343_v38  ;;  %v7495_v42 = vsel %vm20_vm0, %v7448_v33, 0.0  ;;  %v7510_v20 = vld [vmem:[#allocation2 + $0x25a] sm:$0xff] }
 0x20f   :  { %10421 = vst [vmem:[#allocation49_spill] sm:$0xff] %v7495_v42  ;;  %v7498_v37 = vsel %vm20_vm0, %v3998_v48, 0.0  ;;  %v2143_v41 = vmul.f32 0.3275911, %v7475_v62  ;;  %v7502_v43 = vmul.f32 0.70710677, %v7478_v49  ;;  %v3999_v10 = vmul.f32 %v7481_v0, %v7481_v0 }
 0x210   :  { %10422 = vst [vmem:[#allocation97_spill] sm:$0xff] %v7498_v37  ;;  %v3739_v23 = vadd.f32 1.0, %v3611_v9  ;;  %v3612_v59 = vsel %vm3484_vm15, %v3420_v15, %v3548_v51  ;;  %v3267_v6 = vmul.f32 1.442695, %v3165_v35  ;;  %v1307_v26 = vadd.f32 %v1243_v3, %v1114_v55 }
 0x211   :  { %v1693_v38 = vadd.f32 %v1629_v16, %v1500_v4  ;;  %v1437_v27 = vmul.f32 %v10401_v21, %v7508_v63  ;;  %v1822_v48 = vmul.f32 %v10408_v1, %v7510_v20  ;;  %v7518_v33 = vsel %vm20_vm0, %v7481_v0, 0.0 }
 0x212   :  { %10423 = vst [vmem:[#allocation99_spill] sm:$0xff] %v7518_v33  ;;  %v2909_v34 = vmul.f32 %v4610_v47, %v7353_v53  ;;  %v2782_v15 = vmul.f32 %v2718_v22, %v7399_v61  ;;  %v3166_v9 = vmul.f32 %v3102_v31, %v7262_v25  ;;  %v344_v55 = vmul.f32 %v10241_v60, %v7373_v14  ;;  %v410_v25 = vld [vmem:[#allocation2 + $0x261] sm:$0xff] }
 0x213   :  { %v473_v4 = vmul.f32 %v10391_v58, %v7401_v45  ;;  %v2207_v51 = vadd.f32 1.0, %v2143_v41  ;;  %v7528_v35 = vand.u32 2147483647, %v7502_v43  ;;  %v7531_v3 = vsel %vm20_vm0, %v3999_v10, 0.0  ;;  %v10426_v45 = vld [vmem:[#allocation66_spill] sm:$0xff]  ;;  %v10427_v41 = vld [vmem:[#allocation67_spill] sm:$0xff] }
 0x214   :  { %10424 = vst [vmem:[#allocation98_spill] sm:$0xff] %v7531_v3  ;;  %v7533_v16 = vmul.f32 %v3739_v23, %v3675_v44  ;;  %v3740_v47 = vadd.f32 1.0, %v3612_v59  ;;  %v665_v22 = vmul.f32 %v10335_v8, %v7375_v40  ;;  %4771 = vpow2.f32 %v3267_v6 }
 0x215   :  { %v1501_v31 = vadd.f32 %v1437_v27, %v1307_v26  ;;  %v1630_v14 = vmul.f32 %v10405_v7, %v410_v25  ;;  %v1886_v0 = vadd.f32 %v1822_v48, %v1693_v38  ;;  %v7540_v37 = vmul.f32 %v10427_v41, %v10426_v45  ;;  %v603_v38 = vld [vmem:[#allocation2 + $0x262] sm:$0xff] }
 0x216   :  { %10425 = vst [vmem:[#allocation109_spill] sm:$0xff] %v7533_v16  ;;  %v2973_v33 = vadd.f32 0.2548296, %v2909_v34  ;;  %v4611_v42 = vadd.f32 -0.28449672, %v2782_v15  ;;  %v537_v3 = vadd.f32 %v473_v4, %v344_v55  ;;  %4773 = vrcp.f32 %v2207_v51 }
 0x217   :  { %10428 = vst [vmem:[#allocation66_spill] sm:$0xff] %v7540_v37  ;;  %v3269_v10 = vmul.f32 1.442695, %v3166_v9  ;;  %v666_v44 = vmul.f32 %v10335_v8, %v7424_v17  ;;  %v2144_v40 = vmul.f32 0.3275911, %v7528_v35  ;;  %v4000_v23 = vmul.f32 %v7533_v16, %v7533_v16 }
 0x218   :  { %v7547_v59 = vmul.f32 %v3740_v47, %v3676_v56  ;;  %v7550_v6 = vmul.f32 0.5, %v7171_v29  ;;  %v729_v26 = vadd.f32 %v665_v22, %v536_v54  ;;  %v345_v27 = vmul.f32 %v10241_v60, %v7455_v36  ;;  %v156_v54 = vld [vmem:[%s9936_s4 + $0x1b8] sm:$0xff] }
 0x219   :  { %v1694_v48 = vadd.f32 %v1630_v14, %v1501_v31  ;;  %v7555_v34 = vadd.f32 %v7429_v30, %v1886_v0  ;;  %v1823_v17 = vmul.f32 %v10408_v1, %v603_v38  ;;  %v3037_v15 = vmul.f32 %v2973_v33, %v7353_v53  ;;  %220 = vst.msk [vmem:[#allocation2 + $0x2d9] sm:$0xff] %vm20_vm0, %v156_v54 }
 0x21a   :  { %10429 = vst [vmem:[#allocation67_spill] sm:$0xff] %v7547_v59  ;;  %v2910_v9 = vmul.f32 %v4611_v42, %v7399_v61  ;;  %v474_v56 = vmul.f32 %v10391_v58, %v7486_v19  ;;  %v858_v29 = vmul.f32 %v5225_v11, %v7455_v36  ;;  %v4772_v55 = vpop.eup %4771  ;;  %4775 = vpow2.f32 %v3269_v10 }
 0x21b   :  { %v730_v0 = vadd.f32 %v666_v44, %v537_v3  ;;  %v2208_v4 = vadd.f32 1.0, %v2144_v40  ;;  %v859_v47 = vmul.f32 %v5225_v11, %v7508_v63  ;;  %v7572_v53 = vsel %vm20_vm0, %v7533_v16, 0.0 }
 0x21c   :  { %10430 = vst [vmem:[#allocation110_spill] sm:$0xff] %v7572_v53  ;;  %v7575_v33 = vsel %vm20_vm0, %v4000_v23, 0.0  ;;  %v7578_v36 = vmul.f32 0.5, %v7214_v39  ;;  %v3103_v42 = vsub.f32 0.0, %v7475_v62  ;;  %v4774_v22 = vpop.eup %4773  ;;  %v7583_v3 = vsel %vm20_vm0, %v7547_v59, 0.0 }
 0x21d   :  { %10431 = vst [vmem:[#allocation111_spill] sm:$0xff] %v7575_v33  ;;  %v1051_v31 = vmul.f32 %v5227_v12, %v7486_v19  ;;  %v7588_v14 = vmul.f32 0.70710677, %v7555_v34  ;;  %v1887_v45 = vadd.f32 %v1823_v17, %v1694_v48  ;;  %v3357_v41 = vmul.f32 %v4772_v55, %v3037_v15  ;;  %v282_v17 = vld [vmem:[#allocation2 + $0x270] sm:$0xff] }
 0x21e   :  { %10432 = vst [vmem:[#allocation112_spill] sm:$0xff] %v7583_v3  ;;  %v2974_v10 = vadd.f32 0.2548296, %v2910_v9  ;;  %v538_v44 = vadd.f32 %v474_v56, %v345_v27  ;;  %v922_v40 = vadd.f32 %v858_v29, %v729_v26  ;;  %vm3485_vm1 = vcmp.ge.f32.partialorder %v7192_v5, 0.0 }
 0x21f   :  { %4777 = vrcp.f32 %v2208_v4  ;;  %v667_v39 = vmul.f32 %v10335_v8, %v7510_v20  ;;  %v923_v23 = vadd.f32 %v859_v47, %v730_v0  ;;  %v1052_v54 = vmul.f32 %v5227_v12, %v410_v25 }
 0x220   :  { %v2335_v16 = vmul.f32 %v4774_v22, %v2207_v51  ;;  %v3167_v19 = vmul.f32 %v3103_v42, %v7475_v62  ;;  %v346_v33 = vmul.f32 %v10241_v60, %v7508_v63  ;;  %v475_v48 = vmul.f32 %v10391_v58, %v410_v25  ;;  %v4776_v27 = vpop.eup %4775 }
 0x221   :  { %v4001_v26 = vmul.f32 %v7547_v59, %v7547_v59  ;;  %v3104_v15 = vsub.f32 0.0, %v7528_v35  ;;  %v7602_v9 = vand.u32 2147483647, %v7588_v14  ;;  %v7605_v56 = vadd.f32 %v7429_v30, %v1887_v45  ;;  %v283_v45 = vld [vmem:[#allocation2 + $0x278] sm:$0xff] }
 0x222   :  { %v3421_v51 = vsub.f32 1.0, %v3357_v41  ;;  %v3038_v62 = vmul.f32 %v2974_v10, %v7399_v61  ;;  %v1115_v29 = vadd.f32 %v1051_v31, %v922_v40  ;;  %v1244_v63 = vmul.f32 %v5229_v13, %v7510_v20 }
 0x223   :  { %v731_v25 = vadd.f32 %v667_v39, %v538_v44  ;;  %v1116_v55 = vadd.f32 %v1052_v54, %v923_v23  ;;  %v1245_v0 = vmul.f32 %v5229_v13, %v603_v38  ;;  %v860_v47 = vmul.f32 %v5225_v11, %v282_v17  ;;  %v411_v44 = vld [vmem:[#allocation2 + $0x271] sm:$0xff] }
 0x224   :  { %v2399_v42 = vsub.f32 2.0, %v2335_v16  ;;  %v3271_v59 = vmul.f32 1.442695, %v3167_v19  ;;  %v539_v3 = vadd.f32 %v475_v48, %v346_v33  ;;  %v668_v53 = vmul.f32 %v10335_v8, %v603_v38  ;;  %v157_v16 = vld [vmem:[%s9936_s4 + $0x1c0] sm:$0xff] }
 0x225   :  { %v4778_v50 = vpop.eup %4777  ;;  %v7614_v41 = vsel %vm20_vm0, %v4001_v26, 0.0  ;;  %v3168_v61 = vmul.f32 %v3104_v15, %v7528_v35  ;;  %v2145_v20 = vmul.f32 0.3275911, %v7602_v9  ;;  %v7619_v31 = vmul.f32 0.70710677, %v7605_v56  ;;  %221 = vst.msk [vmem:[#allocation2 + $0x2e9] sm:$0xff] %vm20_vm0, %v157_v16 }
 0x226   :  { %10433 = vst [vmem:[#allocation113_spill] sm:$0xff] %v7614_v41  ;;  %v3549_v10 = vsub.f32 0.0, %v3421_v51  ;;  %v7624_v33 = vmul.f32 %v4776_v27, %v3038_v62  ;;  %v1308_v38 = vadd.f32 %v1244_v63, %v1115_v29  ;;  %v1438_v40 = vmul.f32 %v10401_v21, %v282_v17 }
 0x227   :  { %10434 = vst [vmem:[#allocation114_spill] sm:$0xff] %v7619_v31  ;;  %v1309_v39 = vadd.f32 %v1245_v0, %v1116_v55  ;;  %v924_v35 = vadd.f32 %v860_v47, %v731_v25  ;;  %v1053_v23 = vmul.f32 %v5227_v12, %v411_v44  ;;  %v1439_v54 = vmul.f32 %v10401_v21, %v283_v45  ;;  %v604_v47 = vld [vmem:[#allocation2 + $0x272] sm:$0xff] }
 0x228   :  { %v7630_v19 = vmul.f32 %v4774_v22, %v2399_v42  ;;  %v2336_v48 = vmul.f32 %v4778_v50, %v2208_v4  ;;  %v732_v26 = vadd.f32 %v668_v53, %v539_v3  ;;  %v861_v15 = vmul.f32 %v5225_v11, %v283_v45  ;;  %v412_v22 = vld [vmem:[#allocation2 + $0x279] sm:$0xff] }
 0x229   :  { %4779 = vpow2.f32 %v3271_v59  ;;  %v3273_v27 = vmul.f32 1.442695, %v3168_v61  ;;  %v2209_v62 = vadd.f32 1.0, %v2145_v20  ;;  %v7634_v29 = vand.u32 2147483647, %v7619_v31 }
 0x22a   :  { %v3613_v63 = vsel %vm3485_vm1, %v3421_v51, %v3549_v10  ;;  %v1502_v55 = vadd.f32 %v1438_v40, %v1308_v38  ;;  %v1631_v0 = vmul.f32 %v10405_v7, %v411_v44  ;;  %v1117_v4 = vadd.f32 %v1053_v23, %v924_v35  ;;  %v605_v23 = vld [vmem:[#allocation2 + $0x27a] sm:$0xff] }
 0x22b   :  { %v1246_v53 = vmul.f32 %v5229_v13, %v604_v47  ;;  %v1503_v3 = vadd.f32 %v1439_v54, %v1309_v39  ;;  %v1632_v59 = vmul.f32 %v10405_v7, %v412_v22  ;;  %vm3486_vm2 = vcmp.ge.f32.partialorder %v7239_v24, 0.0  ;;  %v284_v54 = vld [vmem:[#allocation2 + $0x288] sm:$0xff] }
 0x22c   :  { %v2527_v42 = vmul.f32 1.0614054, %v7630_v19  ;;  %v2400_v61 = vsub.f32 2.0, %v2336_v48  ;;  %v925_v5 = vadd.f32 %v861_v15, %v732_v26  ;;  %v1054_v51 = vmul.f32 %v5227_v12, %v412_v22 }
 0x22d   :  { %4781 = vrcp.f32 %v2209_v62  ;;  %v2146_v20 = vmul.f32 0.3275911, %v7634_v29  ;;  %v347_v16 = vmul.f32 %v10241_v60, %v282_v17  ;;  %v476_v10 = vmul.f32 %v10391_v58, %v411_v44 }
 0x22e   :  { %v1695_v38 = vadd.f32 %v1631_v0, %v1502_v55  ;;  %v348_v40 = vmul.f32 %v10241_v60, %v283_v45  ;;  %v477_v39 = vmul.f32 %v10391_v58, %v412_v22  ;;  %v1824_v35 = vmul.f32 %v10408_v1, %v604_v47 }
 0x22f   :  { %v7651_v48 = vpop.eup %4779  ;;  %v1310_v26 = vadd.f32 %v1246_v53, %v1117_v4  ;;  %v1696_v15 = vadd.f32 %v1632_v59, %v1503_v3  ;;  %v1825_v25 = vmul.f32 %v10408_v1, %v605_v23  ;;  %v1440_v41 = vmul.f32 %v10401_v21, %v284_v54  ;;  %v158_v4 = vld [vmem:[%s9936_s4 + $0x1c8] sm:$0xff] }
 0x230   :  { %v3741_v17 = vadd.f32 1.0, %v3613_v63  ;;  %v7656_v44 = vmul.f32 0.5, %v7432_v32  ;;  %v1118_v55 = vadd.f32 %v1054_v51, %v925_v5  ;;  %v1247_v45 = vmul.f32 %v5229_v13, %v605_v23  ;;  %222 = vst.msk [vmem:[#allocation2 + $0x2f1] sm:$0xff] %vm20_vm0, %v158_v4  ;;  %v285_v51 = vld [vmem:[#allocation2 + $0x290] sm:$0xff] }
 0x231   :  { %v4548_v0 = vadd.f32 -1.4531521, %v2527_v42  ;;  %v7659_v22 = vmul.f32 %v4778_v50, %v2400_v61  ;;  %v540_v18 = vadd.f32 %v476_v10, %v347_v16  ;;  %v669_v52 = vmul.f32 %v10335_v8, %v604_v47 }
 0x232   :  { %v10435_v53 = vsub.f32 1.0, %v7624_v33  ;;  %v2210_v63 = vadd.f32 1.0, %v2146_v20  ;;  %v541_v59 = vadd.f32 %v477_v39, %v348_v40  ;;  %v1888_v32 = vadd.f32 %v1824_v35, %v1695_v38 }
 0x233   :  { %v4782_v5 = vpop.eup %4781  ;;  %v670_v50 = vmul.f32 %v10335_v8, %v605_v23  ;;  %v1889_v42 = vadd.f32 %v1825_v25, %v1696_v15  ;;  %v1504_v61 = vadd.f32 %v1440_v41, %v1310_v26  ;;  %v1633_v47 = vmul.f32 %v10405_v7, %v413_v28 }
 0x234   :  { %v3550_v3 = vsub.f32 0.0, %v10435_v53  ;;  %4783 = vpow2.f32 %v3273_v27  ;;  %v7671_v16 = vmul.f32 0.5, %v7478_v49  ;;  %v1311_v10 = vadd.f32 %v1247_v45, %v1118_v55  ;;  %v606_v55 = vld [vmem:[#allocation2 + $0x28a] sm:$0xff] }
 0x235   :  { %v1441_v20 = vmul.f32 %v10401_v21, %v285_v51  ;;  %v2655_v38 = vmul.f32 %v4548_v0, %v7630_v19  ;;  %v2528_v40 = vmul.f32 1.0614054, %v7659_v22  ;;  %v733_v39 = vadd.f32 %v669_v52, %v540_v18  ;;  %v414_v18 = vld [vmem:[#allocation2 + $0x291] sm:$0xff] }
 0x236   :  { %v862_v35 = vmul.f32 %v5225_v11, %v284_v54  ;;  %v7678_v25 = vmul.f32 %v3741_v17, %v7550_v6  ;;  %v2337_v41 = vmul.f32 %v4782_v5, %v2209_v62  ;;  %4785 = vrcp.f32 %v2210_v63 }
 0x237   :  { %v7681_v27 = vadd.f32 %v7429_v30, %v1888_v32  ;;  %v10438_v49 = vmov %v10435_v53  ;;  %v734_v26 = vadd.f32 %v670_v50, %v541_v59  ;;  %v7688_v15 = vadd.f32 %v7429_v30, %v1889_v42 }
 0x238   :  { %10436 = vst [vmem:[#allocation115_spill] sm:$0xff] %v7678_v25  ;;  %v3614_v23 = vsel %vm3486_vm2, %v10438_v49, %v3550_v3  ;;  %v1697_v52 = vadd.f32 %v1633_v47, %v1504_v61  ;;  %v863_v6 = vmul.f32 %v5225_v11, %v285_v51  ;;  %v1505_v17 = vadd.f32 %v1441_v20, %v1311_v10  ;;  %v607_v20 = vld [vmem:[#allocation2 + $0x292] sm:$0xff] }
 0x239   :  { %10437 = vst [vmem:[#allocation116_spill] sm:$0xff] %v7681_v27  ;;  %v1634_v62 = vmul.f32 %v10405_v7, %v414_v18  ;;  %v1826_v45 = vmul.f32 %v10408_v1, %v606_v55  ;;  %v2719_v0 = vadd.f32 1.4214138, %v2655_v38  ;;  %v4549_v4 = vadd.f32 -1.4531521, %v2528_v40 }
 0x23a   :  { %10439 = vst [vmem:[#allocation117_spill] sm:$0xff] %v7688_v15  ;;  %v926_v33 = vadd.f32 %v862_v35, %v733_v39  ;;  %v1055_v24 = vmul.f32 %v5227_v12, %v413_v28  ;;  %v7694_v53 = vpop.eup %4783  ;;  %v7698_v3 = vmul.f32 %v7678_v25, %v7678_v25  ;;  %v7700_v59 = vadd.f32 1.0, %v3614_v23 }
 0x23b   :  { %v2401_v32 = vsub.f32 2.0, %v2337_v41  ;;  %v7703_v50 = vmul.f32 0.70710677, %v7681_v27  ;;  %v7706_v42 = vmul.f32 0.70710677, %v7688_v15  ;;  %v349_v61 = vmul.f32 %v10241_v60, %v284_v54 }
 0x23c   :  { %v478_v47 = vmul.f32 %v10391_v58, %v413_v28  ;;  %v1056_v10 = vmul.f32 %v5227_v12, %v414_v18  ;;  %v4786_v38 = vpop.eup %4785  ;;  %v927_v40 = vadd.f32 %v863_v6, %v734_v26  ;;  %v1698_v39 = vadd.f32 %v1634_v62, %v1505_v17 }
 0x23d   :  { %10440 = vst [vmem:[#allocation118_spill] sm:$0xff] %v7703_v50  ;;  %v1890_v35 = vadd.f32 %v1826_v45, %v1697_v52  ;;  %v1827_v49 = vmul.f32 %v10408_v1, %v607_v20  ;;  %v2783_v41 = vmul.f32 %v2719_v0, %v7630_v19  ;;  %v2656_v23 = vmul.f32 %v4549_v4, %v7659_v22  ;;  %v159_v1 = vld [vmem:[%s9936_s4 + $0x1d0] sm:$0xff]  ;;  %v7734_v0 = vld [vmem:[#allocation2 + $0x2a0] sm:$0xff] }
 0x23e   :  { %10441 = vst [vmem:[#allocation119_spill] sm:$0xff] %v7706_v42  ;;  %v1119_v57 = vadd.f32 %v1055_v24, %v926_v33  ;;  %v1248_v46 = vmul.f32 %v5229_v13, %v606_v55  ;;  %v7715_v15 = vmul.f32 %v4782_v5, %v2401_v32  ;;  %v7718_v28 = vand.u32 2147483647, %v7703_v50 }
 0x23f   :  { %v350_v54 = vmul.f32 %v10241_v60, %v285_v51  ;;  %v479_v26 = vmul.f32 %v10391_v58, %v414_v18  ;;  %v2338_v52 = vmul.f32 %v4786_v38, %v2210_v63  ;;  %v7726_v6 = vand.u32 2147483647, %v7706_v42  ;;  %223 = vst.msk [vmem:[#allocation2 + $0x301] sm:$0xff] %vm20_vm0, %v159_v1 }
 0x240   :  { %v542_v17 = vadd.f32 %v478_v47, %v349_v61  ;;  %v671_v62 = vmul.f32 %v10335_v8, %v606_v55  ;;  %v1120_v5 = vadd.f32 %v1056_v10, %v927_v40  ;;  %v7731_v45 = vadd.f32 %v7429_v30, %v1890_v35 }
 0x241   :  { %v1249_v51 = vmul.f32 %v5229_v13, %v607_v20  ;;  %v1891_v18 = vadd.f32 %v1827_v49, %v1698_v39  ;;  %v4612_v4 = vadd.f32 -0.28449672, %v2783_v41  ;;  %v2720_v33 = vadd.f32 1.4214138, %v2656_v23  ;;  %v7744_v49 = vld [vmem:[#allocation2 + $0x2a8] sm:$0xff] }
 0x242   :  { %10442 = vst [vmem:[#allocation120_spill] sm:$0xff] %v7731_v45  ;;  %v1312_v63 = vadd.f32 %v1248_v46, %v1119_v57  ;;  %v1442_v24 = vmul.f32 %v10401_v21, %v7734_v0  ;;  %v2529_v32 = vmul.f32 1.0614054, %v7715_v15  ;;  %v2147_v55 = vmul.f32 0.3275911, %v7718_v28  ;;  %v7752_v23 = vld [vmem:[#allocation2 + $0x2a1] sm:$0xff] }
 0x243   :  { %v543_v61 = vadd.f32 %v479_v26, %v350_v54  ;;  %v672_v47 = vmul.f32 %v10335_v8, %v607_v20  ;;  %v2402_v10 = vsub.f32 2.0, %v2338_v52  ;;  %v2148_v40 = vmul.f32 0.3275911, %v7726_v6 }
 0x244   :  { %v735_v35 = vadd.f32 %v671_v62, %v542_v17  ;;  %v864_v39 = vmul.f32 %v5225_v11, %v7734_v0  ;;  %v7747_v46 = vmul.f32 0.70710677, %v7731_v45  ;;  %v1313_v57 = vadd.f32 %v1249_v51, %v1120_v5 }
 0x245   :  { %v7750_v41 = vadd.f32 %v7429_v30, %v1891_v18  ;;  %v1443_v20 = vmul.f32 %v10401_v21, %v7744_v49  ;;  %v2911_v54 = vmul.f32 %v4612_v4, %v7630_v19  ;;  %v2784_v26 = vmul.f32 %v2720_v33, %v7659_v22  ;;  %v7770_v33 = vld [vmem:[#allocation2 + $0x2a9] sm:$0xff] }
 0x246   :  { %10443 = vst [vmem:[#allocation121_spill] sm:$0xff] %v7747_v46  ;;  %v1506_v1 = vadd.f32 %v1442_v24, %v1312_v63  ;;  %v1635_v52 = vmul.f32 %v10405_v7, %v7752_v23  ;;  %v4550_v17 = vadd.f32 -1.4531521, %v2529_v32  ;;  %v7760_v62 = vadd.f32 1.0, %v2147_v55  ;;  %v7778_v32 = vld [vmem:[#allocation2 + $0x2a2] sm:$0xff] }
 0x247   :  { %10444 = vst [vmem:[#allocation122_spill] sm:$0xff] %v7750_v41  ;;  %v736_v5 = vadd.f32 %v672_v47, %v543_v61  ;;  %v865_v51 = vmul.f32 %v5225_v11, %v7744_v49  ;;  %v7764_v18 = vmul.f32 %v4786_v38, %v2402_v10  ;;  %v7766_v45 = vadd.f32 1.0, %v2148_v40  ;;  %v7785_v40 = vld [vmem:[%s9934_s0 + $0x8] ss:$0 sm:$0xff] }
 0x248   :  { %v928_v42 = vadd.f32 %v864_v39, %v735_v35  ;;  %v1057_v4 = vmul.f32 %v5227_v12, %v7752_v23  ;;  %v7773_v63 = vand.u32 2147483647, %v7747_v46  ;;  %v7776_v24 = vmul.f32 0.70710677, %v7750_v41  ;;  %v160_v39 = vld [vmem:[%s9936_s4 + $0x1d8] sm:$0xff]  ;;  %v7801_v41 = vld [vmem:[#allocation2 + $0x2aa] sm:$0xff] }
 0x249   :  { %v1507_v55 = vadd.f32 %v1443_v20, %v1313_v57  ;;  %v1636_v38 = vmul.f32 %v10405_v7, %v7770_v33  ;;  %v2975_v61 = vadd.f32 0.2548296, %v2911_v54  ;;  %v4613_v47 = vadd.f32 -0.28449672, %v2784_v26  ;;  %224 = vst.msk [vmem:[#allocation2 + $0x309] sm:$0xff] %vm20_vm0, %v160_v39 }
 0x24a   :  { %10445 = vst [vmem:[#allocation123_spill] sm:$0xff] %v7773_v63  ;;  %v1699_v10 = vadd.f32 %v1635_v52, %v1506_v1  ;;  %v1828_v35 = vmul.f32 %v7785_v40, %v7778_v32  ;;  %v2657_v57 = vmul.f32 %v4550_v17, %v7715_v15  ;;  %4787 = vrcp.f32 %v7760_v62 }
 0x24b   :  { %10446 = vst [vmem:[#allocation124_spill] sm:$0xff] %v7776_v24  ;;  %v929_v20 = vadd.f32 %v865_v51, %v736_v5  ;;  %v1058_v54 = vmul.f32 %v5227_v12, %v7770_v33  ;;  %v2530_v26 = vmul.f32 1.0614054, %v7764_v18  ;;  %4789 = vrcp.f32 %v7766_v45 }
 0x24c   :  { %v1121_v1 = vadd.f32 %v1057_v4, %v928_v42  ;;  %v1250_v52 = vmul.f32 %v5229_v13, %v7778_v32  ;;  %v2149_v17 = vmul.f32 0.3275911, %v7773_v63  ;;  %v7805_v46 = vand.u32 2147483647, %v7776_v24 }
 0x24d   :  { %v1700_v5 = vadd.f32 %v1636_v38, %v1507_v55  ;;  %v1829_v51 = vmul.f32 %v7785_v40, %v7801_v41  ;;  %v3039_v39 = vmul.f32 %v2975_v61, %v7630_v19  ;;  %v2912_v50 = vmul.f32 %v4613_v47, %v7659_v22  ;;  %v7818_v55 = vld [vmem:[#allocation2 + $0x2b8] sm:$0xff] }
 0x24e   :  { %10447 = vst [vmem:[#allocation125_spill] sm:$0xff] %v7805_v46  ;;  %v3105_v42 = vsub.f32 0.0, %v7602_v9  ;;  %v1892_v4 = vadd.f32 %v1828_v35, %v1699_v10  ;;  %v7814_v27 = vmul.f32 %v7700_v59, %v7578_v36  ;;  %v2721_v31 = vadd.f32 1.4214138, %v2657_v57 }
 0x24f   :  { %v1122_v63 = vadd.f32 %v1058_v54, %v929_v20  ;;  %v1251_v24 = vmul.f32 %v5229_v13, %v7801_v41  ;;  %v7822_v38 = vsel %vm20_vm0, %v7678_v25, 0.0  ;;  %v4551_v19 = vadd.f32 -1.4531521, %v2530_v26 }
 0x250   :  { %10448 = vst [vmem:[#allocation126_spill] sm:$0xff] %v7814_v27  ;;  %v1314_v61 = vadd.f32 %v1250_v52, %v1121_v1  ;;  %v1444_v47 = vmul.f32 %v10401_v21, %v7818_v55  ;;  %v4788_v10 = vpop.eup %4787  ;;  %v7828_v36 = vsel %vm20_vm0, %v7698_v3, 0.0  ;;  %v7830_v59 = vadd.f32 1.0, %v2149_v17  ;;  %v7838_v52 = vld [vmem:[#allocation2 + $0x2c0] sm:$0xff] }
 0x251   :  { %10449 = vst [vmem:[#allocation127_spill] sm:$0xff] %v7822_v38  ;;  %v2150_v35 = vmul.f32 0.3275911, %v7805_v46  ;;  %v1893_v57 = vadd.f32 %v1829_v51, %v1700_v5  ;;  %v4790_v20 = vpop.eup %4789  ;;  %v3359_v54 = vmul.f32 %v7651_v48, %v3039_v39  ;;  %v2976_v25 = vadd.f32 0.2548296, %v2912_v50  ;;  %v7846_v51 = vld [vmem:[#allocation2 + $0x2b9] sm:$0xff] }
 0x252   :  { %10450 = vst [vmem:[#allocation128_spill] sm:$0xff] %v7828_v36  ;;  %v3169_v26 = vmul.f32 %v3105_v42, %v7602_v9  ;;  %v7836_v1 = vadd.f32 %v7429_v30, %v1892_v4  ;;  %v7842_v3 = vsel %vm20_vm0, %v7814_v27, 0.0  ;;  %vm3487_vm3 = vcmp.ge.f32.partialorder %v7452_v2, 0.0 }
 0x253   :  { %10452 = vst [vmem:[#allocation130_spill] sm:$0xff] %v7842_v3  ;;  %v2785_v17 = vmul.f32 %v2721_v31, %v7715_v15  ;;  %v1315_v5 = vadd.f32 %v1251_v24, %v1122_v63  ;;  %v1445_v48 = vmul.f32 %v10401_v21, %v7838_v52  ;;  %v2658_v9 = vmul.f32 %v4551_v19, %v7764_v18  ;;  %v7868_v3 = vld [vmem:[#allocation2 + $0x2ba] sm:$0xff] }
 0x254   :  { %10451 = vst [vmem:[#allocation129_spill] sm:$0xff] %v7836_v1  ;;  %v2339_v50 = vmul.f32 %v4788_v10, %v7760_v62  ;;  %v1508_v39 = vadd.f32 %v1444_v47, %v1314_v61  ;;  %v1637_v42 = vmul.f32 %v10405_v7, %v7846_v51  ;;  %v2340_v4 = vmul.f32 %v4790_v20, %v7766_v45  ;;  %v7865_v61 = vld [vmem:[#allocation2 + $0x2c1] sm:$0xff] }
 0x255   :  { %4791 = vrcp.f32 %v7830_v59  ;;  %v2214_v36 = vadd.f32 1.0, %v2150_v35  ;;  %v7857_v31 = vadd.f32 %v7429_v30, %v1893_v57  ;;  %v4003_v63 = vmul.f32 %v7814_v27, %v7814_v27  ;;  %10455 = vst [vmem:[#allocation133_spill] sm:$0xff] %v7865_v61 }
 0x256   :  { %v3423_v24 = vsub.f32 1.0, %v3359_v54  ;;  %v3040_v19 = vmul.f32 %v2976_v25, %v7659_v22  ;;  %v7863_v62 = vmul.f32 0.70710677, %v7836_v1  ;;  %v3275_v47 = vmul.f32 1.442695, %v3169_v26  ;;  %v161_v54 = vld [vmem:[%s9936_s4 + $0x1e0] sm:$0xff] }
 0x257   :  { %10453 = vst [vmem:[#allocation131_spill] sm:$0xff] %v7857_v31  ;;  %v3106_v45 = vsub.f32 0.0, %v7634_v29  ;;  %v1509_v35 = vadd.f32 %v1445_v48, %v1315_v5  ;;  %v1638_v57 = vmul.f32 %v10405_v7, %v7865_v61  ;;  %v4614_v27 = vadd.f32 -0.28449672, %v2785_v17 }
 0x258   :  { %10454 = vst [vmem:[#allocation132_spill] sm:$0xff] %v7863_v62  ;;  %v2403_v22 = vsub.f32 2.0, %v2339_v50  ;;  %v1701_v25 = vadd.f32 %v1637_v42, %v1508_v39  ;;  %v1830_v38 = vmul.f32 %v7785_v40, %v7868_v3  ;;  %v2722_v1 = vadd.f32 1.4214138, %v2658_v9  ;;  %v7888_v50 = vld [vmem:[#allocation2 + $0x2c2] sm:$0xff] }
 0x259   :  { %v2404_v26 = vsub.f32 2.0, %v2340_v4  ;;  %4793 = vrcp.f32 %v2214_v36  ;;  %v7878_v46 = vmul.f32 0.70710677, %v7857_v31  ;;  %225 = vst.msk [vmem:[#allocation2 + $0x319] sm:$0xff] %vm20_vm0, %v161_v54  ;;  %v7882_v5 = vsel %vm20_vm0, %v4003_v63, 0.0 }
 0x25a   :  { %10457 = vst [vmem:[#allocation135_spill] sm:$0xff] %v7882_v5  ;;  %v3551_v48 = vsub.f32 0.0, %v3423_v24  ;;  %v3360_v61 = vmul.f32 %v7694_v53, %v3040_v19  ;;  %v7886_v17 = vand.u32 2147483647, %v7863_v62  ;;  %v351_v9 = vmul.f32 %v10241_v60, %v7734_v0 }
 0x25b   :  { %10456 = vst [vmem:[#allocation134_spill] sm:$0xff] %v7878_v46  ;;  %v4792_v39 = vpop.eup %4791  ;;  %v480_v42 = vmul.f32 %v10391_v58, %v7752_v23  ;;  %v1702_v4 = vadd.f32 %v1638_v57, %v1509_v35  ;;  %v1831_v63 = vmul.f32 %v7785_v40, %v7888_v50  ;;  %vm3488_vm4 = vcmp.ge.f32.partialorder %v7502_v43, 0.0 }
 0x25c   :  { %v2913_v53 = vmul.f32 %v4614_v27, %v7715_v15  ;;  %v3170_v19 = vmul.f32 %v3106_v45, %v7634_v29  ;;  %v7899_v54 = vmul.f32 %v4788_v10, %v2403_v22  ;;  %v1894_v5 = vadd.f32 %v1830_v38, %v1701_v25 }
 0x25d   :  { %4795 = vpow2.f32 %v3275_v47  ;;  %v2786_v31 = vmul.f32 %v2722_v1, %v7764_v18  ;;  %v7902_v0 = vmul.f32 %v4790_v20, %v2404_v26  ;;  %v7905_v23 = vand.u32 2147483647, %v7878_v46 }
 0x25e   :  { %v3615_v35 = vsel %vm3487_vm3, %v3423_v24, %v3551_v48  ;;  %v7910_v57 = vmul.f32 0.5, %v7555_v34  ;;  %v2341_v27 = vmul.f32 %v4792_v39, %v7830_v59  ;;  %v2151_v29 = vmul.f32 0.3275911, %v7886_v17 }
 0x25f   :  { %v4794_v10 = vpop.eup %4793  ;;  %v3424_v38 = vsub.f32 1.0, %v3360_v61  ;;  %v544_v47 = vadd.f32 %v480_v42, %v351_v9  ;;  %v673_v20 = vmul.f32 %v10335_v8, %v7778_v32  ;;  %v1895_v1 = vadd.f32 %v1831_v63, %v1702_v4 }
 0x260   :  { %v2977_v45 = vadd.f32 0.2548296, %v2913_v53  ;;  %v3277_v22 = vmul.f32 1.442695, %v3170_v19  ;;  %v2531_v25 = vmul.f32 1.0614054, %v7899_v54  ;;  %v7918_v2 = vadd.f32 %v7429_v30, %v1894_v5 }
 0x261   :  { %v7922_v34 = vmul.f32 %v7540_v37, %v7540_v37  ;;  %v4615_v59 = vadd.f32 -0.28449672, %v2786_v31  ;;  %v2532_v24 = vmul.f32 1.0614054, %v7902_v0  ;;  %v2152_v61 = vmul.f32 0.3275911, %v7905_v23 }
 0x262   :  { %10458 = vst [vmem:[#allocation136_spill] sm:$0xff] %v7918_v2  ;;  %v3743_v26 = vadd.f32 1.0, %v3615_v35  ;;  %v2405_v48 = vsub.f32 2.0, %v2341_v27  ;;  %v2342_v32 = vmul.f32 %v4794_v10, %v2214_v36  ;;  %v2215_v9 = vadd.f32 1.0, %v2151_v29 }
 0x263   :  { %10459 = vst [vmem:[#allocation137_spill] sm:$0xff] %v7922_v34  ;;  %v4796_v42 = vpop.eup %4795  ;;  %v3552_v4 = vsub.f32 0.0, %v3424_v38  ;;  %v737_v63 = vadd.f32 %v673_v20, %v544_v47  ;;  %v866_v5 = vmul.f32 %v5225_v11, %v7818_v55  ;;  %v7929_v53 = vadd.f32 %v7429_v30, %v1895_v1  ;;  %v162_v47 = vld [vmem:[%s9936_s4 + $0x1e8] sm:$0xff] }
 0x264   :  { %4797 = vpow2.f32 %v3277_v22  ;;  %v7932_v31 = vmul.f32 0.5, %v7605_v56  ;;  %v4552_v19 = vadd.f32 -1.4531521, %v2531_v25  ;;  %v7935_v34 = vmul.f32 0.70710677, %v7918_v2  ;;  %226 = vst.msk [vmem:[#allocation2 + $0x321] sm:$0xff] %vm20_vm0, %v162_v47 }
 0x265   :  { %10460 = vst [vmem:[#allocation138_spill] sm:$0xff] %v7929_v53  ;;  %v3041_v36 = vmul.f32 %v2977_v45, %v7715_v15  ;;  %v2914_v35 = vmul.f32 %v4615_v59, %v7764_v18  ;;  %v4553_v27 = vadd.f32 -1.4531521, %v2532_v24  ;;  %v2216_v29 = vadd.f32 1.0, %v2152_v61 }
 0x266   :  { %10461 = vst [vmem:[#allocation139_spill] sm:$0xff] %v7935_v34  ;;  %v7943_v30 = vmul.f32 %v3743_v26, %v7656_v44  ;;  %v7945_v20 = vmul.f32 %v4792_v39, %v2405_v48  ;;  %v2406_v56 = vsub.f32 2.0, %v2342_v32  ;;  %4799 = vrcp.f32 %v2215_v9 }
 0x267   :  { %v3616_v15 = vsel %vm3488_vm4, %v3424_v38, %v3552_v4  ;;  %v930_v1 = vadd.f32 %v866_v5, %v737_v63  ;;  %v1059_v45 = vmul.f32 %v5227_v12, %v7846_v51  ;;  %v7953_v22 = vmul.f32 0.70710677, %v7929_v53 }
 0x268   :  { %10462 = vst [vmem:[#allocation140_spill] sm:$0xff] %v7943_v30  ;;  %v2659_v25 = vmul.f32 %v4552_v19, %v7899_v54  ;;  %v352_v44 = vmul.f32 %v10241_v60, %v7744_v49  ;;  %v481_v39 = vmul.f32 %v10391_v58, %v7770_v33  ;;  %v7961_v59 = vand.u32 2147483647, %v7935_v34 }
 0x269   :  { %10463 = vst [vmem:[#allocation141_spill] sm:$0xff] %v7953_v22  ;;  %v3361_v43 = vmul.f32 %v4796_v42, %v3041_v36  ;;  %v2978_v38 = vadd.f32 0.2548296, %v2914_v35  ;;  %v2660_v24 = vmul.f32 %v4553_v27, %v7902_v0  ;;  %4801 = vrcp.f32 %v2216_v29 }
 0x26a   :  { %v4798_v61 = vpop.eup %4797  ;;  %v4004_v26 = vmul.f32 %v7943_v30, %v7943_v30  ;;  %v3744_v48 = vadd.f32 1.0, %v3616_v15  ;;  %vm3489_vm5 = vcmp.ge.f32.partialorder %v7588_v14, 0.0  ;;  %v2533_v49 = vmul.f32 1.0614054, %v7945_v20 }
 0x26b   :  { %v7968_v32 = vmul.f32 %v4794_v10, %v2406_v56  ;;  %v7972_v33 = vsel %vm20_vm0, %v7943_v30, 0.0  ;;  %v1123_v42 = vadd.f32 %v1059_v45, %v930_v1  ;;  %v1252_v4 = vmul.f32 %v5229_v13, %v7868_v3 }
 0x26c   :  { %10464 = vst [vmem:[#allocation142_spill] sm:$0xff] %v7972_v33  ;;  %v7977_v63 = vand.u32 2147483647, %v7953_v22  ;;  %v4800_v5 = vpop.eup %4799  ;;  %v2723_v19 = vadd.f32 1.4214138, %v2659_v25  ;;  %v545_v36 = vadd.f32 %v481_v39, %v352_v44  ;;  %v674_v35 = vmul.f32 %v10335_v8, %v7801_v41  ;;  %v7991_v44 = vld [vmem:[#allocation2 + $0x2d0] sm:$0xff] }
 0x26d   :  { %v2153_v10 = vmul.f32 0.3275911, %v7961_v59  ;;  %v3425_v27 = vsub.f32 1.0, %v3361_v43  ;;  %v3042_v47 = vmul.f32 %v2978_v38, %v7764_v18  ;;  %v3107_v56 = vsub.f32 0.0, %v7718_v28  ;;  %v8005_v22 = vld [vmem:[#allocation2 + $0x2d1] sm:$0xff] }
 0x26e   :  { %v2724_v15 = vadd.f32 1.4214138, %v2660_v24  ;;  %v7985_v1 = vsel %vm20_vm0, %v4004_v26, 0.0  ;;  %v7988_v45 = vmul.f32 %v3744_v48, %v7671_v16  ;;  %v4554_v30 = vadd.f32 -1.4531521, %v2533_v49 }
 0x26f   :  { %10465 = vst [vmem:[#allocation143_spill] sm:$0xff] %v7985_v1  ;;  %v2534_v25 = vmul.f32 1.0614054, %v7968_v32  ;;  %v4802_v41 = vpop.eup %4801  ;;  %v2343_v39 = vmul.f32 %v4800_v5, %v2215_v9  ;;  %v1316_v33 = vadd.f32 %v1252_v4, %v1123_v42  ;;  %v2154_v43 = vmul.f32 0.3275911, %v7977_v63 }
 0x270   :  { %10466 = vst [vmem:[#allocation144_spill] sm:$0xff] %v7988_v45  ;;  %v1446_v18 = vmul.f32 %v10401_v21, %v7991_v44  ;;  %v2787_v38 = vmul.f32 %v2723_v19, %v7899_v54  ;;  %v738_v24 = vadd.f32 %v674_v35, %v545_v36  ;;  %v867_v16 = vmul.f32 %v5225_v11, %v7838_v52  ;;  %v163_v19 = vld [vmem:[%s9936_s4 + $0x1f0] sm:$0xff]  ;;  %v10467_v36 = vld [vmem:[#allocation114_spill] sm:$0xff] }
 0x271   :  { %v2217_v26 = vadd.f32 1.0, %v2153_v10  ;;  %v3553_v48 = vsub.f32 0.0, %v3425_v27  ;;  %v7999_v49 = vmul.f32 %v4798_v61, %v3042_v47  ;;  %v3171_v1 = vmul.f32 %v3107_v56, %v7718_v28  ;;  %227 = vst.msk [vmem:[#allocation2 + $0x331] sm:$0xff] %vm20_vm0, %v163_v19  ;;  %v10468_v56 = vld [vmem:[#allocation133_spill] sm:$0xff] }
 0x272   :  { %v3108_v9 = vsub.f32 0.0, %v7726_v6  ;;  %v2788_v42 = vmul.f32 %v2724_v15, %v7902_v0  ;;  %v2661_v4 = vmul.f32 %v4554_v30, %v7945_v20  ;;  %v4555_v37 = vadd.f32 -1.4531521, %v2534_v25  ;;  %v8021_v19 = vld [vmem:[#allocation2 + $0x2d2] sm:$0xff] }
 0x273   :  { %v2344_v53 = vmul.f32 %v4802_v41, %v2216_v29  ;;  %vm3490_vm6 = vcmp.ge.f32.partialorder %v10467_v36, 0.0  ;;  %v2407_v61 = vsub.f32 2.0, %v2343_v39  ;;  %v2218_v35 = vadd.f32 1.0, %v2154_v43 }
 0x274   :  { %v1510_v10 = vadd.f32 %v1446_v18, %v1316_v33  ;;  %v1639_v28 = vmul.f32 %v10405_v7, %v8005_v22  ;;  %v4616_v47 = vadd.f32 -0.28449672, %v2787_v38  ;;  %v931_v30 = vadd.f32 %v867_v16, %v738_v24 }
 0x275   :  { %v1060_v29 = vmul.f32 %v5227_v12, %v10468_v56  ;;  %4803 = vrcp.f32 %v2217_v26  ;;  %v3617_v15 = vsel %vm3489_vm5, %v3425_v27, %v3553_v48  ;;  %v3426_v25 = vsub.f32 1.0, %v7999_v49 }
 0x276   :  { %v3279_v2 = vmul.f32 1.442695, %v3171_v1  ;;  %v3172_v39 = vmul.f32 %v3108_v9, %v7726_v6  ;;  %v4617_v33 = vadd.f32 -0.28449672, %v2788_v42  ;;  %v2725_v43 = vadd.f32 1.4214138, %v2661_v4 }
 0x277   :  { %v2662_v18 = vmul.f32 %v4555_v37, %v7968_v32  ;;  %v2408_v34 = vsub.f32 2.0, %v2344_v53  ;;  %v8023_v38 = vmul.f32 %v4800_v5, %v2407_v61  ;;  %4805 = vrcp.f32 %v2218_v35  ;;  %v10470_v5 = vld [vmem:[#allocation123_spill] sm:$0xff] }
 0x278   :  { %v1703_v24 = vadd.f32 %v1639_v28, %v1510_v10  ;;  %v1832_v14 = vmul.f32 %v7785_v40, %v8021_v19  ;;  %v4005_v27 = vmul.f32 %v7988_v45, %v7988_v45  ;;  %v2915_v1 = vmul.f32 %v4616_v47, %v7899_v54 }
 0x279   :  { %v1124_v6 = vadd.f32 %v1060_v29, %v931_v30  ;;  %v1253_v16 = vmul.f32 %v5229_v13, %v7888_v50  ;;  %v8034_v37 = vsel %vm20_vm0, %v7988_v45, 0.0  ;;  %4807 = vpow2.f32 %v3279_v2  ;;  %v8042_v30 = vld [vmem:[#allocation2 + $0x2d8] sm:$0xff] }
 0x27a   :  { %10469 = vst [vmem:[#allocation114_spill] sm:$0xff] %v8034_v37  ;;  %v3281_v53 = vmul.f32 1.442695, %v3172_v39  ;;  %v3109_v48 = vsub.f32 0.0, %v10470_v5  ;;  %v3745_v9 = vadd.f32 1.0, %v3617_v15  ;;  %v3554_v42 = vsub.f32 0.0, %v3426_v25 }
 0x27b   :  { %v4804_v49 = vpop.eup %4803  ;;  %v2789_v4 = vmul.f32 %v2725_v43, %v7945_v20  ;;  %v8038_v61 = vmul.f32 %v4802_v41, %v2408_v34  ;;  %v2916_v10 = vmul.f32 %v4617_v33, %v7902_v0  ;;  %v2726_v28 = vadd.f32 1.4214138, %v2662_v18  ;;  %v164_v2 = vld [vmem:[%s9936_s4 + $0x1f8] sm:$0xff]  ;;  %v10472_v43 = vld [vmem:[#allocation125_spill] sm:$0xff] }
 0x27c   :  { %v2535_v47 = vmul.f32 1.0614054, %v8023_v38  ;;  %v1896_v29 = vadd.f32 %v1832_v14, %v1703_v24  ;;  %v8048_v39 = vsel %vm20_vm0, %v4005_v27, 0.0  ;;  %v2979_v15 = vadd.f32 0.2548296, %v2915_v1  ;;  %228 = vst.msk [vmem:[#allocation2 + $0x339] sm:$0xff] %vm20_vm0, %v164_v2 }
 0x27d   :  { %10471 = vst [vmem:[#allocation133_spill] sm:$0xff] %v8048_v39  ;;  %v1317_v45 = vadd.f32 %v1253_v16, %v1124_v6  ;;  %v1447_v34 = vmul.f32 %v10401_v21, %v8042_v30  ;;  %v4806_v41 = vpop.eup %4805  ;;  %4809 = vpow2.f32 %v3281_v53  ;;  %v3173_v33 = vmul.f32 %v3109_v48, %v10470_v5  ;;  %v8062_v53 = vld [vmem:[#allocation2 + $0x2d9] sm:$0xff] }
 0x27e   :  { %v3110_v18 = vsub.f32 0.0, %v10472_v43  ;;  %v2345_v24 = vmul.f32 %v4804_v49, %v2217_v26  ;;  %v8056_v14 = vmul.f32 %v3745_v9, %v7910_v57  ;;  %v3618_v27 = vsel %vm3490_vm6, %v3426_v25, %v3554_v42  ;;  %v8067_v26 = vld [vmem:[%s9935_s1] ss:$0 sm:$0xff] }
 0x27f   :  { %v4618_v1 = vadd.f32 -0.28449672, %v2789_v4  ;;  %v2536_v6 = vmul.f32 1.0614054, %v8038_v61  ;;  %v4808_v16 = vpop.eup %4807  ;;  %v2980_v39 = vadd.f32 0.2548296, %v2916_v10  ;;  %v2790_v2 = vmul.f32 %v2726_v28, %v7968_v32 }
 0x280   :  { %10473 = vst [vmem:[#allocation123_spill] sm:$0xff] %v8056_v14  ;;  %v4556_v37 = vadd.f32 -1.4531521, %v2535_v47  ;;  %v8070_v57 = vadd.f32 %v8067_v26, %v1896_v29  ;;  %v3043_v36 = vmul.f32 %v2979_v15, %v7899_v54  ;;  %v2346_v25 = vmul.f32 %v4806_v41, %v2218_v35  ;;  %v10474_v47 = vld [vmem:[#allocation116_spill] sm:$0xff] }
 0x281   :  { %v1511_v5 = vadd.f32 %v1447_v34, %v1317_v45  ;;  %v1640_v48 = vmul.f32 %v10405_v7, %v8062_v53  ;;  %v3746_v9 = vadd.f32 1.0, %v3618_v27  ;;  %v3283_v42 = vmul.f32 1.442695, %v3173_v33  ;;  %v8087_v33 = vld [vmem:[#allocation2 + $0x2da] sm:$0xff] }
 0x282   :  { %v3174_v4 = vmul.f32 %v3110_v18, %v10472_v43  ;;  %v2409_v10 = vsub.f32 2.0, %v2345_v24  ;;  %v4006_v28 = vmul.f32 %v8056_v14, %v8056_v14  ;;  %v8079_v46 = vmul.f32 0.5, %v10474_v47 }
 0x283   :  { %v2917_v29 = vmul.f32 %v4618_v1, %v7945_v20  ;;  %v4557_v62 = vadd.f32 -1.4531521, %v2536_v6  ;;  %v4810_v54 = vpop.eup %4809  ;;  %v3044_v45 = vmul.f32 %v2980_v39, %v7902_v0  ;;  %v4619_v35 = vadd.f32 -0.28449672, %v2790_v2  ;;  %v10476_v6 = vld [vmem:[#allocation118_spill] sm:$0xff]  ;;  %v10478_v2 = vld [vmem:[#allocation117_spill] sm:$0xff] }
 0x284   :  { %v2663_v15 = vmul.f32 %v4556_v37, %v8023_v38  ;;  %v8085_v34 = vmul.f32 0.70710677, %v8070_v57  ;;  %v3363_v43 = vmul.f32 %v4808_v16, %v3043_v36  ;;  %v2410_v18 = vsub.f32 2.0, %v2346_v25 }
 0x285   :  { %v1704_v24 = vadd.f32 %v1640_v48, %v1511_v5  ;;  %v1833_v27 = vmul.f32 %v7785_v40, %v8087_v33  ;;  %v8092_v1 = vmul.f32 %v3746_v9, %v7932_v31  ;;  %vm3491_vm7 = vcmp.ge.f32.partialorder %v10476_v6, 0.0 }
 0x286   :  { %4811 = vpow2.f32 %v3283_v42  ;;  %v3285_v0 = vmul.f32 1.442695, %v3174_v4  ;;  %v8095_v39 = vmul.f32 %v4804_v49, %v2409_v10  ;;  %v8099_v37 = vsel %vm20_vm0, %v8056_v14, 0.0 }
 0x287   :  { %10475 = vst [vmem:[#allocation125_spill] sm:$0xff] %v8092_v1  ;;  %v8102_v16 = vmul.f32 0.5, %v10478_v2  ;;  %v2981_v36 = vadd.f32 0.2548296, %v2917_v29  ;;  %v2664_v25 = vmul.f32 %v4557_v62, %v8038_v61  ;;  %v3364_v5 = vmul.f32 %v4810_v54, %v3044_v45  ;;  %v10480_v62 = vld [vmem:[#allocation119_spill] sm:$0xff] }
 0x288   :  { %10477 = vst [vmem:[#allocation116_spill] sm:$0xff] %v8099_v37  ;;  %v2918_v31 = vmul.f32 %v4619_v35, %v7968_v32  ;;  %v2727_v48 = vadd.f32 1.4214138, %v2663_v15  ;;  %v8107_v9 = vand.u32 2147483647, %v8085_v34  ;;  %v3427_v42 = vsub.f32 1.0, %v3363_v43 }
 0x289   :  { %v3111_v49 = vsub.f32 0.0, %v7886_v17  ;;  %v8110_v4 = vmul.f32 %v4806_v41, %v2410_v18  ;;  %v1897_v10 = vadd.f32 %v1833_v27, %v1704_v24  ;;  %v8113_v47 = vsel %vm20_vm0, %v4006_v28, 0.0 }
 0x28a   :  { %10479 = vst [vmem:[#allocation118_spill] sm:$0xff] %v8113_v47  ;;  %v4007_v29 = vmul.f32 %v8092_v1, %v8092_v1  ;;  %vm3492_vm8 = vcmp.ge.f32.partialorder %v10480_v62, 0.0  ;;  %4813 = vpow2.f32 %v3285_v0  ;;  %v2537_v54 = vmul.f32 1.0614054, %v8095_v39 }
 0x28b   :  { %v3045_v45 = vmul.f32 %v2981_v36, %v7945_v20  ;;  %v2728_v35 = vadd.f32 1.4214138, %v2664_v25  ;;  %v353_v15 = vmul.f32 %v10241_v60, %v7818_v55  ;;  %v482_v41 = vmul.f32 %v10391_v58, %v7846_v51 }
 0x28c   :  { %v4812_v43 = vpop.eup %4811  ;;  %v3428_v28 = vsub.f32 1.0, %v3364_v5  ;;  %v2982_v18 = vadd.f32 0.2548296, %v2918_v31  ;;  %v2791_v24 = vmul.f32 %v2727_v48, %v8023_v38  ;;  %v2155_v27 = vmul.f32 0.3275911, %v8107_v9 }
 0x28d   :  { %v3555_v2 = vsub.f32 0.0, %v3427_v42  ;;  %v3175_v0 = vmul.f32 %v3111_v49, %v7886_v17  ;;  %v2538_v14 = vmul.f32 1.0614054, %v8110_v4  ;;  %v8129_v20 = vadd.f32 %v8067_v26, %v1897_v10 }
 0x28e   :  { %v8133_v55 = vsel %vm20_vm0, %v8092_v1, 0.0  ;;  %v8136_v51 = vsel %vm20_vm0, %v4007_v29, 0.0  ;;  %v3112_v36 = vsub.f32 0.0, %v7905_v23  ;;  %v4558_v25 = vadd.f32 -1.4531521, %v2537_v54 }
 0x28f   :  { %10481 = vst [vmem:[#allocation117_spill] sm:$0xff] %v8133_v55  ;;  %v3365_v5 = vmul.f32 %v4812_v43, %v3045_v45  ;;  %v2792_v31 = vmul.f32 %v2728_v35, %v8038_v61  ;;  %v546_v48 = vadd.f32 %v482_v41, %v353_v15  ;;  %v675_v17 = vmul.f32 %v10335_v8, %v7868_v3  ;;  %v10484_v45 = vld [vmem:[#allocation121_spill] sm:$0xff]  ;;  %v10485_v35 = vld [vmem:[#allocation120_spill] sm:$0xff] }
 0x290   :  { %10482 = vst [vmem:[#allocation119_spill] sm:$0xff] %v8136_v51  ;;  %v4814_v49 = vpop.eup %4813  ;;  %v3556_v10 = vsub.f32 0.0, %v3428_v28  ;;  %v3046_v47 = vmul.f32 %v2982_v18, %v7968_v32  ;;  %v4620_v37 = vadd.f32 -0.28449672, %v2791_v24  ;;  %v2219_v1 = vadd.f32 1.0, %v2155_v27 }
 0x291   :  { %v3619_v29 = vsel %vm3491_vm7, %v3427_v42, %v3555_v2  ;;  %v3287_v51 = vmul.f32 1.442695, %v3175_v0  ;;  %v4559_v55 = vadd.f32 -1.4531521, %v2538_v14  ;;  %v8146_v54 = vmul.f32 0.70710677, %v8129_v20 }
 0x292   :  { %vm3493_vm9 = vcmp.ge.f32.partialorder %v10484_v45, 0.0  ;;  %v8150_v15 = vmul.f32 0.5, %v10485_v35  ;;  %v3176_v3 = vmul.f32 %v3112_v36, %v7905_v23  ;;  %v2665_v41 = vmul.f32 %v4558_v25, %v8095_v39 }
 0x293   :  { %10483 = vst [vmem:[#allocation145_spill] sm:$0xff] %v8146_v54  ;;  %v3429_v32 = vsub.f32 1.0, %v3365_v5  ;;  %v4621_v43 = vadd.f32 -0.28449672, %v2792_v31  ;;  %v739_v18 = vadd.f32 %v675_v17, %v546_v48  ;;  %v868_v6 = vmul.f32 %v5225_v11, %v7991_v44 }
 0x294   :  { %v3747_v42 = vadd.f32 1.0, %v3619_v29  ;;  %v3366_v14 = vmul.f32 %v4814_v49, %v3046_v47  ;;  %v2919_v24 = vmul.f32 %v4620_v37, %v8023_v38  ;;  %4815 = vrcp.f32 %v2219_v1 }
 0x295   :  { %v3620_v27 = vsel %vm3492_vm8, %v3428_v28, %v3556_v10  ;;  %4817 = vpow2.f32 %v3287_v51  ;;  %v2666_v2 = vmul.f32 %v4559_v55, %v8110_v4  ;;  %v8161_v23 = vand.u32 2147483647, %v8146_v54  ;;  %v10486_v55 = vld [vmem:[#allocation124_spill] sm:$0xff] }
 0x296   :  { %v3289_v0 = vmul.f32 1.442695, %v3176_v3  ;;  %v354_v36 = vmul.f32 %v10241_v60, %v7838_v52  ;;  %v483_v25 = vmul.f32 %v10391_v58, %v10468_v56  ;;  %v2729_v47 = vadd.f32 1.4214138, %v2665_v41 }
 0x297   :  { %v3557_v5 = vsub.f32 0.0, %v3429_v32  ;;  %v2920_v37 = vmul.f32 %v4621_v43, %v8038_v61  ;;  %v932_v31 = vadd.f32 %v868_v6, %v739_v18  ;;  %v1061_v62 = vmul.f32 %v5227_v12, %v8005_v22 }
 0x298   :  { %v3430_v28 = vsub.f32 1.0, %v3366_v14  ;;  %vm3494_vm10 = vcmp.ge.f32.partialorder %v10486_v55, 0.0  ;;  %v2983_v51 = vadd.f32 0.2548296, %v2919_v24  ;;  %v3113_v48 = vsub.f32 0.0, %v7961_v59 }
 0x299   :  { %v8173_v17 = vmul.f32 %v3747_v42, %v8079_v46  ;;  %v3748_v52 = vadd.f32 1.0, %v3620_v27  ;;  %v2730_v49 = vadd.f32 1.4214138, %v2666_v2  ;;  %v2156_v56 = vmul.f32 0.3275911, %v8161_v23  ;;  %v10488_v2 = vld [vmem:[#allocation122_spill] sm:$0xff] }
 0x29a   :  { %v4816_v10 = vpop.eup %4815  ;;  %4819 = vpow2.f32 %v3289_v0  ;;  %v547_v29 = vadd.f32 %v483_v25, %v354_v36  ;;  %v2793_v35 = vmul.f32 %v2729_v47, %v8095_v39  ;;  %v676_v3 = vmul.f32 %v10335_v8, %v7888_v50 }
 0x29b   :  { %10487 = vst [vmem:[#allocation121_spill] sm:$0xff] %v8173_v17  ;;  %v4818_v41 = vpop.eup %4817  ;;  %v3621_v43 = vsel %vm3493_vm9, %v3429_v32, %v3557_v5  ;;  %v2984_v18 = vadd.f32 0.2548296, %v2920_v37  ;;  %v1125_v6 = vadd.f32 %v1061_v62, %v932_v31  ;;  %v1254_v46 = vmul.f32 %v5229_v13, %v8021_v19  ;;  %v8193_v37 = vld [vmem:[#allocation2 + $0x2e8] sm:$0xff] }
 0x29c   :  { %v3558_v42 = vsub.f32 0.0, %v3430_v28  ;;  %v3047_v14 = vmul.f32 %v2983_v51, %v8023_v38  ;;  %v3177_v24 = vmul.f32 %v3113_v48, %v7961_v59  ;;  %v3114_v27 = vsub.f32 0.0, %v7977_v63 }
 0x29d   :  { %v3686_v0 = vmul.f32 0.5, %v10488_v2  ;;  %v2794_v50 = vmul.f32 %v2730_v49, %v8110_v4  ;;  %v2347_v36 = vmul.f32 %v4816_v10, %v2219_v1  ;;  %v2220_v25 = vadd.f32 1.0, %v2156_v56 }
 0x29e   :  { %v4008_v45 = vmul.f32 %v8173_v17, %v8173_v17  ;;  %v8191_v32 = vmul.f32 %v3748_v52, %v8102_v16  ;;  %v4622_v47 = vadd.f32 -0.28449672, %v2793_v35  ;;  %v740_v5 = vadd.f32 %v676_v3, %v547_v29  ;;  %v8213_v3 = vld [vmem:[#allocation2 + $0x2e9] sm:$0xff] }
 0x29f   :  { %v3749_v38 = vadd.f32 1.0, %v3621_v43  ;;  %v3048_v59 = vmul.f32 %v2984_v18, %v8038_v61  ;;  %v1318_v31 = vadd.f32 %v1254_v46, %v1125_v6  ;;  %v1448_v62 = vmul.f32 %v10401_v21, %v8193_v37 }
 0x2a0   :  { %10489 = vst [vmem:[#allocation120_spill] sm:$0xff] %v8191_v32  ;;  %v4820_v51 = vpop.eup %4819  ;;  %v3622_v1 = vsel %vm3494_vm10, %v3430_v28, %v3558_v42  ;;  %v3367_v48 = vmul.f32 %v4818_v41, %v3047_v14  ;;  %v3291_v49 = vmul.f32 1.442695, %v3177_v24  ;;  %v3178_v16 = vmul.f32 %v3114_v27, %v7977_v63 }
 0x2a1   :  { %v4623_v52 = vadd.f32 -0.28449672, %v2794_v50  ;;  %v869_v56 = vmul.f32 %v5225_v11, %v8042_v30  ;;  %v2411_v29 = vsub.f32 2.0, %v2347_v36  ;;  %4821 = vrcp.f32 %v2220_v25  ;;  %v10495_v36 = vld [vmem:[#allocation132_spill] sm:$0xff] }
 0x2a2   :  { %v8205_v61 = vsel %vm20_vm0, %v8173_v17, 0.0  ;;  %v8208_v35 = vsel %vm20_vm0, %v4008_v45, 0.0  ;;  %v4009_v28 = vmul.f32 %v8191_v32, %v8191_v32  ;;  %v2921_v55 = vmul.f32 %v4622_v47, %v8095_v39  ;;  %v8233_v47 = vld [vmem:[#allocation2 + $0x2ea] sm:$0xff] }
 0x2a3   :  { %10490 = vst [vmem:[#allocation124_spill] sm:$0xff] %v8205_v61  ;;  %v8216_v63 = vmul.f32 %v3749_v38, %v8150_v15  ;;  %v3368_v41 = vmul.f32 %v4820_v51, %v3048_v59  ;;  %v1512_v43 = vadd.f32 %v1448_v62, %v1318_v31  ;;  %v1641_v18 = vmul.f32 %v10405_v7, %v8213_v3  ;;  %v10496_v59 = vld [vmem:[#allocation129_spill] sm:$0xff] }
 0x2a4   :  { %10491 = vst [vmem:[#allocation122_spill] sm:$0xff] %v8208_v35  ;;  %v3750_v6 = vadd.f32 1.0, %v3622_v1  ;;  %v3431_v46 = vsub.f32 1.0, %v3367_v48  ;;  %4823 = vpow2.f32 %v3291_v49  ;;  %v3293_v42 = vmul.f32 1.442695, %v3178_v16 }
 0x2a5   :  { %10492 = vst [vmem:[#allocation146_spill] sm:$0xff] %v8216_v63  ;;  %v2922_v14 = vmul.f32 %v4623_v52, %v8110_v4  ;;  %v933_v24 = vadd.f32 %v869_v56, %v740_v5  ;;  %v1062_v27 = vmul.f32 %v5227_v12, %v8062_v53  ;;  %v8223_v2 = vmul.f32 %v4816_v10, %v2411_v29 }
 0x2a6   :  { %v8227_v15 = vsel %vm20_vm0, %v8191_v32, 0.0  ;;  %v8230_v50 = vsel %vm20_vm0, %v4009_v28, 0.0  ;;  %vm3495_vm11 = vcmp.ge.f32.partialorder %v10495_v36, 0.0  ;;  %v2985_v45 = vadd.f32 0.2548296, %v2921_v55 }
 0x2a7   :  { %10493 = vst [vmem:[#allocation147_spill] sm:$0xff] %v8227_v15  ;;  %v4822_v38 = vpop.eup %4821  ;;  %v3687_v5 = vmul.f32 0.5, %v10496_v59  ;;  %v3432_v31 = vsub.f32 1.0, %v3368_v41  ;;  %v1705_v62 = vadd.f32 %v1641_v18, %v1512_v43  ;;  %v1834_v10 = vmul.f32 %v7785_v40, %v8233_v47  ;;  %v10498_v43 = vld [vmem:[#allocation134_spill] sm:$0xff] }
 0x2a8   :  { %10494 = vst [vmem:[#allocation148_spill] sm:$0xff] %v8230_v50  ;;  %v4010_v51 = vmul.f32 %v8216_v63, %v8216_v63  ;;  %v8240_v1 = vmul.f32 %v3750_v6, %v3686_v0  ;;  %v3559_v48 = vsub.f32 0.0, %v3431_v46  ;;  %4825 = vpow2.f32 %v3293_v42  ;;  %v10499_v6 = vld [vmem:[#allocation131_spill] sm:$0xff] }
 0x2a9   :  { %v2986_v49 = vadd.f32 0.2548296, %v2922_v14  ;;  %v1126_v16 = vadd.f32 %v1062_v27, %v933_v24  ;;  %v2539_v52 = vmul.f32 1.0614054, %v8223_v2  ;;  %v1255_v56 = vmul.f32 %v5229_v13, %v8087_v33  ;;  %v942_v50 = vld [vmem:[#allocation2 + $0x19] sm:$0xff] }
 0x2aa   :  { %10497 = vst [vmem:[#allocation132_spill] sm:$0xff] %v8240_v1  ;;  %v4824_v29 = vpop.eup %4823  ;;  %v3049_v28 = vmul.f32 %v2985_v45, %v8095_v39  ;;  %v355_v55 = vmul.f32 %v10241_v60, %v7991_v44  ;;  %v484_v41 = vmul.f32 %v10391_v58, %v8005_v22  ;;  %v2348_v0 = vmul.f32 %v4822_v38, %v2220_v25  ;;  %v8263_v39 = vld [vmem:[#allocation2 + $0x2f0] sm:$0xff] }
 0x2ab   :  { %vm3496_vm12 = vcmp.ge.f32.partialorder %v10498_v43, 0.0  ;;  %v3560_v18 = vsub.f32 0.0, %v3432_v31  ;;  %v3688_v42 = vmul.f32 0.5, %v10499_v6  ;;  %v1898_v14 = vadd.f32 %v1834_v10, %v1705_v62 }
 0x2ac   :  { %v8254_v24 = vsel %vm20_vm0, %v8216_v63, 0.0  ;;  %v8257_v27 = vsel %vm20_vm0, %v4010_v51, 0.0  ;;  %v4011_v44 = vmul.f32 %v8240_v1, %v8240_v1  ;;  %v3623_v22 = vsel %vm3495_vm11, %v3431_v46, %v3559_v48 }
 0x2ad   :  { %10500 = vst [vmem:[#allocation129_spill] sm:$0xff] %v8254_v24  ;;  %v3050_v25 = vmul.f32 %v2986_v49, %v8110_v4  ;;  %v4560_v45 = vadd.f32 -1.4531521, %v2539_v52  ;;  %v1319_v59 = vadd.f32 %v1255_v56, %v1126_v16  ;;  %v1449_v62 = vmul.f32 %v10401_v21, %v8263_v39  ;;  %v10505_v16 = vld [vmem:[#allocation139_spill] sm:$0xff]  ;;  %v8287_v52 = vld [vmem:[#allocation2 + $0x2f1] sm:$0xff] }
 0x2ae   :  { %10501 = vst [vmem:[#allocation134_spill] sm:$0xff] %v8257_v27  ;;  %v4826_v10 = vpop.eup %4825  ;;  %v3369_v6 = vmul.f32 %v4824_v29, %v3049_v28  ;;  %v548_v63 = vadd.f32 %v484_v41, %v355_v55  ;;  %v356_v51 = vmul.f32 %v10241_v60, %v8042_v30  ;;  %v2412_v32 = vsub.f32 2.0, %v2348_v0  ;;  %v10506_v41 = vld [vmem:[#allocation136_spill] sm:$0xff] }
 0x2af   :  { %v3751_v17 = vadd.f32 1.0, %v3623_v22  ;;  %v3624_v46 = vsel %vm3496_vm12, %v3432_v31, %v3560_v18  ;;  %v485_v36 = vmul.f32 %v10391_v58, %v8062_v53  ;;  %v8275_v4 = vadd.f32 %v8067_v26, %v1898_v14  ;;  %v10508_v14 = vld [vmem:[#allocation141_spill] sm:$0xff] }
 0x2b0   :  { %v8279_v48 = vsel %vm20_vm0, %v8240_v1, 0.0  ;;  %v8282_v49 = vsel %vm20_vm0, %v4011_v44, 0.0  ;;  %vm3497_vm13 = vcmp.ge.f32.partialorder %v10505_v16, 0.0  ;;  %v677_v30 = vmul.f32 %v10335_v8, %v8021_v19 }
 0x2b1   :  { %10502 = vst [vmem:[#allocation131_spill] sm:$0xff] %v8275_v4  ;;  %v3370_v31 = vmul.f32 %v4826_v10, %v3050_v25  ;;  %v2667_v53 = vmul.f32 %v4560_v45, %v8223_v2  ;;  %v1513_v56 = vadd.f32 %v1449_v62, %v1319_v59  ;;  %v1642_v29 = vmul.f32 %v10405_v7, %v8287_v52  ;;  %v8306_v62 = vld [vmem:[#allocation2 + $0x2f2] sm:$0xff] }
 0x2b2   :  { %10503 = vst [vmem:[#allocation149_spill] sm:$0xff] %v8279_v48  ;;  %v3752_v28 = vadd.f32 1.0, %v3624_v46  ;;  %v3433_v55 = vsub.f32 1.0, %v3369_v6  ;;  %v3689_v0 = vmul.f32 0.5, %v10506_v41  ;;  %v8293_v43 = vmul.f32 %v4822_v38, %v2412_v32 }
 0x2b3   :  { %10504 = vst [vmem:[#allocation150_spill] sm:$0xff] %v8282_v49  ;;  %v8295_v18 = vmul.f32 %v3751_v17, %v3687_v5  ;;  %vm3498_vm14 = vcmp.ge.f32.partialorder %v10508_v14, 0.0  ;;  %v549_v19 = vadd.f32 %v485_v36, %v356_v51  ;;  %v8299_v44 = vmul.f32 0.70710677, %v8275_v4 }
 0x2b4   :  { %v741_v22 = vadd.f32 %v677_v30, %v548_v63  ;;  %v3115_v25 = vsub.f32 0.0, %v8107_v9  ;;  %v678_v45 = vmul.f32 %v10335_v8, %v8087_v33  ;;  %v870_v59 = vmul.f32 %v5225_v11, %v8193_v37 }
 0x2b5   :  { %10507 = vst [vmem:[#allocation139_spill] sm:$0xff] %v8295_v18  ;;  %v3434_v32 = vsub.f32 1.0, %v3370_v31  ;;  %v2731_v17 = vadd.f32 1.4214138, %v2667_v53  ;;  %v1706_v38 = vadd.f32 %v1642_v29, %v1513_v56  ;;  %v1835_v5 = vmul.f32 %v7785_v40, %v8306_v62  ;;  %v10511_v40 = vld [vmem:[#allocation138_spill] sm:$0xff] }
 0x2b6   :  { %10509 = vst [vmem:[#allocation136_spill] sm:$0xff] %v8299_v44  ;;  %v8310_v10 = vmul.f32 %v3752_v28, %v3688_v42  ;;  %v3561_v6 = vsub.f32 0.0, %v3433_v55  ;;  %v2540_v63 = vmul.f32 1.0614054, %v8293_v43  ;;  %v3116_v51 = vsub.f32 0.0, %v8161_v23 }
 0x2b7   :  { %v4012_v33 = vmul.f32 %v8295_v18, %v8295_v18  ;;  %v357_v46 = vmul.f32 %v10241_v60, %v8193_v37  ;;  %v486_v36 = vmul.f32 %v10391_v58, %v8213_v3  ;;  %v8321_v30 = vand.u32 2147483647, %v8299_v44 }
 0x2b8   :  { %10510 = vst [vmem:[#allocation141_spill] sm:$0xff] %v8310_v10  ;;  %v3690_v42 = vmul.f32 0.5, %v10511_v40  ;;  %v3179_v31 = vmul.f32 %v3115_v25, %v8107_v9  ;;  %v934_v53 = vadd.f32 %v870_v59, %v741_v22  ;;  %v1063_v56 = vmul.f32 %v5227_v12, %v8213_v3 }
 0x2b9   :  { %v3562_v29 = vsub.f32 0.0, %v3434_v32  ;;  %v2795_v28 = vmul.f32 %v2731_v17, %v8223_v2  ;;  %v742_v41 = vadd.f32 %v678_v45, %v549_v19  ;;  %v1899_v1 = vadd.f32 %v1835_v5, %v1706_v38 }
 0x2ba   :  { %v4013_v37 = vmul.f32 %v8310_v10, %v8310_v10  ;;  %v3625_v49 = vsel %vm3497_vm13, %v3433_v55, %v3561_v6  ;;  %v4561_v27 = vadd.f32 -1.4531521, %v2540_v63  ;;  %v3180_v40 = vmul.f32 %v3116_v51, %v8161_v23 }
 0x2bb   :  { %v8335_v9 = vsel %vm20_vm0, %v8295_v18, 0.0  ;;  %v8338_v3 = vsel %vm20_vm0, %v4012_v33, 0.0  ;;  %v550_v22 = vadd.f32 %v486_v36, %v357_v46  ;;  %v2157_v19 = vmul.f32 0.3275911, %v8321_v30 }
 0x2bc   :  { %10512 = vst [vmem:[#allocation138_spill] sm:$0xff] %v8335_v9  ;;  %v8343_v25 = vsel %vm20_vm0, %v8310_v10, 0.0  ;;  %v3295_v45 = vmul.f32 1.442695, %v3179_v31  ;;  %v1127_v16 = vadd.f32 %v1063_v56, %v934_v53  ;;  %v871_v55 = vmul.f32 %v5225_v11, %v8263_v39  ;;  %v294_v56 = vld [vmem:[#allocation2 + $0x300] sm:$0xff] }
 0x2bd   :  { %10513 = vst [vmem:[#allocation151_spill] sm:$0xff] %v8338_v3  ;;  %v3753_v23 = vadd.f32 1.0, %v3625_v49  ;;  %v3626_v59 = vsel %vm3498_vm14, %v3434_v32, %v3562_v29  ;;  %v4624_v17 = vadd.f32 -0.28449672, %v2795_v28  ;;  %v8350_v38 = vadd.f32 %v8067_v26, %v1899_v1  ;;  %v616_v10 = vld [vmem:[#allocation2 + $0x302] sm:$0xff] }
 0x2be   :  { %10514 = vst [vmem:[#allocation152_spill] sm:$0xff] %v8343_v25  ;;  %v8353_v5 = vsel %vm20_vm0, %v4013_v37, 0.0  ;;  %v2668_v6 = vmul.f32 %v4561_v27, %v8293_v43  ;;  %v3297_v63 = vmul.f32 1.442695, %v3180_v40  ;;  %v1256_v51 = vmul.f32 %v5229_v13, %v8233_v47 }
 0x2bf   :  { %10515 = vst [vmem:[#allocation153_spill] sm:$0xff] %v8350_v38  ;;  %v358_v33 = vmul.f32 %v10241_v60, %v8263_v39  ;;  %v487_v49 = vmul.f32 %v10391_v58, %v8287_v52  ;;  %v679_v14 = vmul.f32 %v10335_v8, %v8233_v47  ;;  %v2221_v1 = vadd.f32 1.0, %v2157_v19 }
 0x2c0   :  { %10516 = vst [vmem:[#allocation154_spill] sm:$0xff] %v8353_v5  ;;  %v3754_v32 = vadd.f32 1.0, %v3626_v59  ;;  %4827 = vpow2.f32 %v3295_v45  ;;  %v935_v46 = vadd.f32 %v871_v55, %v742_v41  ;;  %v1064_v27 = vmul.f32 %v5227_v12, %v8287_v52  ;;  %v423_v55 = vld [vmem:[#allocation2 + $0x301] sm:$0xff]  ;;  %v10523_v59 = vld [vmem:[#allocation6_spill] sm:$0xff] }
 0x2c1   :  { %v8366_v36 = vmul.f32 %v3753_v23, %v3689_v0  ;;  %v2923_v31 = vmul.f32 %v4624_v17, %v8223_v2  ;;  %v8370_v53 = vmul.f32 0.5, %v8070_v57  ;;  %v8373_v39 = vmul.f32 0.70710677, %v8350_v38  ;;  %v556_v0 = vld [vmem:[#allocation2 + $0x2] sm:$0xff] }
 0x2c2   :  { %v2732_v29 = vadd.f32 1.4214138, %v2668_v6  ;;  %4829 = vpow2.f32 %v3297_v63  ;;  %v1320_v47 = vadd.f32 %v1256_v51, %v1127_v16  ;;  %v1450_v28 = vmul.f32 %v10401_v21, %v294_v56  ;;  %v10524_v17 = vld [vmem:[#allocation7_spill] sm:$0xff] }
 0x2c3   :  { %10517 = vst [vmem:[#allocation155_spill] sm:$0xff] %v8366_v36  ;;  %v551_v41 = vadd.f32 %v487_v49, %v358_v33  ;;  %v743_v37 = vadd.f32 %v679_v14, %v550_v22  ;;  %4831 = vrcp.f32 %v2221_v1  ;;  %v680_v52 = vmul.f32 %v10335_v8, %v8306_v62 }
 0x2c4   :  { %10518 = vst [vmem:[#allocation156_spill] sm:$0xff] %v8370_v53  ;;  %v8378_v40 = vmul.f32 %v3754_v32, %v3690_v42  ;;  %v8381_v57 = vmul.f32 0.5, %v8129_v20  ;;  %v1128_v19 = vadd.f32 %v1064_v27, %v935_v46  ;;  %v1257_v45 = vmul.f32 %v5229_v13, %v8306_v62  ;;  %v295_v32 = vld [vmem:[#allocation2 + $0x308] sm:$0xff] }
 0x2c5   :  { %10519 = vst [vmem:[#allocation157_spill] sm:$0xff] %v8373_v39  ;;  %v4014_v16 = vmul.f32 %v8366_v36, %v8366_v36  ;;  %v2987_v23 = vadd.f32 0.2548296, %v2923_v31  ;;  %v8388_v22 = vand.u32 2147483647, %v8373_v39  ;;  %v492_v6 = vadd.f32 %v10524_v17, %v10523_v59 }
 0x2c6   :  { %10520 = vst [vmem:[#allocation158_spill] sm:$0xff] %v8378_v40  ;;  %v4828_v42 = vpop.eup %4827  ;;  %v2796_v63 = vmul.f32 %v2732_v29, %v8293_v43  ;;  %v3117_v20 = vsub.f32 0.0, %v8321_v30  ;;  %v1514_v51 = vadd.f32 %v1450_v28, %v1320_v47  ;;  %v1643_v33 = vmul.f32 %v10405_v7, %v423_v55 }
 0x2c7   :  { %10521 = vst [vmem:[#allocation159_spill] sm:$0xff] %v8381_v57  ;;  %v744_v62 = vadd.f32 %v680_v52, %v551_v41  ;;  %v359_v49 = vmul.f32 %v10241_v60, %v294_v56  ;;  %v488_v14 = vmul.f32 %v10391_v58, %v423_v55  ;;  %v621_v46 = vmul.f32 %v10335_v8, %v556_v0  ;;  %v749_v41 = vld [vmem:[#allocation2 + $0x18] sm:$0xff] }
 0x2c8   :  { %10522 = vst [vmem:[#allocation160_spill] sm:$0xff] %v8388_v22  ;;  %v8398_v27 = vpop.eup %4829  ;;  %v8402_v31 = vsel %vm20_vm0, %v8366_v36, 0.0  ;;  %v4015_v29 = vmul.f32 %v8378_v40, %v8378_v40  ;;  %v1321_v47 = vadd.f32 %v1257_v45, %v1128_v19  ;;  %v1451_v28 = vmul.f32 %v10401_v21, %v295_v32  ;;  %v8416_v19 = vld [vmem:[%s9934_s0 + $0x8] ss:$0 sm:$0xff] }
 0x2c9   :  { %10525 = vst [vmem:[#allocation6_spill] sm:$0xff] %v8402_v31  ;;  %v4832_v52 = vpop.eup %4831  ;;  %v8408_v59 = vsel %vm20_vm0, %v4014_v16, 0.0  ;;  %v3051_v17 = vmul.f32 %v2987_v23, %v8223_v2  ;;  %v2158_v0 = vmul.f32 0.3275911, %v8388_v22  ;;  %v685_v18 = vadd.f32 %v621_v46, %v492_v6  ;;  %v424_v6 = vld [vmem:[#allocation2 + $0x309] sm:$0xff] }
 0x2ca   :  { %10526 = vst [vmem:[#allocation7_spill] sm:$0xff] %v8408_v59  ;;  %v4625_v5 = vadd.f32 -0.28449672, %v2796_v63  ;;  %v3181_v36 = vmul.f32 %v3117_v20, %v8321_v30  ;;  %v1707_v3 = vadd.f32 %v1643_v33, %v1514_v51  ;;  %v1836_v45 = vmul.f32 %v8416_v19, %v616_v10 }
 0x2cb   :  { %10527 = vst [vmem:[#allocation161_spill] sm:$0xff] %v8416_v19  ;;  %v8421_v16 = vsel %vm20_vm0, %v8378_v40, 0.0  ;;  %v552_v2 = vadd.f32 %v488_v14, %v359_v49  ;;  %v872_v23 = vmul.f32 %v5225_v11, %v294_v56  ;;  %v814_v63 = vmul.f32 %v5225_v11, %v749_v41  ;;  %v1135_v40 = vld [vmem:[#allocation2 + $0x1a] sm:$0xff] }
 0x2cc   :  { %10528 = vst [vmem:[#allocation162_spill] sm:$0xff] %v8421_v16  ;;  %v8426_v30 = vsel %vm20_vm0, %v4015_v29, 0.0  ;;  %v2349_v20 = vmul.f32 %v4832_v52, %v2221_v1  ;;  %v1515_v51 = vadd.f32 %v1451_v28, %v1321_v47  ;;  %v1644_v33 = vmul.f32 %v10405_v7, %v424_v6  ;;  %v617_v28 = vld [vmem:[#allocation2 + $0x30a] sm:$0xff] }
 0x2cd   :  { %10529 = vst [vmem:[#allocation163_spill] sm:$0xff] %v8426_v30  ;;  %v3371_v46 = vmul.f32 %v4828_v42, %v3051_v17  ;;  %v2222_v59 = vadd.f32 1.0, %v2158_v0  ;;  %v878_v31 = vadd.f32 %v814_v63, %v685_v18  ;;  %v1007_v35 = vmul.f32 %v5227_v12, %v942_v50  ;;  %v1329_v17 = vld [vmem:[#allocation2 + $0x30] sm:$0xff] }
 0x2ce   :  { %vm3499_vm15 = vcmp.ge.f32.partialorder %v8085_v34, 0.0  ;;  %v2924_v56 = vmul.f32 %v4625_v5, %v8293_v43  ;;  %v3299_v49 = vmul.f32 1.442695, %v3181_v36  ;;  %v1065_v14 = vmul.f32 %v5227_v12, %v423_v55 }
 0x2cf   :  { %v1900_v41 = vadd.f32 %v1836_v45, %v1707_v3  ;;  %v936_v29 = vadd.f32 %v872_v23, %v743_v37  ;;  %v360_v1 = vmul.f32 %v10241_v60, %v295_v32  ;;  %v873_v47 = vmul.f32 %v5225_v11, %v295_v32  ;;  %v1522_v32 = vld [vmem:[#allocation2 + $0x31] sm:$0xff] }
 0x2d0   :  { %v1071_v42 = vadd.f32 %v1007_v35, %v878_v31  ;;  %v2413_v18 = vsub.f32 2.0, %v2349_v20  ;;  %v1708_v0 = vadd.f32 %v1644_v33, %v1515_v51  ;;  %v1837_v50 = vmul.f32 %v8416_v19, %v617_v28  ;;  %v10531_v20 = vld [vmem:[#allocation27_spill] sm:$0xff] }
 0x2d1   :  { %v1200_v63 = vmul.f32 %v5229_v13, %v1135_v40  ;;  %v3435_v30 = vsub.f32 1.0, %v3371_v46  ;;  %4833 = vrcp.f32 %v2222_v59  ;;  %v489_v5 = vmul.f32 %v10391_v58, %v424_v6  ;;  %v10532_v40 = vld [vmem:[#allocation24_spill] sm:$0xff] }
 0x2d2   :  { %v681_v3 = vmul.f32 %v10335_v8, %v616_v10  ;;  %v2988_v36 = vadd.f32 0.2548296, %v2924_v56  ;;  %v8440_v37 = vadd.f32 %v8067_v26, %v1900_v41  ;;  %v1394_v35 = vmul.f32 %v10401_v21, %v1329_v17 }
 0x2d3   :  { %v1264_v55 = vadd.f32 %v1200_v63, %v1071_v42  ;;  %v1129_v31 = vadd.f32 %v1065_v14, %v936_v29  ;;  %v937_v45 = vadd.f32 %v873_v47, %v744_v62  ;;  %v1066_v23 = vmul.f32 %v5227_v12, %v424_v6  ;;  %v1715_v47 = vld [vmem:[#allocation2 + $0x32] sm:$0xff] }
 0x2d4   :  { %10530 = vst [vmem:[#allocation164_spill] sm:$0xff] %v8440_v37  ;;  %v1459_v51 = vadd.f32 %v10532_v40, %v10531_v20  ;;  %v8446_v33 = vmul.f32 %v4832_v52, %v2413_v18  ;;  %v1258_v46 = vmul.f32 %v5229_v13, %v616_v10  ;;  %v1901_v16 = vadd.f32 %v1837_v50, %v1708_v0  ;;  %v10535_v18 = vld [vmem:[#allocation25_spill] sm:$0xff]  ;;  %v10536_v50 = vld [vmem:[#allocation28_spill] sm:$0xff] }
 0x2d5   :  { %v1458_v56 = vadd.f32 %v1394_v35, %v1264_v55  ;;  %v3563_v25 = vsub.f32 0.0, %v3435_v30  ;;  %4835 = vpow2.f32 %v3299_v49  ;;  %v1587_v42 = vmul.f32 %v10405_v7, %v1522_v32  ;;  %v10537_v49 = vld [vmem:[#allocation26_spill] sm:$0xff] }
 0x2d6   :  { %10533 = vst [vmem:[#allocation27_spill] sm:$0xff] %v8446_v33  ;;  %v3052_v14 = vmul.f32 %v2988_v36, %v8293_v43  ;;  %v553_v62 = vadd.f32 %v489_v5, %v360_v1  ;;  %v745_v29 = vadd.f32 %v681_v3, %v552_v2  ;;  %v8453_v6 = vmul.f32 0.70710677, %v8440_v37  ;;  %v10539_v2 = vld [vmem:[#allocation35_spill] sm:$0xff]  ;;  %v10540_v1 = vld [vmem:[#allocation29_spill] sm:$0xff] }
 0x2d7   :  { %v8455_v52 = vpop.eup %4833  ;;  %v1130_v17 = vadd.f32 %v1066_v23, %v937_v45  ;;  %v1651_v10 = vadd.f32 %v1587_v42, %v1458_v56  ;;  %v1652_v0 = vadd.f32 %v10535_v18, %v1459_v51  ;;  %v1653_v63 = vadd.f32 %v10537_v49, %v10536_v50  ;;  %v4906_v32 = vld [vmem:[#allocation2 + $0x3a] sm:$0xff]  ;;  %v10544_v51 = vld [vmem:[#allocation32_spill] sm:$0xff] }
 0x2d8   :  { %10534 = vst [vmem:[#allocation24_spill] sm:$0xff] %v8453_v6  ;;  %v2541_v55 = vmul.f32 1.0614054, %v8446_v33  ;;  %v1322_v35 = vadd.f32 %v1258_v46, %v1129_v31  ;;  %v8462_v43 = vadd.f32 %v8067_v26, %v1901_v16  ;;  %v1654_v5 = vadd.f32 %v10540_v1, %v10539_v2  ;;  %v10541_v23 = vld [vmem:[#allocation30_spill] sm:$0xff] }
 0x2d9   :  { %v3627_v3 = vsel %vm3499_vm15, %v3435_v30, %v3563_v25  ;;  %v1780_v36 = vmul.f32 %v8416_v19, %v1715_v47  ;;  %v1781_v45 = vmul.f32 %v4906_v32, %v8416_v19  ;;  %v1846_v20 = vadd.f32 %v10541_v23, %v1653_v63 }
 0x2da   :  { %10538 = vst [vmem:[#allocation25_spill] sm:$0xff] %v8462_v43  ;;  %v8472_v40 = vmul.f32 %v8398_v27, %v3052_v14  ;;  %v2350_v31 = vmul.f32 %v8455_v52, %v2222_v59  ;;  %v8476_v16 = vand.u32 2147483647, %v8453_v6  ;;  %v1847_v46 = vadd.f32 %v10544_v51, %v1654_v5  ;;  %v296_v14 = vld [vmem:[#allocation2 + $0x318] sm:$0xff] }
 0x2db   :  { %v8479_v56 = vpop.eup %4835  ;;  %v682_v34 = vmul.f32 %v10335_v8, %v617_v28  ;;  %v1844_v25 = vadd.f32 %v1780_v36, %v1651_v10  ;;  %v1845_v30 = vadd.f32 %v1781_v45, %v1652_v0  ;;  %v8483_v42 = vadd.f32 %v8067_v26, %v1846_v20  ;;  %v10548_v0 = vld [vmem:[#allocation34_spill] sm:$0xff] }
 0x2dc   :  { %10542 = vst [vmem:[#allocation28_spill] sm:$0xff] %v8472_v40  ;;  %v8485_v47 = vadd.f32 1.0, %v3627_v3  ;;  %v1259_v27 = vmul.f32 %v5229_v13, %v617_v28  ;;  %v8489_v59 = vmul.f32 0.70710677, %v8462_v43  ;;  %v8492_v18 = vadd.f32 %v8067_v26, %v1847_v46  ;;  %v425_v5 = vld [vmem:[#allocation2 + $0x319] sm:$0xff] }
 0x2dd   :  { %10543 = vst [vmem:[#allocation26_spill] sm:$0xff] %v8476_v16  ;;  %v4562_v50 = vadd.f32 -1.4531521, %v2541_v55  ;;  %v8495_v49 = vadd.f32 %v8067_v26, %v1844_v25  ;;  %v8498_v10 = vadd.f32 %v8067_v26, %v1845_v30  ;;  %v8502_v63 = vadd.f32 %v8067_v26, %v10548_v0  ;;  %v10549_v3 = vld [vmem:[#allocation39_spill] sm:$0xff] }
 0x2de   :  { %10545 = vst [vmem:[#allocation35_spill] sm:$0xff] %v8479_v56  ;;  %v2414_v2 = vsub.f32 2.0, %v2350_v31  ;;  %v2159_v1 = vmul.f32 0.3275911, %v8476_v16  ;;  %v8508_v36 = vadd.f32 %v8067_v26, %v10549_v3  ;;  %v874_v55 = vmul.f32 %v5225_v11, %v296_v14 }
 0x2df   :  { %10546 = vst [vmem:[#allocation29_spill] sm:$0xff] %v8485_v47  ;;  %v8512_v32 = vmul.f32 0.70710677, %v8495_v49  ;;  %v8515_v45 = vmul.f32 0.70710677, %v8498_v10  ;;  %v746_v20 = vadd.f32 %v682_v34, %v553_v62  ;;  %v1452_v51 = vmul.f32 %v10401_v21, %v296_v14  ;;  %v426_v34 = vld [vmem:[#allocation2 + $0x321] sm:$0xff] }
 0x2e0   :  { %10547 = vst [vmem:[#allocation30_spill] sm:$0xff] %v8489_v59  ;;  %v8518_v23 = vmul.f32 0.70710677, %v8483_v42  ;;  %v8521_v31 = vand.u32 2147483647, %v8489_v59  ;;  %v8528_v46 = vmul.f32 %v4562_v50, %v8446_v33  ;;  %v1323_v25 = vadd.f32 %v1259_v27, %v1130_v17  ;;  %v297_v17 = vld [vmem:[#allocation2 + $0x320] sm:$0xff] }
 0x2e1   :  { %10550 = vst [vmem:[#allocation32_spill] sm:$0xff] %v8508_v36  ;;  %v8525_v26 = vmul.f32 0.70710677, %v8492_v18  ;;  %v361_v30 = vmul.f32 %v10241_v60, %v296_v14  ;;  %v8532_v0 = vmul.f32 0.70710677, %v8502_v63  ;;  %v490_v3 = vmul.f32 %v10391_v58, %v425_v5  ;;  %v10556_v33 = vld [vmem:[#allocation43_spill] sm:$0xff] }
 0x2e2   :  { %10551 = vst [vmem:[#allocation34_spill] sm:$0xff] %v8521_v31  ;;  %v1067_v62 = vmul.f32 %v5227_v12, %v425_v5  ;;  %v8537_v41 = vmul.f32 0.70710677, %v8508_v36  ;;  %v8540_v28 = vand.u32 2147483647, %v8512_v32  ;;  %v8542_v43 = vadd.f32 1.0, %v2159_v1 }
 0x2e3   :  { %10552 = vst [vmem:[#allocation39_spill] sm:$0xff] %v8528_v46  ;;  %v938_v50 = vadd.f32 %v874_v55, %v745_v29  ;;  %v8545_v27 = vand.u32 2147483647, %v8515_v45  ;;  %v8548_v14 = vand.u32 2147483647, %v8518_v23  ;;  %v1516_v9 = vadd.f32 %v1452_v51, %v1322_v35  ;;  %v618_v55 = vld [vmem:[#allocation2 + $0x31a] sm:$0xff] }
 0x2e4   :  { %10553 = vst [vmem:[#allocation165_spill] sm:$0xff] %v8542_v43  ;;  %v2160_v59 = vmul.f32 0.3275911, %v8521_v31  ;;  %v1645_v37 = vmul.f32 %v10405_v7, %v425_v5  ;;  %v8553_v48 = vand.u32 2147483647, %v8525_v26  ;;  %v8556_v24 = vmul.f32 %v8455_v52, %v2414_v2  ;;  %v10557_v47 = vld [vmem:[#allocation71_spill] sm:$0xff] }
 0x2e5   :  { %v362_v29 = vmul.f32 %v10241_v60, %v297_v17  ;;  %v491_v1 = vmul.f32 %v10391_v58, %v426_v34  ;;  %v8561_v15 = vand.u32 2147483647, %v8532_v0  ;;  %v875_v61 = vmul.f32 %v5225_v11, %v297_v17  ;;  %v1004_v36 = vld [vmem:[#allocation2 + $0x331] sm:$0xff] }
 0x2e6   :  { %10554 = vst [vmem:[#allocation166_spill] sm:$0xff] %v8556_v24  ;;  %v8565_v35 = vand.u32 2147483647, %v8537_v41  ;;  %v2103_v5 = vmul.f32 0.3275911, %v8540_v28  ;;  %v554_v6 = vadd.f32 %v490_v3, %v361_v30  ;;  %v1131_v52 = vadd.f32 %v1067_v62, %v938_v50 }
 0x2e7   :  { %v2104_v51 = vmul.f32 0.3275911, %v8545_v27  ;;  %v1453_v2 = vmul.f32 %v10401_v21, %v297_v17  ;;  %v2105_v60 = vmul.f32 0.3275911, %v8548_v14  ;;  %4837 = vrcp.f32 %v8542_v43 }
 0x2e8   :  { %v8572_v58 = vadd.f32 1.0, %v2160_v59  ;;  %v1709_v39 = vadd.f32 %v1645_v37, %v1516_v9  ;;  %v2106_v44 = vmul.f32 0.3275911, %v8553_v48  ;;  %v683_v56 = vmul.f32 %v10335_v8, %v618_v55  ;;  %v619_v37 = vld [vmem:[#allocation2 + $0x322] sm:$0xff] }
 0x2e9   :  { %v2107_v31 = vmul.f32 0.3275911, %v8561_v15  ;;  %v2167_v16 = vadd.f32 1.0, %v2103_v5  ;;  %v2168_v38 = vadd.f32 1.0, %v2104_v51  ;;  %v555_v57 = vadd.f32 %v491_v1, %v362_v29 }
 0x2ea   :  { %10555 = vst [vmem:[#allocation167_spill] sm:$0xff] %v8572_v58  ;;  %v939_v30 = vadd.f32 %v875_v61, %v746_v20  ;;  %v2108_v3 = vmul.f32 0.3275911, %v8565_v35  ;;  %v2169_v62 = vadd.f32 1.0, %v2105_v60  ;;  %v1068_v50 = vmul.f32 %v5227_v12, %v426_v34  ;;  %v10558_v20 = vld [vmem:[#allocation46_spill] sm:$0xff]  ;;  %v811_v60 = vld [vmem:[#allocation2 + $0x330] sm:$0xff] }
 0x2eb   :  { %v1260_v17 = vmul.f32 %v5229_v13, %v618_v55  ;;  %v1517_v59 = vadd.f32 %v1453_v2, %v1323_v25  ;;  %v1646_v9 = vmul.f32 %v10405_v7, %v426_v34  ;;  %v2170_v4 = vadd.f32 1.0, %v2106_v44  ;;  %v10560_v25 = vld [vmem:[#allocation68_spill] sm:$0xff] }
 0x2ec   :  { %4839 = vrcp.f32 %v2167_v16  ;;  %v2493_v22 = vmul.f32 1.0614054, %v10556_v33  ;;  %v2494_v5 = vmul.f32 1.0614054, %v10557_v47  ;;  %v1838_v29 = vmul.f32 %v8416_v19, %v618_v55 }
 0x2ed   :  { %v2171_v61 = vadd.f32 1.0, %v2107_v31  ;;  %4841 = vrcp.f32 %v2168_v38  ;;  %v2495_v1 = vmul.f32 1.0614054, %v10558_v20  ;;  %v8585_v51 = vpop.eup %4837  ;;  %v2172_v53 = vadd.f32 1.0, %v2108_v3 }
 0x2ee   :  { %10559 = vst [vmem:[#allocation43_spill] sm:$0xff] %v8585_v51  ;;  %4843 = vrcp.f32 %v2169_v62  ;;  %v2496_v34 = vmul.f32 1.0614054, %v10560_v25  ;;  %v4514_v2 = vadd.f32 -1.4531521, %v2493_v22  ;;  %v747_v44 = vadd.f32 %v683_v56, %v554_v6 }
 0x2ef   :  { %v1132_v46 = vadd.f32 %v1068_v50, %v939_v30  ;;  %v1324_v43 = vadd.f32 %v1260_v17, %v1131_v52  ;;  %v684_v40 = vmul.f32 %v10335_v8, %v619_v37  ;;  %v8589_v58 = vadd.f32 %v1646_v9, %v1517_v59 }
 0x2f0   :  { %v1261_v31 = vmul.f32 %v5229_v13, %v619_v37  ;;  %4845 = vrcp.f32 %v2170_v4  ;;  %v4515_v55 = vadd.f32 -1.4531521, %v2494_v5  ;;  %v8592_v24 = vadd.f32 %v1838_v29, %v1709_v39 }
 0x2f1   :  { %v876_v51 = vmul.f32 %v5225_v11, %v811_v60  ;;  %4847 = vrcp.f32 %v2171_v61  ;;  %v4516_v3 = vadd.f32 -1.4531521, %v2495_v1  ;;  %v1454_v22 = vmul.f32 %v10401_v21, %v811_v60 }
 0x2f2   :  { %10561 = vst [vmem:[#allocation71_spill] sm:$0xff] %v8592_v24  ;;  %v4840_v54 = vpop.eup %4839  ;;  %4849 = vrcp.f32 %v2172_v53  ;;  %v4517_v6 = vadd.f32 -1.4531521, %v2496_v34  ;;  %v2621_v8 = vmul.f32 %v4514_v2, %v10556_v33  ;;  %v8597_v52 = vadd.f32 %v684_v40, %v555_v57 }
 0x2f3   :  { %v4842_v56 = vpop.eup %4841  ;;  %v8600_v30 = vmul.f32 %v8416_v19, %v619_v37  ;;  %v2295_v39 = vmul.f32 %v4840_v54, %v2167_v16  ;;  %v2622_v50 = vmul.f32 %v4515_v55, %v10557_v47  ;;  %v8603_v59 = vadd.f32 %v1261_v31, %v1132_v46 }
 0x2f4   :  { %v4844_v17 = vpop.eup %4843  ;;  %v2296_v9 = vmul.f32 %v4842_v56, %v2168_v38  ;;  %v2623_v5 = vmul.f32 %v4516_v3, %v10558_v20  ;;  %v2685_v29 = vadd.f32 1.4214138, %v2621_v8  ;;  %v8606_v1 = vadd.f32 %v876_v51, %v747_v44  ;;  %v8615_v38 = vld [vmem:[#allocation2 + $0x338] sm:$0xff] }
 0x2f5   :  { %v8609_v60 = vmul.f32 %v5227_v12, %v1004_v36  ;;  %v2297_v57 = vmul.f32 %v4844_v17, %v2169_v62  ;;  %v2359_v40 = vsub.f32 2.0, %v2295_v39  ;;  %v8611_v37 = vadd.f32 %v1454_v22, %v1324_v43 }
 0x2f6   :  { %v4846_v34 = vpop.eup %4845  ;;  %v1647_v16 = vmul.f32 %v10405_v7, %v1004_v36  ;;  %v2360_v2 = vsub.f32 2.0, %v2296_v9  ;;  %v2624_v46 = vmul.f32 %v4517_v6, %v10560_v25  ;;  %v2686_v44 = vadd.f32 1.4214138, %v2622_v50 }
 0x2f7   :  { %v4848_v31 = vpop.eup %4847  ;;  %v2298_v55 = vmul.f32 %v4846_v34, %v2170_v4  ;;  %v2361_v3 = vsub.f32 2.0, %v2297_v57  ;;  %v8617_v51 = vmul.f32 %v4840_v54, %v2359_v40  ;;  %v2687_v39 = vadd.f32 1.4214138, %v2623_v5 }
 0x2f8   :  { %v4850_v8 = vpop.eup %4849  ;;  %v2299_v24 = vmul.f32 %v4848_v31, %v2171_v61  ;;  %v8619_v62 = vmul.f32 %v4842_v56, %v2360_v2  ;;  %v2749_v43 = vmul.f32 %v2685_v29, %v10556_v33  ;;  %v877_v4 = vmul.f32 %v5225_v11, %v8615_v38 }
 0x2f9   :  { %v2300_v22 = vmul.f32 %v4850_v8, %v2172_v53  ;;  %v2362_v36 = vsub.f32 2.0, %v2298_v55  ;;  %v8622_v9 = vmul.f32 %v4844_v17, %v2361_v3  ;;  %v2487_v6 = vmul.f32 1.0614054, %v8617_v51 }
 0x2fa   :  { %v2363_v57 = vsub.f32 2.0, %v2299_v24  ;;  %v2488_v54 = vmul.f32 1.0614054, %v8619_v62  ;;  %v2688_v50 = vadd.f32 1.4214138, %v2624_v46  ;;  %v2750_v17 = vmul.f32 %v2686_v44, %v10557_v47 }
 0x2fb   :  { %v2364_v40 = vsub.f32 2.0, %v2300_v22  ;;  %v8628_v61 = vmul.f32 %v4846_v34, %v2362_v36  ;;  %v2489_v56 = vmul.f32 1.0614054, %v8622_v9  ;;  %v4508_v5 = vadd.f32 -1.4531521, %v2487_v6 }
 0x2fc   :  { %v8631_v29 = vmul.f32 %v4848_v31, %v2363_v57  ;;  %v4509_v53 = vadd.f32 -1.4531521, %v2488_v54  ;;  %v4578_v2 = vadd.f32 -0.28449672, %v2749_v43  ;;  %v2751_v22 = vmul.f32 %v2687_v39, %v10558_v20 }
 0x2fd   :  { %v8634_v55 = vmul.f32 %v4850_v8, %v2364_v40  ;;  %v2490_v11 = vmul.f32 1.0614054, %v8628_v61  ;;  %v4510_v24 = vadd.f32 -1.4531521, %v2489_v56  ;;  %v2615_v3 = vmul.f32 %v4508_v5, %v8617_v51 }
 0x2fe   :  { %v2491_v46 = vmul.f32 1.0614054, %v8631_v29  ;;  %v2616_v34 = vmul.f32 %v4509_v53, %v8619_v62  ;;  %v2752_v31 = vmul.f32 %v2688_v50, %v10560_v25  ;;  %v4579_v54 = vadd.f32 -0.28449672, %v2750_v17 }
 0x2ff   :  { %v2492_v36 = vmul.f32 1.0614054, %v8634_v55  ;;  %v4511_v6 = vadd.f32 -1.4531521, %v2490_v11  ;;  %v2617_v44 = vmul.f32 %v4510_v24, %v8622_v9  ;;  %v2679_v8 = vadd.f32 1.4214138, %v2615_v3 }
 0x300   :  { %v4512_v43 = vadd.f32 -1.4531521, %v2491_v46  ;;  %v2680_v57 = vadd.f32 1.4214138, %v2616_v34  ;;  %v2877_v40 = vmul.f32 %v4578_v2, %v10556_v33  ;;  %v4580_v7 = vadd.f32 -0.28449672, %v2751_v22 }
 0x301   :  { %v4513_v56 = vadd.f32 -1.4531521, %v2492_v36  ;;  %v2618_v5 = vmul.f32 %v4511_v6, %v8628_v61  ;;  %v2681_v19 = vadd.f32 1.4214138, %v2617_v44  ;;  %v2743_v53 = vmul.f32 %v2679_v8, %v8617_v51 }
 0x302   :  { %v2619_v39 = vmul.f32 %v4512_v43, %v8631_v29  ;;  %v2744_v50 = vmul.f32 %v2680_v57, %v8619_v62  ;;  %v4581_v11 = vadd.f32 -0.28449672, %v2752_v31  ;;  %v8653_v2 = vadd.f32 %v8600_v30, %v8589_v58 }
 0x303   :  { %v2620_v24 = vmul.f32 %v4513_v56, %v8634_v55  ;;  %v2682_v3 = vadd.f32 1.4214138, %v2618_v5  ;;  %v2745_v46 = vmul.f32 %v2681_v19, %v8622_v9  ;;  %v4572_v17 = vadd.f32 -0.28449672, %v2743_v53 }
 0x304   :  { %v8657_v34 = vadd.f32 %v8609_v60, %v8606_v1  ;;  %v2683_v36 = vadd.f32 1.4214138, %v2619_v39  ;;  %v2878_v6 = vmul.f32 %v4579_v54, %v10557_v47  ;;  %v8661_v22 = vadd.f32 %v1647_v16, %v8611_v37 }
 0x305   :  { %v2684_v31 = vadd.f32 1.4214138, %v2620_v24  ;;  %v2746_v44 = vmul.f32 %v2682_v3, %v8628_v61  ;;  %v2941_v8 = vadd.f32 0.2548296, %v2877_v40  ;;  %v8665_v19 = vadd.f32 %v877_v4, %v8597_v52 }
 0x306   :  { %v2747_v58 = vmul.f32 %v2683_v36, %v8631_v29  ;;  %v4573_v30 = vadd.f32 -0.28449672, %v2744_v50  ;;  %v2879_v43 = vmul.f32 %v4580_v7, %v10558_v20  ;;  %v4574_v60 = vadd.f32 -0.28449672, %v2745_v46 }
 0x307   :  { %v2748_v1 = vmul.f32 %v2684_v31, %v8634_v55  ;;  %v2871_v57 = vmul.f32 %v4572_v17, %v8617_v51  ;;  %v2880_v37 = vmul.f32 %v4581_v11, %v10560_v25  ;;  %v2942_v16 = vadd.f32 0.2548296, %v2878_v6 }
 0x308   :  { %v3063_v54 = vsub.f32 0.0, %v8540_v28  ;;  %v3064_v40 = vsub.f32 0.0, %v8545_v27  ;;  %v3065_v52 = vsub.f32 0.0, %v8548_v14  ;;  %v4575_v4 = vadd.f32 -0.28449672, %v2746_v44 }
 0x309   :  { %v4576_v56 = vadd.f32 -0.28449672, %v2747_v58  ;;  %v3005_v5 = vmul.f32 %v2941_v8, %v10556_v33  ;;  %v3066_v7 = vsub.f32 0.0, %v8553_v48  ;;  %v4577_v53 = vadd.f32 -0.28449672, %v2748_v1 }
 0x30a   :  { %v2872_v39 = vmul.f32 %v4573_v30, %v8619_v62  ;;  %v2943_v50 = vadd.f32 0.2548296, %v2879_v43  ;;  %v3067_v24 = vsub.f32 0.0, %v8561_v15  ;;  %v2873_v11 = vmul.f32 %v4574_v60, %v8622_v9 }
 0x30b   :  { %v2935_v3 = vadd.f32 0.2548296, %v2871_v57  ;;  %v2944_v46 = vadd.f32 0.2548296, %v2880_v37  ;;  %v3068_v17 = vsub.f32 0.0, %v8565_v35  ;;  %v3006_v36 = vmul.f32 %v2942_v16, %v10557_v47 }
 0x30c   :  { %v3127_v6 = vmul.f32 %v3063_v54, %v8540_v28  ;;  %v3128_v33 = vmul.f32 %v3064_v40, %v8545_v27  ;;  %v3129_v31 = vmul.f32 %v3065_v52, %v8548_v14  ;;  %v2874_v44 = vmul.f32 %v4575_v4, %v8628_v61  ;;  %v8693_v40 = vld [vmem:[#allocation2 + $0x339] sm:$0xff] }
 0x30d   :  { %v2875_v8 = vmul.f32 %v4576_v56, %v8631_v29  ;;  %v3130_v58 = vmul.f32 %v3066_v7, %v8553_v48  ;;  %v3131_v30 = vmul.f32 %v3067_v24, %v8561_v15  ;;  %v2876_v43 = vmul.f32 %v4577_v53, %v8634_v55  ;;  %v8695_v48 = vld [vmem:[#allocation2 + $0x332] sm:$0xff] }
 0x30e   :  { %v3132_v1 = vmul.f32 %v3068_v17, %v8565_v35  ;;  %v3191_v60 = vmul.f32 1.442695, %v3127_v6  ;;  %v3193_v47 = vmul.f32 1.442695, %v3128_v33  ;;  %v3007_v28 = vmul.f32 %v2943_v50, %v10558_v20  ;;  %v10562_v35 = vld [vmem:[#allocation42_spill] sm:$0xff]  ;;  %v10563_v20 = vld [vmem:[#allocation51_spill] sm:$0xff] }
 0x30f   :  { %v3008_v27 = vmul.f32 %v2944_v46, %v10560_v25  ;;  %v3195_v57 = vmul.f32 1.442695, %v3129_v31  ;;  %v3197_v14 = vmul.f32 1.442695, %v3130_v58  ;;  %v2936_v37 = vadd.f32 0.2548296, %v2872_v39 }
 0x310   :  { %v2937_v16 = vadd.f32 0.2548296, %v2873_v11  ;;  %4851 = vpow2.f32 %v3191_v60  ;;  %v3199_v54 = vmul.f32 1.442695, %v3131_v30  ;;  %v2938_v15 = vadd.f32 0.2548296, %v2874_v44 }
 0x311   :  { %4853 = vpow2.f32 %v3193_v47  ;;  %v3201_v52 = vmul.f32 1.442695, %v3132_v1  ;;  %v3325_v4 = vmul.f32 %v10562_v35, %v3005_v5  ;;  %v2939_v56 = vadd.f32 0.2548296, %v2875_v8  ;;  %v10564_v39 = vld [vmem:[#allocation44_spill] sm:$0xff]  ;;  %v10565_v24 = vld [vmem:[#allocation61_spill] sm:$0xff] }
 0x312   :  { %v2940_v7 = vadd.f32 0.2548296, %v2876_v43  ;;  %4855 = vpow2.f32 %v3195_v57  ;;  %v8699_v25 = vmul.f32 %v10563_v20, %v3006_v36  ;;  %v2999_v53 = vmul.f32 %v2935_v3, %v8617_v51 }
 0x313   :  { %4857 = vpow2.f32 %v3197_v14  ;;  %v8703_v50 = vmul.f32 %v10564_v39, %v3007_v28  ;;  %v8706_v11 = vmul.f32 %v10565_v24, %v3008_v27  ;;  %v8710_v46 = vmul.f32 %v5227_v12, %v8693_v40  ;;  %v10566_v28 = vld [vmem:[#allocation33_spill] sm:$0xff] }
 0x314   :  { %v8714_v5 = vmul.f32 %v5229_v13, %v8695_v48  ;;  %v3000_v17 = vmul.f32 %v2936_v37, %v8619_v62  ;;  %4859 = vpow2.f32 %v3199_v54  ;;  %v3001_v51 = vmul.f32 %v2937_v16, %v8622_v9 }
 0x315   :  { %v3002_v3 = vmul.f32 %v2938_v15, %v8628_v61  ;;  %4861 = vpow2.f32 %v3201_v52  ;;  %v3389_v36 = vsub.f32 1.0, %v3325_v4  ;;  %v3003_v33 = vmul.f32 %v2939_v56, %v8631_v29  ;;  %v10567_v56 = vld [vmem:[#allocation37_spill] sm:$0xff] }
 0x316   :  { %v4852_v6 = vpop.eup %4851  ;;  %v3004_v31 = vmul.f32 %v2940_v7, %v8634_v55  ;;  %v3390_v12 = vsub.f32 1.0, %v8699_v25  ;;  %vm3447_vm1 = vcmp.ge.f32.partialorder %v8512_v32, 0.0  ;;  %v3391_v62 = vsub.f32 1.0, %v8703_v50 }
 0x317   :  { %v4854_v44 = vpop.eup %4853  ;;  %v3319_v8 = vmul.f32 %v4852_v6, %v2999_v53  ;;  %v3392_v58 = vsub.f32 1.0, %v8706_v11  ;;  %vm3448_vm2 = vcmp.ge.f32.partialorder %v8515_v45, 0.0  ;;  %vm3449_vm3 = vcmp.ge.f32.partialorder %v8518_v23, 0.0  ;;  %v10580_v11 = vld [vmem:[#allocation11_spill] sm:$0xff] }
 0x318   :  { %v4856_v9 = vpop.eup %4855  ;;  %v3320_v61 = vmul.f32 %v4854_v44, %v3000_v17  ;;  %vm3450_vm4 = vcmp.ge.f32.partialorder %v8525_v26, 0.0  ;;  %vm3451_vm5 = vcmp.ge.f32.partialorder %v8532_v0, 0.0  ;;  %vm3452_vm6 = vcmp.ge.f32.partialorder %v8537_v41, 0.0  ;;  %v10568_v44 = vld [vmem:[#allocation54_spill] sm:$0xff]  ;;  %v10572_v26 = vld [vmem:[#allocation48_spill] sm:$0xff] }
 0x319   :  { %v4858_v29 = vpop.eup %4857  ;;  %v3321_v55 = vmul.f32 %v4856_v9, %v3001_v51  ;;  %v3383_v30 = vsub.f32 1.0, %v3319_v8  ;;  %v3517_v43 = vsub.f32 0.0, %v3389_v36  ;;  %vm3453_vm7 = vcmp.ge.f32.partialorder %v10566_v28, 0.0  ;;  %v1198_v28 = vld [vmem:[#allocation2 + $0x33a] sm:$0xff] }
 0x31a   :  { %v4860_v1 = vpop.eup %4859  ;;  %v3322_v60 = vmul.f32 %v4858_v29, %v3002_v3  ;;  %v3384_v47 = vsub.f32 1.0, %v3320_v61  ;;  %v3518_v27 = vsub.f32 0.0, %v3390_v12  ;;  %v3519_v54 = vsub.f32 0.0, %v3391_v62 }
 0x31b   :  { %v4862_v57 = vpop.eup %4861  ;;  %v3323_v14 = vmul.f32 %v4860_v1, %v3003_v33  ;;  %v3385_v37 = vsub.f32 1.0, %v3321_v55  ;;  %v3511_v16 = vsub.f32 0.0, %v3383_v30  ;;  %v3639_v4 = vmul.f32 0.5, %v8495_v49 }
 0x31c   :  { %v3324_v15 = vmul.f32 %v4862_v57, %v3004_v31  ;;  %v3386_v52 = vsub.f32 1.0, %v3322_v60  ;;  %v3512_v35 = vsub.f32 0.0, %v3384_v47  ;;  %vm3455_vm8 = vcmp.ge.f32.partialorder %v10567_v56, 0.0 }
 0x31d   :  { %v3387_v7 = vsub.f32 1.0, %v3323_v14  ;;  %v3513_v20 = vsub.f32 0.0, %v3385_v37  ;;  %v3575_v53 = vsel %vm3447_vm1, %v3383_v30, %v3511_v16  ;;  %v3581_v39 = vsel %vm3453_vm7, %v3389_v36, %v3517_v43  ;;  %v10574_v16 = vld [vmem:[#allocation32_spill] sm:$0xff] }
 0x31e   :  { %v3388_v24 = vsub.f32 1.0, %v3324_v15  ;;  %v3514_v17 = vsub.f32 0.0, %v3386_v52  ;;  %v3576_v51 = vsel %vm3448_vm2, %v3384_v47, %v3512_v35  ;;  %v3703_v3 = vadd.f32 1.0, %v3575_v53 }
 0x31f   :  { %v3515_v6 = vsub.f32 0.0, %v3387_v7  ;;  %v3577_v33 = vsel %vm3449_vm3, %v3385_v37, %v3513_v20  ;;  %v3640_v49 = vmul.f32 0.5, %v8498_v10  ;;  %v3704_v31 = vadd.f32 1.0, %v3576_v51 }
 0x320   :  { %vm3456_vm9 = vcmp.ge.f32.partialorder %v10568_v44, 0.0  ;;  %v3516_v8 = vsub.f32 0.0, %v3388_v24  ;;  %v3578_v32 = vsel %vm3450_vm4, %v3386_v52, %v3514_v17  ;;  %v3641_v36 = vmul.f32 0.5, %v8483_v42 }
 0x321   :  { %v3705_v9 = vadd.f32 1.0, %v3577_v33  ;;  %v3579_v45 = vsel %vm3451_vm5, %v3387_v7, %v3515_v6  ;;  %v3706_v61 = vadd.f32 1.0, %v3578_v32  ;;  %v8750_v29 = vmul.f32 %v3703_v3, %v3639_v4 }
 0x322   :  { %v8752_v23 = vmul.f32 %v3704_v31, %v3640_v49  ;;  %v3580_v10 = vsel %vm3452_vm6, %v3388_v24, %v3516_v8  ;;  %v3642_v55 = vmul.f32 0.5, %v8492_v18  ;;  %v3707_v30 = vadd.f32 1.0, %v3579_v45  ;;  %v10583_v31 = vld [vmem:[#allocation14_spill] sm:$0xff]  ;;  %v10584_v8 = vld [vmem:[#allocation40_spill] sm:$0xff] }
 0x323   :  { %10569 = vst [vmem:[#allocation46_spill] sm:$0xff] %v8750_v29  ;;  %v8757_v43 = vmul.f32 %v3705_v9, %v3641_v36  ;;  %v1455_v42 = vmul.f32 %v10401_v21, %v8615_v38  ;;  %vm3454_vm10 = vcmp.ge.f32.partialorder %v10572_v26, 0.0  ;;  %v3520_v0 = vsub.f32 0.0, %v3392_v58  ;;  %v10586_v26 = vld [vmem:[#allocation15_spill] sm:$0xff] }
 0x324   :  { %10570 = vst [vmem:[#allocation68_spill] sm:$0xff] %v8752_v23  ;;  %v3643_v1 = vmul.f32 0.5, %v8502_v63  ;;  %v3708_v60 = vadd.f32 1.0, %v3580_v10  ;;  %v8765_v47 = vmul.f32 %v3706_v61, %v3642_v55  ;;  %v3831_v41 = vsel %vm20_vm0, %v8750_v29, 0.0 }
 0x325   :  { %10571 = vst [vmem:[#allocation42_spill] sm:$0xff] %v8757_v43  ;;  %v3832_v18 = vsel %vm20_vm0, %v8752_v23, 0.0  ;;  %v3582_v21 = vsel %vm3454_vm10, %v3390_v12, %v3518_v27  ;;  %v3709_v38 = vadd.f32 1.0, %v3581_v39  ;;  %v3834_v14 = vsel %vm20_vm0, %v8757_v43, 0.0  ;;  %v10576_v27 = vld [vmem:[#allocation31_spill] sm:$0xff] }
 0x326   :  { %10573 = vst [vmem:[#allocation51_spill] sm:$0xff] %v8765_v47  ;;  %v3833_v57 = vadd.f32 %v3832_v18, %v3831_v41  ;;  %v1134_v63 = vadd.f32 %v8710_v46, %v8665_v19  ;;  %v3583_v37 = vsel %vm3455_vm8, %v3391_v62, %v3519_v54  ;;  %v3644_v15 = vmul.f32 0.5, %v10574_v16 }
 0x327   :  { %v8782_v52 = vmul.f32 %v3707_v30, %v3643_v1  ;;  %v1326_v25 = vadd.f32 %v8714_v5, %v8657_v34  ;;  %v1519_v12 = vadd.f32 %v1455_v42, %v8603_v59  ;;  %v3645_v35 = vmul.f32 0.5, %v10576_v27  ;;  %v10579_v5 = vld [vmem:[#allocation45_spill] sm:$0xff]  ;;  %v10587_v1 = vld [vmem:[#allocation55_spill] sm:$0xff] }
 0x328   :  { %v3835_v4 = vadd.f32 %v3834_v14, %v3833_v57  ;;  %v1263_v7 = vmul.f32 %v5229_v13, %v1198_v28  ;;  %v3710_v19 = vadd.f32 1.0, %v3582_v21  ;;  %v8789_v46 = vmul.f32 %v3708_v60, %v3644_v15  ;;  %v4907_v21 = vld [vmem:[%s9935_s1] ss:$0 sm:$0xff] }
 0x329   :  { %10575 = vst [vmem:[#allocation44_spill] sm:$0xff] %v8782_v52  ;;  %v3836_v50 = vsel %vm20_vm0, %v8765_v47, 0.0  ;;  %v3584_v62 = vsel %vm3456_vm9, %v3392_v58, %v3520_v0  ;;  %v3711_v54 = vadd.f32 1.0, %v3583_v37  ;;  %v8797_v34 = vmul.f32 %v3709_v38, %v3645_v35  ;;  %v10581_v58 = vld [vmem:[#allocation161_spill] sm:$0xff]  ;;  %v10589_v38 = vld [vmem:[#allocation71_spill] sm:$0xff]  ;;  %v10590_v37 = vld [vmem:[#allocation18_spill] sm:$0xff] }
 0x32a   :  { %10577 = vst [vmem:[#allocation61_spill] sm:$0xff] %v8789_v46  ;;  %v3837_v59 = vadd.f32 %v3836_v50, %v3835_v4  ;;  %v3646_v56 = vmul.f32 0.5, %v10579_v5  ;;  %v3838_v13 = vsel %vm20_vm0, %v8782_v52, 0.0  ;;  %v3964_v20 = vmul.f32 %v8750_v29, %v8750_v29  ;;  %v10643_v29 = vld [vmem:[#allocation105_spill] sm:$0xff] }
 0x32b   :  { %10578 = vst [vmem:[#allocation33_spill] sm:$0xff] %v8797_v34  ;;  %v3965_v53 = vmul.f32 %v8752_v23, %v8752_v23  ;;  %v1648_v39 = vmul.f32 %v10580_v11, %v8693_v40  ;;  %v1840_v24 = vmul.f32 %v10581_v58, %v8695_v48  ;;  %v3966_v51 = vmul.f32 %v8757_v43, %v8757_v43  ;;  %v10638_v43 = vld [vmem:[#allocation79_spill] sm:$0xff] }
 0x32c   :  { %v3839_v17 = vadd.f32 %v3838_v13, %v3837_v59  ;;  %v1327_v3 = vadd.f32 %v1263_v7, %v1134_v63  ;;  %v3712_v6 = vadd.f32 1.0, %v3584_v62  ;;  %v8812_v33 = vmul.f32 %v3710_v19, %v3646_v56  ;;  %v10591_v19 = vld [vmem:[#allocation19_spill] sm:$0xff]  ;;  %v10592_v13 = vld [vmem:[#allocation22_spill] sm:$0xff] }
 0x32d   :  { %v3840_v49 = vsel %vm20_vm0, %v8789_v46, 0.0  ;;  %v1520_v44 = vadd.f32 %v10583_v31, %v1326_v25  ;;  %v8818_v32 = vmul.f32 %v3711_v54, %v10584_v8  ;;  %v3842_v48 = vsel %vm20_vm0, %v8797_v34, 0.0  ;;  %v10595_v31 = vld [vmem:[#allocation3_spill] sm:$0xff] }
 0x32e   :  { %10582 = vst [vmem:[#allocation37_spill] sm:$0xff] %v8812_v33  ;;  %v3841_v40 = vadd.f32 %v3840_v49, %v3839_v17  ;;  %v3967_v36 = vmul.f32 %v8765_v47, %v8765_v47  ;;  %v4028_v9 = vsel %vm20_vm0, %v3964_v20, 0.0  ;;  %v4029_v45 = vsel %vm20_vm0, %v3965_v53, 0.0  ;;  %v10593_v53 = vld [vmem:[#allocation64_spill] sm:$0xff] }
 0x32f   :  { %10585 = vst [vmem:[#allocation54_spill] sm:$0xff] %v8818_v32  ;;  %v4031_v61 = vsel %vm20_vm0, %v3966_v51, 0.0  ;;  %v1712_v10 = vadd.f32 %v1648_v39, %v1519_v12  ;;  %v1841_v55 = vmul.f32 %v10581_v58, %v1198_v28  ;;  %v4030_v42 = vadd.f32 %v4029_v45, %v4028_v9 }
 0x330   :  { %v3843_v30 = vadd.f32 %v3842_v48, %v3841_v40  ;;  %v1521_v0 = vadd.f32 %v10586_v26, %v1327_v3  ;;  %v8830_v60 = vmul.f32 %v3712_v6, %v10587_v1  ;;  %v3844_v41 = vsel %vm20_vm0, %v8812_v33, 0.0  ;;  %v10594_v6 = vld [vmem:[#allocation23_spill] sm:$0xff]  ;;  %v10597_v26 = vld [vmem:[#allocation145_spill] sm:$0xff] }
 0x331   :  { %v3968_v18 = vmul.f32 %v8782_v52, %v8782_v52  ;;  %v8840_v57 = vadd.f32 %v4907_v21, %v10589_v38  ;;  %v1904_v28 = vadd.f32 %v1840_v24, %v8661_v22  ;;  %v4032_v63 = vadd.f32 %v4031_v61, %v4030_v42 }
 0x332   :  { %10588 = vst [vmem:[#allocation48_spill] sm:$0xff] %v8830_v60  ;;  %v3845_v14 = vadd.f32 %v3844_v41, %v3843_v30  ;;  %v1713_v16 = vadd.f32 %v10590_v37, %v1520_v44  ;;  %v3846_v15 = vsel %vm20_vm0, %v8818_v32, 0.0  ;;  %v3969_v25 = vmul.f32 %v8789_v46, %v8789_v46 }
 0x333   :  { %v4033_v12 = vsel %vm20_vm0, %v3967_v36, 0.0  ;;  %v8850_v27 = vadd.f32 %v4907_v21, %v8653_v2  ;;  %v1905_v35 = vadd.f32 %v1841_v55, %v1712_v10  ;;  %v1714_v22 = vadd.f32 %v10591_v19, %v1521_v0  ;;  %v10596_v10 = vld [vmem:[#allocation36_spill] sm:$0xff] }
 0x334   :  { %v3847_v4 = vadd.f32 %v3846_v15, %v3845_v14  ;;  %v4034_v7 = vadd.f32 %v4033_v12, %v4032_v63  ;;  %v3848_v50 = vsel %vm20_vm0, %v8830_v60, 0.0  ;;  %v3970_v62 = vmul.f32 %v8797_v34, %v8797_v34 }
 0x335   :  { %v4035_v54 = vsel %vm20_vm0, %v3968_v18, 0.0  ;;  %v8859_v59 = vmul.f32 0.70710677, %v8840_v57  ;;  %v8861_v5 = vadd.f32 %v4907_v21, %v1904_v28  ;;  %v1906_v20 = vadd.f32 %v10592_v13, %v1713_v16  ;;  %v10599_v28 = vld [vmem:[#allocation66_spill] sm:$0xff] }
 0x336   :  { %v3849_v2 = vadd.f32 %v3848_v50, %v3847_v4  ;;  %v4036_v56 = vadd.f32 %v4035_v54, %v4034_v7  ;;  %v3850_v11 = vsel %vm20_vm0, %v10593_v53, 0.0  ;;  %v3971_v39 = vmul.f32 %v8812_v33, %v8812_v33 }
 0x337   :  { %v4037_v58 = vsel %vm20_vm0, %v3969_v25, 0.0  ;;  %v8870_v24 = vmul.f32 0.70710677, %v8850_v27  ;;  %v8872_v17 = vadd.f32 %v4907_v21, %v1905_v35  ;;  %v1907_v49 = vadd.f32 %v10594_v6, %v1714_v22  ;;  %v10601_v22 = vld [vmem:[#allocation166_spill] sm:$0xff] }
 0x338   :  { %v3851_v51 = vadd.f32 %v3850_v11, %v3849_v2  ;;  %v4038_v3 = vadd.f32 %v4037_v58, %v4036_v56  ;;  %v3852_v44 = vsel %vm20_vm0, %v10595_v31, 0.0  ;;  %v3972_v8 = vmul.f32 %v8818_v32, %v8818_v32 }
 0x339   :  { %v4039_v40 = vsel %vm20_vm0, %v3970_v62, 0.0  ;;  %v8881_v48 = vand.u32 2147483647, %v8859_v59  ;;  %v8884_v36 = vmul.f32 0.70710677, %v8861_v5  ;;  %v8886_v61 = vadd.f32 %v4907_v21, %v1906_v20 }
 0x33a   :  { %v3853_v9 = vadd.f32 %v3852_v44, %v3851_v51  ;;  %v4040_v45 = vadd.f32 %v4039_v40, %v4038_v3  ;;  %v3854_v55 = vsel %vm20_vm0, %v10596_v10, 0.0  ;;  %v3973_v30 = vmul.f32 %v8830_v60, %v8830_v60  ;;  %v10603_v51 = vld [vmem:[#allocation69_spill] sm:$0xff] }
 0x33b   :  { %v4041_v42 = vsel %vm20_vm0, %v3971_v39, 0.0  ;;  %vm3500_vm11 = vcmp.ge.f32.partialorder %v10597_v26, 0.0  ;;  %v8895_v0 = vand.u32 2147483647, %v8870_v24  ;;  %v8898_v1 = vmul.f32 0.70710677, %v8872_v17 }
 0x33c   :  { %v3855_v41 = vadd.f32 %v3854_v55, %v3853_v9  ;;  %v4042_v18 = vadd.f32 %v4041_v42, %v4040_v45  ;;  %v8900_v38 = vadd.f32 %v4907_v21, %v1907_v49  ;;  %v3856_v14 = vsel %vm20_vm0, %v10599_v28, 0.0  ;;  %v10600_v21 = vld [vmem:[#allocation56_spill] sm:$0xff]  ;;  %v10602_v39 = vld [vmem:[#allocation167_spill] sm:$0xff]  ;;  %v10606_v42 = vld [vmem:[#allocation50_spill] sm:$0xff] }
 0x33d   :  { %v3974_v63 = vmul.f32 %v10593_v53, %v10593_v53  ;;  %v4043_v37 = vsel %vm20_vm0, %v3972_v8, 0.0  ;;  %v2161_v16 = vmul.f32 0.3275911, %v8881_v48  ;;  %v8909_v15 = vand.u32 2147483647, %v8884_v36  ;;  %v10604_v49 = vld [vmem:[#allocation28_spill] sm:$0xff] }
 0x33e   :  { %10598 = vst [vmem:[#allocation32_spill] sm:$0xff] %v8900_v38  ;;  %v3857_v25 = vadd.f32 %v3856_v14, %v3855_v41  ;;  %v4044_v12 = vadd.f32 %v4043_v37, %v4042_v18  ;;  %v8912_v35 = vmul.f32 0.70710677, %v8886_v61  ;;  %v3858_v4 = vsel %vm20_vm0, %v10600_v21, 0.0  ;;  %v10607_v14 = vld [vmem:[#allocation165_spill] sm:$0xff] }
 0x33f   :  { %v3975_v7 = vmul.f32 %v10595_v31, %v10595_v31  ;;  %v4045_v19 = vsel %vm20_vm0, %v3973_v30, 0.0  ;;  %v2542_v50 = vmul.f32 1.0614054, %v10601_v22  ;;  %v2162_v62 = vmul.f32 0.3275911, %v8895_v0  ;;  %v10624_v31 = vld [vmem:[#allocation82_spill] sm:$0xff] }
 0x340   :  { %v3859_v54 = vadd.f32 %v3858_v4, %v3857_v25  ;;  %v4046_v2 = vadd.f32 %v4045_v19, %v4044_v12  ;;  %v8922_v56 = vmul.f32 0.70710677, %v8900_v38  ;;  %v8925_v13 = vand.u32 2147483647, %v8898_v1  ;;  %v10609_v4 = vld [vmem:[#allocation39_spill] sm:$0xff] }
 0x341   :  { %v3976_v20 = vmul.f32 %v10596_v10, %v10596_v10  ;;  %v4047_v11 = vsel %vm20_vm0, %v3974_v63, 0.0  ;;  %4863 = vrcp.f32 %v10602_v39  ;;  %v2225_v58 = vadd.f32 1.0, %v2161_v16  ;;  %v10608_v63 = vld [vmem:[#allocation43_spill] sm:$0xff] }
 0x342   :  { %v3861_v3 = vadd.f32 %v10603_v51, %v3859_v54  ;;  %v4048_v6 = vadd.f32 %v4047_v11, %v4046_v2  ;;  %v10605_v44 = vsub.f32 1.0, %v10604_v49  ;;  %v2163_v40 = vmul.f32 0.3275911, %v8909_v15  ;;  %v10610_v54 = vld [vmem:[#allocation59_spill] sm:$0xff] }
 0x343   :  { %v8936_v9 = vand.u32 2147483647, %v8912_v35  ;;  %v4049_v45 = vsel %vm20_vm0, %v3975_v7, 0.0  ;;  %v4563_v55 = vadd.f32 -1.4531521, %v2542_v50  ;;  %v2226_v30 = vadd.f32 1.0, %v2162_v62 }
 0x344   :  { %v3564_v8 = vsub.f32 0.0, %v10605_v44  ;;  %v3863_v41 = vadd.f32 %v10606_v42, %v3861_v3  ;;  %v4050_v18 = vadd.f32 %v4049_v45, %v4048_v6  ;;  %v2351_v37 = vmul.f32 %v10608_v63, %v10607_v14  ;;  %v10612_v3 = vld [vmem:[#allocation137_spill] sm:$0xff]  ;;  %v10613_v45 = vld [vmem:[#allocation62_spill] sm:$0xff] }
 0x345   :  { %v8943_v16 = vand.u32 2147483647, %v8922_v56  ;;  %v2164_v25 = vmul.f32 0.3275911, %v8925_v13  ;;  %v4051_v12 = vsel %vm20_vm0, %v3976_v20, 0.0  ;;  %4865 = vrcp.f32 %v2225_v58 }
 0x346   :  { %v2733_v19 = vadd.f32 1.4214138, %v10609_v4  ;;  %v3865_v7 = vadd.f32 %v10610_v54, %v3863_v41  ;;  %v4052_v50 = vadd.f32 %v4051_v12, %v4050_v18  ;;  %v10611_v62 = vmov %v10605_v44  ;;  %v10614_v12 = vld [vmem:[#allocation70_spill] sm:$0xff]  ;;  %v10618_v54 = vld [vmem:[#allocation160_spill] sm:$0xff] }
 0x347   :  { %v3628_v2 = vsel %vm3500_vm11, %v10611_v62, %v3564_v8  ;;  %v2227_v11 = vadd.f32 1.0, %v2163_v40  ;;  %v2165_v51 = vmul.f32 0.3275911, %v8936_v9  ;;  %v4053_v6 = vsel %vm20_vm0, %v10612_v3, 0.0  ;;  %v4864_v44 = vpop.eup %4863  ;;  %v10615_v8 = vld [vmem:[#allocation156_spill] sm:$0xff]  ;;  %v10616_v40 = vld [vmem:[#allocation29_spill] sm:$0xff] }
 0x348   :  { %v2670_v20 = vmul.f32 %v4563_v55, %v10601_v22  ;;  %4867 = vrcp.f32 %v2226_v30  ;;  %v3867_v42 = vadd.f32 %v10613_v45, %v3865_v7  ;;  %v4054_v14 = vadd.f32 %v4053_v6, %v4052_v50  ;;  %v10620_v55 = vld [vmem:[#allocation13_spill] sm:$0xff]  ;;  %v10621_v6 = vld [vmem:[#allocation27_spill] sm:$0xff] }
 0x349   :  { %v2415_v41 = vsub.f32 2.0, %v2351_v37  ;;  %v2166_v18 = vmul.f32 0.3275911, %v8943_v16  ;;  %v2228_v49 = vadd.f32 1.0, %v2164_v25  ;;  %v4055_v26 = vsel %vm20_vm0, %v10614_v12, 0.0  ;;  %v10622_v12 = vld [vmem:[#allocation131_spill] sm:$0xff] }
 0x34a   :  { %v8963_v4 = vmul.f32 %v10616_v40, %v10615_v8  ;;  %v10619_v62 = vsub.f32 0.0, %v10618_v54  ;;  %v3869_v21 = vadd.f32 %v10620_v55, %v3867_v42  ;;  %v4056_v28 = vadd.f32 %v4055_v26, %v4054_v14  ;;  %v10623_v8 = vld [vmem:[#allocation78_spill] sm:$0xff]  ;;  %v10625_v14 = vld [vmem:[#allocation16_spill] sm:$0xff]  ;;  %v10627_v55 = vld [vmem:[#allocation159_spill] sm:$0xff] }
 0x34b   :  { %v3756_v7 = vadd.f32 1.0, %v3628_v2  ;;  %v2352_v37 = vmul.f32 %v4864_v44, %v10602_v39  ;;  %4869 = vrcp.f32 %v2227_v11  ;;  %v2229_v50 = vadd.f32 1.0, %v2165_v51  ;;  %v4866_v25 = vpop.eup %4865  ;;  %v10626_v26 = vld [vmem:[#allocation72_spill] sm:$0xff] }
 0x34c   :  { %10617 = vst [vmem:[#allocation31_spill] sm:$0xff] %v8963_v4  ;;  %v3182_v3 = vmul.f32 %v10619_v62, %v10618_v54  ;;  %v2797_v45 = vmul.f32 %v2733_v19, %v10621_v6  ;;  %v8972_v10 = vmul.f32 0.5, %v10622_v12  ;;  %v3871_v40 = vadd.f32 %v10623_v8, %v3869_v21  ;;  %v10631_v8 = vld [vmem:[#allocation83_spill] sm:$0xff] }
 0x34d   :  { %v4058_v53 = vadd.f32 %v10624_v31, %v4056_v28  ;;  %v2734_v60 = vadd.f32 1.4214138, %v2670_v20  ;;  %v8977_v54 = vmul.f32 %v10608_v63, %v2415_v41  ;;  %v2230_v42 = vadd.f32 1.0, %v2166_v18  ;;  %v10629_v63 = vld [vmem:[#allocation153_spill] sm:$0xff] }
 0x34e   :  { %4871 = vrcp.f32 %v2228_v49  ;;  %v4868_v2 = vpop.eup %4867  ;;  %v4016_v39 = vmul.f32 %v8963_v4, %v8963_v4  ;;  %v3301_v51 = vmul.f32 1.442695, %v3182_v3  ;;  %v3873_v19 = vadd.f32 %v10625_v14, %v3871_v40  ;;  %v10630_v41 = vld [vmem:[#allocation81_spill] sm:$0xff] }
 0x34f   :  { %v4060_v62 = vadd.f32 %v10626_v26, %v4058_v53  ;;  %v8984_v12 = vmul.f32 %v3756_v7, %v10627_v55  ;;  %v2416_v21 = vsub.f32 2.0, %v2352_v37  ;;  %v2353_v31 = vmul.f32 %v4866_v25, %v2225_v58  ;;  %v10632_v58 = vld [vmem:[#allocation26_spill] sm:$0xff]  ;;  %v10634_v26 = vld [vmem:[#allocation73_spill] sm:$0xff] }
 0x350   :  { %4873 = vrcp.f32 %v2229_v50  ;;  %v4626_v28 = vadd.f32 -0.28449672, %v2797_v45  ;;  %v8987_v20 = vmul.f32 0.5, %v10629_v63  ;;  %v3875_v18 = vadd.f32 %v10630_v41, %v3873_v19  ;;  %v10633_v45 = vld [vmem:[#allocation17_spill] sm:$0xff] }
 0x351   :  { %10628 = vst [vmem:[#allocation45_spill] sm:$0xff] %v8984_v12  ;;  %v4062_v32 = vadd.f32 %v10631_v8, %v4060_v62  ;;  %v4870_v33 = vpop.eup %4869  ;;  %v2798_v3 = vmul.f32 %v2734_v60, %v10601_v22  ;;  %v2543_v40 = vmul.f32 1.0614054, %v8977_v54  ;;  %v2354_v53 = vmul.f32 %v4868_v2, %v2226_v30 }
 0x352   :  { %4875 = vrcp.f32 %v2230_v42  ;;  %v8995_v7 = vsel %vm20_vm0, %v8963_v4, 0.0  ;;  %v3119_v37 = vsub.f32 0.0, %v10632_v58  ;;  %v3877_v14 = vadd.f32 %v10633_v45, %v3875_v18  ;;  %v10635_v4 = vld [vmem:[#allocation77_spill] sm:$0xff]  ;;  %v10636_v18 = vld [vmem:[#allocation20_spill] sm:$0xff] }
 0x353   :  { %v4064_v55 = vadd.f32 %v10634_v26, %v4062_v32  ;;  %v9001_v62 = vsel %vm20_vm0, %v4016_v39, 0.0  ;;  %v4017_v60 = vmul.f32 %v8984_v12, %v8984_v12  ;;  %v9005_v63 = vmul.f32 %v4864_v44, %v2416_v21  ;;  %v10637_v21 = vld [vmem:[#allocation100_spill] sm:$0xff] }
 0x354   :  { %v4872_v19 = vpop.eup %4871  ;;  %v2417_v30 = vsub.f32 2.0, %v2353_v31  ;;  %v9009_v41 = vsel %vm20_vm0, %v8984_v12, 0.0  ;;  %v2355_v8 = vmul.f32 %v4870_v33, %v2227_v11  ;;  %v3879_v34 = vadd.f32 %v10635_v4, %v3877_v14  ;;  %v10640_v14 = vld [vmem:[#allocation34_spill] sm:$0xff] }
 0x355   :  { %v4066_v45 = vadd.f32 %v10636_v18, %v4064_v55  ;;  %v2925_v26 = vmul.f32 %v4626_v28, %v10621_v6  ;;  %v4627_v39 = vadd.f32 -0.28449672, %v2798_v3  ;;  %v4564_v46 = vadd.f32 -1.4531521, %v2543_v40  ;;  %v10641_v40 = vld [vmem:[#allocation102_spill] sm:$0xff] }
 0x356   :  { %v4874_v32 = vpop.eup %4873  ;;  %v2418_v52 = vsub.f32 2.0, %v2354_v53  ;;  %v3183_v47 = vmul.f32 %v3119_v37, %v10632_v58  ;;  %v2356_v44 = vmul.f32 %v4872_v19, %v2228_v49  ;;  %v3881_v31 = vadd.f32 %v10637_v21, %v3879_v34  ;;  %v10642_v58 = vld [vmem:[#allocation84_spill] sm:$0xff] }
 0x357   :  { %v4068_v23 = vadd.f32 %v10638_v43, %v4066_v45  ;;  %v9018_v11 = vsel %vm20_vm0, %v4017_v60, 0.0  ;;  %v2544_v4 = vmul.f32 1.0614054, %v9005_v63  ;;  %v3120_v55 = vsub.f32 0.0, %v10640_v14 }
 0x358   :  { %v4876_v12 = vpop.eup %4875  ;;  %10639 = vst [vmem:[#allocation11_spill] sm:$0xff] %v9018_v11  ;;  %v9022_v18 = vmul.f32 %v4866_v25, %v2417_v30  ;;  %v2419_v28 = vsub.f32 2.0, %v2355_v8  ;;  %v2357_v3 = vmul.f32 %v4874_v32, %v2229_v50  ;;  %v3883_v53 = vadd.f32 %v10641_v40, %v3881_v31  ;;  %v10644_v11 = vld [vmem:[#allocation41_spill] sm:$0xff] }
 0x359   :  { %v4070_v49 = vadd.f32 %v10642_v58, %v4068_v23  ;;  %v2989_v37 = vadd.f32 0.2548296, %v2925_v26  ;;  %v2926_v34 = vmul.f32 %v4627_v39, %v10601_v22  ;;  %v2671_v43 = vmul.f32 %v4564_v46, %v8977_v54  ;;  %v10645_v26 = vld [vmem:[#allocation75_spill] sm:$0xff]  ;;  %v10646_v40 = vld [vmem:[#allocation85_spill] sm:$0xff] }
 0x35a   :  { %v9028_v45 = vmul.f32 %v4868_v2, %v2418_v52  ;;  %v2358_v60 = vmul.f32 %v4876_v12, %v2230_v42  ;;  %v2420_v21 = vsub.f32 2.0, %v2356_v44  ;;  %v3885_v38 = vadd.f32 %v10643_v29, %v3883_v53 }
 0x35b   :  { %v4072_v25 = vadd.f32 %v10644_v11, %v4070_v49  ;;  %4877 = vpow2.f32 %v3301_v51  ;;  %v3303_v30 = vmul.f32 1.442695, %v3183_v47  ;;  %v4565_v50 = vadd.f32 -1.4531521, %v2544_v4  ;;  %v10647_v47 = vld [vmem:[#allocation4_spill] sm:$0xff]  ;;  %v10648_v4 = vld [vmem:[#allocation93_spill] sm:$0xff] }
 0x35c   :  { %v2545_v8 = vmul.f32 1.0614054, %v9022_v18  ;;  %v9033_v31 = vmul.f32 %v4870_v33, %v2419_v28  ;;  %v2421_v23 = vsub.f32 2.0, %v2357_v3  ;;  %v3887_v39 = vadd.f32 %v10645_v26, %v3885_v38  ;;  %v10650_v49 = vld [vmem:[#allocation101_spill] sm:$0xff] }
 0x35d   :  { %v4074_v46 = vadd.f32 %v10646_v40, %v4072_v25  ;;  %v2990_v52 = vadd.f32 0.2548296, %v2926_v34  ;;  %v2735_v2 = vadd.f32 1.4214138, %v2671_v43  ;;  %v3184_v42 = vmul.f32 %v3120_v55, %v10640_v14  ;;  %v10649_v14 = vld [vmem:[#allocation106_spill] sm:$0xff] }
 0x35e   :  { %v2546_v29 = vmul.f32 1.0614054, %v9028_v45  ;;  %v2422_v44 = vsub.f32 2.0, %v2358_v60  ;;  %v9039_v11 = vmul.f32 %v4872_v19, %v2420_v21  ;;  %v3889_v51 = vadd.f32 %v10647_v47, %v3887_v39 }
 0x35f   :  { %v4076_v53 = vadd.f32 %v10648_v4, %v4074_v46  ;;  %v3053_v33 = vmul.f32 %v2989_v37, %v10621_v6  ;;  %4879 = vpow2.f32 %v3303_v30  ;;  %v2672_v38 = vmul.f32 %v4565_v50, %v9005_v63  ;;  %v10651_v30 = vld [vmem:[#allocation107_spill] sm:$0xff] }
 0x360   :  { %v4566_v28 = vadd.f32 -1.4531521, %v2545_v8  ;;  %v2547_v3 = vmul.f32 1.0614054, %v9033_v31  ;;  %v9046_v58 = vmul.f32 %v4874_v32, %v2421_v23  ;;  %v3891_v55 = vadd.f32 %v10649_v14, %v3889_v51  ;;  %v10652_v8 = vld [vmem:[#allocation103_spill] sm:$0xff] }
 0x361   :  { %v4078_v34 = vadd.f32 %v10650_v49, %v4076_v53  ;;  %v4878_v19 = vpop.eup %4877  ;;  %v3054_v43 = vmul.f32 %v2990_v52, %v10601_v22  ;;  %v2799_v60 = vmul.f32 %v2735_v2, %v8977_v54  ;;  %v3305_v21 = vmul.f32 1.442695, %v3184_v42  ;;  %v10653_v23 = vld [vmem:[#allocation35_spill] sm:$0xff]  ;;  %v10654_v2 = vld [vmem:[#allocation8_spill] sm:$0xff]  ;;  %v10655_v42 = vld [vmem:[#allocation86_spill] sm:$0xff] }
 0x362   :  { %v4567_v25 = vadd.f32 -1.4531521, %v2546_v29  ;;  %v9052_v6 = vmul.f32 %v4876_v12, %v2422_v44  ;;  %v2548_v37 = vmul.f32 1.0614054, %v9039_v11  ;;  %v3893_v50 = vadd.f32 %v10651_v30, %v3891_v55 }
 0x363   :  { %v4080_v32 = vadd.f32 %v10652_v8, %v4078_v34  ;;  %v9058_v26 = vmul.f32 %v10653_v23, %v3053_v33  ;;  %v2736_v39 = vadd.f32 1.4214138, %v2672_v38  ;;  %v2673_v40 = vmul.f32 %v4566_v28, %v9022_v18  ;;  %v10656_v38 = vld [vmem:[#allocation9_spill] sm:$0xff] }
 0x364   :  { %v3121_v22 = vsub.f32 0.0, %v8881_v48  ;;  %v4568_v46 = vadd.f32 -1.4531521, %v2547_v3  ;;  %v2549_v52 = vmul.f32 1.0614054, %v9046_v58  ;;  %v3895_v12 = vadd.f32 %v10654_v2, %v3893_v50  ;;  %v10657_v3 = vld [vmem:[#allocation87_spill] sm:$0xff] }
 0x365   :  { %v4082_v29 = vadd.f32 %v10655_v42, %v4080_v32  ;;  %v9065_v44 = vpop.eup %4879  ;;  %v9067_v47 = vmul.f32 %v4878_v19, %v3054_v43  ;;  %v4628_v51 = vadd.f32 -0.28449672, %v2799_v60  ;;  %4881 = vpow2.f32 %v3305_v21  ;;  %v10658_v60 = vld [vmem:[#allocation49_spill] sm:$0xff] }
 0x366   :  { %v2674_v4 = vmul.f32 %v4567_v25, %v9028_v45  ;;  %v2550_v53 = vmul.f32 1.0614054, %v9052_v6  ;;  %v4569_v33 = vadd.f32 -1.4531521, %v2548_v37  ;;  %v3897_v28 = vadd.f32 %v10656_v38, %v3895_v12  ;;  %v10659_v25 = vld [vmem:[#allocation5_spill] sm:$0xff] }
 0x367   :  { %v4084_v14 = vadd.f32 %v10657_v3, %v4082_v29  ;;  %v10170_v55 = vsub.f32 1.0, %v9058_v26  ;;  %v2800_v49 = vmul.f32 %v2736_v39, %v9005_v63  ;;  %v2737_v34 = vadd.f32 1.4214138, %v2673_v40  ;;  %v10660_v40 = vld [vmem:[#allocation99_spill] sm:$0xff] }
 0x368   :  { %v3185_v30 = vmul.f32 %v3121_v22, %v8881_v48  ;;  %v2675_v19 = vmul.f32 %v4568_v46, %v9033_v31  ;;  %v4570_v43 = vadd.f32 -1.4531521, %v2549_v52  ;;  %v3899_v21 = vadd.f32 %v10658_v60, %v3897_v28  ;;  %v10661_v48 = vld [vmem:[#allocation108_spill] sm:$0xff] }
 0x369   :  { %v4086_v50 = vadd.f32 %v10659_v25, %v4084_v14  ;;  %v10169_v37 = vsub.f32 1.0, %v9067_v47  ;;  %v2927_v8 = vmul.f32 %v4628_v51, %v8977_v54  ;;  %v2738_v32 = vadd.f32 1.4214138, %v2674_v4 }
 0x36a   :  { %v3122_v23 = vsub.f32 0.0, %v8895_v0  ;;  %v4571_v2 = vadd.f32 -1.4531521, %v2550_v53  ;;  %v2676_v39 = vmul.f32 %v4569_v33, %v9039_v11  ;;  %v3901_v12 = vadd.f32 %v10660_v40, %v3899_v21  ;;  %v10662_v53 = vld [vmem:[#allocation110_spill] sm:$0xff]  ;;  %v10663_v33 = vld [vmem:[#allocation89_spill] sm:$0xff] }
 0x36b   :  { %v4088_v22 = vadd.f32 %v10661_v48, %v4086_v50  ;;  %v9085_v46 = vpop.eup %4881  ;;  %v9089_v52 = vsub.f32 0.0, %v10170_v55  ;;  %v4629_v42 = vadd.f32 -0.28449672, %v2800_v49  ;;  %v2801_v29 = vmul.f32 %v2737_v34, %v9022_v18  ;;  %v10665_v50 = vld [vmem:[#allocation90_spill] sm:$0xff] }
 0x36c   :  { %v3307_v51 = vmul.f32 1.442695, %v3185_v30  ;;  %v2739_v4 = vadd.f32 1.4214138, %v2675_v19  ;;  %v2677_v38 = vmul.f32 %v4570_v43, %v9046_v58  ;;  %v3903_v28 = vadd.f32 %v10662_v53, %v3901_v12  ;;  %v10664_v30 = vld [vmem:[#allocation112_spill] sm:$0xff]  ;;  %v10666_v53 = vld [vmem:[#allocation127_spill] sm:$0xff] }
 0x36d   :  { %v4090_v3 = vadd.f32 %v10663_v33, %v4088_v22  ;;  %v9097_v14 = vsub.f32 0.0, %v10169_v37  ;;  %v2991_v60 = vadd.f32 0.2548296, %v2927_v8  ;;  %v2802_v21 = vmul.f32 %v2738_v32, %v9028_v45  ;;  %v10667_v33 = vld [vmem:[#allocation95_spill] sm:$0xff] }
 0x36e   :  { %v3186_v25 = vmul.f32 %v3122_v23, %v8895_v0  ;;  %v2678_v49 = vmul.f32 %v4571_v2, %v9052_v6  ;;  %v2740_v34 = vadd.f32 1.4214138, %v2676_v39  ;;  %v3905_v19 = vadd.f32 %v10664_v30, %v3903_v28  ;;  %v10669_v30 = vld [vmem:[#allocation97_spill] sm:$0xff] }
 0x36f   :  { %v4092_v43 = vadd.f32 %v10665_v50, %v4090_v3  ;;  %v2928_v40 = vmul.f32 %v4629_v42, %v9005_v63  ;;  %v4630_v12 = vadd.f32 -0.28449672, %v2801_v29  ;;  %4883 = vpow2.f32 %v3307_v51  ;;  %v10668_v29 = vld [vmem:[#allocation130_spill] sm:$0xff] }
 0x370   :  { %v3123_v48 = vsub.f32 0.0, %v8909_v15  ;;  %v2803_v22 = vmul.f32 %v2739_v4, %v9033_v31  ;;  %v2741_v8 = vadd.f32 1.4214138, %v2677_v38  ;;  %v3907_v32 = vadd.f32 %v10666_v53, %v3905_v19 }
 0x371   :  { %v4094_v0 = vadd.f32 %v10667_v33, %v4092_v43  ;;  %v3055_v23 = vmul.f32 %v2991_v60, %v8977_v54  ;;  %v4631_v2 = vadd.f32 -0.28449672, %v2802_v21  ;;  %v3309_v39 = vmul.f32 1.442695, %v3186_v25  ;;  %v10670_v43 = vld [vmem:[#allocation136_spill] sm:$0xff]  ;;  %v10671_v54 = vld [vmem:[#allocation157_spill] sm:$0xff] }
 0x372   :  { %v3124_v28 = vsub.f32 0.0, %v8925_v13  ;;  %v2742_v3 = vadd.f32 1.4214138, %v2678_v49  ;;  %v2804_v42 = vmul.f32 %v2740_v34, %v9039_v11  ;;  %v3909_v51 = vadd.f32 %v10668_v29, %v3907_v32  ;;  %v10672_v25 = vld [vmem:[#allocation142_spill] sm:$0xff] }
 0x373   :  { %v4096_v50 = vadd.f32 %v10669_v30, %v4094_v0  ;;  %v2992_v37 = vadd.f32 0.2548296, %v2928_v40  ;;  %v2929_v4 = vmul.f32 %v4630_v12, %v9022_v18  ;;  %v3187_v38 = vmul.f32 %v3123_v48, %v8909_v15  ;;  %v10673_v34 = vld [vmem:[#allocation98_spill] sm:$0xff] }
 0x374   :  { %v3125_v19 = vsub.f32 0.0, %v8936_v9  ;;  %vm3501_vm12 = vcmp.ge.f32.partialorder %v10670_v43, 0.0  ;;  %vm3502_vm13 = vcmp.ge.f32.partialorder %v10671_v54, 0.0  ;;  %v4632_v60 = vadd.f32 -0.28449672, %v2803_v22  ;;  %v10674_v0 = vld [vmem:[#allocation114_spill] sm:$0xff] }
 0x375   :  { %v2805_v21 = vmul.f32 %v2741_v8, %v9046_v58  ;;  %v3911_v49 = vadd.f32 %v10672_v25, %v3909_v51  ;;  %v4098_v53 = vadd.f32 %v10673_v34, %v4096_v50  ;;  %v4884_v32 = vpop.eup %4883  ;;  %v2930_v40 = vmul.f32 %v4631_v2, %v9028_v45  ;;  %v10675_v22 = vld [vmem:[#allocation111_spill] sm:$0xff]  ;;  %v10676_v34 = vld [vmem:[#allocation116_spill] sm:$0xff] }
 0x376   :  { %4885 = vpow2.f32 %v3309_v39  ;;  %v3126_v12 = vsub.f32 0.0, %v8943_v16  ;;  %v3188_v15 = vmul.f32 %v3124_v28, %v8925_v13  ;;  %v2806_v48 = vmul.f32 %v2742_v3, %v9052_v6  ;;  %v10677_v13 = vld [vmem:[#allocation113_spill] sm:$0xff] }
 0x377   :  { %v4633_v33 = vadd.f32 -0.28449672, %v2804_v42  ;;  %v3913_v29 = vadd.f32 %v10674_v0, %v3911_v49  ;;  %v4100_v30 = vadd.f32 %v10675_v22, %v4098_v53  ;;  %v9129_v8 = vmul.f32 %v9065_v44, %v3055_v23  ;;  %v10678_v0 = vld [vmem:[#allocation24_spill] sm:$0xff] }
 0x378   :  { %v2993_v51 = vadd.f32 0.2548296, %v2929_v4  ;;  %v3311_v50 = vmul.f32 1.442695, %v3187_v38  ;;  %v3189_v25 = vmul.f32 %v3125_v19, %v8936_v9  ;;  %v2931_v2 = vmul.f32 %v4632_v60, %v9033_v31  ;;  %v10679_v4 = vld [vmem:[#allocation117_spill] sm:$0xff]  ;;  %v10680_v38 = vld [vmem:[#allocation128_spill] sm:$0xff] }
 0x379   :  { %v4634_v39 = vadd.f32 -0.28449672, %v2805_v21  ;;  %v3915_v55 = vadd.f32 %v10676_v34, %v3913_v29  ;;  %v4102_v28 = vadd.f32 %v10677_v13, %v4100_v30  ;;  %v3056_v3 = vmul.f32 %v2992_v37, %v9005_v63  ;;  %v10683_v34 = vld [vmem:[#allocation147_spill] sm:$0xff] }
 0x37a   :  { %v2994_v42 = vadd.f32 0.2548296, %v2930_v40  ;;  %v3190_v49 = vmul.f32 %v3126_v12, %v8943_v16  ;;  %v3313_v53 = vmul.f32 1.442695, %v3188_v15  ;;  %vm3503_vm14 = vcmp.ge.f32.partialorder %v10678_v0, 0.0  ;;  %v10681_v40 = vld [vmem:[#allocation124_spill] sm:$0xff] }
 0x37b   :  { %v4635_v44 = vadd.f32 -0.28449672, %v2806_v48  ;;  %v2932_v23 = vmul.f32 %v4633_v33, %v9039_v11  ;;  %v3917_v9 = vadd.f32 %v10679_v4, %v3915_v55  ;;  %v4104_v19 = vadd.f32 %v10680_v38, %v4102_v28  ;;  %v10682_v15 = vld [vmem:[#allocation135_spill] sm:$0xff]  ;;  %v10689_v4 = vld [vmem:[#allocation149_spill] sm:$0xff] }
 0x37c   :  { %v4886_v60 = vpop.eup %4885  ;;  %v3439_v21 = vsub.f32 1.0, %v9129_v8  ;;  %v3057_v29 = vmul.f32 %v2993_v51, %v9022_v18  ;;  %4887 = vpow2.f32 %v3311_v50  ;;  %v3315_v63 = vmul.f32 1.442695, %v3189_v25  ;;  %v10684_v51 = vld [vmem:[#allocation143_spill] sm:$0xff] }
 0x37d   :  { %v2995_v37 = vadd.f32 0.2548296, %v2931_v2  ;;  %v2933_v16 = vmul.f32 %v4634_v39, %v9046_v58  ;;  %v3919_v12 = vadd.f32 %v10681_v40, %v3917_v9  ;;  %v4106_v48 = vadd.f32 %v10682_v15, %v4104_v19  ;;  %v10691_v19 = vld [vmem:[#allocation164_spill] sm:$0xff]  ;;  %v10692_v40 = vld [vmem:[#allocation138_spill] sm:$0xff] }
 0x37e   :  { %v3376_v33 = vmul.f32 %v9085_v46, %v3056_v3  ;;  %v3058_v55 = vmul.f32 %v2994_v42, %v9028_v45  ;;  %4889 = vpow2.f32 %v3313_v53  ;;  %v3317_v22 = vmul.f32 1.442695, %v3190_v49  ;;  %v10687_v3 = vld [vmem:[#allocation129_spill] sm:$0xff] }
 0x37f   :  { %v2934_v30 = vmul.f32 %v4635_v44, %v9052_v6  ;;  %v2996_v8 = vadd.f32 0.2548296, %v2932_v23  ;;  %v3921_v18 = vadd.f32 %v10683_v34, %v3919_v12  ;;  %v4108_v50 = vadd.f32 %v10684_v51, %v4106_v48  ;;  %v10688_v49 = vld [vmem:[#allocation133_spill] sm:$0xff]  ;;  %v10695_v34 = vld [vmem:[#allocation152_spill] sm:$0xff]  ;;  %v10696_v51 = vld [vmem:[#allocation122_spill] sm:$0xff] }
 0x380   :  { %v10685_v25 = vsub.f32 1.0, %v9058_v26  ;;  %v10686_v46 = vsub.f32 1.0, %v9067_v47  ;;  %v3377_v39 = vmul.f32 %v4884_v32, %v3057_v29  ;;  %4891 = vpow2.f32 %v3315_v63 }
 0x381   :  { %v3059_v13 = vmul.f32 %v2995_v37, %v9033_v31  ;;  %v2997_v28 = vadd.f32 0.2548296, %v2933_v16  ;;  %v3923_v42 = vadd.f32 %v10687_v3, %v3921_v18  ;;  %v4110_v53 = vadd.f32 %v10688_v49, %v4108_v50 }
 0x382   :  { %v3629_v2 = vsel %vm3501_vm12, %v10685_v25, %v9089_v52  ;;  %v3630_v45 = vsel %vm3502_vm13, %v10686_v46, %v9097_v14  ;;  %v4888_v44 = vpop.eup %4887  ;;  %v3567_v26 = vsub.f32 0.0, %v3439_v21  ;;  %v3440_v23 = vsub.f32 1.0, %v3376_v33  ;;  %v10690_v14 = vld [vmem:[#allocation118_spill] sm:$0xff] }
 0x383   :  { %v3378_v43 = vmul.f32 %v4886_v60, %v3058_v55  ;;  %4893 = vpow2.f32 %v3317_v22  ;;  %v2998_v52 = vadd.f32 0.2548296, %v2934_v30  ;;  %v3060_v47 = vmul.f32 %v2996_v8, %v9039_v11  ;;  %v10693_v60 = vld [vmem:[#allocation119_spill] sm:$0xff]  ;;  %v10694_v33 = vld [vmem:[#allocation30_spill] sm:$0xff] }
 0x384   :  { %v3925_v54 = vadd.f32 %v10689_v4, %v3923_v42  ;;  %v4112_v32 = vadd.f32 %v10690_v14, %v4110_v53  ;;  %v4890_v9 = vpop.eup %4889  ;;  %v3757_v38 = vadd.f32 1.0, %v3629_v2  ;;  %v3758_v31 = vadd.f32 1.0, %v3630_v45  ;;  %v10697_v45 = vld [vmem:[#allocation6_spill] sm:$0xff] }
 0x385   :  { %v3695_v29 = vmul.f32 0.5, %v10691_v19  ;;  %v3441_v63 = vsub.f32 1.0, %v3377_v39  ;;  %v3379_v37 = vmul.f32 %v4888_v44, %v3059_v13  ;;  %v3061_v16 = vmul.f32 %v2997_v28, %v9046_v58  ;;  %v10700_v44 = vld [vmem:[#allocation134_spill] sm:$0xff] }
 0x386   :  { %v3927_v12 = vadd.f32 %v10692_v40, %v3925_v54  ;;  %v4114_v15 = vadd.f32 %v10693_v60, %v4112_v32  ;;  %v4892_v48 = vpop.eup %4891  ;;  %v3631_v11 = vsel %vm3503_vm14, %v3439_v21, %v3567_v26  ;;  %vm3504_vm15 = vcmp.ge.f32.partialorder %v10694_v33, 0.0 }
 0x387   :  { %v3568_v55 = vsub.f32 0.0, %v3440_v23  ;;  %v3442_v22 = vsub.f32 1.0, %v3378_v43  ;;  %v3062_v30 = vmul.f32 %v2998_v52, %v9052_v6  ;;  %v3380_v8 = vmul.f32 %v4890_v9, %v3060_v47  ;;  %v10698_v6 = vld [vmem:[#allocation148_spill] sm:$0xff]  ;;  %v10701_v47 = vld [vmem:[#allocation25_spill] sm:$0xff]  ;;  %v10702_v9 = vld [vmem:[#allocation150_spill] sm:$0xff] }
 0x388   :  { %v3929_v18 = vadd.f32 %v10695_v34, %v3927_v12  ;;  %v4116_v50 = vadd.f32 %v10696_v51, %v4114_v15  ;;  %v9178_v25 = vmul.f32 %v3757_v38, %v8972_v10  ;;  %v9181_v2 = vmul.f32 %v3758_v31, %v8987_v20  ;;  %v10699_v20 = vld [vmem:[#allocation162_spill] sm:$0xff] }
 0x389   :  { %v4894_v58 = vpop.eup %4893  ;;  %vm3505_vm1 = vcmp.ge.f32.partialorder %v8859_v59, 0.0  ;;  %v3569_v0 = vsub.f32 0.0, %v3441_v63  ;;  %v3443_v21 = vsub.f32 1.0, %v3379_v37  ;;  %v3381_v46 = vmul.f32 %v4892_v48, %v3061_v16  ;;  %v10703_v59 = vld [vmem:[#allocation151_spill] sm:$0xff] }
 0x38a   :  { %v3931_v39 = vadd.f32 %v10697_v45, %v3929_v18  ;;  %v4118_v13 = vadd.f32 %v10698_v6, %v4116_v50  ;;  %v3759_v28 = vadd.f32 1.0, %v3631_v11  ;;  %v3632_v3 = vsel %vm3504_vm15, %v3440_v23, %v3568_v55 }
 0x38b   :  { %vm3506_vm2 = vcmp.ge.f32.partialorder %v8870_v24, 0.0  ;;  %v3570_v10 = vsub.f32 0.0, %v3442_v22  ;;  %v3382_v42 = vmul.f32 %v4894_v58, %v3062_v30  ;;  %v3444_v49 = vsub.f32 1.0, %v3380_v8  ;;  %v10704_v24 = vld [vmem:[#allocation154_spill] sm:$0xff]  ;;  %v10705_v8 = vld [vmem:[#allocation7_spill] sm:$0xff] }
 0x38c   :  { %v3933_v53 = vadd.f32 %v10699_v20, %v3931_v39  ;;  %v4120_v26 = vadd.f32 %v10700_v44, %v4118_v13  ;;  %v3938_v43 = vsel %vm20_vm0, %v9178_v25, 0.0  ;;  %v3940_v52 = vsel %vm20_vm0, %v9181_v2, 0.0 }
 0x38d   :  { %v3696_v4 = vmul.f32 0.5, %v10701_v47  ;;  %v3633_v23 = vsel %vm3505_vm1, %v3441_v63, %v3569_v0  ;;  %v3571_v54 = vsub.f32 0.0, %v3443_v21  ;;  %v3445_v14 = vsub.f32 1.0, %v3381_v46  ;;  %v10706_v0 = vld [vmem:[#allocation163_spill] sm:$0xff] }
 0x38e   :  { %v3935_v32 = vadd.f32 %v8995_v7, %v3933_v53  ;;  %v4122_v38 = vadd.f32 %v10702_v9, %v4120_v26  ;;  %v9200_v31 = vmul.f32 %v3759_v28, %v3695_v29  ;;  %v3760_v19 = vadd.f32 1.0, %v3632_v3  ;;  %v10707_v53 = vld [vmem:[#allocation11_spill] sm:$0xff] }
 0x38f   :  { %v3634_v37 = vsel %vm3506_vm2, %v3442_v22, %v3570_v10  ;;  %vm3507_vm3 = vcmp.ge.f32.partialorder %v8884_v36, 0.0  ;;  %v3446_v16 = vsub.f32 1.0, %v3382_v42  ;;  %v3572_v40 = vsub.f32 0.0, %v3444_v49 }
 0x390   :  { %v3937_v12 = vadd.f32 %v9009_v41, %v3935_v32  ;;  %v4124_v63 = vadd.f32 %v10703_v59, %v4122_v38  ;;  %v3697_v60 = vmul.f32 0.5, %v8840_v57  ;;  %v3761_v15 = vadd.f32 1.0, %v3633_v23 }
 0x391   :  { %v3698_v7 = vmul.f32 0.5, %v8850_v27  ;;  %vm3508_vm4 = vcmp.ge.f32.partialorder %v8898_v1, 0.0  ;;  %v3635_v29 = vsel %vm3507_vm3, %v3443_v21, %v3571_v54  ;;  %v3573_v48 = vsub.f32 0.0, %v3445_v14 }
 0x392   :  { %v3939_v11 = vadd.f32 %v3938_v43, %v3937_v12  ;;  %v4126_v33 = vadd.f32 %v10704_v24, %v4124_v63  ;;  %v3942_v36 = vsel %vm20_vm0, %v9200_v31, 0.0  ;;  %v9213_v55 = vmul.f32 %v3760_v19, %v3696_v4 }
 0x393   :  { %v3762_v41 = vadd.f32 1.0, %v3634_v37  ;;  %vm3509_vm5 = vcmp.ge.f32.partialorder %v8912_v35, 0.0  ;;  %v3574_v22 = vsub.f32 0.0, %v3446_v16  ;;  %v3636_v57 = vsel %vm3508_vm4, %v3444_v49, %v3572_v40 }
 0x394   :  { %v3941_v30 = vadd.f32 %v3940_v52, %v3939_v11  ;;  %v4128_v27 = vadd.f32 %v10705_v8, %v4126_v33  ;;  %v9217_v34 = vmul.f32 %v3761_v15, %v3697_v60  ;;  %v3699_v1 = vmul.f32 0.5, %v8861_v5 }
 0x395   :  { %v3763_v18 = vadd.f32 1.0, %v3635_v29  ;;  %vm3510_vm6 = vcmp.ge.f32.partialorder %v8922_v56, 0.0  ;;  %v4018_v51 = vmul.f32 %v9178_v25, %v9178_v25  ;;  %v3637_v50 = vsel %vm3509_vm5, %v3445_v14, %v3573_v48 }
 0x396   :  { %v3943_v58 = vadd.f32 %v3942_v36, %v3941_v30  ;;  %v4130_v21 = vadd.f32 %v10706_v0, %v4128_v27  ;;  %v3944_v35 = vsel %vm20_vm0, %v9213_v55, 0.0  ;;  %v9226_v46 = vmul.f32 %v3762_v41, %v3698_v7 }
 0x397   :  { %v3700_v45 = vmul.f32 0.5, %v8872_v17  ;;  %v3764_v39 = vadd.f32 1.0, %v3636_v57  ;;  %v4019_v5 = vmul.f32 %v9181_v2, %v9181_v2  ;;  %v3638_v6 = vsel %vm3510_vm6, %v3446_v16, %v3574_v22 }
 0x398   :  { %v3945_v56 = vadd.f32 %v3944_v35, %v3943_v58  ;;  %v4132_v13 = vadd.f32 %v9001_v62, %v4130_v21  ;;  %v3946_v28 = vsel %vm20_vm0, %v9217_v34, 0.0  ;;  %v9234_v3 = vmul.f32 %v3763_v18, %v3699_v1  ;;  %v10708_v62 = vld [vmem:[#allocation32_spill] sm:$0xff] }
 0x399   :  { %v3701_v10 = vmul.f32 0.5, %v8886_v61  ;;  %v3765_v42 = vadd.f32 1.0, %v3637_v50  ;;  %v4135_v49 = vsel %vm20_vm0, %v4018_v51, 0.0  ;;  %v4020_v17 = vmul.f32 %v9200_v31, %v9200_v31 }
 0x39a   :  { %v3947_v20 = vadd.f32 %v3946_v28, %v3945_v56  ;;  %v4134_v44 = vadd.f32 %v10707_v53, %v4132_v13  ;;  %v3948_v26 = vsel %vm20_vm0, %v9226_v46, 0.0  ;;  %v3702_v43 = vmul.f32 0.5, %v10708_v62 }
 0x39b   :  { %v3766_v52 = vadd.f32 1.0, %v3638_v6  ;;  %v9244_v47 = vmul.f32 %v3764_v39, %v3700_v45  ;;  %v4137_v61 = vsel %vm20_vm0, %v4019_v5, 0.0  ;;  %v4021_v54 = vmul.f32 %v9213_v55, %v9213_v55 }
 0x39c   :  { %v3949_v4 = vadd.f32 %v3948_v26, %v3947_v20  ;;  %v4136_v23 = vadd.f32 %v4135_v49, %v4134_v44  ;;  %v3950_v14 = vsel %vm20_vm0, %v9234_v3, 0.0  ;;  %v9251_v32 = vmul.f32 %v3765_v42, %v3701_v10 }
 0x39d   :  { %v4139_v19 = vsel %vm20_vm0, %v4020_v17, 0.0  ;;  %v4022_v37 = vmul.f32 %v9217_v34, %v9217_v34  ;;  %v9256_v16 = vmul.f32 %v3766_v52, %v3702_v43  ;;  %v3952_v40 = vsel %vm20_vm0, %v9244_v47, 0.0 }
 0x39e   :  { %v3951_v9 = vadd.f32 %v3950_v14, %v3949_v4  ;;  %v4138_v38 = vadd.f32 %v4137_v61, %v4136_v23  ;;  %v4141_v63 = vsel %vm20_vm0, %v4021_v54, 0.0  ;;  %v4023_v60 = vmul.f32 %v9226_v46, %v9226_v46  ;;  %v232_v14 = vld [vmem:[%s9937_s2] sm:$0x1] }
 0x39f   :  { %v3954_v15 = vsel %vm20_vm0, %v9251_v32, 0.0  ;;  %v4143_v48 = vsel %vm20_vm0, %v4022_v37, 0.0  ;;  %v4024_v11 = vmul.f32 %v9234_v3, %v9234_v3  ;;  %v3956_v24 = vsel %vm20_vm0, %v9256_v16, 0.0  ;;  %v233_v37 = vld [vmem:[%s9938_s3] sm:$0x1] }
 0x3a0   :  { %v3953_v12 = vadd.f32 %v3952_v40, %v3951_v9  ;;  %v4140_v59 = vadd.f32 %v4139_v19, %v4138_v38  ;;  %v4145_v41 = vsel %vm20_vm0, %v4023_v60, 0.0  ;;  %v4025_v22 = vmul.f32 %v9244_v47, %v9244_v47 }
 0x3a1   :  { %v4147_v8 = vsel %vm20_vm0, %v4024_v11, 0.0  ;;  %v4026_v27 = vmul.f32 %v9251_v32, %v9251_v32  ;;  %v4027_v51 = vmul.f32 %v9256_v16, %v9256_v16 }
 0x3a2   :  { %v3955_v7 = vadd.f32 %v3954_v15, %v3953_v12  ;;  %v4142_v29 = vadd.f32 %v4141_v63, %v4140_v59  ;;  %v4149_v50 = vsel %vm20_vm0, %v4025_v22, 0.0  ;;  %v10709_v63 = vld [vmem:[#allocation46_spill] sm:$0xff]  ;;  %v4182_v22 = vld [vmem:[%s9936_s4 + $0x10] sm:$0xff] }
 0x3a3   :  { %v4151_v21 = vsel %vm20_vm0, %v4026_v27, 0.0  ;;  %v4153_v39 = vsel %vm20_vm0, %v4027_v51, 0.0 }
 0x3a4   :  { %v3957_v33 = vadd.f32 %v3956_v24, %v3955_v7  ;;  %v4144_v36 = vadd.f32 %v4143_v48, %v4142_v29  ;;  %v10710_v7 = vld [vmem:[#allocation68_spill] sm:$0xff]  ;;  %v10711_v48 = vld [vmem:[#allocation42_spill] sm:$0xff]  ;;  %v10712_v24 = vld [vmem:[#allocation51_spill] sm:$0xff] }
 0x3a6   :  { %v3958_v57 = vrot.slane %v3957_v33, 4  ;;  %v4146_v30 = vadd.f32 %v4145_v41, %v4144_v36  ;;  %v4180_v36 = vld [vmem:[%s9936_s4] sm:$0xff]  ;;  %v4181_v41 = vld [vmem:[%s9936_s4 + $0x8] sm:$0xff] }
 0x3a8   :  { %v3959_v1 = vadd.f32 %v3958_v57, %v3957_v33  ;;  %v4148_v18 = vadd.f32 %v4147_v8, %v4146_v30  ;;  %v10713_v57 = vld [vmem:[#allocation44_spill] sm:$0xff]  ;;  %v10714_v8 = vld [vmem:[#allocation61_spill] sm:$0xff] }
 0x3aa   :  { %v3960_v58 = vrot.slane %v3959_v1, 2  ;;  %v4150_v0 = vadd.f32 %v4149_v50, %v4148_v18 }
 0x3ac   :  { %v3961_v35 = vadd.f32 %v3960_v58, %v3959_v1  ;;  %v4152_v45 = vadd.f32 %v4151_v21, %v4150_v0  ;;  %v10715_v1 = vld [vmem:[#allocation33_spill] sm:$0xff]  ;;  %v4183_v0 = vld [vmem:[%s9936_s4 + $0x18] sm:$0xff] }
 0x3ae   :  { %v3962_v5 = vrot.slane %v3961_v35, 1  ;;  %v4154_v6 = vadd.f32 %v4153_v39, %v4152_v45 }
 0x3b0   :  { %v4155_v56 = vrot.slane %v4154_v6, 4  ;;  %v3963_v13 = vadd.f32 %v3962_v5, %v3961_v35  ;;  %v4184_v35 = vld [vmem:[%s9936_s4 + $0x20] sm:$0xff]  ;;  %v10716_v5 = vld [vmem:[#allocation37_spill] sm:$0xff] }
 0x3b2   :  { %v4156_v28 = vadd.f32 %v4155_v56, %v4154_v6  ;;  %v4161_v49 = vmul.f32 0.001953125, %v3963_v13  ;;  %v10717_v56 = vld [vmem:[#allocation54_spill] sm:$0xff] }
 0x3b4   :  { %v4157_v10 = vrot.slane %v4156_v28, 2  ;;  %v4163_v53 = vmul.f32 %v4161_v49, %v4161_v49 }
 0x3b6   :  { %v4158_v42 = vadd.f32 %v4157_v10, %v4156_v28 }
 0x3b8   :  { %v4159_v17 = vrot.slane %v4158_v42, 1 }
 0x3ba   :  { %v4160_v20 = vadd.f32 %v4159_v17, %v4158_v42 }
 0x3bc   :  { %v4162_v44 = vmul.f32 0.001953125, %v4160_v20 }
 0x3be   :  { %v4164_v26 = vsub.f32 %v4162_v44, %v4163_v53  ;;  %v4186_v53 = vld [vmem:[%s9936_s4 + $0x30] sm:$0xff] }
 0x3c0   :  { %v4165_v62 = vmax.f32 %v4164_v26, 0.0  ;;  %v10718_v26 = vld [vmem:[#allocation48_spill] sm:$0xff] }
 0x3c2   :  { %v4166_v43 = vadd.f32 1e-05, %v4165_v62 }
 0x3c4   :  { %4895 = vrsqrt.f32 %v4166_v43  ;;  %vm4173_vm8 = vweird.f32 %v4166_v43 }
 0x3ca   :  { %v4896_v52 = vpop.eup %4895 }
 0x3cb   :  { %v4168_v4 = vmul.f32 %v4896_v52, %v4166_v43  ;;  %vm4174_vm7 = vweird.f32 %v4896_v52 }
 0x3cc   :  { %vm4175_vm9 = vmor %vm4173_vm8, %vm4174_vm7 }
 0x3cd   :  { %v4169_v23 = vmul.f32 %v4896_v52, %v4168_v4 }
 0x3cf   :  { %v4170_v61 = vmul.f32 0.5, %v4169_v23  ;;  %v10719_v23 = vld [vmem:[#allocation64_spill] sm:$0xff] }
 0x3d1   :  { %v4171_v54 = vsub.f32 1.5, %v4170_v61 }
 0x3d3   :  { %v4172_v9 = vmul.f32 %v4896_v52, %v4171_v54 }
 0x3d5   :  { %v4176_v38 = vsel %vm4175_vm9, %v4896_v52, %v4172_v9  ;;  %v4187_v52 = vld [vmem:[%s9936_s4 + $0x38] sm:$0xff] }
 0x3d6   :  { %v4177_v19 = vmul.f32 %v4176_v38, %v232_v14  ;;  %v4188_v14 = vld [vmem:[%s9936_s4 + $0x40] sm:$0xff] }
 0x3d7   :  { %v10720_v38 = vld [vmem:[#allocation3_spill] sm:$0xff] }
 0x3d8   :  { %v4178_v40 = vmul.f32 %v4177_v19, %v4161_v49  ;;  %v9287_v12 = vperm.slane %v4177_v19, 0  ;;  %v4185_v49 = vld [vmem:[%s9936_s4 + $0x28] sm:$0xff] }
 0x3da   :  { %v4179_v59 = vsub.f32 %v233_v37, %v4178_v40  ;;  %v4245_v60 = vmul.f32 %v9287_v12, %v10709_v63  ;;  %v4246_v29 = vmul.f32 %v9287_v12, %v10710_v7  ;;  %v4247_v11 = vmul.f32 %v9287_v12, %v10711_v48  ;;  %v4189_v40 = vld [vmem:[%s9936_s4 + $0x48] sm:$0xff] }
 0x3db   :  { %v4248_v33 = vmul.f32 %v9287_v12, %v10712_v24  ;;  %v4249_v30 = vmul.f32 %v9287_v12, %v10713_v57  ;;  %v4250_v27 = vmul.f32 %v9287_v12, %v10714_v8  ;;  %v4251_v18 = vmul.f32 %v9287_v12, %v10715_v1  ;;  %v10721_v63 = vld [vmem:[#allocation36_spill] sm:$0xff]  ;;  %v4192_v8 = vld [vmem:[%s9936_s4 + $0x60] sm:$0xff] }
 0x3dc   :  { %v9291_v15 = vperm.slane %v4179_v59, 0  ;;  %v4252_v6 = vmul.f32 %v9287_v12, %v10716_v5  ;;  %v4253_v13 = vmul.f32 %v9287_v12, %v10717_v56  ;;  %v4254_v62 = vmul.f32 %v9287_v12, %v10718_v26  ;;  %v10724_v1 = vld [vmem:[#allocation52_spill] sm:$0xff]  ;;  %v10726_v5 = vld [vmem:[#allocation38_spill] sm:$0xff] }
 0x3dd   :  { %v4255_v61 = vmul.f32 %v9287_v12, %v10719_v23  ;;  %v4256_v19 = vmul.f32 %v9287_v12, %v10720_v38 }
 0x3de   :  { %v4312_v51 = vadd.f32 %v9291_v15, %v4245_v60  ;;  %v4313_v50 = vadd.f32 %v9291_v15, %v4246_v29  ;;  %v4314_v58 = vadd.f32 %v9291_v15, %v4247_v11  ;;  %v4315_v21 = vadd.f32 %v9291_v15, %v4248_v33  ;;  %v4190_v29 = vld [vmem:[%s9936_s4 + $0x50] sm:$0xff]  ;;  %v10722_v11 = vld [vmem:[#allocation66_spill] sm:$0xff] }
 0x3df   :  { %v4316_v45 = vadd.f32 %v9291_v15, %v4249_v30  ;;  %v4317_v39 = vadd.f32 %v9291_v15, %v4250_v27  ;;  %v4318_v17 = vadd.f32 %v9291_v15, %v4251_v18  ;;  %v4319_v44 = vadd.f32 %v9291_v15, %v4252_v6 }
 0x3e0   :  { %v4376_v28 = vadd.f32 %v4312_v51, %v4180_v36  ;;  %v4377_v10 = vadd.f32 %v4313_v50, %v4181_v41  ;;  %v4378_v42 = vadd.f32 %v4314_v58, %v4182_v22  ;;  %v4379_v20 = vadd.f32 %v4315_v21, %v4183_v0  ;;  %v4191_v36 = vld [vmem:[%s9936_s4 + $0x58] sm:$0xff]  ;;  %v10723_v22 = vld [vmem:[#allocation56_spill] sm:$0xff] }
 0x3e1   :  { %v4380_v43 = vadd.f32 %v4316_v45, %v4184_v35  ;;  %v4320_v4 = vadd.f32 %v9291_v15, %v4253_v13  ;;  %v4381_v54 = vadd.f32 %v4317_v39, %v4185_v49  ;;  %v4321_v9 = vadd.f32 %v9291_v15, %v4254_v62  ;;  %v4193_v50 = vld [vmem:[%s9936_s4 + $0x68] sm:$0xff]  ;;  %v10725_v0 = vld [vmem:[#allocation58_spill] sm:$0xff]  ;;  %v4194_v45 = vld [vmem:[%s9936_s4 + $0x70] sm:$0xff] }
 0x3e2   :  { %4440 = vst.msk [vmem:[%s9939_s5] sm:$0xff] %vm20_vm0, %v4376_v28  ;;  %v4382_v37 = vadd.f32 %v4318_v17, %v4186_v53  ;;  %v4322_v59 = vadd.f32 %v9291_v15, %v4255_v61  ;;  %v4257_v60 = vmul.f32 %v9287_v12, %v10721_v63  ;;  %v4383_v7 = vadd.f32 %v4319_v44, %v4187_v52  ;;  %v4195_v13 = vld [vmem:[%s9936_s4 + $0x78] sm:$0xff]  ;;  %v4196_v17 = vld [vmem:[%s9936_s4 + $0x80] sm:$0xff]  ;;  %v10728_v53 = vld [vmem:[#allocation53_spill] sm:$0xff] }
 0x3e3   :  { %4441 = vst.msk [vmem:[%s9939_s5 + $0x8] sm:$0xff] %vm20_vm0, %v4377_v10  ;;  %v4323_v48 = vadd.f32 %v9291_v15, %v4256_v19  ;;  %v4258_v24 = vmul.f32 %v9287_v12, %v10722_v11  ;;  %v4384_v33 = vadd.f32 %v4320_v4, %v4188_v14  ;;  %v4259_v57 = vmul.f32 %v9287_v12, %v10723_v22  ;;  %v10727_v10 = vld [vmem:[#allocation57_spill] sm:$0xff]  ;;  %v4197_v62 = vld [vmem:[%s9936_s4 + $0x88] sm:$0xff]  ;;  %v4199_v19 = vld [vmem:[%s9936_s4 + $0x98] sm:$0xff] }
 0x3e4   :  { %4442 = vst.msk [vmem:[%s9939_s5 + $0x10] sm:$0xff] %vm20_vm0, %v4378_v42  ;;  %v4324_v41 = vadd.f32 %v9291_v15, %v4257_v60  ;;  %v4385_v30 = vadd.f32 %v4321_v9, %v4189_v40  ;;  %v4260_v18 = vmul.f32 %v9287_v12, %v10724_v1  ;;  %v4386_v51 = vadd.f32 %v4322_v59, %v4190_v29  ;;  %v10729_v52 = vld [vmem:[#allocation76_spill] sm:$0xff]  ;;  %v4198_v61 = vld [vmem:[%s9936_s4 + $0x90] sm:$0xff]  ;;  %v10731_v40 = vld [vmem:[#allocation74_spill] sm:$0xff] }
 0x3e5   :  { %4443 = vst.msk [vmem:[%s9939_s5 + $0x18] sm:$0xff] %vm20_vm0, %v4379_v20  ;;  %v4325_v27 = vadd.f32 %v9291_v15, %v4258_v24  ;;  %v4326_v58 = vadd.f32 %v9291_v15, %v4259_v57  ;;  %v4261_v21 = vmul.f32 %v9287_v12, %v10725_v0  ;;  %v4387_v35 = vadd.f32 %v4323_v48, %v4191_v36  ;;  %v10730_v14 = vld [vmem:[#allocation60_spill] sm:$0xff]  ;;  %v4200_v60 = vld [vmem:[%s9936_s4 + $0xa0] sm:$0xff]  ;;  %v10733_v36 = vld [vmem:[#allocation10_spill] sm:$0xff] }
 0x3e6   :  { %4444 = vst.msk [vmem:[%s9939_s5 + $0x20] sm:$0xff] %vm20_vm0, %v4380_v43  ;;  %v4327_v39 = vadd.f32 %v9291_v15, %v4260_v18  ;;  %v4262_v6 = vmul.f32 %v9287_v12, %v10726_v5  ;;  %v4388_v56 = vadd.f32 %v4324_v41, %v4192_v8  ;;  %v4263_v42 = vmul.f32 %v9287_v12, %v10727_v10  ;;  %v10732_v29 = vld [vmem:[#allocation12_spill] sm:$0xff]  ;;  %v4202_v57 = vld [vmem:[%s9936_s4 + $0xb0] sm:$0xff]  ;;  %v10734_v8 = vld [vmem:[#allocation91_spill] sm:$0xff] }
 0x3e7   :  { %4445 = vst.msk [vmem:[%s9939_s5 + $0x28] sm:$0xff] %vm20_vm0, %v4381_v54  ;;  %v4328_v28 = vadd.f32 %v9291_v15, %v4261_v21  ;;  %v4389_v49 = vadd.f32 %v4325_v27, %v4193_v50  ;;  %v4264_v44 = vmul.f32 %v9287_v12, %v10728_v53  ;;  %v4390_v26 = vadd.f32 %v4326_v58, %v4194_v45  ;;  %v4201_v24 = vld [vmem:[%s9936_s4 + $0xa8] sm:$0xff]  ;;  %v4203_v18 = vld [vmem:[%s9936_s4 + $0xb8] sm:$0xff]  ;;  %v4204_v21 = vld [vmem:[%s9936_s4 + $0xc0] sm:$0xff] }
 0x3e8   :  { %4446 = vst.msk [vmem:[%s9939_s5 + $0x30] sm:$0xff] %vm20_vm0, %v4382_v37  ;;  %v4329_v20 = vadd.f32 %v9291_v15, %v4262_v6  ;;  %v4330_v43 = vadd.f32 %v9291_v15, %v4263_v42  ;;  %v4265_v4 = vmul.f32 %v9287_v12, %v10729_v52  ;;  %v4391_v23 = vadd.f32 %v4327_v39, %v4195_v13  ;;  %v10735_v50 = vld [vmem:[#allocation96_spill] sm:$0xff]  ;;  %v10737_v13 = vld [vmem:[#allocation21_spill] sm:$0xff] }
 0x3e9   :  { %4447 = vst.msk [vmem:[%s9939_s5 + $0x38] sm:$0xff] %vm20_vm0, %v4383_v7  ;;  %v4331_v54 = vadd.f32 %v9291_v15, %v4264_v44  ;;  %v4266_v9 = vmul.f32 %v9287_v12, %v10730_v14  ;;  %v4392_v38 = vadd.f32 %v4328_v28, %v4196_v17  ;;  %v4267_v59 = vmul.f32 %v9287_v12, %v10731_v40  ;;  %v10736_v45 = vld [vmem:[#allocation104_spill] sm:$0xff]  ;;  %v4206_v42 = vld [vmem:[%s9936_s4 + $0xd0] sm:$0xff]  ;;  %v10738_v17 = vld [vmem:[#allocation63_spill] sm:$0xff] }
 0x3ea   :  { %4448 = vst.msk [vmem:[%s9939_s5 + $0x40] sm:$0xff] %vm20_vm0, %v4384_v33  ;;  %v4332_v37 = vadd.f32 %v9291_v15, %v4265_v4  ;;  %v4393_v63 = vadd.f32 %v4329_v20, %v4197_v62  ;;  %v4268_v48 = vmul.f32 %v9287_v12, %v10732_v29  ;;  %v4394_v11 = vadd.f32 %v4330_v43, %v4198_v61  ;;  %v4205_v6 = vld [vmem:[%s9936_s4 + $0xc8] sm:$0xff]  ;;  %v4207_v44 = vld [vmem:[%s9936_s4 + $0xd8] sm:$0xff]  ;;  %v10739_v62 = vld [vmem:[#allocation47_spill] sm:$0xff] }
 0x3eb   :  { %4449 = vst.msk [vmem:[%s9939_s5 + $0x48] sm:$0xff] %vm20_vm0, %v4385_v30  ;;  %v4333_v7 = vadd.f32 %v9291_v15, %v4266_v9  ;;  %v4334_v33 = vadd.f32 %v9291_v15, %v4267_v59  ;;  %v4269_v41 = vmul.f32 %v9287_v12, %v10733_v36  ;;  %v4395_v22 = vadd.f32 %v4331_v54, %v4199_v19  ;;  %v4208_v4 = vld [vmem:[%s9936_s4 + $0xe0] sm:$0xff]  ;;  %v10740_v61 = vld [vmem:[#allocation65_spill] sm:$0xff]  ;;  %v4209_v9 = vld [vmem:[%s9936_s4 + $0xe8] sm:$0xff] }
 0x3ec   :  { %4450 = vst.msk [vmem:[%s9939_s5 + $0x50] sm:$0xff] %vm20_vm0, %v4386_v51  ;;  %v4335_v30 = vadd.f32 %v9291_v15, %v4268_v48  ;;  %v4270_v27 = vmul.f32 %v9287_v12, %v10734_v8  ;;  %v4396_v1 = vadd.f32 %v4332_v37, %v4200_v60  ;;  %v4271_v58 = vmul.f32 %v9287_v12, %v10735_v50  ;;  %v10741_v19 = vld [vmem:[#allocation88_spill] sm:$0xff]  ;;  %v4210_v59 = vld [vmem:[%s9936_s4 + $0xf0] sm:$0xff]  ;;  %v4211_v48 = vld [vmem:[%s9936_s4 + $0xf8] sm:$0xff] }
 0x3ed   :  { %4451 = vst.msk [vmem:[%s9939_s5 + $0x58] sm:$0xff] %vm20_vm0, %v4387_v35  ;;  %v4336_v51 = vadd.f32 %v9291_v15, %v4269_v41  ;;  %v4397_v0 = vadd.f32 %v4333_v7, %v4201_v24  ;;  %v4272_v39 = vmul.f32 %v9287_v12, %v10736_v45  ;;  %v4398_v5 = vadd.f32 %v4334_v33, %v4202_v57  ;;  %v10742_v60 = vld [vmem:[#allocation92_spill] sm:$0xff]  ;;  %v4212_v41 = vld [vmem:[%s9936_s4 + $0x100] sm:$0xff]  ;;  %v10744_v57 = vld [vmem:[#allocation94_spill] sm:$0xff] }
 0x3ee   :  { %4452 = vst.msk [vmem:[%s9939_s5 + $0x60] sm:$0xff] %vm20_vm0, %v4388_v56  ;;  %v4337_v35 = vadd.f32 %v9291_v15, %v4270_v27  ;;  %v4338_v56 = vadd.f32 %v9291_v15, %v4271_v58  ;;  %v4273_v28 = vmul.f32 %v9287_v12, %v10737_v13  ;;  %v4399_v10 = vadd.f32 %v4335_v30, %v4203_v18  ;;  %v10743_v24 = vld [vmem:[#allocation80_spill] sm:$0xff]  ;;  %v10745_v18 = vld [vmem:[#allocation109_spill] sm:$0xff] }
 0x3ef   :  { %4453 = vst.msk [vmem:[%s9939_s5 + $0x68] sm:$0xff] %vm20_vm0, %v4389_v49  ;;  %v4339_v49 = vadd.f32 %v9291_v15, %v4272_v39  ;;  %v4274_v20 = vmul.f32 %v9287_v12, %v10738_v17  ;;  %v4400_v53 = vadd.f32 %v4336_v51, %v4204_v21  ;;  %v4275_v43 = vmul.f32 %v9287_v12, %v10739_v62  ;;  %v4213_v27 = vld [vmem:[%s9936_s4 + $0x108] sm:$0xff]  ;;  %v4214_v58 = vld [vmem:[%s9936_s4 + $0x110] sm:$0xff]  ;;  %v10746_v21 = vld [vmem:[#allocation67_spill] sm:$0xff] }
 0x3f0   :  { %4454 = vst.msk [vmem:[%s9939_s5 + $0x70] sm:$0xff] %vm20_vm0, %v4390_v26  ;;  %v4340_v26 = vadd.f32 %v9291_v15, %v4273_v28  ;;  %v4401_v52 = vadd.f32 %v4337_v35, %v4205_v6  ;;  %v4276_v54 = vmul.f32 %v9287_v12, %v10740_v61  ;;  %v4402_v14 = vadd.f32 %v4338_v56, %v4206_v42  ;;  %v4215_v39 = vld [vmem:[%s9936_s4 + $0x118] sm:$0xff]  ;;  %v10747_v6 = vld [vmem:[#allocation115_spill] sm:$0xff] }
 0x3f1   :  { %4455 = vst.msk [vmem:[%s9939_s5 + $0x78] sm:$0xff] %vm20_vm0, %v4391_v23  ;;  %v4341_v23 = vadd.f32 %v9291_v15, %v4274_v20  ;;  %v4277_v37 = vmul.f32 %v9287_v12, %v10741_v19  ;;  %v4403_v40 = vadd.f32 %v4339_v49, %v4207_v44  ;;  %v4278_v7 = vmul.f32 %v9287_v12, %v10742_v60  ;;  %v4216_v28 = vld [vmem:[%s9936_s4 + $0x120] sm:$0xff]  ;;  %v10748_v42 = vld [vmem:[#allocation126_spill] sm:$0xff]  ;;  %v4217_v20 = vld [vmem:[%s9936_s4 + $0x128] sm:$0xff] }
 0x3f2   :  { %4456 = vst.msk [vmem:[%s9939_s5 + $0x80] sm:$0xff] %vm20_vm0, %v4392_v38  ;;  %v4342_v38 = vadd.f32 %v9291_v15, %v4275_v43  ;;  %v4404_v29 = vadd.f32 %v4340_v26, %v4208_v4  ;;  %v4279_v33 = vmul.f32 %v9287_v12, %v10743_v24  ;;  %v4280_v30 = vmul.f32 %v9287_v12, %v10744_v57  ;;  %v10749_v44 = vld [vmem:[#allocation140_spill] sm:$0xff]  ;;  %v4218_v43 = vld [vmem:[%s9936_s4 + $0x130] sm:$0xff] }
 0x3f3   :  { %4457 = vst.msk [vmem:[%s9939_s5 + $0x88] sm:$0xff] %vm20_vm0, %v4393_v63  ;;  %v4343_v63 = vadd.f32 %v9291_v15, %v4276_v54  ;;  %v4405_v36 = vadd.f32 %v4341_v23, %v4209_v9  ;;  %v4281_v51 = vmul.f32 %v9287_v12, %v10745_v18  ;;  %v4282_v35 = vmul.f32 %v9287_v12, %v10746_v21  ;;  %v10750_v4 = vld [vmem:[#allocation144_spill] sm:$0xff]  ;;  %v4219_v54 = vld [vmem:[%s9936_s4 + $0x138] sm:$0xff]  ;;  %v10751_v9 = vld [vmem:[#allocation123_spill] sm:$0xff] }
 0x3f4   :  { %4458 = vst.msk [vmem:[%s9939_s5 + $0x90] sm:$0xff] %vm20_vm0, %v4394_v11  ;;  %v4344_v11 = vadd.f32 %v9291_v15, %v4277_v37  ;;  %v4406_v8 = vadd.f32 %v4342_v38, %v4210_v59  ;;  %v4283_v56 = vmul.f32 %v9287_v12, %v10747_v6  ;;  %v4284_v49 = vmul.f32 %v9287_v12, %v10748_v42  ;;  %v4220_v37 = vld [vmem:[%s9936_s4 + $0x140] sm:$0xff]  ;;  %v10752_v59 = vld [vmem:[#allocation125_spill] sm:$0xff] }
 0x3f5   :  { %4459 = vst.msk [vmem:[%s9939_s5 + $0x98] sm:$0xff] %vm20_vm0, %v4395_v22  ;;  %v4345_v22 = vadd.f32 %v9291_v15, %v4278_v7  ;;  %v4407_v50 = vadd.f32 %v4343_v63, %v4211_v48  ;;  %v4285_v26 = vmul.f32 %v9287_v12, %v10749_v44  ;;  %v4286_v23 = vmul.f32 %v9287_v12, %v10750_v4  ;;  %v4221_v7 = vld [vmem:[%s9936_s4 + $0x148] sm:$0xff]  ;;  %v10753_v48 = vld [vmem:[#allocation121_spill] sm:$0xff] }
 0x3f6   :  { %4460 = vst.msk [vmem:[%s9939_s5 + $0xa0] sm:$0xff] %vm20_vm0, %v4396_v1  ;;  %v4346_v1 = vadd.f32 %v9291_v15, %v4279_v33  ;;  %v4408_v45 = vadd.f32 %v4344_v11, %v4212_v41  ;;  %v4287_v38 = vmul.f32 %v9287_v12, %v10751_v9  ;;  %v4288_v63 = vmul.f32 %v9287_v12, %v10752_v59  ;;  %v4222_v33 = vld [vmem:[%s9936_s4 + $0x150] sm:$0xff]  ;;  %v10754_v41 = vld [vmem:[#allocation120_spill] sm:$0xff] }
 0x3f7   :  { %4461 = vst.msk [vmem:[%s9939_s5 + $0xa8] sm:$0xff] %vm20_vm0, %v4397_v0  ;;  %v4347_v0 = vadd.f32 %v9291_v15, %v4280_v30  ;;  %v4409_v13 = vadd.f32 %v4345_v22, %v4213_v27  ;;  %v4289_v11 = vmul.f32 %v9287_v12, %v10753_v48  ;;  %v4290_v22 = vmul.f32 %v9287_v12, %v10754_v41  ;;  %v4223_v30 = vld [vmem:[%s9936_s4 + $0x158] sm:$0xff] }
 0x3f8   :  { %4462 = vst.msk [vmem:[%s9939_s5 + $0xb0] sm:$0xff] %vm20_vm0, %v4398_v5  ;;  %v4348_v5 = vadd.f32 %v9291_v15, %v4281_v51  ;;  %v4410_v17 = vadd.f32 %v4346_v1, %v4214_v58  ;;  %v10755_v27 = vld [vmem:[#allocation146_spill] sm:$0xff]  ;;  %v4224_v51 = vld [vmem:[%s9936_s4 + $0x160] sm:$0xff]  ;;  %v10756_v58 = vld [vmem:[#allocation132_spill] sm:$0xff]  ;;  %v4308_v21 = vmul.f32 %v9287_v12, %v9256_v16 }
 0x3f9   :  { %4463 = vst.msk [vmem:[%s9939_s5 + $0xb8] sm:$0xff] %vm20_vm0, %v4399_v10  ;;  %v4349_v10 = vadd.f32 %v9291_v15, %v4282_v35  ;;  %v4411_v62 = vadd.f32 %v4347_v0, %v4215_v39  ;;  %v4291_v1 = vmul.f32 %v9287_v12, %v10755_v27  ;;  %v4292_v0 = vmul.f32 %v9287_v12, %v10756_v58  ;;  %v4235_v27 = vld [vmem:[%s9936_s4 + $0x1b8] sm:$0xff] }
 0x3fa   :  { %4464 = vst.msk [vmem:[%s9939_s5 + $0xc0] sm:$0xff] %vm20_vm0, %v4400_v53  ;;  %v4350_v53 = vadd.f32 %v9291_v15, %v4283_v56  ;;  %v4412_v61 = vadd.f32 %v4348_v5, %v4216_v28  ;;  %v10757_v5 = vld [vmem:[#allocation139_spill] sm:$0xff]  ;;  %v4226_v56 = vld [vmem:[%s9936_s4 + $0x170] sm:$0xff]  ;;  %v9743_v42 = vadd.f32 %v9291_v15, %v4308_v21  ;;  %v4304_v58 = vmul.f32 %v9287_v12, %v9226_v46 }
 0x3fb   :  { %4465 = vst.msk [vmem:[%s9939_s5 + $0xc8] sm:$0xff] %vm20_vm0, %v4401_v52  ;;  %v4351_v52 = vadd.f32 %v9291_v15, %v4284_v49  ;;  %v4413_v19 = vadd.f32 %v4349_v10, %v4217_v20  ;;  %v4358_v39 = vadd.f32 %v9291_v15, %v4291_v1  ;;  %v4293_v6 = vmul.f32 %v9287_v12, %v10757_v5  ;;  %v10758_v28 = vld [vmem:[#allocation141_spill] sm:$0xff] }
 0x3fc   :  { %4466 = vst.msk [vmem:[%s9939_s5 + $0xd0] sm:$0xff] %vm20_vm0, %v4402_v14  ;;  %v4352_v14 = vadd.f32 %v9291_v15, %v4285_v26  ;;  %v4414_v60 = vadd.f32 %v4350_v53, %v4218_v43  ;;  %v4294_v10 = vmul.f32 %v9287_v12, %v10758_v28  ;;  %v10759_v53 = vld [vmem:[#allocation155_spill] sm:$0xff]  ;;  %v4306_v5 = vmul.f32 %v9287_v12, %v9244_v47 }
 0x3fd   :  { %4467 = vst.msk [vmem:[%s9939_s5 + $0xd8] sm:$0xff] %vm20_vm0, %v4403_v40  ;;  %v4353_v40 = vadd.f32 %v9291_v15, %v4286_v23  ;;  %v4415_v24 = vadd.f32 %v4351_v52, %v4219_v54  ;;  %v4360_v20 = vadd.f32 %v9291_v15, %v4293_v6  ;;  %v4295_v44 = vmul.f32 %v9287_v12, %v10759_v53  ;;  %v10760_v52 = vld [vmem:[#allocation158_spill] sm:$0xff] }
 0x3fe   :  { %4468 = vst.msk [vmem:[%s9939_s5 + $0xe0] sm:$0xff] %vm20_vm0, %v4404_v29  ;;  %v4354_v29 = vadd.f32 %v9291_v15, %v4287_v38  ;;  %v4416_v57 = vadd.f32 %v4352_v14, %v4220_v37  ;;  %v4361_v43 = vadd.f32 %v9291_v15, %v4294_v10  ;;  %v4296_v4 = vmul.f32 %v9287_v12, %v10760_v52  ;;  %v10761_v14 = vld [vmem:[#allocation31_spill] sm:$0xff]  ;;  %v4239_v6 = vld [vmem:[%s9936_s4 + $0x1d8] sm:$0xff] }
 0x3ff   :  { %4469 = vst.msk [vmem:[%s9939_s5 + $0xe8] sm:$0xff] %vm20_vm0, %v4405_v36  ;;  %v4355_v36 = vadd.f32 %v9291_v15, %v4288_v63  ;;  %v4417_v18 = vadd.f32 %v4353_v40, %v4221_v7  ;;  %v4422_v23 = vadd.f32 %v4358_v39, %v4226_v56  ;;  %v4362_v54 = vadd.f32 %v9291_v15, %v4295_v44  ;;  %v10762_v40 = vld [vmem:[#allocation45_spill] sm:$0xff] }
 0x400   :  { %4470 = vst.msk [vmem:[%s9939_s5 + $0xf0] sm:$0xff] %vm20_vm0, %v4406_v8  ;;  %v4356_v8 = vadd.f32 %v9291_v15, %v4289_v11  ;;  %v4418_v35 = vadd.f32 %v4354_v29, %v4222_v33  ;;  %v4297_v9 = vmul.f32 %v9287_v12, %v10761_v14  ;;  %v4363_v37 = vadd.f32 %v9291_v15, %v4296_v4  ;;  %v4232_v11 = vld [vmem:[%s9936_s4 + $0x1a0] sm:$0xff] }
 0x401   :  { %4471 = vst.msk [vmem:[%s9939_s5 + $0xf8] sm:$0xff] %vm20_vm0, %v4407_v50  ;;  %v4357_v50 = vadd.f32 %v9291_v15, %v4290_v22  ;;  %v4419_v16 = vadd.f32 %v4355_v36, %v4223_v30  ;;  %v4298_v59 = vmul.f32 %v9287_v12, %v10762_v40  ;;  %v4299_v29 = vmul.f32 %v9287_v12, %v9178_v25  ;;  %v4233_v36 = vld [vmem:[%s9936_s4 + $0x1a8] sm:$0xff] }
 0x402   :  { %4472 = vst.msk [vmem:[%s9939_s5 + $0x100] sm:$0xff] %vm20_vm0, %v4408_v45  ;;  %v4225_v45 = vld [vmem:[%s9936_s4 + $0x168] sm:$0xff]  ;;  %v4420_v49 = vadd.f32 %v4356_v8, %v4224_v51  ;;  %v4364_v7 = vadd.f32 %v9291_v15, %v4297_v9  ;;  %v4300_v33 = vmul.f32 %v9287_v12, %v9181_v2  ;;  %v4301_v22 = vmul.f32 %v9287_v12, %v9200_v31  ;;  %v4236_v51 = vld [vmem:[%s9936_s4 + $0x1c0] sm:$0xff] }
 0x403   :  { %4473 = vst.msk [vmem:[%s9939_s5 + $0x108] sm:$0xff] %vm20_vm0, %v4409_v13  ;;  %v4359_v13 = vadd.f32 %v9291_v15, %v4292_v0  ;;  %v4421_v26 = vadd.f32 %v4357_v50, %v4225_v45  ;;  %v4366_v41 = vadd.f32 %v9291_v15, %v4299_v29  ;;  %v4302_v8 = vmul.f32 %v9287_v12, %v9213_v55  ;;  %v4237_v0 = vld [vmem:[%s9936_s4 + $0x1c8] sm:$0xff]  ;;  %v4238_v45 = vld [vmem:[%s9936_s4 + $0x1d0] sm:$0xff] }
 0x404   :  { %4474 = vst.msk [vmem:[%s9939_s5 + $0x110] sm:$0xff] %vm20_vm0, %v4410_v17  ;;  %v4227_v17 = vld [vmem:[%s9936_s4 + $0x178] sm:$0xff]  ;;  %v4367_v30 = vadd.f32 %v9291_v15, %v4300_v33  ;;  %v4428_v31 = vadd.f32 %v4364_v7, %v4232_v11  ;;  %v4368_v1 = vadd.f32 %v9291_v15, %v4301_v22  ;;  %v4371_v39 = vadd.f32 %v9291_v15, %v4304_v58 }
 0x405   :  { %4475 = vst.msk [vmem:[%s9939_s5 + $0x118] sm:$0xff] %vm20_vm0, %v4411_v62  ;;  %v4228_v62 = vld [vmem:[%s9936_s4 + $0x180] sm:$0xff]  ;;  %v4423_v38 = vadd.f32 %v4359_v13, %v4227_v17  ;;  %v4369_v50 = vadd.f32 %v9291_v15, %v4302_v8  ;;  %v4307_v56 = vmul.f32 %v9287_v12, %v9251_v32  ;;  %v4373_v28 = vadd.f32 %v9291_v15, %v4306_v5  ;;  %v4241_v32 = vld [vmem:[%s9936_s4 + $0x1e8] sm:$0xff]  ;;  %v4242_v17 = vld [vmem:[%s9936_s4 + $0x1f0] sm:$0xff] }
 0x406   :  { %4476 = vst.msk [vmem:[%s9939_s5 + $0x120] sm:$0xff] %vm20_vm0, %v4412_v61  ;;  %v4229_v61 = vld [vmem:[%s9936_s4 + $0x188] sm:$0xff]  ;;  %v4424_v63 = vadd.f32 %v4360_v20, %v4228_v62  ;;  %v4431_v46 = vadd.f32 %v4367_v30, %v4235_v27  ;;  %v4240_v13 = vld [vmem:[%s9936_s4 + $0x1e0] sm:$0xff] }
 0x407   :  { %4477 = vst.msk [vmem:[%s9939_s5 + $0x128] sm:$0xff] %vm20_vm0, %v4413_v19  ;;  %v4230_v19 = vld [vmem:[%s9936_s4 + $0x190] sm:$0xff]  ;;  %v4425_v48 = vadd.f32 %v4361_v43, %v4229_v61  ;;  %v4433_v47 = vadd.f32 %v4369_v50, %v4237_v0  ;;  %v4437_v53 = vadd.f32 %v4373_v28, %v4241_v32 }
 0x408   :  { %4478 = vst.msk [vmem:[%s9939_s5 + $0x130] sm:$0xff] %vm20_vm0, %v4414_v60  ;;  %v4231_v60 = vld [vmem:[%s9936_s4 + $0x198] sm:$0xff]  ;;  %v4426_v25 = vadd.f32 %v4362_v54, %v4230_v19 }
 0x409   :  { %4479 = vst.msk [vmem:[%s9939_s5 + $0x138] sm:$0xff] %vm20_vm0, %v4415_v24  ;;  %v4365_v24 = vadd.f32 %v9291_v15, %v4298_v59  ;;  %v4427_v2 = vadd.f32 %v4363_v37, %v4231_v60 }
 0x40a   :  { %4480 = vst.msk [vmem:[%s9939_s5 + $0x140] sm:$0xff] %vm20_vm0, %v4416_v57  ;;  %v4234_v57 = vld [vmem:[%s9936_s4 + $0x1b0] sm:$0xff] }
 0x40b   :  { %4481 = vst.msk [vmem:[%s9939_s5 + $0x148] sm:$0xff] %vm20_vm0, %v4417_v18  ;;  %v4303_v18 = vmul.f32 %v9287_v12, %v9217_v34  ;;  %v4429_v55 = vadd.f32 %v4365_v24, %v4233_v36  ;;  %v4430_v34 = vadd.f32 %v4366_v41, %v4234_v57 }
 0x40c   :  { %4482 = vst.msk [vmem:[%s9939_s5 + $0x150] sm:$0xff] %vm20_vm0, %v4418_v35  ;;  %v4305_v35 = vmul.f32 %v9287_v12, %v9234_v3  ;;  %v4432_v3 = vadd.f32 %v4368_v1, %v4236_v51  ;;  %v4374_v12 = vadd.f32 %v9291_v15, %v4307_v56 }
 0x40d   :  { %4483 = vst.msk [vmem:[%s9939_s5 + $0x158] sm:$0xff] %vm20_vm0, %v4419_v16  ;;  %v4370_v21 = vadd.f32 %v9291_v15, %v4303_v18 }
 0x40e   :  { %4484 = vst.msk [vmem:[%s9939_s5 + $0x160] sm:$0xff] %vm20_vm0, %v4420_v49  ;;  %v4372_v16 = vadd.f32 %v9291_v15, %v4305_v35  ;;  %v4435_v49 = vadd.f32 %v4371_v39, %v4239_v6  ;;  %v4243_v15 = vld [vmem:[%s9936_s4 + $0x1f8] sm:$0xff]  ;;  %v4438_v44 = vadd.f32 %v4374_v12, %v4242_v17 }
 0x40f   :  { %4485 = vst.msk [vmem:[%s9939_s5 + $0x168] sm:$0xff] %vm20_vm0, %v4421_v26  ;;  %v4434_v10 = vadd.f32 %v4370_v21, %v4238_v45  ;;  %v4439_v26 = vadd.f32 %v9743_v42, %v4243_v15 }
 0x410   :  { %4486 = vst.msk [vmem:[%s9939_s5 + $0x170] sm:$0xff] %vm20_vm0, %v4422_v23  ;;  %v4436_v20 = vadd.f32 %v4372_v16, %v4240_v13 }
 0x411   :  { %4487 = vst.msk [vmem:[%s9939_s5 + $0x178] sm:$0xff] %vm20_vm0, %v4423_v38 }
 0x412   :  { %4488 = vst.msk [vmem:[%s9939_s5 + $0x180] sm:$0xff] %vm20_vm0, %v4424_v63 }
 0x413   :  { %4489 = vst.msk [vmem:[%s9939_s5 + $0x188] sm:$0xff] %vm20_vm0, %v4425_v48 }
 0x414   :  { %4490 = vst.msk [vmem:[%s9939_s5 + $0x190] sm:$0xff] %vm20_vm0, %v4426_v25 }
 0x415   :  { %4491 = vst.msk [vmem:[%s9939_s5 + $0x198] sm:$0xff] %vm20_vm0, %v4427_v2 }
 0x416   :  { %4492 = vst.msk [vmem:[%s9939_s5 + $0x1a0] sm:$0xff] %vm20_vm0, %v4428_v31 }
 0x417   :  { %4493 = vst.msk [vmem:[%s9939_s5 + $0x1a8] sm:$0xff] %vm20_vm0, %v4429_v55 }
 0x418   :  { %4494 = vst.msk [vmem:[%s9939_s5 + $0x1b0] sm:$0xff] %vm20_vm0, %v4430_v34 }
 0x419   :  { %4495 = vst.msk [vmem:[%s9939_s5 + $0x1b8] sm:$0xff] %vm20_vm0, %v4431_v46 }
 0x41a   :  { %4496 = vst.msk [vmem:[%s9939_s5 + $0x1c0] sm:$0xff] %vm20_vm0, %v4432_v3 }
 0x41b   :  { %4497 = vst.msk [vmem:[%s9939_s5 + $0x1c8] sm:$0xff] %vm20_vm0, %v4433_v47 }
 0x41c   :  { %4498 = vst.msk [vmem:[%s9939_s5 + $0x1d0] sm:$0xff] %vm20_vm0, %v4434_v10 }
 0x41d   :  { %4499 = vst.msk [vmem:[%s9939_s5 + $0x1d8] sm:$0xff] %vm20_vm0, %v4435_v49 }
 0x41e   :  { %4500 = vst.msk [vmem:[%s9939_s5 + $0x1e0] sm:$0xff] %vm20_vm0, %v4436_v20 }
 0x41f   :  { %4501 = vst.msk [vmem:[%s9939_s5 + $0x1e8] sm:$0xff] %vm20_vm0, %v4437_v53 }
 0x420   :  { %4502 = vst.msk [vmem:[%s9939_s5 + $0x1f0] sm:$0xff] %vm20_vm0, %v4438_v44 }
 0x421   :  { %4503 = vst.msk [vmem:[%s9939_s5 + $0x1f8] sm:$0xff] %vm20_vm0, %v4439_v26 }

</bundles_post_ra>
